<compile_context>
chip_gen: v5e
topology: v5e:2x2
jax: 0.10.0
libtpu: 0.0.40
codegen_flags: <defaults>
</compile_context>

<pallas_src>
import jax
import jax.numpy as jnp
from jax.experimental import pallas as pl
from jax.experimental.pallas import tpu as pltpu

_PAD = 128          # halo width (flattened pixels) on each side of the flat pad buffers
_COL_BUDGET = 2048  # max pixel-columns processed per grid step (VMEM / vreg pressure cap)


def _make_kernel(BB, H, W, HWp):
    HW = H * W
    N = BB * HWp
    bf16 = jnp.bfloat16
    f32 = jnp.float32

    def kernel(x_ref, mask_ref, wf_ref,
               b1_ref, b5a_ref, b3a_ref,
               w5b_ref, b5b_ref,
               w3b_ref, b3b_ref,
               w3c_ref, b3c_ref,
               bp_ref,
               out_ref,
               padA, padB, padC, padP):
        # ---- zero only the halo strips of the flat pad buffers (interiors are
        #      fully rewritten every step; halos must be finite so that
        #      mask * halo == 0 exactly) ----
        for pad_ref in (padA, padB, padC, padP):
            c = pad_ref.shape[0]
            z = jnp.zeros((c, _PAD), bf16)
            pad_ref[:, 0:_PAD] = z
            pad_ref[:, _PAD + N:_PAD + N + _PAD] = z

        def mask_row(oy, ox):
            idx = (oy + 2) * 5 + (ox + 2)
            return mask_ref[idx:idx + 1, :]                 # (1, N) bf16 {0,1}

        def store_branch(c0, c1, val):
            # channel offsets 0/16/40/64 are sublane-aligned; HWp is a multiple
            # of 128 so every store is a lane-dense, unmasked vst.
            for b in range(BB):
                out_ref[b, c0:c1, :] = val[:, b * HWp:(b + 1) * HWp]

        # ---- all four 1x1 convs over x fused into ONE bf16 MXU matmul ----
        t = jnp.dot(wf_ref[...], x_ref[...], preferred_element_type=f32)   # (72, N)

        # branch1x1 — store immediately (kills the 16xN slab's liveness)
        store_branch(0, 16, t[0:16, :] + b1_ref[...])

        # seed the bf16 flat pad interiors for the spatial convs / pooling
        padA[:, _PAD:_PAD + N] = (t[16:32, :] + b5a_ref[...]).astype(bf16)
        padB[:, _PAD:_PAD + N] = (t[32:48, :] + b3a_ref[...]).astype(bf16)
        padP[:, _PAD:_PAD + N] = t[48:72, :].astype(bf16)   # pool bias added after pooling

        # ---- kxk "same" conv: k^2 shifted-slice matmuls with f32 accumulation.
        #      The {0,1} mask implements the zero padding at image borders, and
        #      the masked operand feeds the MXU directly (no im2col store). ----
        def conv_taps(pad_ref, w_ref, k, cout):
            r = (k - 1) // 2
            acc = jnp.zeros((cout, N), f32)
            tap = 0
            for oy in range(-r, r + 1):
                for ox in range(-r, r + 1):
                    s = oy * W + ox
                    operand = (pad_ref[:, _PAD + s:_PAD + s + N]
                               * mask_row(oy, ox))          # (cin, N) bf16
                    acc = acc + jnp.dot(w_ref[tap], operand,
                                        preferred_element_type=f32)
                    tap += 1
            return acc

        # branch 5x5: 1x1 (above) -> 5x5, pad 2
        store_branch(16, 40, conv_taps(padA, w5b_ref, 5, 24) + b5b_ref[...])

        # branch 3x3 double: 1x1 (above) -> 3x3 -> 3x3
        mid = conv_taps(padB, w3b_ref, 3, 24) + b3b_ref[...]
        padC[:, _PAD:_PAD + N] = mid.astype(bf16)
        store_branch(40, 64, conv_taps(padC, w3c_ref, 3, 24) + b3c_ref[...])

        # branch pool: avg_pool3x3(wp @ x) + bp  (pool and 1x1 commute);
        # count_include_pad=True -> divide by 9 everywhere (PyTorch default).
        psum = jnp.zeros((24, N), f32)
        for oy in (-1, 0, 1):
            for ox in (-1, 0, 1):
                s = oy * W + ox
                psum = psum + (padP[:, _PAD + s:_PAD + s + N] * mask_row(oy, ox))
        store_branch(64, 88, psum * (1.0 / 9.0) + bp_ref[...])

    return kernel


def inception_a_pallas(x_nchw, params):
    B, Cin, H, W = x_nchw.shape
    HW = H * W
    assert 2 * W + 2 <= _PAD, "flat halo too small for this W"

    HWp = ((HW + 127) // 128) * 128          # lane-pad the pixel axis
    Cin_p = ((Cin + 7) // 8) * 8             # sublane-pad the input channels

    # Batch block per grid step: prefer >= 3 grid steps (steady-state DMA
    # pipelining), then >= 2 (both v7x TensorCores), while keeping the per-step
    # column count within the VMEM / vreg budget.
    divisors = [d for d in range(1, B + 1)
                if B % d == 0 and d * HWp <= _COL_BUDGET]
    if not divisors:
        divisors = [1]
    BB = divisors[0]
    for min_steps in (3, 2, 1):
        cands = [d for d in divisors if B // d >= min_steps]
        if cands:
            BB = max(cands)
            break
    G = B // BB
    N = BB * HWp

    # ---- channel-major activations (Cin_p, B*HWp): columns ordered (b, y, x),
    #      lane-padded per image, cast to bf16 (halves HBM traffic) ----
    x_cm = jnp.transpose(x_nchw.astype(jnp.float32), (1, 0, 2, 3)).reshape(Cin, B, HW)
    if HWp != HW:
        x_cm = jnp.pad(x_cm, ((0, 0), (0, 0), (0, HWp - HW)))
    x_cm = x_cm.reshape(Cin, B * HWp)
    if Cin_p != Cin:
        x_cm = jnp.pad(x_cm, ((0, Cin_p - Cin), (0, 0)))
    x_cm = x_cm.astype(jnp.bfloat16)

    # ---- {0,1} validity masks for every (dy, dx) in [-2, 2]^2 (bf16).  They
    #      implement the zero padding of the 3x3/5x5 convs and of avg_pool at
    #      image borders (and zero out the per-image lane-padding columns). ----
    n = jnp.arange(N, dtype=jnp.int32)
    rem = n % HWp
    xi = rem % W
    yi = rem // W
    valid = rem < HW
    rows = []
    for oy in range(-2, 3):
        for ox in range(-2, 3):
            rows.append(valid & (xi + ox >= 0) & (xi + ox < W)
                        & (yi + oy >= 0) & (yi + oy < H))
    mask25 = jnp.stack(rows, axis=0).astype(jnp.bfloat16)          # (25, N)

    def w_1x1(w):            # (Cout, Cin, 1, 1) -> (Cout, Cin_p) bf16
        wm = w[:, :, 0, 0].astype(jnp.float32)
        if Cin_p != Cin:
            wm = jnp.pad(wm, ((0, 0), (0, Cin_p - Cin)))
        return wm.astype(jnp.bfloat16)

    def w_taps(w):           # (Cout, Cin, k, k) -> (k*k, Cout, Cin) bf16, tap-major
        cout, cin, k, _ = w.shape
        return jnp.transpose(w, (2, 3, 0, 1)).reshape(k * k, cout, cin).astype(jnp.bfloat16)

    def b_col(b):
        return b.reshape(-1, 1).astype(jnp.float32)

    # Fused 1x1 weights: rows = [w1 | w5a | w3a | wp] -> (72, Cin_p).
    wf = jnp.concatenate([w_1x1(params["w1"]), w_1x1(params["w5a"]),
                          w_1x1(params["w3a"]), w_1x1(params["wp"])], axis=0)

    args = [
        x_cm, mask25, wf,
        b_col(params["b1"]), b_col(params["b5a"]), b_col(params["b3a"]),
        w_taps(params["w5b"]), b_col(params["b5b"]),
        w_taps(params["w3b"]), b_col(params["b3b"]),
        w_taps(params["w3c"]), b_col(params["b3c"]),
        b_col(params["bp"]),
    ]

    in_specs = [pl.BlockSpec((Cin_p, N), lambda i: (0, i))]
    in_specs += [pl.BlockSpec(a.shape, lambda i, _nd=a.ndim: (0,) * _nd)
                 for a in args[1:]]
    out_spec = pl.BlockSpec((BB, 88, HWp), lambda i: (i, 0, 0))

    # Explicit VMEM budget: double-buffered blocks + persistent scratch + live values.
    est = (2 * Cin_p * N * 2          # x block (bf16), double-buffered
           + 2 * 25 * N * 2           # masks (bf16, constant index -> fetched once)
           + 2 * 88 * N * 4           # output block (f32), double-buffered
           + 80 * (N + 2 * _PAD) * 2  # bf16 flat pad scratch buffers
           + 160 * N * 4              # transient f32 live values (t + accumulators)
           + (1 << 21))               # weights / biases / slack
    vmem_limit = int(min(64 * 2 ** 20, max(24 * 2 ** 20, 2 * est)))

    out = pl.pallas_call(
        _make_kernel(BB, H, W, HWp),
        out_shape=jax.ShapeDtypeStruct((B, 88, HWp), jnp.float32),
        grid_spec=pltpu.PrefetchScalarGridSpec(
            num_scalar_prefetch=0,
            grid=(G,),
            in_specs=in_specs,
            out_specs=out_spec,
            scratch_shapes=[
                pltpu.VMEM((16, N + 2 * _PAD), jnp.bfloat16),   # flat pad: 5x5 input
                pltpu.VMEM((16, N + 2 * _PAD), jnp.bfloat16),   # flat pad: 3x3 #1 input
                pltpu.VMEM((24, N + 2 * _PAD), jnp.bfloat16),   # flat pad: 3x3 #2 input
                pltpu.VMEM((24, N + 2 * _PAD), jnp.bfloat16),   # flat pad: pool input
            ],
        ),
        compiler_params=pltpu.CompilerParams(
            dimension_semantics=("parallel",),
            vmem_limit_bytes=vmem_limit),
    )(*args)

    if HWp != HW:
        out = out[:, :, :HW]
    # (B, 88, H*W) is already NCHW up to a metadata reshape — no transpose.
    return out.reshape(B, 88, H, W)


def _ref_forward(x, params):
    """Pure-JAX f32 NCHW reference (mirrors the PyTorch forward)."""
    def conv(inp, w, b, pad):
        y = jax.lax.conv_general_dilated(
            inp, w, window_strides=(1, 1),
            padding=[(pad, pad), (pad, pad)],
            dimension_numbers=("NCHW", "OIHW", "NCHW"))
        return y + b.reshape(1, -1, 1, 1)

    br1 = conv(x, params["w1"], params["b1"], 0)
    b5 = conv(x, params["w5a"], params["b5a"], 0)
    b5 = conv(b5, params["w5b"], params["b5b"], 2)
    b3 = conv(x, params["w3a"], params["b3a"], 0)
    b3 = conv(b3, params["w3b"], params["b3b"], 1)
    b3 = conv(b3, params["w3c"], params["b3c"], 1)
    bp = jax.lax.reduce_window(
        x, 0.0, jax.lax.add, (1, 1, 3, 3), (1, 1, 1, 1),
        [(0, 0), (0, 0), (1, 1), (1, 1)]) / 9.0
    bp = conv(bp, params["wp"], params["bp"], 0)
    return jnp.concatenate([br1, b5, b3, bp], axis=1)


def _init_conv(key, cout, cin, k):
    kw, kb = jax.random.split(key)
    fan_in = cin * k * k
    bound = 1.0 / (fan_in ** 0.5)
    w = jax.random.uniform(kw, (cout, cin, k, k), jnp.float32, -bound, bound)
    b = jax.random.uniform(kb, (cout,), jnp.float32, -bound, bound)
    return w, b


if __name__ == "__main__":
    B, Cin, H, W = 2, 4, 16, 16
    keys = jax.random.split(jax.random.PRNGKey(0), 8)

    params = {}
    params["w1"], params["b1"] = _init_conv(keys[0], 16, Cin, 1)
    params["w5a"], params["b5a"] = _init_conv(keys[1], 16, Cin, 1)
    params["w5b"], params["b5b"] = _init_conv(keys[2], 24, 16, 5)
    params["w3a"], params["b3a"] = _init_conv(keys[3], 16, Cin, 1)
    params["w3b"], params["b3b"] = _init_conv(keys[4], 24, 16, 3)
    params["w3c"], params["b3c"] = _init_conv(keys[5], 24, 24, 3)
    params["wp"], params["bp"] = _init_conv(keys[6], 24, Cin, 1)

    x = jax.random.normal(keys[7], (B, Cin, H, W), jnp.float32)

    out = jax.block_until_ready(inception_a_pallas(x, params))
    assert out.shape == (B, 88, H, W), out.shape

    ref = jax.block_until_ready(_ref_forward(x, params))
    # bf16 operands with f32 accumulation: tolerance loosened vs. the f32 reference.
    max_err = float(jnp.max(jnp.abs(out - ref)))
    mean_err = float(jnp.mean(jnp.abs(out - ref)))
    if not (max_err < 5e-2 and mean_err < 1e-2):
        raise RuntimeError(
            f"Pallas InceptionA output does not match reference "
            f"(max_err={max_err:.4f}, mean_err={mean_err:.5f})")

    print("KERNEL_OK")
</pallas_src>

<mosaic_0001>
module attributes {stable_mosaic.version = 11 : i64} {
  func.func @kernel(%arg0: i32, %arg1: memref<8x256xbf16, #tpu.memory_space<vmem>>, %arg2: memref<25x256xbf16, #tpu.memory_space<vmem>>, %arg3: memref<72x8xbf16, #tpu.memory_space<vmem>>, %arg4: memref<16x1xf32, #tpu.memory_space<vmem>>, %arg5: memref<16x1xf32, #tpu.memory_space<vmem>>, %arg6: memref<16x1xf32, #tpu.memory_space<vmem>>, %arg7: memref<25x24x16xbf16, #tpu.memory_space<vmem>>, %arg8: memref<24x1xf32, #tpu.memory_space<vmem>>, %arg9: memref<9x24x16xbf16, #tpu.memory_space<vmem>>, %arg10: memref<24x1xf32, #tpu.memory_space<vmem>>, %arg11: memref<9x24x24xbf16, #tpu.memory_space<vmem>>, %arg12: memref<24x1xf32, #tpu.memory_space<vmem>>, %arg13: memref<24x1xf32, #tpu.memory_space<vmem>>, %arg14: memref<1x88x256xf32, #tpu.memory_space<vmem>>, %arg15: memref<16x512xbf16, #tpu.memory_space<vmem>>, %arg16: memref<16x512xbf16, #tpu.memory_space<vmem>>, %arg17: memref<24x512xbf16, #tpu.memory_space<vmem>>, %arg18: memref<24x512xbf16, #tpu.memory_space<vmem>>) attributes {dimension_semantics = [#tpu.dimension_semantics<parallel>], iteration_bounds = array<i64: 2>, scalar_prefetch = 0 : i64, scratch_operands = 4 : i64, tpu.core_type = #tpu.core_type<tc>, window_params = [{transform_indices = @transform_0, window_bounds = array<i64: 8, 256>}, {pipeline_mode = #tpu.pipeline_mode<synchronous>, transform_indices = @transform_1, window_bounds = array<i64: 25, 256>}, {pipeline_mode = #tpu.pipeline_mode<synchronous>, transform_indices = @transform_2, window_bounds = array<i64: 72, 8>}, {pipeline_mode = #tpu.pipeline_mode<synchronous>, transform_indices = @transform_3, window_bounds = array<i64: 16, 1>}, {pipeline_mode = #tpu.pipeline_mode<synchronous>, transform_indices = @transform_4, window_bounds = array<i64: 16, 1>}, {pipeline_mode = #tpu.pipeline_mode<synchronous>, transform_indices = @transform_5, window_bounds = array<i64: 16, 1>}, {pipeline_mode = #tpu.pipeline_mode<synchronous>, transform_indices = @transform_6, window_bounds = array<i64: 25, 24, 16>}, {pipeline_mode = #tpu.pipeline_mode<synchronous>, transform_indices = @transform_7, window_bounds = array<i64: 24, 1>}, {pipeline_mode = #tpu.pipeline_mode<synchronous>, transform_indices = @transform_8, window_bounds = array<i64: 9, 24, 16>}, {pipeline_mode = #tpu.pipeline_mode<synchronous>, transform_indices = @transform_9, window_bounds = array<i64: 24, 1>}, {pipeline_mode = #tpu.pipeline_mode<synchronous>, transform_indices = @transform_10, window_bounds = array<i64: 9, 24, 24>}, {pipeline_mode = #tpu.pipeline_mode<synchronous>, transform_indices = @transform_11, window_bounds = array<i64: 24, 1>}, {pipeline_mode = #tpu.pipeline_mode<synchronous>, transform_indices = @transform_12, window_bounds = array<i64: 24, 1>}, {transform_indices = @transform_13, window_bounds = array<i64: 1, 88, 256>}]} {
    %cst = arith.constant 0.000000e+00 : bf16
    %0 = vector.broadcast %cst : bf16 to vector<16x128xbf16>
    %c0 = arith.constant 0 : index
    %c0_0 = arith.constant 0 : index
    %1 = vector.load %arg15[%c0, %c0_0] : memref<16x512xbf16, #tpu.memory_space<vmem>>, vector<16x128xbf16>
    tpu.vector_store %arg15[%c0, %c0_0], %0 {strides = array<i32>} : memref<16x512xbf16, #tpu.memory_space<vmem>>, vector<16x128xbf16>,
    %c0_1 = arith.constant 0 : index
    %c384 = arith.constant 384 : index
    %2 = vector.load %arg15[%c0_1, %c384] : memref<16x512xbf16, #tpu.memory_space<vmem>>, vector<16x128xbf16>
    tpu.vector_store %arg15[%c0_1, %c384], %0 {strides = array<i32>} : memref<16x512xbf16, #tpu.memory_space<vmem>>, vector<16x128xbf16>,
    %cst_2 = arith.constant 0.000000e+00 : bf16
    %3 = vector.broadcast %cst_2 : bf16 to vector<16x128xbf16>
    %c0_3 = arith.constant 0 : index
    %c0_4 = arith.constant 0 : index
    %4 = vector.load %arg16[%c0_3, %c0_4] : memref<16x512xbf16, #tpu.memory_space<vmem>>, vector<16x128xbf16>
    tpu.vector_store %arg16[%c0_3, %c0_4], %3 {strides = array<i32>} : memref<16x512xbf16, #tpu.memory_space<vmem>>, vector<16x128xbf16>,
    %c0_5 = arith.constant 0 : index
    %c384_6 = arith.constant 384 : index
    %5 = vector.load %arg16[%c0_5, %c384_6] : memref<16x512xbf16, #tpu.memory_space<vmem>>, vector<16x128xbf16>
    tpu.vector_store %arg16[%c0_5, %c384_6], %3 {strides = array<i32>} : memref<16x512xbf16, #tpu.memory_space<vmem>>, vector<16x128xbf16>,
    %cst_7 = arith.constant 0.000000e+00 : bf16
    %6 = vector.broadcast %cst_7 : bf16 to vector<24x128xbf16>
    %c0_8 = arith.constant 0 : index
    %c0_9 = arith.constant 0 : index
    %7 = vector.load %arg17[%c0_8, %c0_9] : memref<24x512xbf16, #tpu.memory_space<vmem>>, vector<24x128xbf16>
    tpu.vector_store %arg17[%c0_8, %c0_9], %6 {strides = array<i32>} : memref<24x512xbf16, #tpu.memory_space<vmem>>, vector<24x128xbf16>,
    %c0_10 = arith.constant 0 : index
    %c384_11 = arith.constant 384 : index
    %8 = vector.load %arg17[%c0_10, %c384_11] : memref<24x512xbf16, #tpu.memory_space<vmem>>, vector<24x128xbf16>
    tpu.vector_store %arg17[%c0_10, %c384_11], %6 {strides = array<i32>} : memref<24x512xbf16, #tpu.memory_space<vmem>>, vector<24x128xbf16>,
    %cst_12 = arith.constant 0.000000e+00 : bf16
    %9 = vector.broadcast %cst_12 : bf16 to vector<24x128xbf16>
    %c0_13 = arith.constant 0 : index
    %c0_14 = arith.constant 0 : index
    %10 = vector.load %arg18[%c0_13, %c0_14] : memref<24x512xbf16, #tpu.memory_space<vmem>>, vector<24x128xbf16>
    tpu.vector_store %arg18[%c0_13, %c0_14], %9 {strides = array<i32>} : memref<24x512xbf16, #tpu.memory_space<vmem>>, vector<24x128xbf16>,
    %c0_15 = arith.constant 0 : index
    %c384_16 = arith.constant 384 : index
    %11 = vector.load %arg18[%c0_15, %c384_16] : memref<24x512xbf16, #tpu.memory_space<vmem>>, vector<24x128xbf16>
    tpu.vector_store %arg18[%c0_15, %c384_16], %9 {strides = array<i32>} : memref<24x512xbf16, #tpu.memory_space<vmem>>, vector<24x128xbf16>,
    %c0_17 = arith.constant 0 : index
    %c0_18 = arith.constant 0 : index
    %12 = vector.load %arg3[%c0_17, %c0_18] : memref<72x8xbf16, #tpu.memory_space<vmem>>, vector<72x8xbf16>
    %c0_19 = arith.constant 0 : index
    %c0_20 = arith.constant 0 : index
    %13 = vector.load %arg1[%c0_19, %c0_20] : memref<8x256xbf16, #tpu.memory_space<vmem>>, vector<8x256xbf16>
    %cst_21 = arith.constant dense<0.000000e+00> : vector<72x256xf32>
    %14 = tpu.matmul %12, %13, %cst_21 {dimension_numbers = #tpu.dot_dimension_numbers<[1], [0], [0], [1], [0, 0, 1, 1], [], []>} : vector<72x8xbf16>, vector<8x256xbf16>, vector<72x256xf32> -> vector<72x256xf32>
    %15 = vector.extract_strided_slice %14 {offsets = [0, 0], sizes = [16, 256], strides = [1, 1]} : vector<72x256xf32> to vector<16x256xf32>
    %c0_22 = arith.constant 0 : index
    %c0_23 = arith.constant 0 : index
    %16 = vector.load %arg4[%c0_22, %c0_23] : memref<16x1xf32, #tpu.memory_space<vmem>>, vector<16x1xf32>
    %17 = vector.broadcast %16 : vector<16x1xf32> to vector<16x256xf32>
    %18 = arith.addf %15, %17 : vector<16x256xf32>
    %c0_24 = arith.constant 0 : index
    %c0_25 = arith.constant 0 : index
    %c0_26 = arith.constant 0 : index
    %19 = vector.load %arg14[%c0_24, %c0_25, %c0_26] : memref<1x88x256xf32, #tpu.memory_space<vmem>>, vector<1x16x256xf32>
    %20 = vector.shape_cast %19 : vector<1x16x256xf32> to vector<16x256xf32>
    %21 = vector.shape_cast %18 : vector<16x256xf32> to vector<1x16x256xf32>
    tpu.vector_store %arg14[%c0_24, %c0_25, %c0_26], %21 {strides = array<i32>} : memref<1x88x256xf32, #tpu.memory_space<vmem>>, vector<1x16x256xf32>,
    %22 = vector.extract_strided_slice %14 {offsets = [16, 0], sizes = [16, 256], strides = [1, 1]} : vector<72x256xf32> to vector<16x256xf32>
    %c0_27 = arith.constant 0 : index
    %c0_28 = arith.constant 0 : index
    %23 = vector.load %arg5[%c0_27, %c0_28] : memref<16x1xf32, #tpu.memory_space<vmem>>, vector<16x1xf32>
    %24 = vector.broadcast %23 : vector<16x1xf32> to vector<16x256xf32>
    %25 = arith.addf %22, %24 : vector<16x256xf32>
    %26 = arith.truncf %25 : vector<16x256xf32> to vector<16x256xbf16>
    %c0_29 = arith.constant 0 : index
    %c128 = arith.constant 128 : index
    %27 = vector.load %arg15[%c0_29, %c128] : memref<16x512xbf16, #tpu.memory_space<vmem>>, vector<16x256xbf16>
    tpu.vector_store %arg15[%c0_29, %c128], %26 {strides = array<i32>} : memref<16x512xbf16, #tpu.memory_space<vmem>>, vector<16x256xbf16>,
    %28 = vector.extract_strided_slice %14 {offsets = [32, 0], sizes = [16, 256], strides = [1, 1]} : vector<72x256xf32> to vector<16x256xf32>
    %c0_30 = arith.constant 0 : index
    %c0_31 = arith.constant 0 : index
    %29 = vector.load %arg6[%c0_30, %c0_31] : memref<16x1xf32, #tpu.memory_space<vmem>>, vector<16x1xf32>
    %30 = vector.broadcast %29 : vector<16x1xf32> to vector<16x256xf32>
    %31 = arith.addf %28, %30 : vector<16x256xf32>
    %32 = arith.truncf %31 : vector<16x256xf32> to vector<16x256xbf16>
    %c0_32 = arith.constant 0 : index
    %c128_33 = arith.constant 128 : index
    %33 = vector.load %arg16[%c0_32, %c128_33] : memref<16x512xbf16, #tpu.memory_space<vmem>>, vector<16x256xbf16>
    tpu.vector_store %arg16[%c0_32, %c128_33], %32 {strides = array<i32>} : memref<16x512xbf16, #tpu.memory_space<vmem>>, vector<16x256xbf16>,
    %34 = vector.extract_strided_slice %14 {offsets = [48, 0], sizes = [24, 256], strides = [1, 1]} : vector<72x256xf32> to vector<24x256xf32>
    %35 = arith.truncf %34 : vector<24x256xf32> to vector<24x256xbf16>
    %c0_34 = arith.constant 0 : index
    %c128_35 = arith.constant 128 : index
    %36 = vector.load %arg18[%c0_34, %c128_35] : memref<24x512xbf16, #tpu.memory_space<vmem>>, vector<24x256xbf16>
    tpu.vector_store %arg18[%c0_34, %c128_35], %35 {strides = array<i32>} : memref<24x512xbf16, #tpu.memory_space<vmem>>, vector<24x256xbf16>,
    %cst_36 = arith.constant 0.000000e+00 : f32
    %37 = vector.broadcast %cst_36 : f32 to vector<24x256xf32>
    %c0_37 = arith.constant 0 : index
    %c94 = arith.constant 94 : index
    %38 = vector.load %arg15[%c0_37, %c94] : memref<16x512xbf16, #tpu.memory_space<vmem>>, vector<16x256xbf16>
    %c0_38 = arith.constant 0 : index
    %c0_39 = arith.constant 0 : index
    %39 = vector.load %arg2[%c0_38, %c0_39] : memref<25x256xbf16, #tpu.memory_space<vmem>>, vector<1x256xbf16>
    %40 = vector.broadcast %39 : vector<1x256xbf16> to vector<16x256xbf16>
    %41 = arith.mulf %38, %40 : vector<16x256xbf16>
    %c0_40 = arith.constant 0 : index
    %c0_41 = arith.constant 0 : index
    %c0_42 = arith.constant 0 : index
    %42 = vector.load %arg7[%c0_40, %c0_41, %c0_42] : memref<25x24x16xbf16, #tpu.memory_space<vmem>>, vector<1x24x16xbf16>
    %43 = vector.shape_cast %42 : vector<1x24x16xbf16> to vector<24x16xbf16>
    %cst_43 = arith.constant dense<0.000000e+00> : vector<24x256xf32>
    %44 = tpu.matmul %43, %41, %cst_43 {dimension_numbers = #tpu.dot_dimension_numbers<[1], [0], [0], [1], [0, 0, 1, 1], [], []>} : vector<24x16xbf16>, vector<16x256xbf16>, vector<24x256xf32> -> vector<24x256xf32>
    %45 = arith.addf %37, %44 : vector<24x256xf32>
    %c0_44 = arith.constant 0 : index
    %c95 = arith.constant 95 : index
    %46 = vector.load %arg15[%c0_44, %c95] : memref<16x512xbf16, #tpu.memory_space<vmem>>, vector<16x256xbf16>
    %c1 = arith.constant 1 : index
    %c0_45 = arith.constant 0 : index
    %47 = vector.load %arg2[%c1, %c0_45] : memref<25x256xbf16, #tpu.memory_space<vmem>>, vector<1x256xbf16>
    %48 = vector.broadcast %47 : vector<1x256xbf16> to vector<16x256xbf16>
    %49 = arith.mulf %46, %48 : vector<16x256xbf16>
    %c1_46 = arith.constant 1 : index
    %c0_47 = arith.constant 0 : index
    %c0_48 = arith.constant 0 : index
    %50 = vector.load %arg7[%c1_46, %c0_47, %c0_48] : memref<25x24x16xbf16, #tpu.memory_space<vmem>>, vector<1x24x16xbf16>
    %51 = vector.shape_cast %50 : vector<1x24x16xbf16> to vector<24x16xbf16>
    %cst_49 = arith.constant dense<0.000000e+00> : vector<24x256xf32>
    %52 = tpu.matmul %51, %49, %cst_49 {dimension_numbers = #tpu.dot_dimension_numbers<[1], [0], [0], [1], [0, 0, 1, 1], [], []>} : vector<24x16xbf16>, vector<16x256xbf16>, vector<24x256xf32> -> vector<24x256xf32>
    %53 = arith.addf %45, %52 : vector<24x256xf32>
    %c0_50 = arith.constant 0 : index
    %c96 = arith.constant 96 : index
    %54 = vector.load %arg15[%c0_50, %c96] : memref<16x512xbf16, #tpu.memory_space<vmem>>, vector<16x256xbf16>
    %c2 = arith.constant 2 : index
    %c0_51 = arith.constant 0 : index
    %55 = vector.load %arg2[%c2, %c0_51] : memref<25x256xbf16, #tpu.memory_space<vmem>>, vector<1x256xbf16>
    %56 = vector.broadcast %55 : vector<1x256xbf16> to vector<16x256xbf16>
    %57 = arith.mulf %54, %56 : vector<16x256xbf16>
    %c2_52 = arith.constant 2 : index
    %c0_53 = arith.constant 0 : index
    %c0_54 = arith.constant 0 : index
    %58 = vector.load %arg7[%c2_52, %c0_53, %c0_54] : memref<25x24x16xbf16, #tpu.memory_space<vmem>>, vector<1x24x16xbf16>
    %59 = vector.shape_cast %58 : vector<1x24x16xbf16> to vector<24x16xbf16>
    %cst_55 = arith.constant dense<0.000000e+00> : vector<24x256xf32>
    %60 = tpu.matmul %59, %57, %cst_55 {dimension_numbers = #tpu.dot_dimension_numbers<[1], [0], [0], [1], [0, 0, 1, 1], [], []>} : vector<24x16xbf16>, vector<16x256xbf16>, vector<24x256xf32> -> vector<24x256xf32>
    %61 = arith.addf %53, %60 : vector<24x256xf32>
    %c0_56 = arith.constant 0 : index
    %c97 = arith.constant 97 : index
    %62 = vector.load %arg15[%c0_56, %c97] : memref<16x512xbf16, #tpu.memory_space<vmem>>, vector<16x256xbf16>
    %c3 = arith.constant 3 : index
    %c0_57 = arith.constant 0 : index
    %63 = vector.load %arg2[%c3, %c0_57] : memref<25x256xbf16, #tpu.memory_space<vmem>>, vector<1x256xbf16>
    %64 = vector.broadcast %63 : vector<1x256xbf16> to vector<16x256xbf16>
    %65 = arith.mulf %62, %64 : vector<16x256xbf16>
    %c3_58 = arith.constant 3 : index
    %c0_59 = arith.constant 0 : index
    %c0_60 = arith.constant 0 : index
    %66 = vector.load %arg7[%c3_58, %c0_59, %c0_60] : memref<25x24x16xbf16, #tpu.memory_space<vmem>>, vector<1x24x16xbf16>
    %67 = vector.shape_cast %66 : vector<1x24x16xbf16> to vector<24x16xbf16>
    %cst_61 = arith.constant dense<0.000000e+00> : vector<24x256xf32>
    %68 = tpu.matmul %67, %65, %cst_61 {dimension_numbers = #tpu.dot_dimension_numbers<[1], [0], [0], [1], [0, 0, 1, 1], [], []>} : vector<24x16xbf16>, vector<16x256xbf16>, vector<24x256xf32> -> vector<24x256xf32>
    %69 = arith.addf %61, %68 : vector<24x256xf32>
    %c0_62 = arith.constant 0 : index
    %c98 = arith.constant 98 : index
    %70 = vector.load %arg15[%c0_62, %c98] : memref<16x512xbf16, #tpu.memory_space<vmem>>, vector<16x256xbf16>
    %c4 = arith.constant 4 : index
    %c0_63 = arith.constant 0 : index
    %71 = vector.load %arg2[%c4, %c0_63] : memref<25x256xbf16, #tpu.memory_space<vmem>>, vector<1x256xbf16>
    %72 = vector.broadcast %71 : vector<1x256xbf16> to vector<16x256xbf16>
    %73 = arith.mulf %70, %72 : vector<16x256xbf16>
    %c4_64 = arith.constant 4 : index
    %c0_65 = arith.constant 0 : index
    %c0_66 = arith.constant 0 : index
    %74 = vector.load %arg7[%c4_64, %c0_65, %c0_66] : memref<25x24x16xbf16, #tpu.memory_space<vmem>>, vector<1x24x16xbf16>
    %75 = vector.shape_cast %74 : vector<1x24x16xbf16> to vector<24x16xbf16>
    %cst_67 = arith.constant dense<0.000000e+00> : vector<24x256xf32>
    %76 = tpu.matmul %75, %73, %cst_67 {dimension_numbers = #tpu.dot_dimension_numbers<[1], [0], [0], [1], [0, 0, 1, 1], [], []>} : vector<24x16xbf16>, vector<16x256xbf16>, vector<24x256xf32> -> vector<24x256xf32>
    %77 = arith.addf %69, %76 : vector<24x256xf32>
    %c0_68 = arith.constant 0 : index
    %c110 = arith.constant 110 : index
    %78 = vector.load %arg15[%c0_68, %c110] : memref<16x512xbf16, #tpu.memory_space<vmem>>, vector<16x256xbf16>
    %c5 = arith.constant 5 : index
    %c0_69 = arith.constant 0 : index
    %79 = vector.load %arg2[%c5, %c0_69] : memref<25x256xbf16, #tpu.memory_space<vmem>>, vector<1x256xbf16>
    %80 = vector.broadcast %79 : vector<1x256xbf16> to vector<16x256xbf16>
    %81 = arith.mulf %78, %80 : vector<16x256xbf16>
    %c5_70 = arith.constant 5 : index
    %c0_71 = arith.constant 0 : index
    %c0_72 = arith.constant 0 : index
    %82 = vector.load %arg7[%c5_70, %c0_71, %c0_72] : memref<25x24x16xbf16, #tpu.memory_space<vmem>>, vector<1x24x16xbf16>
    %83 = vector.shape_cast %82 : vector<1x24x16xbf16> to vector<24x16xbf16>
    %cst_73 = arith.constant dense<0.000000e+00> : vector<24x256xf32>
    %84 = tpu.matmul %83, %81, %cst_73 {dimension_numbers = #tpu.dot_dimension_numbers<[1], [0], [0], [1], [0, 0, 1, 1], [], []>} : vector<24x16xbf16>, vector<16x256xbf16>, vector<24x256xf32> -> vector<24x256xf32>
    %85 = arith.addf %77, %84 : vector<24x256xf32>
    %c0_74 = arith.constant 0 : index
    %c111 = arith.constant 111 : index
    %86 = vector.load %arg15[%c0_74, %c111] : memref<16x512xbf16, #tpu.memory_space<vmem>>, vector<16x256xbf16>
    %c6 = arith.constant 6 : index
    %c0_75 = arith.constant 0 : index
    %87 = vector.load %arg2[%c6, %c0_75] : memref<25x256xbf16, #tpu.memory_space<vmem>>, vector<1x256xbf16>
    %88 = vector.broadcast %87 : vector<1x256xbf16> to vector<16x256xbf16>
    %89 = arith.mulf %86, %88 : vector<16x256xbf16>
    %c6_76 = arith.constant 6 : index
    %c0_77 = arith.constant 0 : index
    %c0_78 = arith.constant 0 : index
    %90 = vector.load %arg7[%c6_76, %c0_77, %c0_78] : memref<25x24x16xbf16, #tpu.memory_space<vmem>>, vector<1x24x16xbf16>
    %91 = vector.shape_cast %90 : vector<1x24x16xbf16> to vector<24x16xbf16>
    %cst_79 = arith.constant dense<0.000000e+00> : vector<24x256xf32>
    %92 = tpu.matmul %91, %89, %cst_79 {dimension_numbers = #tpu.dot_dimension_numbers<[1], [0], [0], [1], [0, 0, 1, 1], [], []>} : vector<24x16xbf16>, vector<16x256xbf16>, vector<24x256xf32> -> vector<24x256xf32>
    %93 = arith.addf %85, %92 : vector<24x256xf32>
    %c0_80 = arith.constant 0 : index
    %c112 = arith.constant 112 : index
    %94 = vector.load %arg15[%c0_80, %c112] : memref<16x512xbf16, #tpu.memory_space<vmem>>, vector<16x256xbf16>
    %c7 = arith.constant 7 : index
    %c0_81 = arith.constant 0 : index
    %95 = vector.load %arg2[%c7, %c0_81] : memref<25x256xbf16, #tpu.memory_space<vmem>>, vector<1x256xbf16>
    %96 = vector.broadcast %95 : vector<1x256xbf16> to vector<16x256xbf16>
    %97 = arith.mulf %94, %96 : vector<16x256xbf16>
    %c7_82 = arith.constant 7 : index
    %c0_83 = arith.constant 0 : index
    %c0_84 = arith.constant 0 : index
    %98 = vector.load %arg7[%c7_82, %c0_83, %c0_84] : memref<25x24x16xbf16, #tpu.memory_space<vmem>>, vector<1x24x16xbf16>
    %99 = vector.shape_cast %98 : vector<1x24x16xbf16> to vector<24x16xbf16>
    %cst_85 = arith.constant dense<0.000000e+00> : vector<24x256xf32>
    %100 = tpu.matmul %99, %97, %cst_85 {dimension_numbers = #tpu.dot_dimension_numbers<[1], [0], [0], [1], [0, 0, 1, 1], [], []>} : vector<24x16xbf16>, vector<16x256xbf16>, vector<24x256xf32> -> vector<24x256xf32>
    %101 = arith.addf %93, %100 : vector<24x256xf32>
    %c0_86 = arith.constant 0 : index
    %c113 = arith.constant 113 : index
    %102 = vector.load %arg15[%c0_86, %c113] : memref<16x512xbf16, #tpu.memory_space<vmem>>, vector<16x256xbf16>
    %c8 = arith.constant 8 : index
    %c0_87 = arith.constant 0 : index
    %103 = vector.load %arg2[%c8, %c0_87] : memref<25x256xbf16, #tpu.memory_space<vmem>>, vector<1x256xbf16>
    %104 = vector.broadcast %103 : vector<1x256xbf16> to vector<16x256xbf16>
    %105 = arith.mulf %102, %104 : vector<16x256xbf16>
    %c8_88 = arith.constant 8 : index
    %c0_89 = arith.constant 0 : index
    %c0_90 = arith.constant 0 : index
    %106 = vector.load %arg7[%c8_88, %c0_89, %c0_90] : memref<25x24x16xbf16, #tpu.memory_space<vmem>>, vector<1x24x16xbf16>
    %107 = vector.shape_cast %106 : vector<1x24x16xbf16> to vector<24x16xbf16>
    %cst_91 = arith.constant dense<0.000000e+00> : vector<24x256xf32>
    %108 = tpu.matmul %107, %105, %cst_91 {dimension_numbers = #tpu.dot_dimension_numbers<[1], [0], [0], [1], [0, 0, 1, 1], [], []>} : vector<24x16xbf16>, vector<16x256xbf16>, vector<24x256xf32> -> vector<24x256xf32>
    %109 = arith.addf %101, %108 : vector<24x256xf32>
    %c0_92 = arith.constant 0 : index
    %c114 = arith.constant 114 : index
    %110 = vector.load %arg15[%c0_92, %c114] : memref<16x512xbf16, #tpu.memory_space<vmem>>, vector<16x256xbf16>
    %c9 = arith.constant 9 : index
    %c0_93 = arith.constant 0 : index
    %111 = vector.load %arg2[%c9, %c0_93] : memref<25x256xbf16, #tpu.memory_space<vmem>>, vector<1x256xbf16>
    %112 = vector.broadcast %111 : vector<1x256xbf16> to vector<16x256xbf16>
    %113 = arith.mulf %110, %112 : vector<16x256xbf16>
    %c9_94 = arith.constant 9 : index
    %c0_95 = arith.constant 0 : index
    %c0_96 = arith.constant 0 : index
    %114 = vector.load %arg7[%c9_94, %c0_95, %c0_96] : memref<25x24x16xbf16, #tpu.memory_space<vmem>>, vector<1x24x16xbf16>
    %115 = vector.shape_cast %114 : vector<1x24x16xbf16> to vector<24x16xbf16>
    %cst_97 = arith.constant dense<0.000000e+00> : vector<24x256xf32>
    %116 = tpu.matmul %115, %113, %cst_97 {dimension_numbers = #tpu.dot_dimension_numbers<[1], [0], [0], [1], [0, 0, 1, 1], [], []>} : vector<24x16xbf16>, vector<16x256xbf16>, vector<24x256xf32> -> vector<24x256xf32>
    %117 = arith.addf %109, %116 : vector<24x256xf32>
    %c0_98 = arith.constant 0 : index
    %c126 = arith.constant 126 : index
    %118 = vector.load %arg15[%c0_98, %c126] : memref<16x512xbf16, #tpu.memory_space<vmem>>, vector<16x256xbf16>
    %c10 = arith.constant 10 : index
    %c0_99 = arith.constant 0 : index
    %119 = vector.load %arg2[%c10, %c0_99] : memref<25x256xbf16, #tpu.memory_space<vmem>>, vector<1x256xbf16>
    %120 = vector.broadcast %119 : vector<1x256xbf16> to vector<16x256xbf16>
    %121 = arith.mulf %118, %120 : vector<16x256xbf16>
    %c10_100 = arith.constant 10 : index
    %c0_101 = arith.constant 0 : index
    %c0_102 = arith.constant 0 : index
    %122 = vector.load %arg7[%c10_100, %c0_101, %c0_102] : memref<25x24x16xbf16, #tpu.memory_space<vmem>>, vector<1x24x16xbf16>
    %123 = vector.shape_cast %122 : vector<1x24x16xbf16> to vector<24x16xbf16>
    %cst_103 = arith.constant dense<0.000000e+00> : vector<24x256xf32>
    %124 = tpu.matmul %123, %121, %cst_103 {dimension_numbers = #tpu.dot_dimension_numbers<[1], [0], [0], [1], [0, 0, 1, 1], [], []>} : vector<24x16xbf16>, vector<16x256xbf16>, vector<24x256xf32> -> vector<24x256xf32>
    %125 = arith.addf %117, %124 : vector<24x256xf32>
    %c0_104 = arith.constant 0 : index
    %c127 = arith.constant 127 : index
    %126 = vector.load %arg15[%c0_104, %c127] : memref<16x512xbf16, #tpu.memory_space<vmem>>, vector<16x256xbf16>
    %c11 = arith.constant 11 : index
    %c0_105 = arith.constant 0 : index
    %127 = vector.load %arg2[%c11, %c0_105] : memref<25x256xbf16, #tpu.memory_space<vmem>>, vector<1x256xbf16>
    %128 = vector.broadcast %127 : vector<1x256xbf16> to vector<16x256xbf16>
    %129 = arith.mulf %126, %128 : vector<16x256xbf16>
    %c11_106 = arith.constant 11 : index
    %c0_107 = arith.constant 0 : index
    %c0_108 = arith.constant 0 : index
    %130 = vector.load %arg7[%c11_106, %c0_107, %c0_108] : memref<25x24x16xbf16, #tpu.memory_space<vmem>>, vector<1x24x16xbf16>
    %131 = vector.shape_cast %130 : vector<1x24x16xbf16> to vector<24x16xbf16>
    %cst_109 = arith.constant dense<0.000000e+00> : vector<24x256xf32>
    %132 = tpu.matmul %131, %129, %cst_109 {dimension_numbers = #tpu.dot_dimension_numbers<[1], [0], [0], [1], [0, 0, 1, 1], [], []>} : vector<24x16xbf16>, vector<16x256xbf16>, vector<24x256xf32> -> vector<24x256xf32>
    %133 = arith.addf %125, %132 : vector<24x256xf32>
    %c0_110 = arith.constant 0 : index
    %c128_111 = arith.constant 128 : index
    %134 = vector.load %arg15[%c0_110, %c128_111] : memref<16x512xbf16, #tpu.memory_space<vmem>>, vector<16x256xbf16>
    %c12 = arith.constant 12 : index
    %c0_112 = arith.constant 0 : index
    %135 = vector.load %arg2[%c12, %c0_112] : memref<25x256xbf16, #tpu.memory_space<vmem>>, vector<1x256xbf16>
    %136 = vector.broadcast %135 : vector<1x256xbf16> to vector<16x256xbf16>
    %137 = arith.mulf %134, %136 : vector<16x256xbf16>
    %c12_113 = arith.constant 12 : index
    %c0_114 = arith.constant 0 : index
    %c0_115 = arith.constant 0 : index
    %138 = vector.load %arg7[%c12_113, %c0_114, %c0_115] : memref<25x24x16xbf16, #tpu.memory_space<vmem>>, vector<1x24x16xbf16>
    %139 = vector.shape_cast %138 : vector<1x24x16xbf16> to vector<24x16xbf16>
    %cst_116 = arith.constant dense<0.000000e+00> : vector<24x256xf32>
    %140 = tpu.matmul %139, %137, %cst_116 {dimension_numbers = #tpu.dot_dimension_numbers<[1], [0], [0], [1], [0, 0, 1, 1], [], []>} : vector<24x16xbf16>, vector<16x256xbf16>, vector<24x256xf32> -> vector<24x256xf32>
    %141 = arith.addf %133, %140 : vector<24x256xf32>
    %c0_117 = arith.constant 0 : index
    %c129 = arith.constant 129 : index
    %142 = vector.load %arg15[%c0_117, %c129] : memref<16x512xbf16, #tpu.memory_space<vmem>>, vector<16x256xbf16>
    %c13 = arith.constant 13 : index
    %c0_118 = arith.constant 0 : index
    %143 = vector.load %arg2[%c13, %c0_118] : memref<25x256xbf16, #tpu.memory_space<vmem>>, vector<1x256xbf16>
    %144 = vector.broadcast %143 : vector<1x256xbf16> to vector<16x256xbf16>
    %145 = arith.mulf %142, %144 : vector<16x256xbf16>
    %c13_119 = arith.constant 13 : index
    %c0_120 = arith.constant 0 : index
    %c0_121 = arith.constant 0 : index
    %146 = vector.load %arg7[%c13_119, %c0_120, %c0_121] : memref<25x24x16xbf16, #tpu.memory_space<vmem>>, vector<1x24x16xbf16>
    %147 = vector.shape_cast %146 : vector<1x24x16xbf16> to vector<24x16xbf16>
    %cst_122 = arith.constant dense<0.000000e+00> : vector<24x256xf32>
    %148 = tpu.matmul %147, %145, %cst_122 {dimension_numbers = #tpu.dot_dimension_numbers<[1], [0], [0], [1], [0, 0, 1, 1], [], []>} : vector<24x16xbf16>, vector<16x256xbf16>, vector<24x256xf32> -> vector<24x256xf32>
    %149 = arith.addf %141, %148 : vector<24x256xf32>
    %c0_123 = arith.constant 0 : index
    %c130 = arith.constant 130 : index
    %150 = vector.load %arg15[%c0_123, %c130] : memref<16x512xbf16, #tpu.memory_space<vmem>>, vector<16x256xbf16>
    %c14 = arith.constant 14 : index
    %c0_124 = arith.constant 0 : index
    %151 = vector.load %arg2[%c14, %c0_124] : memref<25x256xbf16, #tpu.memory_space<vmem>>, vector<1x256xbf16>
    %152 = vector.broadcast %151 : vector<1x256xbf16> to vector<16x256xbf16>
    %153 = arith.mulf %150, %152 : vector<16x256xbf16>
    %c14_125 = arith.constant 14 : index
    %c0_126 = arith.constant 0 : index
    %c0_127 = arith.constant 0 : index
    %154 = vector.load %arg7[%c14_125, %c0_126, %c0_127] : memref<25x24x16xbf16, #tpu.memory_space<vmem>>, vector<1x24x16xbf16>
    %155 = vector.shape_cast %154 : vector<1x24x16xbf16> to vector<24x16xbf16>
    %cst_128 = arith.constant dense<0.000000e+00> : vector<24x256xf32>
    %156 = tpu.matmul %155, %153, %cst_128 {dimension_numbers = #tpu.dot_dimension_numbers<[1], [0], [0], [1], [0, 0, 1, 1], [], []>} : vector<24x16xbf16>, vector<16x256xbf16>, vector<24x256xf32> -> vector<24x256xf32>
    %157 = arith.addf %149, %156 : vector<24x256xf32>
    %c0_129 = arith.constant 0 : index
    %c142 = arith.constant 142 : index
    %158 = vector.load %arg15[%c0_129, %c142] : memref<16x512xbf16, #tpu.memory_space<vmem>>, vector<16x256xbf16>
    %c15 = arith.constant 15 : index
    %c0_130 = arith.constant 0 : index
    %159 = vector.load %arg2[%c15, %c0_130] : memref<25x256xbf16, #tpu.memory_space<vmem>>, vector<1x256xbf16>
    %160 = vector.broadcast %159 : vector<1x256xbf16> to vector<16x256xbf16>
    %161 = arith.mulf %158, %160 : vector<16x256xbf16>
    %c15_131 = arith.constant 15 : index
    %c0_132 = arith.constant 0 : index
    %c0_133 = arith.constant 0 : index
    %162 = vector.load %arg7[%c15_131, %c0_132, %c0_133] : memref<25x24x16xbf16, #tpu.memory_space<vmem>>, vector<1x24x16xbf16>
    %163 = vector.shape_cast %162 : vector<1x24x16xbf16> to vector<24x16xbf16>
    %cst_134 = arith.constant dense<0.000000e+00> : vector<24x256xf32>
    %164 = tpu.matmul %163, %161, %cst_134 {dimension_numbers = #tpu.dot_dimension_numbers<[1], [0], [0], [1], [0, 0, 1, 1], [], []>} : vector<24x16xbf16>, vector<16x256xbf16>, vector<24x256xf32> -> vector<24x256xf32>
    %165 = arith.addf %157, %164 : vector<24x256xf32>
    %c0_135 = arith.constant 0 : index
    %c143 = arith.constant 143 : index
    %166 = vector.load %arg15[%c0_135, %c143] : memref<16x512xbf16, #tpu.memory_space<vmem>>, vector<16x256xbf16>
    %c16 = arith.constant 16 : index
    %c0_136 = arith.constant 0 : index
    %167 = vector.load %arg2[%c16, %c0_136] : memref<25x256xbf16, #tpu.memory_space<vmem>>, vector<1x256xbf16>
    %168 = vector.broadcast %167 : vector<1x256xbf16> to vector<16x256xbf16>
    %169 = arith.mulf %166, %168 : vector<16x256xbf16>
    %c16_137 = arith.constant 16 : index
    %c0_138 = arith.constant 0 : index
    %c0_139 = arith.constant 0 : index
    %170 = vector.load %arg7[%c16_137, %c0_138, %c0_139] : memref<25x24x16xbf16, #tpu.memory_space<vmem>>, vector<1x24x16xbf16>
    %171 = vector.shape_cast %170 : vector<1x24x16xbf16> to vector<24x16xbf16>
    %cst_140 = arith.constant dense<0.000000e+00> : vector<24x256xf32>
    %172 = tpu.matmul %171, %169, %cst_140 {dimension_numbers = #tpu.dot_dimension_numbers<[1], [0], [0], [1], [0, 0, 1, 1], [], []>} : vector<24x16xbf16>, vector<16x256xbf16>, vector<24x256xf32> -> vector<24x256xf32>
    %173 = arith.addf %165, %172 : vector<24x256xf32>
    %c0_141 = arith.constant 0 : index
    %c144 = arith.constant 144 : index
    %174 = vector.load %arg15[%c0_141, %c144] : memref<16x512xbf16, #tpu.memory_space<vmem>>, vector<16x256xbf16>
    %c17 = arith.constant 17 : index
    %c0_142 = arith.constant 0 : index
    %175 = vector.load %arg2[%c17, %c0_142] : memref<25x256xbf16, #tpu.memory_space<vmem>>, vector<1x256xbf16>
    %176 = vector.broadcast %175 : vector<1x256xbf16> to vector<16x256xbf16>
    %177 = arith.mulf %174, %176 : vector<16x256xbf16>
    %c17_143 = arith.constant 17 : index
    %c0_144 = arith.constant 0 : index
    %c0_145 = arith.constant 0 : index
    %178 = vector.load %arg7[%c17_143, %c0_144, %c0_145] : memref<25x24x16xbf16, #tpu.memory_space<vmem>>, vector<1x24x16xbf16>
    %179 = vector.shape_cast %178 : vector<1x24x16xbf16> to vector<24x16xbf16>
    %cst_146 = arith.constant dense<0.000000e+00> : vector<24x256xf32>
    %180 = tpu.matmul %179, %177, %cst_146 {dimension_numbers = #tpu.dot_dimension_numbers<[1], [0], [0], [1], [0, 0, 1, 1], [], []>} : vector<24x16xbf16>, vector<16x256xbf16>, vector<24x256xf32> -> vector<24x256xf32>
    %181 = arith.addf %173, %180 : vector<24x256xf32>
    %c0_147 = arith.constant 0 : index
    %c145 = arith.constant 145 : index
    %182 = vector.load %arg15[%c0_147, %c145] : memref<16x512xbf16, #tpu.memory_space<vmem>>, vector<16x256xbf16>
    %c18 = arith.constant 18 : index
    %c0_148 = arith.constant 0 : index
    %183 = vector.load %arg2[%c18, %c0_148] : memref<25x256xbf16, #tpu.memory_space<vmem>>, vector<1x256xbf16>
    %184 = vector.broadcast %183 : vector<1x256xbf16> to vector<16x256xbf16>
    %185 = arith.mulf %182, %184 : vector<16x256xbf16>
    %c18_149 = arith.constant 18 : index
    %c0_150 = arith.constant 0 : index
    %c0_151 = arith.constant 0 : index
    %186 = vector.load %arg7[%c18_149, %c0_150, %c0_151] : memref<25x24x16xbf16, #tpu.memory_space<vmem>>, vector<1x24x16xbf16>
    %187 = vector.shape_cast %186 : vector<1x24x16xbf16> to vector<24x16xbf16>
    %cst_152 = arith.constant dense<0.000000e+00> : vector<24x256xf32>
    %188 = tpu.matmul %187, %185, %cst_152 {dimension_numbers = #tpu.dot_dimension_numbers<[1], [0], [0], [1], [0, 0, 1, 1], [], []>} : vector<24x16xbf16>, vector<16x256xbf16>, vector<24x256xf32> -> vector<24x256xf32>
    %189 = arith.addf %181, %188 : vector<24x256xf32>
    %c0_153 = arith.constant 0 : index
    %c146 = arith.constant 146 : index
    %190 = vector.load %arg15[%c0_153, %c146] : memref<16x512xbf16, #tpu.memory_space<vmem>>, vector<16x256xbf16>
    %c19 = arith.constant 19 : index
    %c0_154 = arith.constant 0 : index
    %191 = vector.load %arg2[%c19, %c0_154] : memref<25x256xbf16, #tpu.memory_space<vmem>>, vector<1x256xbf16>
    %192 = vector.broadcast %191 : vector<1x256xbf16> to vector<16x256xbf16>
    %193 = arith.mulf %190, %192 : vector<16x256xbf16>
    %c19_155 = arith.constant 19 : index
    %c0_156 = arith.constant 0 : index
    %c0_157 = arith.constant 0 : index
    %194 = vector.load %arg7[%c19_155, %c0_156, %c0_157] : memref<25x24x16xbf16, #tpu.memory_space<vmem>>, vector<1x24x16xbf16>
    %195 = vector.shape_cast %194 : vector<1x24x16xbf16> to vector<24x16xbf16>
    %cst_158 = arith.constant dense<0.000000e+00> : vector<24x256xf32>
    %196 = tpu.matmul %195, %193, %cst_158 {dimension_numbers = #tpu.dot_dimension_numbers<[1], [0], [0], [1], [0, 0, 1, 1], [], []>} : vector<24x16xbf16>, vector<16x256xbf16>, vector<24x256xf32> -> vector<24x256xf32>
    %197 = arith.addf %189, %196 : vector<24x256xf32>
    %c0_159 = arith.constant 0 : index
    %c158 = arith.constant 158 : index
    %198 = vector.load %arg15[%c0_159, %c158] : memref<16x512xbf16, #tpu.memory_space<vmem>>, vector<16x256xbf16>
    %c20 = arith.constant 20 : index
    %c0_160 = arith.constant 0 : index
    %199 = vector.load %arg2[%c20, %c0_160] : memref<25x256xbf16, #tpu.memory_space<vmem>>, vector<1x256xbf16>
    %200 = vector.broadcast %199 : vector<1x256xbf16> to vector<16x256xbf16>
    %201 = arith.mulf %198, %200 : vector<16x256xbf16>
    %c20_161 = arith.constant 20 : index
    %c0_162 = arith.constant 0 : index
    %c0_163 = arith.constant 0 : index
    %202 = vector.load %arg7[%c20_161, %c0_162, %c0_163] : memref<25x24x16xbf16, #tpu.memory_space<vmem>>, vector<1x24x16xbf16>
    %203 = vector.shape_cast %202 : vector<1x24x16xbf16> to vector<24x16xbf16>
    %cst_164 = arith.constant dense<0.000000e+00> : vector<24x256xf32>
    %204 = tpu.matmul %203, %201, %cst_164 {dimension_numbers = #tpu.dot_dimension_numbers<[1], [0], [0], [1], [0, 0, 1, 1], [], []>} : vector<24x16xbf16>, vector<16x256xbf16>, vector<24x256xf32> -> vector<24x256xf32>
    %205 = arith.addf %197, %204 : vector<24x256xf32>
    %c0_165 = arith.constant 0 : index
    %c159 = arith.constant 159 : index
    %206 = vector.load %arg15[%c0_165, %c159] : memref<16x512xbf16, #tpu.memory_space<vmem>>, vector<16x256xbf16>
    %c21 = arith.constant 21 : index
    %c0_166 = arith.constant 0 : index
    %207 = vector.load %arg2[%c21, %c0_166] : memref<25x256xbf16, #tpu.memory_space<vmem>>, vector<1x256xbf16>
    %208 = vector.broadcast %207 : vector<1x256xbf16> to vector<16x256xbf16>
    %209 = arith.mulf %206, %208 : vector<16x256xbf16>
    %c21_167 = arith.constant 21 : index
    %c0_168 = arith.constant 0 : index
    %c0_169 = arith.constant 0 : index
    %210 = vector.load %arg7[%c21_167, %c0_168, %c0_169] : memref<25x24x16xbf16, #tpu.memory_space<vmem>>, vector<1x24x16xbf16>
    %211 = vector.shape_cast %210 : vector<1x24x16xbf16> to vector<24x16xbf16>
    %cst_170 = arith.constant dense<0.000000e+00> : vector<24x256xf32>
    %212 = tpu.matmul %211, %209, %cst_170 {dimension_numbers = #tpu.dot_dimension_numbers<[1], [0], [0], [1], [0, 0, 1, 1], [], []>} : vector<24x16xbf16>, vector<16x256xbf16>, vector<24x256xf32> -> vector<24x256xf32>
    %213 = arith.addf %205, %212 : vector<24x256xf32>
    %c0_171 = arith.constant 0 : index
    %c160 = arith.constant 160 : index
    %214 = vector.load %arg15[%c0_171, %c160] : memref<16x512xbf16, #tpu.memory_space<vmem>>, vector<16x256xbf16>
    %c22 = arith.constant 22 : index
    %c0_172 = arith.constant 0 : index
    %215 = vector.load %arg2[%c22, %c0_172] : memref<25x256xbf16, #tpu.memory_space<vmem>>, vector<1x256xbf16>
    %216 = vector.broadcast %215 : vector<1x256xbf16> to vector<16x256xbf16>
    %217 = arith.mulf %214, %216 : vector<16x256xbf16>
    %c22_173 = arith.constant 22 : index
    %c0_174 = arith.constant 0 : index
    %c0_175 = arith.constant 0 : index
    %218 = vector.load %arg7[%c22_173, %c0_174, %c0_175] : memref<25x24x16xbf16, #tpu.memory_space<vmem>>, vector<1x24x16xbf16>
    %219 = vector.shape_cast %218 : vector<1x24x16xbf16> to vector<24x16xbf16>
    %cst_176 = arith.constant dense<0.000000e+00> : vector<24x256xf32>
    %220 = tpu.matmul %219, %217, %cst_176 {dimension_numbers = #tpu.dot_dimension_numbers<[1], [0], [0], [1], [0, 0, 1, 1], [], []>} : vector<24x16xbf16>, vector<16x256xbf16>, vector<24x256xf32> -> vector<24x256xf32>
    %221 = arith.addf %213, %220 : vector<24x256xf32>
    %c0_177 = arith.constant 0 : index
    %c161 = arith.constant 161 : index
    %222 = vector.load %arg15[%c0_177, %c161] : memref<16x512xbf16, #tpu.memory_space<vmem>>, vector<16x256xbf16>
    %c23 = arith.constant 23 : index
    %c0_178 = arith.constant 0 : index
    %223 = vector.load %arg2[%c23, %c0_178] : memref<25x256xbf16, #tpu.memory_space<vmem>>, vector<1x256xbf16>
    %224 = vector.broadcast %223 : vector<1x256xbf16> to vector<16x256xbf16>
    %225 = arith.mulf %222, %224 : vector<16x256xbf16>
    %c23_179 = arith.constant 23 : index
    %c0_180 = arith.constant 0 : index
    %c0_181 = arith.constant 0 : index
    %226 = vector.load %arg7[%c23_179, %c0_180, %c0_181] : memref<25x24x16xbf16, #tpu.memory_space<vmem>>, vector<1x24x16xbf16>
    %227 = vector.shape_cast %226 : vector<1x24x16xbf16> to vector<24x16xbf16>
    %cst_182 = arith.constant dense<0.000000e+00> : vector<24x256xf32>
    %228 = tpu.matmul %227, %225, %cst_182 {dimension_numbers = #tpu.dot_dimension_numbers<[1], [0], [0], [1], [0, 0, 1, 1], [], []>} : vector<24x16xbf16>, vector<16x256xbf16>, vector<24x256xf32> -> vector<24x256xf32>
    %229 = arith.addf %221, %228 : vector<24x256xf32>
    %c0_183 = arith.constant 0 : index
    %c162 = arith.constant 162 : index
    %230 = vector.load %arg15[%c0_183, %c162] : memref<16x512xbf16, #tpu.memory_space<vmem>>, vector<16x256xbf16>
    %c24 = arith.constant 24 : index
    %c0_184 = arith.constant 0 : index
    %231 = vector.load %arg2[%c24, %c0_184] : memref<25x256xbf16, #tpu.memory_space<vmem>>, vector<1x256xbf16>
    %232 = vector.broadcast %231 : vector<1x256xbf16> to vector<16x256xbf16>
    %233 = arith.mulf %230, %232 : vector<16x256xbf16>
    %c24_185 = arith.constant 24 : index
    %c0_186 = arith.constant 0 : index
    %c0_187 = arith.constant 0 : index
    %234 = vector.load %arg7[%c24_185, %c0_186, %c0_187] : memref<25x24x16xbf16, #tpu.memory_space<vmem>>, vector<1x24x16xbf16>
    %235 = vector.shape_cast %234 : vector<1x24x16xbf16> to vector<24x16xbf16>
    %cst_188 = arith.constant dense<0.000000e+00> : vector<24x256xf32>
    %236 = tpu.matmul %235, %233, %cst_188 {dimension_numbers = #tpu.dot_dimension_numbers<[1], [0], [0], [1], [0, 0, 1, 1], [], []>} : vector<24x16xbf16>, vector<16x256xbf16>, vector<24x256xf32> -> vector<24x256xf32>
    %237 = arith.addf %229, %236 : vector<24x256xf32>
    %c0_189 = arith.constant 0 : index
    %c0_190 = arith.constant 0 : index
    %238 = vector.load %arg8[%c0_189, %c0_190] : memref<24x1xf32, #tpu.memory_space<vmem>>, vector<24x1xf32>
    %239 = vector.broadcast %238 : vector<24x1xf32> to vector<24x256xf32>
    %240 = arith.addf %237, %239 : vector<24x256xf32>
    %c0_191 = arith.constant 0 : index
    %c16_192 = arith.constant 16 : index
    %c0_193 = arith.constant 0 : index
    %241 = vector.load %arg14[%c0_191, %c16_192, %c0_193] : memref<1x88x256xf32, #tpu.memory_space<vmem>>, vector<1x24x256xf32>
    %242 = vector.shape_cast %241 : vector<1x24x256xf32> to vector<24x256xf32>
    %243 = vector.shape_cast %240 : vector<24x256xf32> to vector<1x24x256xf32>
    tpu.vector_store %arg14[%c0_191, %c16_192, %c0_193], %243 {strides = array<i32>} : memref<1x88x256xf32, #tpu.memory_space<vmem>>, vector<1x24x256xf32>,
    %cst_194 = arith.constant 0.000000e+00 : f32
    %244 = vector.broadcast %cst_194 : f32 to vector<24x256xf32>
    %c0_195 = arith.constant 0 : index
    %c111_196 = arith.constant 111 : index
    %245 = vector.load %arg16[%c0_195, %c111_196] : memref<16x512xbf16, #tpu.memory_space<vmem>>, vector<16x256xbf16>
    %c6_197 = arith.constant 6 : index
    %c0_198 = arith.constant 0 : index
    %246 = vector.load %arg2[%c6_197, %c0_198] : memref<25x256xbf16, #tpu.memory_space<vmem>>, vector<1x256xbf16>
    %247 = vector.broadcast %246 : vector<1x256xbf16> to vector<16x256xbf16>
    %248 = arith.mulf %245, %247 : vector<16x256xbf16>
    %c0_199 = arith.constant 0 : index
    %c0_200 = arith.constant 0 : index
    %c0_201 = arith.constant 0 : index
    %249 = vector.load %arg9[%c0_199, %c0_200, %c0_201] : memref<9x24x16xbf16, #tpu.memory_space<vmem>>, vector<1x24x16xbf16>
    %250 = vector.shape_cast %249 : vector<1x24x16xbf16> to vector<24x16xbf16>
    %cst_202 = arith.constant dense<0.000000e+00> : vector<24x256xf32>
    %251 = tpu.matmul %250, %248, %cst_202 {dimension_numbers = #tpu.dot_dimension_numbers<[1], [0], [0], [1], [0, 0, 1, 1], [], []>} : vector<24x16xbf16>, vector<16x256xbf16>, vector<24x256xf32> -> vector<24x256xf32>
    %252 = arith.addf %244, %251 : vector<24x256xf32>
    %c0_203 = arith.constant 0 : index
    %c112_204 = arith.constant 112 : index
    %253 = vector.load %arg16[%c0_203, %c112_204] : memref<16x512xbf16, #tpu.memory_space<vmem>>, vector<16x256xbf16>
    %c7_205 = arith.constant 7 : index
    %c0_206 = arith.constant 0 : index
    %254 = vector.load %arg2[%c7_205, %c0_206] : memref<25x256xbf16, #tpu.memory_space<vmem>>, vector<1x256xbf16>
    %255 = vector.broadcast %254 : vector<1x256xbf16> to vector<16x256xbf16>
    %256 = arith.mulf %253, %255 : vector<16x256xbf16>
    %c1_207 = arith.constant 1 : index
    %c0_208 = arith.constant 0 : index
    %c0_209 = arith.constant 0 : index
    %257 = vector.load %arg9[%c1_207, %c0_208, %c0_209] : memref<9x24x16xbf16, #tpu.memory_space<vmem>>, vector<1x24x16xbf16>
    %258 = vector.shape_cast %257 : vector<1x24x16xbf16> to vector<24x16xbf16>
    %cst_210 = arith.constant dense<0.000000e+00> : vector<24x256xf32>
    %259 = tpu.matmul %258, %256, %cst_210 {dimension_numbers = #tpu.dot_dimension_numbers<[1], [0], [0], [1], [0, 0, 1, 1], [], []>} : vector<24x16xbf16>, vector<16x256xbf16>, vector<24x256xf32> -> vector<24x256xf32>
    %260 = arith.addf %252, %259 : vector<24x256xf32>
    %c0_211 = arith.constant 0 : index
    %c113_212 = arith.constant 113 : index
    %261 = vector.load %arg16[%c0_211, %c113_212] : memref<16x512xbf16, #tpu.memory_space<vmem>>, vector<16x256xbf16>
    %c8_213 = arith.constant 8 : index
    %c0_214 = arith.constant 0 : index
    %262 = vector.load %arg2[%c8_213, %c0_214] : memref<25x256xbf16, #tpu.memory_space<vmem>>, vector<1x256xbf16>
    %263 = vector.broadcast %262 : vector<1x256xbf16> to vector<16x256xbf16>
    %264 = arith.mulf %261, %263 : vector<16x256xbf16>
    %c2_215 = arith.constant 2 : index
    %c0_216 = arith.constant 0 : index
    %c0_217 = arith.constant 0 : index
    %265 = vector.load %arg9[%c2_215, %c0_216, %c0_217] : memref<9x24x16xbf16, #tpu.memory_space<vmem>>, vector<1x24x16xbf16>
    %266 = vector.shape_cast %265 : vector<1x24x16xbf16> to vector<24x16xbf16>
    %cst_218 = arith.constant dense<0.000000e+00> : vector<24x256xf32>
    %267 = tpu.matmul %266, %264, %cst_218 {dimension_numbers = #tpu.dot_dimension_numbers<[1], [0], [0], [1], [0, 0, 1, 1], [], []>} : vector<24x16xbf16>, vector<16x256xbf16>, vector<24x256xf32> -> vector<24x256xf32>
    %268 = arith.addf %260, %267 : vector<24x256xf32>
    %c0_219 = arith.constant 0 : index
    %c127_220 = arith.constant 127 : index
    %269 = vector.load %arg16[%c0_219, %c127_220] : memref<16x512xbf16, #tpu.memory_space<vmem>>, vector<16x256xbf16>
    %c11_221 = arith.constant 11 : index
    %c0_222 = arith.constant 0 : index
    %270 = vector.load %arg2[%c11_221, %c0_222] : memref<25x256xbf16, #tpu.memory_space<vmem>>, vector<1x256xbf16>
    %271 = vector.broadcast %270 : vector<1x256xbf16> to vector<16x256xbf16>
    %272 = arith.mulf %269, %271 : vector<16x256xbf16>
    %c3_223 = arith.constant 3 : index
    %c0_224 = arith.constant 0 : index
    %c0_225 = arith.constant 0 : index
    %273 = vector.load %arg9[%c3_223, %c0_224, %c0_225] : memref<9x24x16xbf16, #tpu.memory_space<vmem>>, vector<1x24x16xbf16>
    %274 = vector.shape_cast %273 : vector<1x24x16xbf16> to vector<24x16xbf16>
    %cst_226 = arith.constant dense<0.000000e+00> : vector<24x256xf32>
    %275 = tpu.matmul %274, %272, %cst_226 {dimension_numbers = #tpu.dot_dimension_numbers<[1], [0], [0], [1], [0, 0, 1, 1], [], []>} : vector<24x16xbf16>, vector<16x256xbf16>, vector<24x256xf32> -> vector<24x256xf32>
    %276 = arith.addf %268, %275 : vector<24x256xf32>
    %c0_227 = arith.constant 0 : index
    %c128_228 = arith.constant 128 : index
    %277 = vector.load %arg16[%c0_227, %c128_228] : memref<16x512xbf16, #tpu.memory_space<vmem>>, vector<16x256xbf16>
    %c12_229 = arith.constant 12 : index
    %c0_230 = arith.constant 0 : index
    %278 = vector.load %arg2[%c12_229, %c0_230] : memref<25x256xbf16, #tpu.memory_space<vmem>>, vector<1x256xbf16>
    %279 = vector.broadcast %278 : vector<1x256xbf16> to vector<16x256xbf16>
    %280 = arith.mulf %277, %279 : vector<16x256xbf16>
    %c4_231 = arith.constant 4 : index
    %c0_232 = arith.constant 0 : index
    %c0_233 = arith.constant 0 : index
    %281 = vector.load %arg9[%c4_231, %c0_232, %c0_233] : memref<9x24x16xbf16, #tpu.memory_space<vmem>>, vector<1x24x16xbf16>
    %282 = vector.shape_cast %281 : vector<1x24x16xbf16> to vector<24x16xbf16>
    %cst_234 = arith.constant dense<0.000000e+00> : vector<24x256xf32>
    %283 = tpu.matmul %282, %280, %cst_234 {dimension_numbers = #tpu.dot_dimension_numbers<[1], [0], [0], [1], [0, 0, 1, 1], [], []>} : vector<24x16xbf16>, vector<16x256xbf16>, vector<24x256xf32> -> vector<24x256xf32>
    %284 = arith.addf %276, %283 : vector<24x256xf32>
    %c0_235 = arith.constant 0 : index
    %c129_236 = arith.constant 129 : index
    %285 = vector.load %arg16[%c0_235, %c129_236] : memref<16x512xbf16, #tpu.memory_space<vmem>>, vector<16x256xbf16>
    %c13_237 = arith.constant 13 : index
    %c0_238 = arith.constant 0 : index
    %286 = vector.load %arg2[%c13_237, %c0_238] : memref<25x256xbf16, #tpu.memory_space<vmem>>, vector<1x256xbf16>
    %287 = vector.broadcast %286 : vector<1x256xbf16> to vector<16x256xbf16>
    %288 = arith.mulf %285, %287 : vector<16x256xbf16>
    %c5_239 = arith.constant 5 : index
    %c0_240 = arith.constant 0 : index
    %c0_241 = arith.constant 0 : index
    %289 = vector.load %arg9[%c5_239, %c0_240, %c0_241] : memref<9x24x16xbf16, #tpu.memory_space<vmem>>, vector<1x24x16xbf16>
    %290 = vector.shape_cast %289 : vector<1x24x16xbf16> to vector<24x16xbf16>
    %cst_242 = arith.constant dense<0.000000e+00> : vector<24x256xf32>
    %291 = tpu.matmul %290, %288, %cst_242 {dimension_numbers = #tpu.dot_dimension_numbers<[1], [0], [0], [1], [0, 0, 1, 1], [], []>} : vector<24x16xbf16>, vector<16x256xbf16>, vector<24x256xf32> -> vector<24x256xf32>
    %292 = arith.addf %284, %291 : vector<24x256xf32>
    %c0_243 = arith.constant 0 : index
    %c143_244 = arith.constant 143 : index
    %293 = vector.load %arg16[%c0_243, %c143_244] : memref<16x512xbf16, #tpu.memory_space<vmem>>, vector<16x256xbf16>
    %c16_245 = arith.constant 16 : index
    %c0_246 = arith.constant 0 : index
    %294 = vector.load %arg2[%c16_245, %c0_246] : memref<25x256xbf16, #tpu.memory_space<vmem>>, vector<1x256xbf16>
    %295 = vector.broadcast %294 : vector<1x256xbf16> to vector<16x256xbf16>
    %296 = arith.mulf %293, %295 : vector<16x256xbf16>
    %c6_247 = arith.constant 6 : index
    %c0_248 = arith.constant 0 : index
    %c0_249 = arith.constant 0 : index
    %297 = vector.load %arg9[%c6_247, %c0_248, %c0_249] : memref<9x24x16xbf16, #tpu.memory_space<vmem>>, vector<1x24x16xbf16>
    %298 = vector.shape_cast %297 : vector<1x24x16xbf16> to vector<24x16xbf16>
    %cst_250 = arith.constant dense<0.000000e+00> : vector<24x256xf32>
    %299 = tpu.matmul %298, %296, %cst_250 {dimension_numbers = #tpu.dot_dimension_numbers<[1], [0], [0], [1], [0, 0, 1, 1], [], []>} : vector<24x16xbf16>, vector<16x256xbf16>, vector<24x256xf32> -> vector<24x256xf32>
    %300 = arith.addf %292, %299 : vector<24x256xf32>
    %c0_251 = arith.constant 0 : index
    %c144_252 = arith.constant 144 : index
    %301 = vector.load %arg16[%c0_251, %c144_252] : memref<16x512xbf16, #tpu.memory_space<vmem>>, vector<16x256xbf16>
    %c17_253 = arith.constant 17 : index
    %c0_254 = arith.constant 0 : index
    %302 = vector.load %arg2[%c17_253, %c0_254] : memref<25x256xbf16, #tpu.memory_space<vmem>>, vector<1x256xbf16>
    %303 = vector.broadcast %302 : vector<1x256xbf16> to vector<16x256xbf16>
    %304 = arith.mulf %301, %303 : vector<16x256xbf16>
    %c7_255 = arith.constant 7 : index
    %c0_256 = arith.constant 0 : index
    %c0_257 = arith.constant 0 : index
    %305 = vector.load %arg9[%c7_255, %c0_256, %c0_257] : memref<9x24x16xbf16, #tpu.memory_space<vmem>>, vector<1x24x16xbf16>
    %306 = vector.shape_cast %305 : vector<1x24x16xbf16> to vector<24x16xbf16>
    %cst_258 = arith.constant dense<0.000000e+00> : vector<24x256xf32>
    %307 = tpu.matmul %306, %304, %cst_258 {dimension_numbers = #tpu.dot_dimension_numbers<[1], [0], [0], [1], [0, 0, 1, 1], [], []>} : vector<24x16xbf16>, vector<16x256xbf16>, vector<24x256xf32> -> vector<24x256xf32>
    %308 = arith.addf %300, %307 : vector<24x256xf32>
    %c0_259 = arith.constant 0 : index
    %c145_260 = arith.constant 145 : index
    %309 = vector.load %arg16[%c0_259, %c145_260] : memref<16x512xbf16, #tpu.memory_space<vmem>>, vector<16x256xbf16>
    %c18_261 = arith.constant 18 : index
    %c0_262 = arith.constant 0 : index
    %310 = vector.load %arg2[%c18_261, %c0_262] : memref<25x256xbf16, #tpu.memory_space<vmem>>, vector<1x256xbf16>
    %311 = vector.broadcast %310 : vector<1x256xbf16> to vector<16x256xbf16>
    %312 = arith.mulf %309, %311 : vector<16x256xbf16>
    %c8_263 = arith.constant 8 : index
    %c0_264 = arith.constant 0 : index
    %c0_265 = arith.constant 0 : index
    %313 = vector.load %arg9[%c8_263, %c0_264, %c0_265] : memref<9x24x16xbf16, #tpu.memory_space<vmem>>, vector<1x24x16xbf16>
    %314 = vector.shape_cast %313 : vector<1x24x16xbf16> to vector<24x16xbf16>
    %cst_266 = arith.constant dense<0.000000e+00> : vector<24x256xf32>
    %315 = tpu.matmul %314, %312, %cst_266 {dimension_numbers = #tpu.dot_dimension_numbers<[1], [0], [0], [1], [0, 0, 1, 1], [], []>} : vector<24x16xbf16>, vector<16x256xbf16>, vector<24x256xf32> -> vector<24x256xf32>
    %316 = arith.addf %308, %315 : vector<24x256xf32>
    %c0_267 = arith.constant 0 : index
    %c0_268 = arith.constant 0 : index
    %317 = vector.load %arg10[%c0_267, %c0_268] : memref<24x1xf32, #tpu.memory_space<vmem>>, vector<24x1xf32>
    %318 = vector.broadcast %317 : vector<24x1xf32> to vector<24x256xf32>
    %319 = arith.addf %316, %318 : vector<24x256xf32>
    %320 = arith.truncf %319 : vector<24x256xf32> to vector<24x256xbf16>
    %c0_269 = arith.constant 0 : index
    %c128_270 = arith.constant 128 : index
    %321 = vector.load %arg17[%c0_269, %c128_270] : memref<24x512xbf16, #tpu.memory_space<vmem>>, vector<24x256xbf16>
    tpu.vector_store %arg17[%c0_269, %c128_270], %320 {strides = array<i32>} : memref<24x512xbf16, #tpu.memory_space<vmem>>, vector<24x256xbf16>,
    %cst_271 = arith.constant 0.000000e+00 : f32
    %322 = vector.broadcast %cst_271 : f32 to vector<24x256xf32>
    %c0_272 = arith.constant 0 : index
    %c111_273 = arith.constant 111 : index
    %323 = vector.load %arg17[%c0_272, %c111_273] : memref<24x512xbf16, #tpu.memory_space<vmem>>, vector<24x256xbf16>
    %c6_274 = arith.constant 6 : index
    %c0_275 = arith.constant 0 : index
    %324 = vector.load %arg2[%c6_274, %c0_275] : memref<25x256xbf16, #tpu.memory_space<vmem>>, vector<1x256xbf16>
    %325 = vector.broadcast %324 : vector<1x256xbf16> to vector<24x256xbf16>
    %326 = arith.mulf %323, %325 : vector<24x256xbf16>
    %c0_276 = arith.constant 0 : index
    %c0_277 = arith.constant 0 : index
    %c0_278 = arith.constant 0 : index
    %327 = vector.load %arg11[%c0_276, %c0_277, %c0_278] : memref<9x24x24xbf16, #tpu.memory_space<vmem>>, vector<1x24x24xbf16>
    %328 = vector.shape_cast %327 : vector<1x24x24xbf16> to vector<24x24xbf16>
    %cst_279 = arith.constant dense<0.000000e+00> : vector<24x256xf32>
    %329 = tpu.matmul %328, %326, %cst_279 {dimension_numbers = #tpu.dot_dimension_numbers<[1], [0], [0], [1], [0, 0, 1, 1], [], []>} : vector<24x24xbf16>, vector<24x256xbf16>, vector<24x256xf32> -> vector<24x256xf32>
    %330 = arith.addf %322, %329 : vector<24x256xf32>
    %c0_280 = arith.constant 0 : index
    %c112_281 = arith.constant 112 : index
    %331 = vector.load %arg17[%c0_280, %c112_281] : memref<24x512xbf16, #tpu.memory_space<vmem>>, vector<24x256xbf16>
    %c7_282 = arith.constant 7 : index
    %c0_283 = arith.constant 0 : index
    %332 = vector.load %arg2[%c7_282, %c0_283] : memref<25x256xbf16, #tpu.memory_space<vmem>>, vector<1x256xbf16>
    %333 = vector.broadcast %332 : vector<1x256xbf16> to vector<24x256xbf16>
    %334 = arith.mulf %331, %333 : vector<24x256xbf16>
    %c1_284 = arith.constant 1 : index
    %c0_285 = arith.constant 0 : index
    %c0_286 = arith.constant 0 : index
    %335 = vector.load %arg11[%c1_284, %c0_285, %c0_286] : memref<9x24x24xbf16, #tpu.memory_space<vmem>>, vector<1x24x24xbf16>
    %336 = vector.shape_cast %335 : vector<1x24x24xbf16> to vector<24x24xbf16>
    %cst_287 = arith.constant dense<0.000000e+00> : vector<24x256xf32>
    %337 = tpu.matmul %336, %334, %cst_287 {dimension_numbers = #tpu.dot_dimension_numbers<[1], [0], [0], [1], [0, 0, 1, 1], [], []>} : vector<24x24xbf16>, vector<24x256xbf16>, vector<24x256xf32> -> vector<24x256xf32>
    %338 = arith.addf %330, %337 : vector<24x256xf32>
    %c0_288 = arith.constant 0 : index
    %c113_289 = arith.constant 113 : index
    %339 = vector.load %arg17[%c0_288, %c113_289] : memref<24x512xbf16, #tpu.memory_space<vmem>>, vector<24x256xbf16>
    %c8_290 = arith.constant 8 : index
    %c0_291 = arith.constant 0 : index
    %340 = vector.load %arg2[%c8_290, %c0_291] : memref<25x256xbf16, #tpu.memory_space<vmem>>, vector<1x256xbf16>
    %341 = vector.broadcast %340 : vector<1x256xbf16> to vector<24x256xbf16>
    %342 = arith.mulf %339, %341 : vector<24x256xbf16>
    %c2_292 = arith.constant 2 : index
    %c0_293 = arith.constant 0 : index
    %c0_294 = arith.constant 0 : index
    %343 = vector.load %arg11[%c2_292, %c0_293, %c0_294] : memref<9x24x24xbf16, #tpu.memory_space<vmem>>, vector<1x24x24xbf16>
    %344 = vector.shape_cast %343 : vector<1x24x24xbf16> to vector<24x24xbf16>
    %cst_295 = arith.constant dense<0.000000e+00> : vector<24x256xf32>
    %345 = tpu.matmul %344, %342, %cst_295 {dimension_numbers = #tpu.dot_dimension_numbers<[1], [0], [0], [1], [0, 0, 1, 1], [], []>} : vector<24x24xbf16>, vector<24x256xbf16>, vector<24x256xf32> -> vector<24x256xf32>
    %346 = arith.addf %338, %345 : vector<24x256xf32>
    %c0_296 = arith.constant 0 : index
    %c127_297 = arith.constant 127 : index
    %347 = vector.load %arg17[%c0_296, %c127_297] : memref<24x512xbf16, #tpu.memory_space<vmem>>, vector<24x256xbf16>
    %c11_298 = arith.constant 11 : index
    %c0_299 = arith.constant 0 : index
    %348 = vector.load %arg2[%c11_298, %c0_299] : memref<25x256xbf16, #tpu.memory_space<vmem>>, vector<1x256xbf16>
    %349 = vector.broadcast %348 : vector<1x256xbf16> to vector<24x256xbf16>
    %350 = arith.mulf %347, %349 : vector<24x256xbf16>
    %c3_300 = arith.constant 3 : index
    %c0_301 = arith.constant 0 : index
    %c0_302 = arith.constant 0 : index
    %351 = vector.load %arg11[%c3_300, %c0_301, %c0_302] : memref<9x24x24xbf16, #tpu.memory_space<vmem>>, vector<1x24x24xbf16>
    %352 = vector.shape_cast %351 : vector<1x24x24xbf16> to vector<24x24xbf16>
    %cst_303 = arith.constant dense<0.000000e+00> : vector<24x256xf32>
    %353 = tpu.matmul %352, %350, %cst_303 {dimension_numbers = #tpu.dot_dimension_numbers<[1], [0], [0], [1], [0, 0, 1, 1], [], []>} : vector<24x24xbf16>, vector<24x256xbf16>, vector<24x256xf32> -> vector<24x256xf32>
    %354 = arith.addf %346, %353 : vector<24x256xf32>
    %c0_304 = arith.constant 0 : index
    %c128_305 = arith.constant 128 : index
    %355 = vector.load %arg17[%c0_304, %c128_305] : memref<24x512xbf16, #tpu.memory_space<vmem>>, vector<24x256xbf16>
    %c12_306 = arith.constant 12 : index
    %c0_307 = arith.constant 0 : index
    %356 = vector.load %arg2[%c12_306, %c0_307] : memref<25x256xbf16, #tpu.memory_space<vmem>>, vector<1x256xbf16>
    %357 = vector.broadcast %356 : vector<1x256xbf16> to vector<24x256xbf16>
    %358 = arith.mulf %355, %357 : vector<24x256xbf16>
    %c4_308 = arith.constant 4 : index
    %c0_309 = arith.constant 0 : index
    %c0_310 = arith.constant 0 : index
    %359 = vector.load %arg11[%c4_308, %c0_309, %c0_310] : memref<9x24x24xbf16, #tpu.memory_space<vmem>>, vector<1x24x24xbf16>
    %360 = vector.shape_cast %359 : vector<1x24x24xbf16> to vector<24x24xbf16>
    %cst_311 = arith.constant dense<0.000000e+00> : vector<24x256xf32>
    %361 = tpu.matmul %360, %358, %cst_311 {dimension_numbers = #tpu.dot_dimension_numbers<[1], [0], [0], [1], [0, 0, 1, 1], [], []>} : vector<24x24xbf16>, vector<24x256xbf16>, vector<24x256xf32> -> vector<24x256xf32>
    %362 = arith.addf %354, %361 : vector<24x256xf32>
    %c0_312 = arith.constant 0 : index
    %c129_313 = arith.constant 129 : index
    %363 = vector.load %arg17[%c0_312, %c129_313] : memref<24x512xbf16, #tpu.memory_space<vmem>>, vector<24x256xbf16>
    %c13_314 = arith.constant 13 : index
    %c0_315 = arith.constant 0 : index
    %364 = vector.load %arg2[%c13_314, %c0_315] : memref<25x256xbf16, #tpu.memory_space<vmem>>, vector<1x256xbf16>
    %365 = vector.broadcast %364 : vector<1x256xbf16> to vector<24x256xbf16>
    %366 = arith.mulf %363, %365 : vector<24x256xbf16>
    %c5_316 = arith.constant 5 : index
    %c0_317 = arith.constant 0 : index
    %c0_318 = arith.constant 0 : index
    %367 = vector.load %arg11[%c5_316, %c0_317, %c0_318] : memref<9x24x24xbf16, #tpu.memory_space<vmem>>, vector<1x24x24xbf16>
    %368 = vector.shape_cast %367 : vector<1x24x24xbf16> to vector<24x24xbf16>
    %cst_319 = arith.constant dense<0.000000e+00> : vector<24x256xf32>
    %369 = tpu.matmul %368, %366, %cst_319 {dimension_numbers = #tpu.dot_dimension_numbers<[1], [0], [0], [1], [0, 0, 1, 1], [], []>} : vector<24x24xbf16>, vector<24x256xbf16>, vector<24x256xf32> -> vector<24x256xf32>
    %370 = arith.addf %362, %369 : vector<24x256xf32>
    %c0_320 = arith.constant 0 : index
    %c143_321 = arith.constant 143 : index
    %371 = vector.load %arg17[%c0_320, %c143_321] : memref<24x512xbf16, #tpu.memory_space<vmem>>, vector<24x256xbf16>
    %c16_322 = arith.constant 16 : index
    %c0_323 = arith.constant 0 : index
    %372 = vector.load %arg2[%c16_322, %c0_323] : memref<25x256xbf16, #tpu.memory_space<vmem>>, vector<1x256xbf16>
    %373 = vector.broadcast %372 : vector<1x256xbf16> to vector<24x256xbf16>
    %374 = arith.mulf %371, %373 : vector<24x256xbf16>
    %c6_324 = arith.constant 6 : index
    %c0_325 = arith.constant 0 : index
    %c0_326 = arith.constant 0 : index
    %375 = vector.load %arg11[%c6_324, %c0_325, %c0_326] : memref<9x24x24xbf16, #tpu.memory_space<vmem>>, vector<1x24x24xbf16>
    %376 = vector.shape_cast %375 : vector<1x24x24xbf16> to vector<24x24xbf16>
    %cst_327 = arith.constant dense<0.000000e+00> : vector<24x256xf32>
    %377 = tpu.matmul %376, %374, %cst_327 {dimension_numbers = #tpu.dot_dimension_numbers<[1], [0], [0], [1], [0, 0, 1, 1], [], []>} : vector<24x24xbf16>, vector<24x256xbf16>, vector<24x256xf32> -> vector<24x256xf32>
    %378 = arith.addf %370, %377 : vector<24x256xf32>
    %c0_328 = arith.constant 0 : index
    %c144_329 = arith.constant 144 : index
    %379 = vector.load %arg17[%c0_328, %c144_329] : memref<24x512xbf16, #tpu.memory_space<vmem>>, vector<24x256xbf16>
    %c17_330 = arith.constant 17 : index
    %c0_331 = arith.constant 0 : index
    %380 = vector.load %arg2[%c17_330, %c0_331] : memref<25x256xbf16, #tpu.memory_space<vmem>>, vector<1x256xbf16>
    %381 = vector.broadcast %380 : vector<1x256xbf16> to vector<24x256xbf16>
    %382 = arith.mulf %379, %381 : vector<24x256xbf16>
    %c7_332 = arith.constant 7 : index
    %c0_333 = arith.constant 0 : index
    %c0_334 = arith.constant 0 : index
    %383 = vector.load %arg11[%c7_332, %c0_333, %c0_334] : memref<9x24x24xbf16, #tpu.memory_space<vmem>>, vector<1x24x24xbf16>
    %384 = vector.shape_cast %383 : vector<1x24x24xbf16> to vector<24x24xbf16>
    %cst_335 = arith.constant dense<0.000000e+00> : vector<24x256xf32>
    %385 = tpu.matmul %384, %382, %cst_335 {dimension_numbers = #tpu.dot_dimension_numbers<[1], [0], [0], [1], [0, 0, 1, 1], [], []>} : vector<24x24xbf16>, vector<24x256xbf16>, vector<24x256xf32> -> vector<24x256xf32>
    %386 = arith.addf %378, %385 : vector<24x256xf32>
    %c0_336 = arith.constant 0 : index
    %c145_337 = arith.constant 145 : index
    %387 = vector.load %arg17[%c0_336, %c145_337] : memref<24x512xbf16, #tpu.memory_space<vmem>>, vector<24x256xbf16>
    %c18_338 = arith.constant 18 : index
    %c0_339 = arith.constant 0 : index
    %388 = vector.load %arg2[%c18_338, %c0_339] : memref<25x256xbf16, #tpu.memory_space<vmem>>, vector<1x256xbf16>
    %389 = vector.broadcast %388 : vector<1x256xbf16> to vector<24x256xbf16>
    %390 = arith.mulf %387, %389 : vector<24x256xbf16>
    %c8_340 = arith.constant 8 : index
    %c0_341 = arith.constant 0 : index
    %c0_342 = arith.constant 0 : index
    %391 = vector.load %arg11[%c8_340, %c0_341, %c0_342] : memref<9x24x24xbf16, #tpu.memory_space<vmem>>, vector<1x24x24xbf16>
    %392 = vector.shape_cast %391 : vector<1x24x24xbf16> to vector<24x24xbf16>
    %cst_343 = arith.constant dense<0.000000e+00> : vector<24x256xf32>
    %393 = tpu.matmul %392, %390, %cst_343 {dimension_numbers = #tpu.dot_dimension_numbers<[1], [0], [0], [1], [0, 0, 1, 1], [], []>} : vector<24x24xbf16>, vector<24x256xbf16>, vector<24x256xf32> -> vector<24x256xf32>
    %394 = arith.addf %386, %393 : vector<24x256xf32>
    %c0_344 = arith.constant 0 : index
    %c0_345 = arith.constant 0 : index
    %395 = vector.load %arg12[%c0_344, %c0_345] : memref<24x1xf32, #tpu.memory_space<vmem>>, vector<24x1xf32>
    %396 = vector.broadcast %395 : vector<24x1xf32> to vector<24x256xf32>
    %397 = arith.addf %394, %396 : vector<24x256xf32>
    %c0_346 = arith.constant 0 : index
    %c40 = arith.constant 40 : index
    %c0_347 = arith.constant 0 : index
    %398 = vector.load %arg14[%c0_346, %c40, %c0_347] : memref<1x88x256xf32, #tpu.memory_space<vmem>>, vector<1x24x256xf32>
    %399 = vector.shape_cast %398 : vector<1x24x256xf32> to vector<24x256xf32>
    %400 = vector.shape_cast %397 : vector<24x256xf32> to vector<1x24x256xf32>
    tpu.vector_store %arg14[%c0_346, %c40, %c0_347], %400 {strides = array<i32>} : memref<1x88x256xf32, #tpu.memory_space<vmem>>, vector<1x24x256xf32>,
    %cst_348 = arith.constant 0.000000e+00 : f32
    %401 = vector.broadcast %cst_348 : f32 to vector<24x256xf32>
    %c0_349 = arith.constant 0 : index
    %c111_350 = arith.constant 111 : index
    %402 = vector.load %arg18[%c0_349, %c111_350] : memref<24x512xbf16, #tpu.memory_space<vmem>>, vector<24x256xbf16>
    %c6_351 = arith.constant 6 : index
    %c0_352 = arith.constant 0 : index
    %403 = vector.load %arg2[%c6_351, %c0_352] : memref<25x256xbf16, #tpu.memory_space<vmem>>, vector<1x256xbf16>
    %404 = vector.broadcast %403 : vector<1x256xbf16> to vector<24x256xbf16>
    %405 = arith.mulf %402, %404 : vector<24x256xbf16>
    %406 = arith.extf %405 : vector<24x256xbf16> to vector<24x256xf32>
    %407 = arith.addf %401, %406 : vector<24x256xf32>
    %c0_353 = arith.constant 0 : index
    %c112_354 = arith.constant 112 : index
    %408 = vector.load %arg18[%c0_353, %c112_354] : memref<24x512xbf16, #tpu.memory_space<vmem>>, vector<24x256xbf16>
    %c7_355 = arith.constant 7 : index
    %c0_356 = arith.constant 0 : index
    %409 = vector.load %arg2[%c7_355, %c0_356] : memref<25x256xbf16, #tpu.memory_space<vmem>>, vector<1x256xbf16>
    %410 = vector.broadcast %409 : vector<1x256xbf16> to vector<24x256xbf16>
    %411 = arith.mulf %408, %410 : vector<24x256xbf16>
    %412 = arith.extf %411 : vector<24x256xbf16> to vector<24x256xf32>
    %413 = arith.addf %407, %412 : vector<24x256xf32>
    %c0_357 = arith.constant 0 : index
    %c113_358 = arith.constant 113 : index
    %414 = vector.load %arg18[%c0_357, %c113_358] : memref<24x512xbf16, #tpu.memory_space<vmem>>, vector<24x256xbf16>
    %c8_359 = arith.constant 8 : index
    %c0_360 = arith.constant 0 : index
    %415 = vector.load %arg2[%c8_359, %c0_360] : memref<25x256xbf16, #tpu.memory_space<vmem>>, vector<1x256xbf16>
    %416 = vector.broadcast %415 : vector<1x256xbf16> to vector<24x256xbf16>
    %417 = arith.mulf %414, %416 : vector<24x256xbf16>
    %418 = arith.extf %417 : vector<24x256xbf16> to vector<24x256xf32>
    %419 = arith.addf %413, %418 : vector<24x256xf32>
    %c0_361 = arith.constant 0 : index
    %c127_362 = arith.constant 127 : index
    %420 = vector.load %arg18[%c0_361, %c127_362] : memref<24x512xbf16, #tpu.memory_space<vmem>>, vector<24x256xbf16>
    %c11_363 = arith.constant 11 : index
    %c0_364 = arith.constant 0 : index
    %421 = vector.load %arg2[%c11_363, %c0_364] : memref<25x256xbf16, #tpu.memory_space<vmem>>, vector<1x256xbf16>
    %422 = vector.broadcast %421 : vector<1x256xbf16> to vector<24x256xbf16>
    %423 = arith.mulf %420, %422 : vector<24x256xbf16>
    %424 = arith.extf %423 : vector<24x256xbf16> to vector<24x256xf32>
    %425 = arith.addf %419, %424 : vector<24x256xf32>
    %c0_365 = arith.constant 0 : index
    %c128_366 = arith.constant 128 : index
    %426 = vector.load %arg18[%c0_365, %c128_366] : memref<24x512xbf16, #tpu.memory_space<vmem>>, vector<24x256xbf16>
    %c12_367 = arith.constant 12 : index
    %c0_368 = arith.constant 0 : index
    %427 = vector.load %arg2[%c12_367, %c0_368] : memref<25x256xbf16, #tpu.memory_space<vmem>>, vector<1x256xbf16>
    %428 = vector.broadcast %427 : vector<1x256xbf16> to vector<24x256xbf16>
    %429 = arith.mulf %426, %428 : vector<24x256xbf16>
    %430 = arith.extf %429 : vector<24x256xbf16> to vector<24x256xf32>
    %431 = arith.addf %425, %430 : vector<24x256xf32>
    %c0_369 = arith.constant 0 : index
    %c129_370 = arith.constant 129 : index
    %432 = vector.load %arg18[%c0_369, %c129_370] : memref<24x512xbf16, #tpu.memory_space<vmem>>, vector<24x256xbf16>
    %c13_371 = arith.constant 13 : index
    %c0_372 = arith.constant 0 : index
    %433 = vector.load %arg2[%c13_371, %c0_372] : memref<25x256xbf16, #tpu.memory_space<vmem>>, vector<1x256xbf16>
    %434 = vector.broadcast %433 : vector<1x256xbf16> to vector<24x256xbf16>
    %435 = arith.mulf %432, %434 : vector<24x256xbf16>
    %436 = arith.extf %435 : vector<24x256xbf16> to vector<24x256xf32>
    %437 = arith.addf %431, %436 : vector<24x256xf32>
    %c0_373 = arith.constant 0 : index
    %c143_374 = arith.constant 143 : index
    %438 = vector.load %arg18[%c0_373, %c143_374] : memref<24x512xbf16, #tpu.memory_space<vmem>>, vector<24x256xbf16>
    %c16_375 = arith.constant 16 : index
    %c0_376 = arith.constant 0 : index
    %439 = vector.load %arg2[%c16_375, %c0_376] : memref<25x256xbf16, #tpu.memory_space<vmem>>, vector<1x256xbf16>
    %440 = vector.broadcast %439 : vector<1x256xbf16> to vector<24x256xbf16>
    %441 = arith.mulf %438, %440 : vector<24x256xbf16>
    %442 = arith.extf %441 : vector<24x256xbf16> to vector<24x256xf32>
    %443 = arith.addf %437, %442 : vector<24x256xf32>
    %c0_377 = arith.constant 0 : index
    %c144_378 = arith.constant 144 : index
    %444 = vector.load %arg18[%c0_377, %c144_378] : memref<24x512xbf16, #tpu.memory_space<vmem>>, vector<24x256xbf16>
    %c17_379 = arith.constant 17 : index
    %c0_380 = arith.constant 0 : index
    %445 = vector.load %arg2[%c17_379, %c0_380] : memref<25x256xbf16, #tpu.memory_space<vmem>>, vector<1x256xbf16>
    %446 = vector.broadcast %445 : vector<1x256xbf16> to vector<24x256xbf16>
    %447 = arith.mulf %444, %446 : vector<24x256xbf16>
    %448 = arith.extf %447 : vector<24x256xbf16> to vector<24x256xf32>
    %449 = arith.addf %443, %448 : vector<24x256xf32>
    %c0_381 = arith.constant 0 : index
    %c145_382 = arith.constant 145 : index
    %450 = vector.load %arg18[%c0_381, %c145_382] : memref<24x512xbf16, #tpu.memory_space<vmem>>, vector<24x256xbf16>
    %c18_383 = arith.constant 18 : index
    %c0_384 = arith.constant 0 : index
    %451 = vector.load %arg2[%c18_383, %c0_384] : memref<25x256xbf16, #tpu.memory_space<vmem>>, vector<1x256xbf16>
    %452 = vector.broadcast %451 : vector<1x256xbf16> to vector<24x256xbf16>
    %453 = arith.mulf %450, %452 : vector<24x256xbf16>
    %454 = arith.extf %453 : vector<24x256xbf16> to vector<24x256xf32>
    %455 = arith.addf %449, %454 : vector<24x256xf32>
    %cst_385 = arith.constant 0.111111112 : f32
    %456 = vector.broadcast %cst_385 : f32 to vector<24x256xf32>
    %457 = arith.mulf %455, %456 : vector<24x256xf32>
    %c0_386 = arith.constant 0 : index
    %c0_387 = arith.constant 0 : index
    %458 = vector.load %arg13[%c0_386, %c0_387] : memref<24x1xf32, #tpu.memory_space<vmem>>, vector<24x1xf32>
    %459 = vector.broadcast %458 : vector<24x1xf32> to vector<24x256xf32>
    %460 = arith.addf %457, %459 : vector<24x256xf32>
    %c0_388 = arith.constant 0 : index
    %c64 = arith.constant 64 : index
    %c0_389 = arith.constant 0 : index
    %461 = vector.load %arg14[%c0_388, %c64, %c0_389] : memref<1x88x256xf32, #tpu.memory_space<vmem>>, vector<1x24x256xf32>
    %462 = vector.shape_cast %461 : vector<1x24x256xf32> to vector<24x256xf32>
    %463 = vector.shape_cast %460 : vector<24x256xf32> to vector<1x24x256xf32>
    tpu.vector_store %arg14[%c0_388, %c64, %c0_389], %463 {strides = array<i32>} : memref<1x88x256xf32, #tpu.memory_space<vmem>>, vector<1x24x256xf32>,
    return
  }
  func.func @transform_0(%arg0: i32) -> (i32, i32) {
    %c0_i32 = arith.constant 0 : i32
    %c0_i32_0 = arith.constant 0 : i32
    return %c0_i32, %arg0 : i32, i32
  }
  func.func @transform_1(%arg0: i32) -> (i32, i32) {
    %c0_i32 = arith.constant 0 : i32
    %c0_i32_0 = arith.constant 0 : i32
    %c0_i32_1 = arith.constant 0 : i32
    return %c0_i32, %c0_i32_0 : i32, i32
  }
  func.func @transform_2(%arg0: i32) -> (i32, i32) {
    %c0_i32 = arith.constant 0 : i32
    %c0_i32_0 = arith.constant 0 : i32
    %c0_i32_1 = arith.constant 0 : i32
    return %c0_i32, %c0_i32_0 : i32, i32
  }
  func.func @transform_3(%arg0: i32) -> (i32, i32) {
    %c0_i32 = arith.constant 0 : i32
    %c0_i32_0 = arith.constant 0 : i32
    %c0_i32_1 = arith.constant 0 : i32
    return %c0_i32, %c0_i32_0 : i32, i32
  }
  func.func @transform_4(%arg0: i32) -> (i32, i32) {
    %c0_i32 = arith.constant 0 : i32
    %c0_i32_0 = arith.constant 0 : i32
    %c0_i32_1 = arith.constant 0 : i32
    return %c0_i32, %c0_i32_0 : i32, i32
  }
  func.func @transform_5(%arg0: i32) -> (i32, i32) {
    %c0_i32 = arith.constant 0 : i32
    %c0_i32_0 = arith.constant 0 : i32
    %c0_i32_1 = arith.constant 0 : i32
    return %c0_i32, %c0_i32_0 : i32, i32
  }
  func.func @transform_6(%arg0: i32) -> (i32, i32, i32) {
    %c0_i32 = arith.constant 0 : i32
    %c0_i32_0 = arith.constant 0 : i32
    %c0_i32_1 = arith.constant 0 : i32
    %c0_i32_2 = arith.constant 0 : i32
    return %c0_i32, %c0_i32_0, %c0_i32_1 : i32, i32, i32
  }
  func.func @transform_7(%arg0: i32) -> (i32, i32) {
    %c0_i32 = arith.constant 0 : i32
    %c0_i32_0 = arith.constant 0 : i32
    %c0_i32_1 = arith.constant 0 : i32
    return %c0_i32, %c0_i32_0 : i32, i32
  }
  func.func @transform_8(%arg0: i32) -> (i32, i32, i32) {
    %c0_i32 = arith.constant 0 : i32
    %c0_i32_0 = arith.constant 0 : i32
    %c0_i32_1 = arith.constant 0 : i32
    %c0_i32_2 = arith.constant 0 : i32
    return %c0_i32, %c0_i32_0, %c0_i32_1 : i32, i32, i32
  }
  func.func @transform_9(%arg0: i32) -> (i32, i32) {
    %c0_i32 = arith.constant 0 : i32
    %c0_i32_0 = arith.constant 0 : i32
    %c0_i32_1 = arith.constant 0 : i32
    return %c0_i32, %c0_i32_0 : i32, i32
  }
  func.func @transform_10(%arg0: i32) -> (i32, i32, i32) {
    %c0_i32 = arith.constant 0 : i32
    %c0_i32_0 = arith.constant 0 : i32
    %c0_i32_1 = arith.constant 0 : i32
    %c0_i32_2 = arith.constant 0 : i32
    return %c0_i32, %c0_i32_0, %c0_i32_1 : i32, i32, i32
  }
  func.func @transform_11(%arg0: i32) -> (i32, i32) {
    %c0_i32 = arith.constant 0 : i32
    %c0_i32_0 = arith.constant 0 : i32
    %c0_i32_1 = arith.constant 0 : i32
    return %c0_i32, %c0_i32_0 : i32, i32
  }
  func.func @transform_12(%arg0: i32) -> (i32, i32) {
    %c0_i32 = arith.constant 0 : i32
    %c0_i32_0 = arith.constant 0 : i32
    %c0_i32_1 = arith.constant 0 : i32
    return %c0_i32, %c0_i32_0 : i32, i32
  }
  func.func @transform_13(%arg0: i32) -> (i32, i32, i32) {
    %c0_i32 = arith.constant 0 : i32
    %c0_i32_0 = arith.constant 0 : i32
    %c0_i32_1 = arith.constant 0 : i32
    return %arg0, %c0_i32, %c0_i32_0 : i32, i32, i32
  }
}

</mosaic_0001>

<bundles_post_ra>
// kernel: tpu_custom_call.1
= control target key start
LH: loop header
LB: loop body
LE: loop exit
PB: predicated region body
PF: predicated region fallthrough
CT: control target
= control target key end

     0   :  { %s10340_s0 = inlined_call_operand.vmem [shape: bf16[8,512], index: 0, kind: input, shape index: {}]   ;;  %s10341_s1 = inlined_call_operand.vmem [shape: bf16[25,256], index: 1, kind: input, shape index: {}]   ;;  %s10342_s2 = inlined_call_operand.vmem [shape: bf16[72,8], index: 2, kind: input, shape index: {}]   ;;  %s10343_s3 = inlined_call_operand.vmem [shape: f32[16,1], index: 3, kind: input, shape index: {}]   ;;  %s10344_s4 = inlined_call_operand.vmem [shape: f32[16,1], index: 4, kind: input, shape index: {}]   ;;  %s10345_s5 = inlined_call_operand.vmem [shape: f32[16,1], index: 5, kind: input, shape index: {}]   ;;  %s10346_s6 = inlined_call_operand.vmem [shape: bf16[25,24,16], index: 6, kind: input, shape index: {}]   ;;  %s10347_s7 = inlined_call_operand.vmem [shape: f32[24,1], index: 7, kind: input, shape index: {}]   ;;  %s10348_s8 = inlined_call_operand.vmem [shape: bf16[9,24,16], index: 8, kind: input, shape index: {}]   ;;  %s10349_s9 = inlined_call_operand.vmem [shape: f32[24,1], index: 9, kind: input, shape index: {}]   ;;  %s10350_s10 = inlined_call_operand.vmem [shape: bf16[9,24,24], index: 10, kind: input, shape index: {}]   ;;  %s10351_s11 = inlined_call_operand.vmem [shape: f32[24,1], index: 11, kind: input, shape index: {}]   ;;  %s10352_s12 = inlined_call_operand.vmem [shape: f32[24,1], index: 12, kind: input, shape index: {}]   ;;  %s10353_s13 = inlined_call_operand.hbm [shape: f32[2,88,256], index: 13, kind: output, shape index: {}]  }
   0x1   :  { %10424 = sst [smem:[#allocation25_spill]] %s10340_s0 }
   0x2   :  { %10425 = sst [smem:[#allocation26_spill]] %s10342_s2 }
   0x3   :  { %10426 = sst [smem:[#allocation27_spill]] %s10343_s3 }
   0x4   :  { %10427 = sst [smem:[#allocation28_spill]] %s10344_s4 }
   0x5   :  { %10428 = sst [smem:[#allocation29_spill]] %s10345_s5 }
   0x6   :  { %10429 = sst [smem:[#allocation30_spill]] %s10346_s6 }
   0x7   :  { %18 = vsyncpa [#allocation7], 0 }
   0x8   :  { %20 = vsyncpa [#allocation7 + $0x1], 0  ;;  %s7693_s25 = smov 0   ;;  %s7695_s26 = smov 0  }
   0x9   :  { %s7697_s27 = smov 0   ;;  %s7699_s28 = smov 0  }
   0xa LB: > { %10430 = sst [smem:[#allocation9_spill]] %s7583_s25  ;;  %s7714_s29 = sadd.s32 4294967295, %s7595_s28   ;;  %s7595_s28 = sphi %s7699_s28, %s10563_s28   ;;  %s7591_s27 = sphi %s7697_s27, %s10565_s27   ;;  %s7587_s26 = sphi %s7695_s26, %s10567_s26   ;;  %s7583_s25 = sphi %s7693_s25, %s10566_s25  }
   0xb   : > { %10431 = sst [smem:[#allocation10_spill]] %s7591_s27  ;;  %s6520_s30 = sadd.s32 4294967294, %s7595_s28  }
   0xc   : > { %10432 = sst [smem:[#allocation11_spill]] %s7595_s28  ;;  %s7718_s14 = sadd.s32 1, %s7595_s28  }
   0xd   : > { %10433 = sst [smem:[#allocation12_spill]] %s7718_s14  ;;  %s311_s15 = sadd.s32 1, %s7591_s27 }
   0xe   : > { %s308_s16 = ssub.s32 %s7595_s28, %s7718_s14  ;;  %p321_p0 = scmp.ne.s32.totalorder %s7591_s27, %s7587_s26 }
   0xf   : > { %p309_p1 = scmp.eq.s32.totalorder %s308_s16, 0  ;;  %p322_p2 = scmp.eq.s32.totalorder %s7714_s29, 1 }
  0x10   : > { %p327_p3 = scmp.ne.s32.totalorder %s7587_s26, %s7583_s25  ;;  %p328_p4 = scmp.eq.s32.totalorder %s6520_s30, 1 }
  0x11   : > { %s7729_s17 = scalar_select %p309_p1, %s7591_s27, %s311_s15  }
  0x12   : > { %p7731_p5 = por %p322_p2, %p321_p0  ;;  %p7735_p6 = por %p328_p4, %p327_p3 }
  0x13   : > { %10434 = sst [smem:[#allocation13_spill]] %s7729_s17  ;;  %p6523_p7 = scmp.ge.s32.totalorder %s7595_s28, 1 }
  0x14   : > { %s10436_s19 = scalar_select %p7735_p6, 1, 0 }
  0x15   : > { %p391_p8 = scmp.lt.s32.totalorder %s7595_s28, 3 }
  0x16   : > { %10437 = sst [smem:[#allocation14_spill]] %s10436_s19 }
  0x17   : > { %p392_p9 = pnand %p6523_p7, %p391_p8 }
  0x19   : > { %395 = sbr.rel (%p392_p9) target bundleno = 3111 (0xc27), region = 72 }
  0x1e   : > { %s6524_s20 = sshll.u32 %s7714_s29, 1  ;;  %v7597_v0 = vmov 0   ;;  %s10438_s4 = sld [smem:[#allocation28_spill]]  ;;  %v659_v2 = vld [vmem:[%s10341_s1] sm:$0x11]  ;;  %vm10375_vm0 = vcmask 1043456  }
  0x1f   : > { %p436_p10 = scmp.lt.s32.totalorder %s6524_s20, 3  ;;  %7133 = vset.pattern.permute.xlu0 %v7597_v0  ;;  %442 = vst [vmem:[#allocation2] sm:$0xf] %v7597_v0  ;;  %7244 = vset.pattern.permute.xlu1 %v7597_v0  ;;  %v661_v3 = vunpack.c.l.b16 %v659_v2  ;;  %v662_v4 = vunpack.c.h.b16 %v659_v2  ;;  %s10439_s0 = sld [smem:[#allocation25_spill]]  ;;  %v867_v9 = vld [vmem:[%s10341_s1] sm:$0x22] }
  0x20   : > { %443 = vst [vmem:[#allocation2 + $0x10] sm:$0xf] %v7597_v0  ;;  %7290 = vset.pattern.permute.xlu2 %v7597_v0  ;;  %v869_v18 = vunpack.c.l.b16 %v867_v9  ;;  %v870_v19 = vunpack.c.h.b16 %v867_v9  ;;  %vm500_vm1 = vcmask 64512   ;;  %s10440_s2 = sld [smem:[#allocation26_spill]]  ;;  %s10356_s16 = smov 95   ;;  %vm10377_vm2 = vcmask 769024  }
  0x21   : > { %s10569_s20 = smov (!%p436_p10, %s6524_s20), 3  ;;  %444 = vst [vmem:[#allocation2 + $0xc] sm:$0xf] %v7597_v0  ;;  %v663_v5 = vpack.c.b16 %v661_v3, %v661_v3  ;;  %v664_v6 = vpack.c.b16 %v662_v4, %v662_v4  ;;  %s10358_s24 = smov 96   ;;  %v1081_v55 = vld [vmem:[%s10341_s1] sm:$0x44] }
  0x22   : > { %445 = vst [vmem:[#allocation2 + $0x1c] sm:$0xf] %v7597_v0  ;;  %s6525_s30 = sshll.u32 %s10569_s20, 2  ;;  %v7778_v31 = vpack.c.b16 %v869_v18, %v869_v18  ;;  %v7780_v32 = vpack.c.b16 %v870_v19, %v870_v19  ;;  %v1083_v57 = vunpack.c.l.b16 %v1081_v55  ;;  %v1084_v58 = vunpack.c.h.b16 %v1081_v55  ;;  %s10366_s15 = smov 33  }
  0x23   : > { %446 = vst [vmem:[#allocation3] sm:$0xf] %v7597_v0  ;;  %v704_v7 = vshrl.u32 %v663_v5, 16  ;;  %v708_v8 = vshrl.u32 %v664_v6, 16  ;;  %v666_v16 = vpack.i.b16 %v663_v5, %v663_v5  ;;  %v670_v17 = vpack.i.b16 %v664_v6, %v664_v6  ;;  %s10360_s22 = smov 34   ;;  %s10367_s23 = smov 110  }
  0x24   : > { %v609_v1 = vld [vmem:[%s10438_s4] sm:$0xff]  ;;  %447 = vst [vmem:[#allocation3 + $0x10] sm:$0xf] %v7597_v0  ;;  %v610_v11 = vld [vmem:[%s10438_s4 + $0x8] sm:$0xff]  ;;  %v874_v36 = vpack.i.b16 %v7778_v31, %v7778_v31  ;;  %v878_v37 = vpack.i.b16 %v7780_v32, %v7780_v32  ;;  %vm10378_vm3 = vcmask 777216   ;;  %vm10392_vm4 = vcmask 785408  }
  0x25   : > { %613 = vperm.xlu0 %7133, %v609_v1   ;;  %s439_s21 = scalar_lea.vmem %s10439_s0, %s6525_s30  ;;  %448 = vst [vmem:[#allocation3 + $0xc] sm:$0xf] %v7597_v0  ;;  %v705_v14 = vpack.i.b16 %v704_v7, %v704_v7  ;;  %v709_v15 = vpack.i.b16 %v708_v8, %v708_v8  ;;  %v668_v29 = vperm.slane %v666_v16, 0  ;;  %v672_v30 = vperm.slane %v670_v17, 0  ;;  %s10365_s20 = smov 32  }
  0x26   : > { %v471_v10 = vld [vmem:[%s439_s21] sm:$0xff]  ;;  %449 = vst [vmem:[#allocation3 + $0x1c] sm:$0xf] %v7597_v0  ;;  %v876_v39 = vperm.slane %v874_v36, 1  ;;  %v880_v40 = vperm.slane %v878_v37, 1  ;;  %s10354_s21 = smov 94   ;;  %v1086_v1 = vpack.c.b16 %v1084_v58, %v1084_v58 }
  0x27   : > { %v496_v12 = vunpack.c.l.b16 %v471_v10  ;;  %v497_v13 = vunpack.c.h.b16 %v471_v10  ;;  %450 = vst [vmem:[#allocation4] sm:$0xf] %v7597_v0  ;;  %v707_v22 = vperm.slane %v705_v14, 0  ;;  %v711_v23 = vperm.slane %v709_v15, 0  ;;  %v7019_v26 = vld [vmem:[%s10440_s2] sm:$0xff]  ;;  %v7020_v43 = vld [vmem:[%s10440_s2 + $0x8] sm:$0xff] }
  0x28   : > { %451 = vst [vmem:[#allocation4 + $0x10] sm:$0xf] %v7597_v0  ;;  %v679_v34 = vunpack.c.l.bf16 %v668_v29  ;;  %v680_v35 = vunpack.c.l.bf16 %v672_v30  ;;  %v881_v41 = vunpack.c.l.bf16 %v876_v39  ;;  %v882_v42 = vunpack.c.l.bf16 %v880_v40  ;;  %s10363_s30 = smov 98   ;;  %s10441_s6 = sld [smem:[#allocation30_spill]] }
  0x29   : > { %v498_v20 = vpack.c.b16 %v496_v12, %v496_v12  ;;  %v499_v21 = vpack.c.b16 %v497_v13, %v497_v13  ;;  %452 = vst [vmem:[#allocation4 + $0x20] sm:$0xf] %v7597_v0  ;;  %v712_v27 = vunpack.c.l.bf16 %v707_v22  ;;  %v713_v28 = vunpack.c.l.bf16 %v711_v23  ;;  %s10444_s3 = sld [smem:[#allocation27_spill]]  ;;  %s10454_s4 = smov 111  }
  0x2a   : > { %453 = vst [vmem:[#allocation4 + $0xc] sm:$0xf] %v7597_v0  ;;  %v7139_v38 = vpack.i.bf16 %v680_v35, %v679_v34  ;;  %v7144_v44 = vpack.i.bf16 %v882_v42, %v881_v41  ;;  %v1195_v5 = vshrl.u32 %v1086_v1, 16  ;;  %v981_v34 = vshrl.u32 %v7780_v32, 16  ;;  %s10456_s17 = smov 33   ;;  %s10457_s27 = smov 32  }
  0x2b   : > { %v518_v24 = vsel %vm10375_vm0, %v498_v20, 0  ;;  %v521_v25 = vsel %vm10375_vm0, %v499_v21, 0  ;;  %454 = vst [vmem:[#allocation4 + $0x1c] sm:$0xf] %v7597_v0  ;;  %v7134_v33 = vpack.i.bf16 %v713_v28, %v712_v27  ;;  %v1092_v41 = vpack.i.b16 %v1086_v1, %v1086_v1  ;;  %s10458_s19 = smov 98   ;;  %s10459_s14 = smov 97  }
  0x2c   : > { %530 = vmatpush.bf16.msra.mxu0 %v518_v24  ;;  %563 = vmatpush.bf16.msra.mxu1 %v521_v25  ;;  %455 = vst [vmem:[#allocation4 + $0x2c] sm:$0xf] %v7597_v0  ;;  %v1196_v14 = vpack.i.b16 %v1195_v5, %v1195_v5  ;;  %vm10396_vm5 = vcmask 269312   ;;  %vm760_vm6 = vcmask 130048   ;;  %vm10394_vm7 = vcmask 793600   ;;  %s10460_s5 = sld [smem:[#allocation29_spill]] }
  0x2d   : > { %618 = vperm.xlu0 %7133, %v610_v11   ;;  %456 = vst [vmem:[#allocation5] sm:$0xf] %v7597_v0  ;;  %7135 = vrot.lane.b32.xlu1 %v7134_v33, %s10356_s16  ;;  %v977_v33 = vshrl.u32 %v7778_v31, 16  ;;  %v982_v31 = vpack.i.b16 %v981_v34, %v981_v34  ;;  %vm10393_vm8 = vcmask 277504   ;;  %s10371_s16 = smov 31   ;;  %vm10395_vm9 = vcmask 801792  }
  0x2e   : > { %457 = vst [vmem:[#allocation5 + $0x10] sm:$0xf] %v7597_v0  ;;  %vm1207_vm10 = vcmask 900096   ;;  %vm10401_vm11 = vcmask 261120   ;;  %vm1317_vm12 = vcmask 908288   ;;  %vm1028_vm13 = vcmask 252928  }
  0x2f   : > { %6542 = vmatmul.msk.bf16.vlgmr.msra.gmra.mxu0 %vm500_vm1, %v7019_v26  ;;  %6547 = vmatmul.msk.bf16.vlgmr.msra.gmra.mxu1 %vm500_vm1, %v7019_v26  ;;  %458 = vst [vmem:[#allocation5 + $0x20] sm:$0xf] %v7597_v0  ;;  %v1198_v26 = vperm.slane %v1196_v14, 2  ;;  %v978_v42 = vpack.i.b16 %v977_v33, %v977_v33  ;;  %vm1421_vm14 = vcmask 916480   ;;  %vm1138_vm15 = vcmask 244736   ;;  %s10489_s28 = smov 1  }
  0x30   : > { %459 = vst [vmem:[#allocation5 + $0xc] sm:$0xf] %v7597_v0  ;;  %vm1242_vm0 = vcmask 146432  }
  0x31   : > { %460 = vst [vmem:[#allocation5 + $0x1c] sm:$0xf] %v7597_v0  ;;  %v1200_v39 = vunpack.c.l.bf16 %v1198_v26  ;;  %v1295_v26 = vld [vmem:[%s10341_s1] sm:$0x88] }
  0x32   : > { %461 = vst [vmem:[#allocation5 + $0x2c] sm:$0xf] %v7597_v0  ;;  %v1085_v0 = vpack.c.b16 %v1083_v57, %v1083_v57  ;;  %v984_v57 = vperm.slane %v982_v31, 1 }
  0x34   : > { %v1191_v4 = vshrl.u32 %v1085_v0, 16  ;;  %v1088_v40 = vpack.i.b16 %v1085_v0, %v1085_v0  ;;  %v986_v0 = vunpack.c.l.bf16 %v984_v57 }
  0x35   : > { %7140 = vrot.lane.b32.xlu1 %v7139_v38, %s10354_s21  ;;  %s10361_s21 = smov 97  }
  0x36   : > { %v1192_v13 = vpack.i.b16 %v1191_v4, %v1191_v4 }
  0x38   : > { %v1194_v25 = vperm.slane %v1192_v13, 2 }
  0x3a   : > { %v1199_v38 = vunpack.c.l.bf16 %v1194_v25 }
  0x3d   : > { %7145 = vrot.lane.b32.xlu1 %v7144_v44, %s10358_s24  ;;  %s10376_s24 = smov 18  }
  0x3f   : > { %6543 = vmatmul.msk.bf16.gmra.mxu0 %vm500_vm1, %v7020_v43  ;;  %6548 = vmatmul.msk.bf16.gmra.mxu1 %vm500_vm1, %v7020_v43 }
  0x97   : > { %v614_v49 = vpop.permute.xlu0 %613 }
  0x9f   : > { %v7136_v56 = vpop.permute.xlu1 %7135  ;;  %v619_v59 = vpop.permute.xlu0 %618 }
  0xa0   : > { %v7138_v10 = vunpack.i.h.bf16 %v7136_v56  ;;  %v7137_v15 = vunpack.i.l.bf16 %v7136_v56  ;;  %v980_v56 = vperm.slane %v978_v42, 1 }
  0xa2   : > { %v721_v32 = vsel %vm10378_vm3, %v7137_v15, %v7138_v10  ;;  %vm1635_vm3 = vcmask 932864  }
  0xa7   : > { %v7141_v3 = vpop.permute.xlu1 %7140 }
  0xa8   : > { %v7820_v8 = vunpack.i.h.bf16 %v7141_v3  ;;  %v7142_v9 = vunpack.i.l.bf16 %v7141_v3 }
  0xaa   : > { %v688_v17 = vsel %vm10377_vm2, %v7142_v9, %v7820_v8  ;;  %vm1531_vm2 = vcmask 924672  }
  0xac   : > { %v7803_v45 = vpop.f32.mrf.mxu0  ;;  %v7805_v46 = vpop.f32.mrf.mxu1 }
  0xb4   : > { %v7807_v47 = vpop.f32.mrf.mxu0  ;;  %v7809_v48 = vpop.f32.mrf.mxu1 }
  0xbc   : > { %v537_v50 = vpop.f32.mrf.mxu0  ;;  %v570_v51 = vpop.f32.mrf.mxu1 }
  0xbd   : > { %v621_v52 = vadd.f32 %v614_v49, %v537_v50  ;;  %v622_v53 = vadd.f32 %v614_v49, %v570_v51  ;;  %v7159_v49 = vpack.i.bf16 %v1200_v39, %v1199_v38  ;;  %v1090_v51 = vperm.slane %v1088_v40, 2 }
  0xbf   : > { %v7811_v54 = vpack.c.bf16 %v622_v53, %v621_v52  ;;  %v1094_v52 = vperm.slane %v1092_v41, 2  ;;  %v7146_v53 = vpop.permute.xlu1 %7145  ;;  %v7024_v41 = vld [vmem:[%s10441_s6 + $0xc] sm:$0xff] }
  0xc0   : > { %v7147_v5 = vunpack.i.l.bf16 %v7146_v53 }
  0xc1   : > { %627 = vst [vmem:[#allocation2 + $0x4] sm:$0xff] %v7811_v54 }
  0xc4   : > { %v539_v60 = vpop.f32.mrf.mxu0  ;;  %v572_v61 = vpop.f32.mrf.mxu1 }
  0xc5   : > { %v623_v62 = vadd.f32 %v619_v59, %v539_v60  ;;  %v624_v63 = vadd.f32 %v619_v59, %v572_v61  ;;  %v7148_v60 = vunpack.i.h.bf16 %v7146_v53  ;;  %v1095_v61 = vunpack.c.l.bf16 %v1090_v51 }
  0xc7   : > { %v7817_v2 = vpack.c.bf16 %v624_v63, %v623_v62  ;;  %v1096_v62 = vunpack.c.l.bf16 %v1094_v52  ;;  %v985_v63 = vunpack.c.l.bf16 %v980_v56 }
  0xc8   : > { %v655_v6 = vld [vmem:[#allocation2] sm:$0xff]  ;;  %v656_v7 = vld [vmem:[#allocation2 + $0x8] sm:$0xf] }
  0xc9   : > { %628 = vst [vmem:[#allocation2 + $0x14] sm:$0xff] %v7817_v2  ;;  %v7822_v11 = vunpack.c.h.bf16 %v655_v6  ;;  %v7824_v12 = vunpack.c.l.bf16 %v656_v7  ;;  %v7826_v16 = vunpack.c.l.bf16 %v655_v6  ;;  %v7154_v4 = vpack.i.bf16 %v1096_v62, %v1095_v61 }
  0xca   : > { %v7149_v6 = vpack.i.bf16 %v986_v0, %v985_v63 }
  0xcb   : > { %v727_v23 = vmul.f32 %v7138_v10, %v7824_v12  ;;  %v693_v24 = vmul.f32 %v688_v17, %v7822_v11  ;;  %v725_v29 = vmul.f32 %v7137_v15, %v7826_v16  ;;  %v692_v50 = vmul.f32 %v7142_v9, %v7826_v16 }
  0xcc   : > { %v726_v55 = vmul.f32 %v721_v32, %v7822_v11  ;;  %v896_v3 = vmul.f32 %v7148_v60, %v7824_v12 }
  0xd0   : > { %v657_v18 = vld [vmem:[#allocation2 + $0x10] sm:$0xff]  ;;  %v658_v19 = vld [vmem:[#allocation2 + $0x18] sm:$0xf] }
  0xd1   : > { %v7830_v20 = vunpack.c.l.bf16 %v657_v18  ;;  %v7832_v21 = vunpack.c.h.bf16 %v657_v18  ;;  %v7834_v22 = vunpack.c.l.bf16 %v658_v19 }
  0xd3   : > { %v730_v27 = vmul.f32 %v7138_v10, %v7834_v22  ;;  %v696_v28 = vmul.f32 %v688_v17, %v7832_v21  ;;  %v728_v30 = vmul.f32 %v7137_v15, %v7830_v20  ;;  %v695_v43 = vmul.f32 %v7142_v9, %v7830_v20 }
  0xd4   : > { %v729_v44 = vmul.f32 %v721_v32, %v7832_v21  ;;  %v899_v1 = vmul.f32 %v7148_v60, %v7834_v22  ;;  %v890_v9 = vsel %vm10392_vm4, %v7147_v5, %v7148_v60  ;;  %v697_v13 = vmul.f32 %v7820_v8, %v7834_v22 }
  0xd5   : > { %v733_v35 = vpack.c.bf16 %v730_v27, %v727_v23  ;;  %v699_v36 = vpack.c.bf16 %v696_v28, %v693_v24  ;;  %v731_v37 = vpack.c.bf16 %v728_v30, %v725_v29  ;;  %v698_v58 = vpack.c.bf16 %v695_v43, %v692_v50 }
  0xd6   : > { %v732_v59 = vpack.c.bf16 %v729_v44, %v726_v55  ;;  %v902_v7 = vpack.c.bf16 %v899_v1, %v896_v3  ;;  %v898_v10 = vmul.f32 %v890_v9, %v7832_v21  ;;  %v895_v14 = vmul.f32 %v890_v9, %v7822_v11 }
  0xd7   : > { %753 = vrot.lane.b32.xlu0 %v733_v35, %s10366_s15  ;;  %816 = vrot.lane.b32.xlu1 %v699_v36, %s10360_s22  ;;  %v694_v15 = vmul.f32 %v7820_v8, %v7824_v12  ;;  %v897_v19 = vmul.f32 %v7147_v5, %v7830_v20  ;;  %v894_v23 = vmul.f32 %v7147_v5, %v7826_v16  ;;  %v1297_v27 = vunpack.c.l.b16 %v1295_v26 }
  0xd8   : > { %749 = vrot.lane.b32.xlu2 %v731_v37, %s10366_s15  ;;  %v901_v17 = vpack.c.bf16 %v898_v10, %v895_v14  ;;  %v1298_v8 = vunpack.c.h.b16 %v1295_v26  ;;  %v1509_v10 = vld [vmem:[%s10341_s1 + $0x8] sm:$0x11]  ;;  %vm1352_vm4 = vcmask 138240  }
  0xd9   : > { %v700_v18 = vpack.c.bf16 %v697_v13, %v694_v15  ;;  %v900_v24 = vpack.c.bf16 %v897_v19, %v894_v23  ;;  %v1299_v29 = vpack.c.b16 %v1297_v27, %v1297_v27  ;;  %v1511_v15 = vunpack.c.l.b16 %v1509_v10 }
  0xda   : > { %v1300_v30 = vpack.c.b16 %v1298_v8, %v1298_v8 }
  0xdb   : > { %v1405_v34 = vshrl.u32 %v1299_v29, 16  ;;  %v1302_v36 = vpack.i.b16 %v1299_v29, %v1299_v29  ;;  %v1513_v19 = vpack.c.b16 %v1511_v15, %v1511_v15  ;;  %v6554_v15 = vld [vmem:[%s10441_s6 + $0x14] sm:$0xf] }
  0xdc   : > { %v1409_v35 = vshrl.u32 %v1300_v30, 16  ;;  %v1306_v37 = vpack.i.b16 %v1300_v30, %v1300_v30 }
  0xdd   : > { %v1406_v39 = vpack.i.b16 %v1405_v34, %v1405_v34  ;;  %v1304_v32 = vperm.slane %v1302_v36, 3  ;;  %v1619_v27 = vshrl.u32 %v1513_v19, 16 }
  0xde   : > { %v1410_v40 = vpack.i.b16 %v1409_v35, %v1409_v35  ;;  %v1308_v43 = vperm.slane %v1306_v37, 3 }
  0xdf   : > { %7160 = vrot.lane.b32.xlu1 %v7159_v49, %s10367_s23  ;;  %814 = vrot.lane.b32.xlu0 %v698_v58, %s10360_s22  ;;  %v1408_v53 = vperm.slane %v1406_v39, 3  ;;  %v1309_v63 = vunpack.c.l.bf16 %v1304_v32  ;;  %s10379_s23 = smov 17  }
  0xe0   : > { %751 = vrot.lane.b32.xlu2 %v732_v59, %s10366_s15  ;;  %v1412_v55 = vperm.slane %v1410_v40, 3  ;;  %v1310_v0 = vunpack.c.l.bf16 %v1308_v43  ;;  %v1620_v43 = vpack.i.b16 %v1619_v27, %v1619_v27  ;;  %s10383_s15 = smov 114  }
  0xe1   : > { %v1413_v5 = vunpack.c.l.bf16 %v1408_v53 }
  0xe7   : > { %922 = vrot.lane.b32.xlu1 %v902_v7, %s10365_s20  ;;  %7155 = vrot.lane.b32.xlu0 %v7154_v4, %s10363_s30  ;;  %v7164_v7 = vpack.i.bf16 %v1310_v0, %v1309_v63  ;;  %s10373_s30 = smov 112  }
  0xe8   : > { %7150 = vrot.lane.b32.xlu2 %v7149_v6, %s10361_s21  ;;  %v1414_v6 = vunpack.c.l.bf16 %v1412_v55  ;;  %s10372_s21 = smov 30  }
  0xea   : > { %v7169_v9 = vpack.i.bf16 %v1414_v6, %v1413_v5 }
  0xef   : > { %920 = vrot.lane.b32.xlu0 %v901_v17, %s10365_s20  ;;  %v1512_v17 = vunpack.c.h.b16 %v1509_v10 }
  0xf0   : > { %818 = vrot.lane.b32.xlu2 %v700_v18, %s10360_s22  ;;  %s10369_s22 = smov 111  }
  0xf8   : > { %918 = vrot.lane.b32.xlu2 %v900_v24, %s10365_s20  ;;  %v1514_v24 = vpack.c.b16 %v1512_v17, %v1512_v17  ;;  %s10381_s20 = smov 113   ;;  %v743_v17 = vunpack.c.l.b16 %v6554_v15 }
  0xfa   : > { %v1623_v36 = vshrl.u32 %v1514_v24, 16  ;;  %v1520_v32 = vpack.i.b16 %v1514_v24, %v1514_v24 }
  0xfc   : > { %v1624_v53 = vpack.i.b16 %v1623_v36, %v1623_v36  ;;  %v1723_v36 = vld [vmem:[%s10341_s1 + $0x8] sm:$0x22] }
 0x132   : > { %v750_v25 = vpop.permute.xlu2 %749 }
 0x13a   : > { %v752_v28 = vpop.permute.xlu2 %751 }
 0x13b   : > { %v756_v33 = vsel %vm10396_vm5, %v750_v25, %v752_v28 }
 0x13c   : > { %774 = vmatpush.bf16.msra.mxu2 %v756_v33 }
 0x13f   : > { %6559 = vmatmul.msk.bf16.vlgmr.msra.gmra.mxu2 %vm760_vm6, %v7024_v41 }
 0x142   : > { %v7151_v38 = vpop.permute.xlu2 %7150 }
 0x143   : > { %v7153_v42 = vunpack.i.h.bf16 %v7151_v38  ;;  %v7152_v31 = vunpack.i.l.bf16 %v7151_v38 }
 0x145   : > { %v1000_v44 = vmul.f32 %v7153_v42, %v7824_v12  ;;  %v1003_v49 = vmul.f32 %v7153_v42, %v7834_v22  ;;  %v998_v50 = vmul.f32 %v7152_v31, %v7826_v16  ;;  %v1001_v51 = vmul.f32 %v7152_v31, %v7830_v20 }
 0x146   : > { %v994_v52 = vsel %vm10394_vm7, %v7152_v31, %v7153_v42  ;;  %vm1884_vm7 = vcmask 7168  }
 0x147   : > { %v1006_v56 = vpack.c.bf16 %v1003_v49, %v1000_v44  ;;  %v1004_v57 = vpack.c.bf16 %v1001_v51, %v998_v50  ;;  %v999_v58 = vmul.f32 %v994_v52, %v7822_v11  ;;  %v1002_v59 = vmul.f32 %v994_v52, %v7832_v21 }
 0x149   : > { %1026 = vrot.lane.b32.xlu1 %v1006_v56, %s10371_s16  ;;  %1022 = vrot.lane.b32.xlu2 %v1004_v57, %s10371_s16  ;;  %v754_v60 = vpop.permute.xlu0 %753  ;;  %v817_v61 = vpop.permute.xlu1 %816  ;;  %v1005_v62 = vpack.c.bf16 %v1002_v59, %v999_v58 }
 0x14a   : > { %v819_v1 = vpop.permute.xlu2 %818  ;;  %v757_v3 = vsel %vm10396_vm5, %v752_v28, %v754_v60  ;;  %vm1670_vm5 = vcmask 113664  }
 0x14b   : > { %1024 = vrot.lane.b32.xlu0 %v1005_v62, %s10371_s16  ;;  %792 = vmatpush.bf16.msra.mxu3 %v757_v3  ;;  %v822_v4 = vsel %vm10393_vm8, %v817_v61, %v819_v1  ;;  %v1522_v62 = vperm.slane %v1520_v32, 0  ;;  %v1622_v1 = vperm.slane %v1620_v43, 0  ;;  %v1626_v3 = vperm.slane %v1624_v53, 0  ;;  %s10385_s16 = smov 126  }
 0x14d   : > { %v1524_v6 = vunpack.c.l.bf16 %v1522_v62 }
 0x14e   : > { %6561 = vmatmul.msk.bf16.vlgmr.msra.gmra.mxu3 %vm760_vm6, %v7024_v41  ;;  %v1516_v41 = vpack.i.b16 %v1513_v19, %v1513_v19 }
 0x14f   : > { %856 = vmatpush.bf16.msrb.mxu3 %v822_v4 }
 0x151   : > { %7165 = vrot.lane.b32.xlu2 %v7164_v7, %s10369_s22  ;;  %v815_v13 = vpop.permute.xlu0 %814  ;;  %v7161_v18 = vpop.permute.xlu1 %7160  ;;  %v1627_v7 = vunpack.c.l.bf16 %v1622_v1  ;;  %s10442_s22 = smov 14  }
 0x152   : > { %v821_v14 = vsel %vm10393_vm8, %v815_v13, %v817_v61  ;;  %v7163_v33 = vunpack.i.h.bf16 %v7161_v18  ;;  %v7162_v34 = vunpack.i.l.bf16 %v7161_v18  ;;  %v919_v42 = vpop.permute.xlu2 %918  ;;  %v1518_v61 = vperm.slane %v1516_v41, 0 }
 0x153   : > { %7170 = vrot.lane.b32.xlu0 %v7169_v9, %s10373_s30  ;;  %838 = vmatpush.bf16.msrb.mxu2 %v821_v14  ;;  %v1628_v9 = vunpack.c.l.bf16 %v1626_v3  ;;  %v745_v18 = vpack.c.b16 %v743_v17, %v743_v17  ;;  %s10387_s30 = smov 16   ;;  %vm1849_vm8 = vcmask 1039360  }
 0x154   : > { %v1214_v50 = vmul.f32 %v7163_v33, %v7824_v12  ;;  %v1217_v51 = vmul.f32 %v7163_v33, %v7834_v22  ;;  %v1208_v52 = vsel %vm1207_vm10, %v7162_v34, %v7163_v33  ;;  %v1212_v57 = vmul.f32 %v7162_v34, %v7826_v16 }
 0x155   : > { %v1215_v58 = vmul.f32 %v7162_v34, %v7830_v20  ;;  %v1213_v59 = vmul.f32 %v1208_v52, %v7822_v11  ;;  %v1216_v60 = vmul.f32 %v1208_v52, %v7832_v21  ;;  %v1523_v5 = vunpack.c.l.bf16 %v1518_v61  ;;  %6560 = vmatmul.msk.bf16.gmra.mxu2 %vm760_vm6, %v745_v18 }
 0x156   : > { %v1220_v63 = vpack.c.bf16 %v1217_v51, %v1214_v50  ;;  %v7179_v13 = vpack.i.bf16 %v1628_v9, %v1627_v7 }
 0x157   : > { %v1218_v0 = vpack.c.bf16 %v1215_v58, %v1212_v57  ;;  %v1219_v4 = vpack.c.bf16 %v1216_v60, %v1213_v59  ;;  %v7174_v10 = vpack.i.bf16 %v1524_v6, %v1523_v5 }
 0x159   : > { %v7156_v23 = vpop.permute.xlu0 %7155  ;;  %v923_v44 = vpop.permute.xlu1 %922 }
 0x15a   : > { %v7158_v25 = vunpack.i.h.bf16 %v7156_v23  ;;  %v7157_v26 = vunpack.i.l.bf16 %v7156_v23 }
 0x15c   : > { %v1110_v8 = vmul.f32 %v7158_v25, %v7824_v12  ;;  %v1113_v28 = vmul.f32 %v7158_v25, %v7834_v22  ;;  %v1108_v29 = vmul.f32 %v7157_v26, %v7826_v16  ;;  %v1111_v30 = vmul.f32 %v7157_v26, %v7830_v20 }
 0x15d   : > { %v1104_v35 = vsel %vm10395_vm9, %v7157_v26, %v7158_v25  ;;  %vm1566_vm9 = vcmask 121856  }
 0x15e   : > { %v1116_v37 = vpack.c.bf16 %v1113_v28, %v1110_v8  ;;  %v1114_v38 = vpack.c.bf16 %v1111_v30, %v1108_v29  ;;  %v1109_v39 = vmul.f32 %v1104_v35, %v7822_v11  ;;  %v1112_v40 = vmul.f32 %v1104_v35, %v7832_v21  ;;  %6562 = vmatmul.msk.bf16.gmra.mxu3 %vm760_vm6, %v745_v18 }
 0x160   : > { %1136 = vrot.lane.b32.xlu0 %v1116_v37, %s10372_s21  ;;  %1132 = vrot.lane.b32.xlu1 %v1114_v38, %s10372_s21  ;;  %v1115_v31 = vpack.c.bf16 %v1112_v40, %v1109_v39  ;;  %v7023_v37 = vld [vmem:[%s10441_s6] sm:$0xff]  ;;  %v1725_v38 = vunpack.c.l.b16 %v1723_v36  ;;  %v1726_v39 = vunpack.c.h.b16 %v1723_v36 }
 0x161   : > { %v921_v49 = vpop.permute.xlu0 %920 }
 0x162   : > { %1134 = vrot.lane.b32.xlu2 %v1115_v31, %s10372_s21  ;;  %v925_v55 = vsel %vm10401_vm11, %v919_v42, %v921_v49  ;;  %v926_v56 = vsel %vm10401_vm11, %v921_v49, %v923_v44  ;;  %v1727_v42 = vpack.c.b16 %v1725_v38, %v1725_v38  ;;  %v1728_v31 = vpack.c.b16 %v1726_v39, %v1726_v39  ;;  %s10399_s21 = smov 127  }
 0x163   : > { %942 = vmatpush.bf16.msra.mxu2 %v925_v55  ;;  %960 = vmatpush.bf16.msra.mxu3 %v926_v56  ;;  %vm1780_vm11 = vcmask 15360  }
 0x164   : > { %v1833_v44 = vshrl.u32 %v1727_v42, 16  ;;  %v1837_v49 = vshrl.u32 %v1728_v31, 16  ;;  %v1730_v50 = vpack.i.b16 %v1727_v42, %v1727_v42  ;;  %v1734_v51 = vpack.i.b16 %v1728_v31, %v1728_v31 }
 0x165   : > { %6567 = vmatmul.msk.bf16.vlgmr.msrb.gmra.mxu2 %vm760_vm6, %v7023_v37 }
 0x166   : > { %v1834_v53 = vpack.i.b16 %v1833_v44, %v1833_v44  ;;  %v1838_v55 = vpack.i.b16 %v1837_v49, %v1837_v49  ;;  %v1732_v58 = vperm.slane %v1730_v50, 1  ;;  %v1736_v59 = vperm.slane %v1734_v51, 1 }
 0x168   : > { %1240 = vrot.lane.b32.xlu0 %v1220_v63, %s10376_s24  ;;  %1236 = vrot.lane.b32.xlu1 %v1218_v0, %s10376_s24  ;;  %v1836_v1 = vperm.slane %v1834_v53, 1  ;;  %v1840_v3 = vperm.slane %v1838_v55, 1 }
 0x16a   : > { %1238 = vrot.lane.b32.xlu2 %v1219_v4, %s10376_s24  ;;  %v1841_v15 = vunpack.c.l.bf16 %v1836_v1  ;;  %v1842_v17 = vunpack.c.l.bf16 %v1840_v3  ;;  %s10389_s24 = smov 15  }
 0x16e   : > { %6569 = vmatmul.msk.bf16.vlgmr.msrb.gmra.mxu3 %vm760_vm6, %v7023_v37 }
 0x170   : > { %7175 = vrot.lane.b32.xlu1 %v7174_v10, %s10381_s20  ;;  %v1737_v10 = vunpack.c.l.bf16 %v1732_v58 }
 0x172   : > { %7180 = vrot.lane.b32.xlu2 %v7179_v13, %s10383_s15  ;;  %v1738_v13 = vunpack.c.l.bf16 %v1736_v59  ;;  %s10397_s15 = smov 1  }
 0x174   : > { %v7184_v18 = vpack.i.bf16 %v1738_v13, %v1737_v10 }
 0x1a3   : > { %v1023_v14 = vpop.permute.xlu2 %1022 }
 0x1ab   : > { %v7166_v19 = vpop.permute.xlu2 %7165 }
 0x1ac   : > { %v7168_v23 = vunpack.i.h.bf16 %v7166_v19  ;;  %v7167_v24 = vunpack.i.l.bf16 %v7166_v19 }
 0x1ae   : > { %v1322_v25 = vmul.f32 %v7167_v24, %v7826_v16  ;;  %v1325_v26 = vmul.f32 %v7167_v24, %v7830_v20  ;;  %v1324_v27 = vmul.f32 %v7168_v23, %v7824_v12  ;;  %v1327_v8 = vmul.f32 %v7168_v23, %v7834_v22 }
 0x1af   : > { %v1318_v28 = vsel %vm1317_vm12, %v7167_v24, %v7168_v23  ;;  %v7189_v24 = vpack.i.bf16 %v1842_v17, %v1841_v15 }
 0x1b0   : > { %v1328_v29 = vpack.c.bf16 %v1325_v26, %v1322_v25  ;;  %v1330_v30 = vpack.c.bf16 %v1327_v8, %v1324_v27  ;;  %v1323_v33 = vmul.f32 %v1318_v28, %v7822_v11  ;;  %v1326_v34 = vmul.f32 %v1318_v28, %v7832_v21 }
 0x1b2   : > { %1346 = vrot.lane.b32.xlu0 %v1328_v29, %s10379_s23  ;;  %1350 = vrot.lane.b32.xlu2 %v1330_v30, %s10379_s23  ;;  %v1329_v35 = vpack.c.bf16 %v1326_v34, %v1323_v33  ;;  %v1939_v33 = vld [vmem:[%s10341_s1 + $0x8] sm:$0x44] }
 0x1b3   : > { %v1941_v34 = vunpack.c.l.b16 %v1939_v33 }
 0x1b4   : > { %1348 = vrot.lane.b32.xlu1 %v1329_v35, %s10379_s23  ;;  %v1942_v35 = vunpack.c.h.b16 %v1939_v33  ;;  %s10447_s23 = smov 114  }
 0x1b5   : > { %v7967_v38 = vpack.c.b16 %v1941_v34, %v1941_v34 }
 0x1b6   : > { %v7969_v39 = vpack.c.b16 %v1942_v35, %v1942_v35 }
 0x1bb   : > { %v1027_v40 = vpop.permute.xlu1 %1026 }
 0x1bd   : > { %v1025_v41 = vpop.permute.xlu0 %1024 }
 0x1be   : > { %v1029_v32 = vsel %vm1028_vm13, %v1023_v14, %v1025_v41  ;;  %v1030_v43 = vsel %vm1028_vm13, %v1025_v41, %v1027_v40  ;;  %v1135_v14 = vpop.permute.xlu2 %1134 }
 0x1bf   : > { %1046 = vmatpush.bf16.msrb.mxu0 %v1029_v32  ;;  %1064 = vmatpush.bf16.msrb.mxu1 %v1030_v43  ;;  %v2029_v32 = vshrl.u32 %v7967_v38, 16  ;;  %v2033_v43 = vshrl.u32 %v7969_v39, 16 }
 0x1c5   : > { %v7171_v52 = vpop.permute.xlu0 %7170 }
 0x1c6   : > { %v7173_v56 = vunpack.i.h.bf16 %v7171_v52  ;;  %v7172_v57 = vunpack.i.l.bf16 %v7171_v52  ;;  %v1239_v27 = vpop.permute.xlu2 %1238 }
 0x1c8   : > { %v1426_v60 = vmul.f32 %v7172_v57, %v7826_v16  ;;  %v1429_v61 = vmul.f32 %v7172_v57, %v7830_v20  ;;  %v1428_v62 = vmul.f32 %v7173_v56, %v7824_v12  ;;  %v1431_v63 = vmul.f32 %v7173_v56, %v7834_v22 }
 0x1c9   : > { %v1422_v0 = vsel %vm1421_vm14, %v7172_v57, %v7173_v56 }
 0x1ca   : > { %v1432_v4 = vpack.c.bf16 %v1429_v61, %v1426_v60  ;;  %v1434_v5 = vpack.c.bf16 %v1431_v63, %v1428_v62  ;;  %v1427_v6 = vmul.f32 %v1422_v0, %v7822_v11  ;;  %v1430_v7 = vmul.f32 %v1422_v0, %v7832_v21 }
 0x1cb   : > { %v2030_v60 = vpack.i.b16 %v2029_v32, %v2029_v32  ;;  %v2034_v61 = vpack.i.b16 %v2033_v43, %v2033_v43  ;;  %v2139_v43 = vld [vmem:[%s10341_s1 + $0x8] sm:$0x88] }
 0x1cc   : > { %1450 = vrot.lane.b32.xlu0 %v1432_v4, %s10387_s30  ;;  %1454 = vrot.lane.b32.xlu2 %v1434_v5, %s10387_s30  ;;  %v1433_v9 = vpack.c.bf16 %v1430_v7, %v1427_v6  ;;  %v7021_v4 = vld [vmem:[%s10440_s2 + $0x10] sm:$0xff]  ;;  %v703_v5 = vld [vmem:[%s10441_s6 + $0x8] sm:$0xf] }
 0x1cd   : > { %v2032_v7 = vperm.slane %v2030_v60, 2  ;;  %v808_v10 = vunpack.c.l.b16 %v703_v5  ;;  %6544 = vmatmul.msk.bf16.gmra.mxu0 %vm500_vm1, %v7021_v4  ;;  %6549 = vmatmul.msk.bf16.gmra.mxu1 %vm500_vm1, %v7021_v4 }
 0x1ce   : > { %1452 = vrot.lane.b32.xlu1 %v1433_v9, %s10387_s30  ;;  %v7181_v36 = vpop.permute.xlu2 %7180  ;;  %v2036_v9 = vperm.slane %v2034_v61, 2  ;;  %s7621_s30 = smov 2  }
 0x1cf   : > { %v7183_v42 = vunpack.i.h.bf16 %v7181_v36  ;;  %v7182_v31 = vunpack.i.l.bf16 %v7181_v36  ;;  %v810_v15 = vpack.c.b16 %v808_v10, %v808_v10  ;;  %v6573_v36 = vld [vmem:[%s10441_s6 + $0x20] sm:$0xf] }
 0x1d1   : > { %v1636_v58 = vsel %vm1635_vm3, %v7182_v31, %v7183_v42  ;;  %v1642_v62 = vmul.f32 %v7183_v42, %v7824_v12  ;;  %v1645_v63 = vmul.f32 %v7183_v42, %v7834_v22  ;;  %v1640_v0 = vmul.f32 %v7182_v31, %v7826_v16  ;;  %6568 = vmatmul.msk.bf16.gmra.mxu2 %vm760_vm6, %v810_v15 }
 0x1d2   : > { %v1137_v19 = vpop.permute.xlu0 %1136  ;;  %v1133_v23 = vpop.permute.xlu1 %1132  ;;  %v1643_v1 = vmul.f32 %v7182_v31, %v7830_v20  ;;  %v1641_v3 = vmul.f32 %v1636_v58, %v7822_v11  ;;  %v1644_v6 = vmul.f32 %v1636_v58, %v7832_v21  ;;  %6570 = vmatmul.msk.bf16.gmra.mxu3 %vm760_vm6, %v810_v15 }
 0x1d3   : > { %v1140_v25 = vsel %vm1138_vm15, %v1135_v14, %v1137_v19  ;;  %v1139_v26 = vsel %vm1138_vm15, %v1133_v23, %v1135_v14  ;;  %v1648_v13 = vpack.c.bf16 %v1645_v63, %v1642_v62  ;;  %v2044_v19 = vunpack.c.l.bf16 %v2036_v9  ;;  %v7028_v62 = vld [vmem:[%s10441_s6 + $0x3c] sm:$0xff] }
 0x1d4   : > { %7185 = vrot.lane.b32.xlu0 %v7184_v18, %s10385_s16  ;;  %1156 = vmatpush.bf16.msrb.mxu2 %v1139_v26  ;;  %v1646_v14 = vpack.c.bf16 %v1643_v1, %v1640_v0  ;;  %s10391_s16 = smov 14   ;;  %v1647_v17 = vpack.c.bf16 %v1644_v6, %v1641_v3  ;;  %v2043_v18 = vunpack.c.l.bf16 %v2032_v7  ;;  %v470_v26 = vld [vmem:[%s10440_s2 + $0x20] sm:$0xf] }
 0x1d5   : > { %1174 = vmatpush.bf16.msrb.mxu3 %v1140_v25  ;;  %v7025_v25 = vld [vmem:[%s10441_s6 + $0x18] sm:$0xff] }
 0x1d6   : > { %7190 = vrot.lane.b32.xlu1 %v7189_v24, %s10399_s21  ;;  %v7194_v23 = vpack.i.bf16 %v2044_v19, %v2043_v18  ;;  %v7022_v24 = vld [vmem:[%s10440_s2 + $0x18] sm:$0xff]  ;;  %s10452_s2 = smov 30  }
 0x1da   : > { %v1241_v8 = vpop.permute.xlu0 %1240  ;;  %v1237_v28 = vpop.permute.xlu1 %1236 }
 0x1db   : > { %v1244_v29 = vsel %vm1242_vm0, %v1239_v27, %v1241_v8  ;;  %v1243_v30 = vsel %vm1242_vm0, %v1237_v28, %v1239_v27  ;;  %v489_v27 = vunpack.c.l.b16 %v470_v26  ;;  %v7026_v28 = vld [vmem:[%s10441_s6 + $0x24] sm:$0xff] }
 0x1dc   : > { %1260 = vmatpush.bf16.msra.mxu0 %v1243_v30  ;;  %1278 = vmatpush.bf16.msra.mxu1 %v1244_v29 }
 0x1dd   : > { %6545 = vmatmul.msk.bf16.gmra.mxu0 %vm500_vm1, %v7022_v24  ;;  %6550 = vmatmul.msk.bf16.gmra.mxu1 %vm500_vm1, %v7022_v24  ;;  %v494_v8 = vpack.c.b16 %v489_v27, %v489_v27 }
 0x1e1   : > { %6578 = vmatmul.msk.bf16.vlgmr.msra.gmra.mxu2 %vm760_vm6, %v7025_v25 }
 0x1e2   : > { %v7176_v37 = vpop.permute.xlu1 %7175  ;;  %6580 = vmatmul.msk.bf16.vlgmr.msra.gmra.mxu3 %vm760_vm6, %v7025_v25 }
 0x1e3   : > { %v7178_v40 = vunpack.i.h.bf16 %v7176_v37  ;;  %v7177_v41 = vunpack.i.l.bf16 %v7176_v37  ;;  %v912_v37 = vunpack.c.l.b16 %v6573_v36 }
 0x1e5   : > { %v1538_v44 = vmul.f32 %v7178_v40, %v7824_v12  ;;  %v1541_v49 = vmul.f32 %v7178_v40, %v7834_v22  ;;  %v1536_v50 = vmul.f32 %v7177_v41, %v7826_v16  ;;  %v1539_v51 = vmul.f32 %v7177_v41, %v7830_v20 }
 0x1e6   : > { %v1532_v52 = vsel %vm1531_vm2, %v7177_v41, %v7178_v40  ;;  %v914_v40 = vpack.c.b16 %v912_v37, %v912_v37  ;;  %v6584_v41 = vld [vmem:[%s10441_s6 + $0x2c] sm:$0xf] }
 0x1e7   : > { %v1544_v53 = vpack.c.bf16 %v1541_v49, %v1538_v44  ;;  %v1542_v55 = vpack.c.bf16 %v1539_v51, %v1536_v50  ;;  %v1537_v56 = vmul.f32 %v1532_v52, %v7822_v11  ;;  %v1540_v57 = vmul.f32 %v1532_v52, %v7832_v21  ;;  %v7027_v49 = vld [vmem:[%s10441_s6 + $0x30] sm:$0xff] }
 0x1e8   : > { %v1016_v42 = vunpack.c.l.b16 %v6584_v41  ;;  %v2141_v51 = vunpack.c.l.b16 %v2139_v43 }
 0x1e9   : > { %1564 = vrot.lane.b32.xlu1 %v1544_v53, %s10389_s24  ;;  %1560 = vrot.lane.b32.xlu2 %v1542_v55, %s10389_s24  ;;  %v1543_v59 = vpack.c.bf16 %v1540_v57, %v1537_v56  ;;  %v2142_v55 = vunpack.c.h.b16 %v2139_v43 }
 0x1ea   : > { %v1018_v31 = vpack.c.b16 %v1016_v42, %v1016_v42  ;;  %v2143_v57 = vpack.c.b16 %v2141_v51, %v2141_v51 }
 0x1eb   : > { %1562 = vrot.lane.b32.xlu0 %v1543_v59, %s10389_s24  ;;  %v2144_v58 = vpack.c.b16 %v2142_v55, %v2142_v55  ;;  %s10448_s24 = smov 113  }
 0x1ec   : > { %v2249_v0 = vshrl.u32 %v2143_v57, 16  ;;  %v2146_v19 = vpack.i.b16 %v2143_v57, %v2143_v57 }
 0x1ed   : > { %6546 = vmatmul.msk.bf16.gmra.mxu0 %vm500_vm1, %v494_v8  ;;  %6551 = vmatmul.msk.bf16.gmra.mxu1 %vm500_vm1, %v494_v8  ;;  %vm1745_vm1 = vcmask 1031168   ;;  %v2253_v5 = vshrl.u32 %v2144_v58, 16  ;;  %v2150_v24 = vpack.i.b16 %v2144_v58, %v2144_v58 }
 0x1f1   : > { %1668 = vrot.lane.b32.xlu1 %v1648_v13, %s10391_s16  ;;  %1664 = vrot.lane.b32.xlu2 %v1646_v14, %s10391_s16  ;;  %v2353_v13 = vld [vmem:[%s10341_s1 + $0x10] sm:$0x11] }
 0x1f2   : > { %6579 = vmatmul.msk.bf16.gmra.mxu2 %vm760_vm6, %v914_v40  ;;  %6581 = vmatmul.msk.bf16.gmra.mxu3 %vm760_vm6, %v914_v40  ;;  %v2355_v26 = vunpack.c.l.b16 %v2353_v13  ;;  %v2356_v27 = vunpack.c.h.b16 %v2353_v13  ;;  %v2152_v40 = vperm.slane %v2150_v24, 3  ;;  %v7531_v13 = vld [vmem:[#allocation2 + $0x4] sm:$0xff]  ;;  %v7532_v24 = vld [vmem:[#allocation2 + $0x14] sm:$0xff] }
 0x1f3   : > { %1666 = vrot.lane.b32.xlu0 %v1647_v17, %s10391_s16  ;;  %s10451_s16 = smov 112  }
 0x1f4   : > { %v2358_v43 = vpack.c.b16 %v2356_v27, %v2356_v27 }
 0x1f6   : > { %v2364_v57 = vpack.i.b16 %v2358_v43, %v2358_v43 }
 0x1f9   : > { %7195 = vrot.lane.b32.xlu2 %v7194_v23, %s10397_s15 }
 0x1fd   : > { %6589 = vmatmul.msk.bf16.vlgmr.msrb.gmra.mxu0 %vm760_vm6, %v7026_v28  ;;  %6591 = vmatmul.msk.bf16.vlgmr.msrb.gmra.mxu1 %vm760_vm6, %v7026_v28  ;;  %v2250_v28 = vpack.i.b16 %v2249_v0, %v2249_v0 }
 0x202   : > { %6600 = vmatmul.msk.bf16.vlgmr.msrb.gmra.mxu2 %vm760_vm6, %v7027_v49  ;;  %6602 = vmatmul.msk.bf16.vlgmr.msrb.gmra.mxu3 %vm760_vm6, %v7027_v49  ;;  %v8079_v49 = vunpack.c.l.bf16 %v7811_v54 }
 0x20c   : > { %v1351_v30 = vpop.permute.xlu2 %1350 }
 0x20d   : > { %6590 = vmatmul.msk.bf16.gmra.mxu0 %vm760_vm6, %v1018_v31  ;;  %6592 = vmatmul.msk.bf16.gmra.mxu1 %vm760_vm6, %v1018_v31 }
 0x21d   : > { %6611 = vmatmul.msk.bf16.vlgmr.msra.gmra.mxu0 %vm760_vm6, %v7028_v62  ;;  %6613 = vmatmul.msk.bf16.vlgmr.msra.gmra.mxu1 %vm760_vm6, %v7028_v62 }
 0x224   : > { %v1347_v29 = vpop.permute.xlu0 %1346 }
 0x226   : > { %v1349_v33 = vpop.permute.xlu1 %1348  ;;  %v1455_v32 = vpop.permute.xlu2 %1454 }
 0x227   : > { %v1353_v34 = vsel %vm1352_vm4, %v1347_v29, %v1349_v33  ;;  %v1354_v35 = vsel %vm1352_vm4, %v1349_v33, %v1351_v30  ;;  %v2254_v29 = vpack.i.b16 %v2253_v5, %v2253_v5 }
 0x228   : > { %1370 = vmatpush.bf16.msra.mxu2 %v1353_v34  ;;  %1388 = vmatpush.bf16.msra.mxu3 %v1354_v35  ;;  %v2148_v34 = vperm.slane %v2146_v19, 3  ;;  %v6595_v35 = vld [vmem:[%s10441_s6 + $0x38] sm:$0xf] }
 0x229   : > { %v1126_v41 = vunpack.c.l.b16 %v6595_v35 }
 0x23e   : > { %v1451_v44 = vpop.permute.xlu0 %1450 }
 0x240   : > { %v1453_v50 = vpop.permute.xlu1 %1452 }
 0x241   : > { %v1457_v52 = vsel %vm760_vm6, %v1451_v44, %v1453_v50  ;;  %v1458_v53 = vsel %vm760_vm6, %v1453_v50, %v1455_v32  ;;  %v2357_v32 = vpack.c.b16 %v2355_v26, %v2355_v26  ;;  %v2256_v44 = vperm.slane %v2254_v29, 3 }
 0x242   : > { %1474 = vmatpush.bf16.msrb.mxu0 %v1457_v52  ;;  %1492 = vmatpush.bf16.msrb.mxu1 %v1458_v53  ;;  %v2153_v53 = vunpack.c.l.bf16 %v2148_v34 }
 0x243   : > { %v8044_v56 = vpop.permute.xlu2 %1560  ;;  %v2360_v55 = vpack.i.b16 %v2357_v32, %v2357_v32  ;;  %v2463_v5 = vshrl.u32 %v2357_v32, 16 }
 0x245   : > { %v2362_v0 = vperm.slane %v2360_v55, 0  ;;  %v7031_v55 = vld [vmem:[%s10441_s6 + $0x60] sm:$0xff] }
 0x246   : > { %v7186_v59 = vpop.permute.xlu0 %7185 }
 0x247   : > { %v7188_v60 = vunpack.i.h.bf16 %v7186_v59  ;;  %v7187_v61 = vunpack.i.l.bf16 %v7186_v59  ;;  %v2258_v59 = vunpack.c.l.bf16 %v2256_v44 }
 0x248   : > { %v7191_v63 = vpop.permute.xlu1 %7190 }
 0x249   : > { %v7193_v1 = vunpack.i.h.bf16 %v7191_v63  ;;  %v1752_v3 = vmul.f32 %v7188_v60, %v7824_v12  ;;  %v1755_v4 = vmul.f32 %v7188_v60, %v7834_v22  ;;  %v7192_v6 = vunpack.i.l.bf16 %v7191_v63 }
 0x24a   : > { %v1750_v7 = vmul.f32 %v7187_v61, %v7826_v16  ;;  %v1753_v9 = vmul.f32 %v7187_v61, %v7830_v20  ;;  %v1746_v10 = vsel %vm1745_vm1, %v7187_v61, %v7188_v60  ;;  %v2026_v60 = vld [vmem:[#allocation2 + $0xc] sm:$0xf]  ;;  %v2028_v61 = vld [vmem:[#allocation2 + $0x1c] sm:$0xf] }
 0x24b   : > { %v1758_v14 = vpack.c.bf16 %v1755_v4, %v1752_v3  ;;  %v8059_v15 = vpop.permute.xlu2 %1664  ;;  %v1751_v17 = vmul.f32 %v1746_v10, %v7822_v11  ;;  %v1754_v18 = vmul.f32 %v1746_v10, %v7832_v21  ;;  %v1850_v8 = vsel %vm1849_vm8, %v7192_v6, %v7193_v1 }
 0x24c   : > { %v1756_v23 = vpack.c.bf16 %v1753_v9, %v1750_v7  ;;  %v1856_v30 = vmul.f32 %v7193_v1, %v7824_v12  ;;  %v1859_v33 = vmul.f32 %v7193_v1, %v7834_v22  ;;  %v1854_v36 = vmul.f32 %v7192_v6, %v7826_v16 }
 0x24d   : > { %1778 = vrot.lane.b32.xlu2 %v1758_v14, %s7621_s30  ;;  %v1757_v25 = vpack.c.bf16 %v1754_v18, %v1751_v17  ;;  %v1857_v37 = vmul.f32 %v7192_v6, %v7830_v20  ;;  %v1855_v42 = vmul.f32 %v1850_v8, %v7822_v11  ;;  %v1858_v31 = vmul.f32 %v1850_v8, %v7832_v21 }
 0x24e   : > { %1774 = vrot.lane.b32.xlu0 %v1756_v23, %s7621_s30  ;;  %v2252_v12 = vperm.slane %v2250_v28, 3  ;;  %v1128_v22 = vpack.c.b16 %v1126_v41, %v1126_v41  ;;  %v1862_v50 = vpack.c.bf16 %v1859_v33, %v1856_v30  ;;  %v8082_v16 = vunpack.c.l.bf16 %v7817_v2 }
 0x24f   : > { %1776 = vrot.lane.b32.xlu1 %v1757_v25, %s7621_s30  ;;  %v1860_v52 = vpack.c.bf16 %v1857_v37, %v1854_v36  ;;  %v1861_v11 = vpack.c.bf16 %v1858_v31, %v1855_v42  ;;  %v2154_v21 = vunpack.c.l.bf16 %v2152_v40  ;;  %v2366_v1 = vperm.slane %v2364_v57, 0  ;;  %v6628_v57 = vld [vmem:[%s10441_s6 + $0x5c] sm:$0xf] }
 0x250   : > { %6601 = vmatmul.msk.bf16.gmra.mxu2 %vm760_vm6, %v1128_v22  ;;  %6603 = vmatmul.msk.bf16.gmra.mxu3 %vm760_vm6, %v1128_v22  ;;  %v2257_v58 = vunpack.c.l.bf16 %v2252_v12  ;;  %v8091_v7 = vunpack.c.l.bf16 %v2026_v60  ;;  %v8093_v9 = vunpack.c.l.bf16 %v2028_v61  ;;  %v2467_v10 = vshrl.u32 %v2358_v43, 16  ;;  %v589_v22 = vld [vmem:[%s10444_s3] sm:$0xff]  ;;  %v1938_v60 = vld [vmem:[#allocation2 + $0x14] sm:$0xff] }
 0x251   : > { %v7199_v3 = vpack.i.bf16 %v2154_v21, %v2153_v53  ;;  %v8095_v14 = vunpack.c.h.bf16 %v7531_v13  ;;  %v2367_v18 = vunpack.c.l.bf16 %v2362_v0  ;;  %v2368_v19 = vunpack.c.l.bf16 %v2366_v1  ;;  %v7030_v21 = vld [vmem:[%s10441_s6 + $0x54] sm:$0xff]  ;;  %v1937_v0 = vld [vmem:[#allocation2 + $0x4] sm:$0xff] }
 0x252   : > { %v7204_v4 = vpack.i.bf16 %v2258_v59, %v2257_v58  ;;  %v8099_v25 = vunpack.c.h.bf16 %v7532_v24  ;;  %v2464_v8 = vpack.i.b16 %v2463_v5, %v2463_v5  ;;  %v2468_v30 = vpack.i.b16 %v2467_v10, %v2467_v10 }
 0x253   : > { %v7196_v51 = vpop.permute.xlu2 %7195  ;;  %v7209_v35 = vpack.i.bf16 %v2368_v19, %v2367_v18  ;;  %v1950_v58 = vpack.i.b16 %v7969_v39, %v7969_v39  ;;  %v1946_v59 = vpack.i.b16 %v7967_v38, %v7967_v38  ;;  %v1955_v1 = vunpack.c.l.bf16 %v1938_v60 }
 0x254   : > { %v7197_v20 = vunpack.i.l.bf16 %v7196_v51  ;;  %v7198_v62 = vunpack.i.h.bf16 %v7196_v51  ;;  %v2466_v40 = vperm.slane %v2464_v8, 0  ;;  %v2470_v41 = vperm.slane %v2468_v30, 0  ;;  %v8163_v30 = vpop.f32.mrf.mxu3 }
 0x255   : > { %1882 = vrot.lane.b32.xlu2 %v1862_v50, %s10397_s15  ;;  %v1948_v61 = vperm.slane %v1946_v59, 2  ;;  %v1953_v5 = vunpack.c.l.bf16 %v1937_v0  ;;  %v1954_v10 = vunpack.c.h.bf16 %v1937_v0 }
 0x256   : > { %1878 = vrot.lane.b32.xlu0 %v1860_v52, %s10397_s15  ;;  %v2056_v54 = vmul.f32 %v7197_v20, %v8079_v49  ;;  %v2059_v2 = vmul.f32 %v7197_v20, %v8082_v16  ;;  %v2052_v23 = vsel %vm1884_vm7, %v7197_v20, %v7198_v62  ;;  %v2058_v28 = vmul.f32 %v7198_v62, %v8091_v7  ;;  %v6617_v52 = vld [vmem:[%s10441_s6 + $0x50] sm:$0xf] }
 0x257   : > { %1880 = vrot.lane.b32.xlu1 %v1861_v11, %s10397_s15  ;;  %v2061_v29 = vmul.f32 %v7198_v62, %v8093_v9  ;;  %v2057_v33 = vmul.f32 %v2052_v23, %v8095_v14  ;;  %v2060_v34 = vmul.f32 %v2052_v23, %v8099_v25  ;;  %v2471_v12 = vunpack.c.l.bf16 %v2466_v40  ;;  %s10402_s15 = sand.u32 1, %s7587_s26  }
 0x258   : > { %v2062_v63 = vpack.c.bf16 %v2059_v2, %v2056_v54  ;;  %v2472_v44 = vunpack.c.l.bf16 %v2470_v41  ;;  %v1340_v53 = vunpack.c.l.b16 %v6617_v52  ;;  %v1444_v54 = vunpack.c.l.b16 %v6628_v57  ;;  %s7066_s20 = smul.u32 176, %s10402_s15 }
 0x259   : > { %v2064_v37 = vpack.c.bf16 %v2061_v29, %v2058_v28  ;;  %v2063_v42 = vpack.c.bf16 %v2060_v34, %v2057_v33  ;;  %v1952_v62 = vperm.slane %v1950_v58, 2  ;;  %v8161_v29 = vpop.f32.mrf.mxu2  ;;  %v2566_v33 = vld [vmem:[%s10341_s1 + $0x10] sm:$0x22] }
 0x25a   : > { %v7214_v50 = vpack.i.bf16 %v2472_v44, %v2471_v12  ;;  %v1342_v11 = vpack.c.b16 %v1340_v53, %v1340_v53  ;;  %v1446_v2 = vpack.c.b16 %v1444_v54, %v1444_v54  ;;  %v2569_v40 = vunpack.c.h.b16 %v2566_v33  ;;  %s8221_s0 = scalar_lea.vmem [#allocation6], %s7066_s20  ;;  %s10449_s20 = smov 17  }
 0x25b   : > { %v1565_v6 = vpop.permute.xlu1 %1564  ;;  %v1958_v13 = vunpack.c.l.bf16 %v1952_v62 }
 0x25c   : > { %v2571_v12 = vpack.c.b16 %v2569_v40, %v2569_v40 }
 0x25d   : > { %2080 = vrot.lane.b32.xlu2 %v2062_v63, %s10399_s21  ;;  %v1563_v17 = vpop.permute.xlu0 %1562  ;;  %v1960_v19 = vmul.f32 %v1958_v13, %v1954_v10 }
 0x25e   : > { %7200 = vrot.lane.b32.xlu0 %v7199_v3, %s7621_s30  ;;  %v1567_v26 = vsel %vm1566_vm9, %v8044_v56, %v1563_v17  ;;  %v1568_v27 = vsel %vm1566_vm9, %v1563_v17, %v1565_v6  ;;  %v7029_v56 = vld [vmem:[%s10441_s6 + $0x48] sm:$0xff]  ;;  %s10443_s30 = smov 15   ;;  %v1956_v3 = vunpack.c.h.bf16 %v1938_v60  ;;  %v1957_v6 = vunpack.c.l.bf16 %v1948_v61 }
 0x25f   : > { %7205 = vrot.lane.b32.xlu1 %v7204_v4, %s10442_s22  ;;  %1584 = vmatpush.bf16.msrb.mxu2 %v1567_v26  ;;  %s10445_s22 = smov 16   ;;  %v7032_v4 = vld [vmem:[%s10441_s6 + $0x6c] sm:$0xff]  ;;  %v2680_v57 = vshrl.u32 %v2571_v12, 16  ;;  %v2577_v61 = vpack.i.b16 %v2571_v12, %v2571_v12 }
 0x260   : > { %1602 = vmatpush.bf16.msrb.mxu3 %v1568_v27  ;;  %6622 = vmatmul.msk.bf16.vlgmr.msra.gmra.mxu2 %vm760_vm6, %v7029_v56  ;;  %v1961_v38 = vmul.f32 %v1957_v6, %v1955_v1  ;;  %v1962_v39 = vmul.f32 %v1958_v13, %v1956_v3  ;;  %v1959_v18 = vmul.f32 %v1957_v6, %v1953_v5  ;;  %v8190_v13 = vpop.f32.mrf.mxu0 }
 0x261   : > { %6624 = vmatmul.msk.bf16.vlgmr.msra.gmra.mxu3 %vm760_vm6, %v7029_v56 }
 0x262   : > { %v1963_v27 = vpack.c.bf16 %v1961_v38, %v1959_v18  ;;  %v1964_v8 = vpack.c.bf16 %v1962_v39, %v1960_v19  ;;  %v2681_v19 = vpack.i.b16 %v2680_v57, %v2680_v57 }
 0x263   : > { %v1669_v36 = vpop.permute.xlu1 %1668 }
 0x265   : > { %7210 = vrot.lane.b32.xlu2 %v7209_v35, %s10443_s30  ;;  %v1667_v31 = vpop.permute.xlu0 %1666 }
 0x266   : > { %2082 = vrot.lane.b32.xlu0 %v2063_v42, %s10399_s21  ;;  %v1671_v32 = vsel %vm1670_vm5, %v8059_v15, %v1667_v31  ;;  %v1672_v43 = vsel %vm1670_vm5, %v1667_v31, %v1669_v36  ;;  %v6606_v15 = vld [vmem:[%s10441_s6 + $0x44] sm:$0xf]  ;;  %v8170_v31 = vpop.f32.mrf.mxu2 }
 0x267   : > { %2084 = vrot.lane.b32.xlu1 %v2064_v37, %s10399_s21  ;;  %1688 = vmatpush.bf16.msra.mxu0 %v1671_v32  ;;  %v1230_v51 = vunpack.c.l.b16 %v6606_v15  ;;  %v2568_v37 = vunpack.c.l.b16 %v2566_v33  ;;  %v8172_v32 = vpop.f32.mrf.mxu3  ;;  %s10446_s21 = smov 126   ;;  %v2579_v33 = vperm.slane %v2577_v61, 1 }
 0x268   : > { %1706 = vmatpush.bf16.msra.mxu1 %v1672_v43 }
 0x269   : > { %v1232_v20 = vpack.c.b16 %v1230_v51, %v1230_v51  ;;  %v2570_v42 = vpack.c.b16 %v2568_v37, %v2568_v37  ;;  %v2683_v37 = vperm.slane %v2681_v19, 1 }
 0x26b   : > { %6612 = vmatmul.msk.bf16.gmra.mxu0 %vm760_vm6, %v1232_v20  ;;  %6614 = vmatmul.msk.bf16.gmra.mxu1 %vm760_vm6, %v1232_v20  ;;  %v2676_v15 = vshrl.u32 %v2570_v42, 16  ;;  %v2573_v60 = vpack.i.b16 %v2570_v42, %v2570_v42 }
 0x26d   : > { %v2677_v10 = vpack.i.b16 %v2676_v15, %v2676_v15 }
 0x26e   : > { %593 = vperm.xlu0 %7133, %v589_v22   ;;  %v8181_v62 = vpop.f32.mrf.mxu2 }
 0x26f   : > { %7215 = vrot.lane.b32.xlu1 %v7214_v50, %s10445_s22 }
 0x270   : > { %6623 = vmatmul.msk.bf16.gmra.mxu2 %vm760_vm6, %v1342_v11 }
 0x271   : > { %6625 = vmatmul.msk.bf16.gmra.mxu3 %vm760_vm6, %v1342_v11 }
 0x27b   : > { %6633 = vmatmul.msk.bf16.vlgmr.msrb.gmra.mxu0 %vm760_vm6, %v7030_v21  ;;  %6635 = vmatmul.msk.bf16.vlgmr.msrb.gmra.mxu1 %vm760_vm6, %v7030_v21 }
 0x280   : > { %6644 = vmatmul.msk.bf16.vlgmr.msrb.gmra.mxu2 %vm760_vm6, %v7031_v55 }
 0x281   : > { %6646 = vmatmul.msk.bf16.vlgmr.msrb.gmra.mxu3 %vm760_vm6, %v7031_v55 }
 0x28b   : > { %6634 = vmatmul.msk.bf16.gmra.mxu0 %vm760_vm6, %v1446_v2  ;;  %6636 = vmatmul.msk.bf16.gmra.mxu1 %vm760_vm6, %v1446_v2 }
 0x29b   : > { %6655 = vmatmul.msk.bf16.vlgmr.msra.gmra.mxu0 %vm760_vm6, %v7032_v4  ;;  %6657 = vmatmul.msk.bf16.vlgmr.msra.gmra.mxu1 %vm760_vm6, %v7032_v4 }
 0x2a7   : > { %v1779_v63 = vpop.permute.xlu2 %1778 }
 0x2af   : > { %v1883_v28 = vpop.permute.xlu2 %1882 }
 0x2b7   : > { %v2081_v41 = vpop.permute.xlu2 %2080 }
 0x2bf   : > { %v7211_v0 = vpop.permute.xlu2 %7210 }
 0x2c0   : > { %v1775_v17 = vpop.permute.xlu0 %1774  ;;  %v7213_v15 = vunpack.i.h.bf16 %v7211_v0 }
 0x2c1   : > { %v1777_v23 = vpop.permute.xlu1 %1776 }
 0x2c2   : > { %v1781_v24 = vsel %vm1780_vm11, %v1775_v17, %v1777_v23  ;;  %v1782_v26 = vsel %vm1780_vm11, %v1777_v23, %v1779_v63  ;;  %v8183_v63 = vpop.f32.mrf.mxu3  ;;  %v8197_v23 = vpop.f32.mrf.mxu1 }
 0x2c3   : > { %1798 = vmatpush.bf16.msra.mxu2 %v1781_v24  ;;  %1816 = vmatpush.bf16.msra.mxu3 %v1782_v26  ;;  %v2575_v26 = vperm.slane %v2573_v60, 1 }
 0x2c5   : > { %v2580_v12 = vunpack.c.l.bf16 %v2575_v26 }
 0x2c7   : > { %1990 = vmatpush.bf16.msrb.mxu2 %v1963_v27  ;;  %2008 = vmatpush.bf16.msrb.mxu3 %v1964_v8 }
 0x2c8   : > { %v1879_v34 = vpop.permute.xlu0 %1878 }
 0x2c9   : > { %v1881_v56 = vpop.permute.xlu1 %1880 }
 0x2ca   : > { %v1885_v35 = vsel %vm1884_vm7, %v1879_v34, %v1881_v56  ;;  %v1886_v36 = vsel %vm1884_vm7, %v1881_v56, %v1883_v28  ;;  %v2780_v34 = vld [vmem:[%s10341_s1 + $0x10] sm:$0x44]  ;;  %v7212_v56 = vunpack.i.l.bf16 %v7211_v0  ;;  %v801_v42 = vpop.f32.mrf.mxu3 }
 0x2cb   : > { %1902 = vmatpush.bf16.msrb.mxu0 %v1885_v35  ;;  %1920 = vmatpush.bf16.msrb.mxu1 %v1886_v36  ;;  %v2679_v36 = vperm.slane %v2677_v10, 1  ;;  %v2782_v40 = vunpack.c.l.b16 %v2780_v34 }
 0x2cd   : > { %v2684_v57 = vunpack.c.l.bf16 %v2679_v36 }
 0x2d0   : > { %v7201_v43 = vpop.permute.xlu0 %7200 }
 0x2d1   : > { %v7203_v44 = vunpack.i.h.bf16 %v7201_v43  ;;  %v7202_v22 = vunpack.i.l.bf16 %v7201_v43  ;;  %v7206_v50 = vpop.permute.xlu1 %7205 }
 0x2d2   : > { %v7208_v11 = vunpack.i.h.bf16 %v7206_v50  ;;  %v7207_v21 = vunpack.i.l.bf16 %v7206_v50  ;;  %v6639_v50 = vld [vmem:[%s10441_s6 + $0x68] sm:$0xf] }
 0x2d3   : > { %v2168_v51 = vmul.f32 %v7203_v44, %v8091_v7  ;;  %v2171_v20 = vmul.f32 %v7203_v44, %v8093_v9  ;;  %v2166_v52 = vmul.f32 %v7202_v22, %v8079_v49  ;;  %v2169_v53 = vmul.f32 %v7202_v22, %v8082_v16 }
 0x2d4   : > { %v2162_v55 = vsel %vm1780_vm11, %v7202_v22, %v7203_v44  ;;  %v2272_v3 = vmul.f32 %v7208_v11, %v8091_v7  ;;  %v2275_v4 = vmul.f32 %v7208_v11, %v8093_v9  ;;  %v2266_v6 = vsel %vm1670_vm5, %v7207_v21, %v7208_v11 }
 0x2d5   : > { %v2174_v54 = vpack.c.bf16 %v2171_v20, %v2168_v51  ;;  %v2172_v2 = vpack.c.bf16 %v2169_v53, %v2166_v52  ;;  %v2167_v58 = vmul.f32 %v2162_v55, %v8095_v14  ;;  %v2170_v59 = vmul.f32 %v2162_v55, %v8099_v25  ;;  %v8214_v53 = vpop.f32.mrf.mxu0 }
 0x2d6   : > { %v2270_v17 = vmul.f32 %v7207_v21, %v8079_v49  ;;  %v2273_v18 = vmul.f32 %v7207_v21, %v8082_v16  ;;  %v2278_v27 = vpack.c.bf16 %v2275_v4, %v2272_v3  ;;  %v2271_v8 = vmul.f32 %v2266_v6, %v8095_v14 }
 0x2d7   : > { %2194 = vrot.lane.b32.xlu1 %v2174_v54, %s10446_s21  ;;  %2190 = vrot.lane.b32.xlu2 %v2172_v2, %s10446_s21  ;;  %v2173_v1 = vpack.c.bf16 %v2170_v59, %v2167_v58  ;;  %v2274_v28 = vmul.f32 %v2266_v6, %v8099_v25  ;;  %v2581_v44 = vunpack.c.l.bf16 %v2579_v33  ;;  %v2783_v22 = vunpack.c.h.b16 %v2780_v34  ;;  %v8219_v2 = vpop.f32.mrf.mxu1  ;;  %v858_v6 = vpop.f32.mrf.mxu3 }
 0x2d8   : > { %v2083_v5 = vpop.permute.xlu0 %2082  ;;  %v2276_v35 = vpack.c.bf16 %v2273_v18, %v2270_v17  ;;  %v2380_v20 = vmul.f32 %v7212_v56, %v8079_v49  ;;  %v2383_v52 = vmul.f32 %v7212_v56, %v8082_v16  ;;  %v1554_v11 = vunpack.c.l.b16 %v6639_v50 }
 0x2d9   : > { %2192 = vrot.lane.b32.xlu0 %v2173_v1, %s10446_s21  ;;  %v2085_v38 = vpop.permute.xlu1 %2084  ;;  %v2087_v39 = vsel %vm1849_vm8, %v2081_v41, %v2083_v5  ;;  %v783_v41 = vpop.f32.mrf.mxu2  ;;  %v2277_v43 = vpack.c.bf16 %v2274_v28, %v2271_v8  ;;  %v2685_v54 = vunpack.c.l.bf16 %v2683_v37  ;;  %v2784_v59 = vpack.c.b16 %v2782_v40, %v2782_v40 }
 0x2da   : > { %v2088_v24 = vsel %vm1849_vm8, %v2083_v5, %v2085_v38  ;;  %2104 = vmatpush.bf16.msra.mxu0 %v2087_v39  ;;  %v1556_v60 = vpack.c.b16 %v1554_v11, %v1554_v11  ;;  %v7219_v61 = vpack.i.bf16 %v2581_v44, %v2580_v12  ;;  %v2785_v0 = vpack.c.b16 %v2783_v22, %v2783_v22 }
 0x2db   : > { %2122 = vmatpush.bf16.msra.mxu1 %v2088_v24  ;;  %v2386_v1 = vpack.c.bf16 %v2383_v52, %v2380_v20  ;;  %v2376_v3 = vsel %vm1566_vm9, %v7212_v56, %v7213_v15  ;;  %v2787_v4 = vpack.i.b16 %v2784_v59, %v2784_v59  ;;  %v8236_v18 = vadd.f32 %v858_v6, %v8163_v30 }
 0x2dc   : > { %6645 = vmatmul.msk.bf16.gmra.mxu2 %vm760_vm6, %v1556_v60  ;;  %6647 = vmatmul.msk.bf16.gmra.mxu3 %vm760_vm6, %v1556_v60  ;;  %v2791_v10 = vpack.i.b16 %v2785_v0, %v2785_v0  ;;  %v2381_v39 = vmul.f32 %v2376_v3, %v8095_v14  ;;  %v2384_v17 = vmul.f32 %v2376_v3, %v8099_v25  ;;  %v2890_v34 = vshrl.u32 %v2784_v59, 16 }
 0x2dd   : > { %v547_v19 = vpop.f32.mrf.mxu0  ;;  %v2385_v8 = vmul.f32 %v7213_v15, %v8093_v9  ;;  %v2789_v33 = vperm.slane %v2787_v4, 2  ;;  %v2894_v36 = vshrl.u32 %v2785_v0, 16  ;;  %vm10468_vm5 = vcmask 801792  }
 0x2de   : > { %v2387_v37 = vpack.c.bf16 %v2384_v17, %v2381_v39  ;;  %vm10469_vm11 = vmmov %vm10468_vm5 }
 0x2df   : > { %2298 = vrot.lane.b32.xlu1 %v2278_v27, %s10447_s23  ;;  %2294 = vrot.lane.b32.xlu2 %v2276_v35, %s10447_s23  ;;  %v2382_v27 = vmul.f32 %v7213_v15, %v8091_v7  ;;  %v2793_v35 = vperm.slane %v2791_v10, 2  ;;  %v2794_v41 = vunpack.c.l.bf16 %v2789_v33  ;;  %v860_v44 = vpop.f32.mrf.mxu3  ;;  %v2895_v50 = vpack.i.b16 %v2894_v36, %v2894_v36  ;;  %v7034_v33 = vld [vmem:[%s10441_s6 + $0x84] sm:$0xff] }
 0x2e0   : > { %v594_v51 = vpop.permute.xlu0 %593 }
 0x2e1   : > { %v601_v21 = vadd.f32 %v594_v51, %v7803_v45  ;;  %v602_v55 = vadd.f32 %v594_v51, %v7805_v46  ;;  %2296 = vrot.lane.b32.xlu0 %v2277_v43, %s10447_s23  ;;  %v7216_v58 = vpop.permute.xlu1 %7215  ;;  %v7224_v46 = vpack.i.bf16 %v2685_v54, %v2684_v57  ;;  %v840_v5 = vpop.f32.mrf.mxu2  ;;  %s10450_s23 = smov 18   ;;  %v2388_v40 = vpack.c.bf16 %v2385_v8, %v2382_v27 }
 0x2e2   : > { %v7217_v45 = vunpack.i.l.bf16 %v7216_v58  ;;  %v8231_v38 = vadd.f32 %v840_v5, %v8161_v29  ;;  %v580_v29 = vpop.f32.mrf.mxu1  ;;  %v7218_v28 = vunpack.i.h.bf16 %v7216_v58  ;;  %v2891_v43 = vpack.i.b16 %v2890_v34, %v2890_v34 }
 0x2e3   : > { %605 = vst [vmem:[%s8221_s0] sm:$0xff] %v601_v21  ;;  %v649_v56 = vpack.c.bf16 %v580_v29, %v547_v19  ;;  %v2795_v22 = vunpack.c.l.bf16 %v2793_v35  ;;  %v8250_v51 = vadd.f32 %v860_v44, %v8172_v32  ;;  %v6661_v35 = vld [vmem:[%s10441_s6 + $0x80] sm:$0xf] }
 0x2e4   : > { %606 = vst [vmem:[%s8221_s0 + $0x8] sm:$0xff] %v602_v55  ;;  %v2483_v24 = vmul.f32 %v7217_v45, %v8079_v49  ;;  %v2486_v26 = vmul.f32 %v7217_v45, %v8082_v16  ;;  %v2479_v42 = vsel %vm760_vm6, %v7217_v45, %v7218_v28  ;;  %v2485_v21 = vmul.f32 %v7218_v28, %v8091_v7 }
 0x2e5   : > { %652 = vst [vmem:[#allocation5 + $0x4] sm:$0xff] %v649_v56  ;;  %v549_v20 = vpop.f32.mrf.mxu0  ;;  %v2484_v52 = vmul.f32 %v2479_v42, %v8095_v14  ;;  %v2487_v11 = vmul.f32 %v2479_v42, %v8099_v25  ;;  %v2488_v55 = vmul.f32 %v7218_v28, %v8093_v9  ;;  %v2893_v54 = vperm.slane %v2891_v43, 2 }
 0x2e6   : > { %v2489_v30 = vpack.c.bf16 %v2486_v26, %v2483_v24  ;;  %v7229_v59 = vpack.i.bf16 %v2795_v22, %v2794_v41  ;;  %v1768_v36 = vunpack.c.l.b16 %v6661_v35 }
 0x2e7   : > { %2404 = vrot.lane.b32.xlu1 %v2386_v1, %s10448_s24  ;;  %7220 = vrot.lane.b32.xlu2 %v7219_v61, %s10449_s20  ;;  %v2490_v60 = vpack.c.bf16 %v2487_v11, %v2484_v52  ;;  %v2491_v32 = vpack.c.bf16 %v2488_v55, %v2485_v21  ;;  %v2898_v61 = vunpack.c.l.bf16 %v2893_v54  ;;  %v863_v45 = vpop.f32.mrf.mxu3  ;;  %v6650_v1 = vld [vmem:[%s10441_s6 + $0x74] sm:$0xf] }
 0x2e8   : > { %v8266_v4 = vadd.f32 %v863_v45, %v8183_v63  ;;  %v1658_v5 = vunpack.c.l.b16 %v6650_v1  ;;  %v7033_v63 = vld [vmem:[%s10441_s6 + $0x78] sm:$0xff]  ;;  %v1770_v41 = vpack.c.b16 %v1768_v36, %v1768_v36 }
 0x2e9   : > { %7225 = vrot.lane.b32.xlu0 %v7224_v46, %s10450_s23  ;;  %v842_v12 = vpop.f32.mrf.mxu2  ;;  %v7036_v45 = vld [vmem:[%s10441_s6 + $0x9c] sm:$0xff]  ;;  %s10480_s23 = smov 127  }
 0x2ea   : > { %v8247_v15 = vadd.f32 %v842_v12, %v8170_v31  ;;  %v582_v57 = vpop.f32.mrf.mxu1  ;;  %v2897_v31 = vperm.slane %v2895_v50, 2  ;;  %v1660_v39 = vpack.c.b16 %v1658_v5, %v1658_v5  ;;  %v6672_v12 = vld [vmem:[%s10441_s6 + $0x8c] sm:$0xf] }
 0x2eb   : > { %v650_v58 = vpack.c.bf16 %v582_v57, %v549_v20  ;;  %v1872_v44 = vunpack.c.l.b16 %v6672_v12 }
 0x2ec   : > { %v2899_v46 = vunpack.c.l.bf16 %v2897_v31  ;;  %6656 = vmatmul.msk.bf16.gmra.mxu0 %vm760_vm6, %v1660_v39  ;;  %6658 = vmatmul.msk.bf16.gmra.mxu1 %vm760_vm6, %v1660_v39 }
 0x2ed   : > { %653 = vst [vmem:[#allocation5 + $0x14] sm:$0xff] %v650_v58  ;;  %v552_v6 = vpop.f32.mrf.mxu0  ;;  %6666 = vmatmul.msk.bf16.vlgmr.msra.gmra.mxu2 %vm760_vm6, %v7033_v63  ;;  %6668 = vmatmul.msk.bf16.vlgmr.msra.gmra.mxu3 %vm760_vm6, %v7033_v63  ;;  %v1874_v11 = vpack.c.b16 %v1872_v44, %v1872_v44  ;;  %v7035_v58 = vld [vmem:[%s10441_s6 + $0x90] sm:$0xff] }
 0x2ee   : > { %v7234_v17 = vpack.i.bf16 %v2899_v46, %v2898_v61 }
 0x2ef   : > { %2507 = vrot.lane.b32.xlu1 %v2489_v30, %s10451_s16  ;;  %2406 = vrot.lane.b32.xlu2 %v2387_v37, %s10448_s24  ;;  %v865_v24 = vpop.f32.mrf.mxu3 }
 0x2f1   : > { %2408 = vrot.lane.b32.xlu0 %v2388_v40, %s10448_s24  ;;  %v845_v0 = vpop.f32.mrf.mxu2 }
 0x2f2   : > { %v8263_v3 = vadd.f32 %v845_v0, %v8181_v62  ;;  %v585_v10 = vpop.f32.mrf.mxu1 }
 0x2f3   : > { %v651_v37 = vpack.c.bf16 %v585_v10, %v552_v6 }
 0x2f5   : > { %v554_v62 = vpop.f32.mrf.mxu0  ;;  %654 = vst [vmem:[#allocation5 + $0x24] sm:$0xff] %v651_v37 }
 0x2f7   : > { %7230 = vrot.lane.b32.xlu1 %v7229_v59, %s10452_s2  ;;  %2509 = vrot.lane.b32.xlu2 %v2490_v60, %s10451_s16  ;;  %s10453_s2 = smov 31   ;;  %v962_v8 = vpop.f32.mrf.mxu3 }
 0x2f8   : > { %v972_v20 = vadd.f32 %v962_v8, %v8236_v18 }
 0x2f9   : > { %2511 = vrot.lane.b32.xlu0 %v2491_v32, %s10451_s16  ;;  %v847_v19 = vpop.f32.mrf.mxu2 }
 0x2fa   : > { %v587_v26 = vpop.f32.mrf.mxu1 }
 0x2fc   : > { %6677 = vmatmul.msk.bf16.vlgmr.msrb.gmra.mxu0 %vm760_vm6, %v7034_v33  ;;  %6679 = vmatmul.msk.bf16.vlgmr.msrb.gmra.mxu1 %vm760_vm6, %v7034_v33 }
 0x2fd   : > { %v1048_v29 = vpop.f32.mrf.mxu0  ;;  %6667 = vmatmul.msk.bf16.gmra.mxu2 %vm760_vm6, %v1770_v41  ;;  %6669 = vmatmul.msk.bf16.gmra.mxu3 %vm760_vm6, %v1770_v41 }
 0x2ff   : > { %7235 = vrot.lane.b32.xlu2 %v7234_v17, %s10453_s2  ;;  %v964_v56 = vpop.f32.mrf.mxu3  ;;  %s10455_s2 = smov 110  }
 0x300   : > { %v974_v32 = vadd.f32 %v964_v56, %v8250_v51  ;;  %v6683_v51 = vld [vmem:[%s10441_s6 + $0x98] sm:$0xf] }
 0x301   : > { %v944_v27 = vpop.f32.mrf.mxu2  ;;  %v1974_v39 = vunpack.c.l.b16 %v6683_v51 }
 0x302   : > { %v1066_v28 = vpop.f32.mrf.mxu1  ;;  %v971_v50 = vadd.f32 %v944_v27, %v8231_v38 }
 0x303   : > { %v1076_v31 = vadd.f32 %v1066_v28, %v972_v20  ;;  %v1976_v62 = vpack.c.b16 %v1974_v39, %v1974_v39 }
 0x304   : > { %v1075_v59 = vadd.f32 %v1048_v29, %v971_v50 }
 0x305   : > { %v1050_v30 = vpop.f32.mrf.mxu0 }
 0x307   : > { %v967_v43 = vpop.f32.mrf.mxu3 }
 0x308   : > { %v976_v6 = vadd.f32 %v967_v43, %v8266_v4  ;;  %v6694_v4 = vld [vmem:[%s10441_s6 + $0xa4] sm:$0xf] }
 0x309   : > { %v946_v34 = vpop.f32.mrf.mxu2  ;;  %v2074_v8 = vunpack.c.l.b16 %v6694_v4 }
 0x30a   : > { %v1068_v40 = vpop.f32.mrf.mxu1  ;;  %v973_v60 = vadd.f32 %v946_v34, %v8247_v15 }
 0x30b   : > { %v1078_v46 = vadd.f32 %v1068_v40, %v974_v32  ;;  %v2076_v34 = vpack.c.b16 %v2074_v8, %v2074_v8 }
 0x30c   : > { %6678 = vmatmul.msk.bf16.gmra.mxu0 %vm760_vm6, %v1874_v11  ;;  %6680 = vmatmul.msk.bf16.gmra.mxu1 %vm760_vm6, %v1874_v11  ;;  %v1077_v1 = vadd.f32 %v1050_v30, %v973_v60 }
 0x30d   : > { %v1053_v22 = vpop.f32.mrf.mxu0  ;;  %6688 = vmatmul.msk.bf16.vlgmr.msrb.gmra.mxu2 %vm760_vm6, %v7035_v58  ;;  %6690 = vmatmul.msk.bf16.vlgmr.msrb.gmra.mxu3 %vm760_vm6, %v7035_v58 }
 0x30f   : > { %v969_v55 = vpop.f32.mrf.mxu3 }
 0x311   : > { %v949_v42 = vpop.f32.mrf.mxu2 }
 0x312   : > { %v1071_v52 = vpop.f32.mrf.mxu1  ;;  %v975_v5 = vadd.f32 %v949_v42, %v8263_v3 }
 0x313   : > { %v1080_v63 = vadd.f32 %v1071_v52, %v976_v6 }
 0x314   : > { %v1079_v26 = vadd.f32 %v1053_v22, %v975_v5 }
 0x315   : > { %v1055_v57 = vpop.f32.mrf.mxu0 }
 0x317   : > { %v1176_v18 = vpop.f32.mrf.mxu3 }
 0x318   : > { %v1186_v35 = vadd.f32 %v1176_v18, %v1076_v31 }
 0x319   : > { %v951_v21 = vpop.f32.mrf.mxu2 }
 0x31a   : > { %v1073_v54 = vpop.f32.mrf.mxu1 }
 0x31c   : > { %6699 = vmatmul.msk.bf16.vlgmr.msra.gmra.mxu0 %vm760_vm6, %v7036_v45  ;;  %6701 = vmatmul.msk.bf16.vlgmr.msra.gmra.mxu1 %vm760_vm6, %v7036_v45 }
 0x31d   : > { %v1262_v61 = vpop.f32.mrf.mxu0  ;;  %6689 = vmatmul.msk.bf16.gmra.mxu2 %vm760_vm6, %v1976_v62  ;;  %6691 = vmatmul.msk.bf16.gmra.mxu3 %vm760_vm6, %v1976_v62 }
 0x31f   : > { %v1178_v15 = vpop.f32.mrf.mxu3 }
 0x320   : > { %v1188_v58 = vadd.f32 %v1178_v15, %v1078_v46 }
 0x321   : > { %v1158_v38 = vpop.f32.mrf.mxu2 }
 0x322   : > { %v1280_v0 = vpop.f32.mrf.mxu1  ;;  %v1185_v56 = vadd.f32 %v1158_v38, %v1075_v59  ;;  %v2994_v38 = vld [vmem:[%s10341_s1 + $0x10] sm:$0x88] }
 0x323   : > { %v8331_v57 = vadd.f32 %v1280_v0, %v1186_v35  ;;  %v2997_v15 = vunpack.c.h.b16 %v2994_v38 }
 0x324   : > { %v8329_v21 = vadd.f32 %v1262_v61, %v1185_v56 }
 0x325   : > { %v1264_v17 = vpop.f32.mrf.mxu0  ;;  %v2999_v56 = vpack.c.b16 %v2997_v15, %v2997_v15 }
 0x327   : > { %v1181_v27 = vpop.f32.mrf.mxu3 }
 0x328   : > { %v1190_v62 = vadd.f32 %v1181_v27, %v1080_v63 }
 0x329   : > { %v1160_v10 = vpop.f32.mrf.mxu2 }
 0x32a   : > { %v1282_v24 = vpop.f32.mrf.mxu1  ;;  %v1187_v54 = vadd.f32 %v1160_v10, %v1077_v1  ;;  %v2996_v1 = vunpack.c.l.b16 %v2994_v38  ;;  %v7037_v10 = vld [vmem:[%s10441_s6 + $0xa8] sm:$0xff]  ;;  %v6716_v38 = vld [vmem:[%s10441_s6 + $0xbc] sm:$0xf] }
 0x32b   : > { %v8354_v51 = vadd.f32 %v1282_v24, %v1188_v58 }
 0x32c   : > { %6700 = vmatmul.msk.bf16.gmra.mxu0 %vm760_vm6, %v2076_v34  ;;  %6702 = vmatmul.msk.bf16.gmra.mxu1 %vm760_vm6, %v2076_v34  ;;  %v8349_v6 = vadd.f32 %v1264_v17, %v1187_v54  ;;  %v2998_v4 = vpack.c.b16 %v2996_v1, %v2996_v1 }
 0x32d   : > { %v8316_v29 = vpop.f32.mrf.mxu0 }
 0x32f   : > { %v1183_v30 = vpop.f32.mrf.mxu3 }
 0x331   : > { %v2191_v19 = vpop.permute.xlu2 %2190  ;;  %v1163_v3 = vpop.f32.mrf.mxu2 }
 0x332   : > { %v8318_v33 = vpop.f32.mrf.mxu1  ;;  %v1189_v39 = vadd.f32 %v1163_v3, %v1079_v26  ;;  %v3104_v26 = vshrl.u32 %v2998_v4, 16 }
 0x333   : > { %v8374_v30 = vadd.f32 %v8318_v33, %v1190_v62 }
 0x334   : > { %v8371_v27 = vadd.f32 %v8316_v29, %v1189_v39 }
 0x335   : > { %v1269_v37 = vpop.f32.mrf.mxu0 }
 0x336   : > { %v7038_v37 = vld [vmem:[%s10441_s6 + $0xb4] sm:$0xff] }
 0x337   : > { %v8339_v60 = vpop.f32.mrf.mxu3 }
 0x339   : > { %v2295_v28 = vpop.permute.xlu2 %2294  ;;  %v1165_v36 = vpop.f32.mrf.mxu2 }
 0x33a   : > { %v1287_v41 = vpop.f32.mrf.mxu1 }
 0x33b   : > { %v6705_v41 = vld [vmem:[%s10441_s6 + $0xb0] sm:$0xf] }
 0x33c   : > { %v2184_v29 = vunpack.c.l.b16 %v6705_v41 }
 0x33d   : > { %v8343_v61 = vpop.f32.mrf.mxu0 }
 0x33f   : > { %v8360_v17 = vpop.f32.mrf.mxu3 }
 0x341   : > { %v7221_v40 = vpop.permute.xlu2 %7220  ;;  %v8337_v18 = vpop.f32.mrf.mxu2 }
 0x342   : > { %v7223_v42 = vunpack.i.h.bf16 %v7221_v40  ;;  %v7222_v43 = vunpack.i.l.bf16 %v7221_v40  ;;  %v8345_v0 = vpop.f32.mrf.mxu1  ;;  %v3108_v40 = vshrl.u32 %v2999_v56, 16 }
 0x344   : > { %v2593_v12 = vmul.f32 %v7222_v43, %v8079_v49  ;;  %v2596_v44 = vmul.f32 %v7222_v43, %v8082_v16  ;;  %v2589_v22 = vsel %vm1352_vm4, %v7222_v43, %v7223_v42  ;;  %v2595_v50 = vmul.f32 %v7223_v42, %v8091_v7 }
 0x345   : > { %v2594_v20 = vmul.f32 %v2589_v22, %v8095_v14  ;;  %v2597_v52 = vmul.f32 %v2589_v22, %v8099_v25  ;;  %v2598_v11 = vmul.f32 %v7223_v42, %v8093_v9  ;;  %v8364_v35 = vpop.f32.mrf.mxu0  ;;  %v3005_v22 = vpack.i.b16 %v2999_v56, %v2999_v56 }
 0x346   : > { %v2599_v55 = vpack.c.bf16 %v2596_v44, %v2593_v12  ;;  %v3109_v12 = vpack.i.b16 %v3108_v40, %v3108_v40  ;;  %v3001_v44 = vpack.i.b16 %v2998_v4, %v2998_v4  ;;  %v2288_v4 = vunpack.c.l.b16 %v6716_v38 }
 0x347   : > { %v2600_v59 = vpack.c.bf16 %v2597_v52, %v2594_v20  ;;  %v2601_v31 = vpack.c.bf16 %v2598_v11, %v2595_v50  ;;  %v8386_v33 = vpop.f32.mrf.mxu3  ;;  %v3007_v1 = vperm.slane %v3005_v22, 3  ;;  %v1400_v40 = vadd.f32 %v8339_v60, %v8331_v57  ;;  %v3208_v57 = vld [vmem:[%s10341_s1 + $0x18] sm:$0x11] }
 0x348   : > { %2617 = vrot.lane.b32.xlu0 %v2599_v55, %s10454_s4  ;;  %v3210_v38 = vunpack.c.l.b16 %v3208_v57 }
 0x349   : > { %v2195_v32 = vpop.permute.xlu1 %2194  ;;  %2619 = vrot.lane.b32.xlu1 %v2600_v59, %s10454_s4  ;;  %2621 = vrot.lane.b32.xlu2 %v2601_v31, %s10454_s4  ;;  %v8362_v8 = vpop.permute.xlu2 %2406  ;;  %v2186_v31 = vpack.c.b16 %v2184_v29, %v2184_v29 }
 0x34a   : > { %v8366_v36 = vpop.f32.mrf.mxu1 }
 0x34b   : > { %v2193_v45 = vpop.permute.xlu0 %2192 }
 0x34c   : > { %v2197_v46 = vsel %vm1745_vm1, %v2191_v19, %v2193_v45  ;;  %v2198_v5 = vsel %vm1745_vm1, %v2193_v45, %v2195_v32  ;;  %v8358_v19 = vpop.f32.mrf.mxu2  ;;  %v3111_v32 = vperm.slane %v3109_v12, 3  ;;  %v3003_v45 = vperm.slane %v3001_v44, 3 }
 0x34d   : > { %2214 = vmatpush.bf16.msra.mxu2 %v2197_v46  ;;  %2232 = vmatpush.bf16.msra.mxu3 %v2198_v5  ;;  %v8390_v20 = vpop.f32.mrf.mxu0  ;;  %v1399_v46 = vadd.f32 %v8337_v18, %v8329_v21 }
 0x34e   : > { %v3008_v29 = vunpack.c.l.bf16 %v3003_v45 }
 0x34f   : > { %v1397_v18 = vpop.f32.mrf.mxu3 }
 0x350   : > { %6710 = vmatmul.msk.bf16.vlgmr.msra.gmra.mxu2 %vm760_vm6, %v7037_v10  ;;  %6712 = vmatmul.msk.bf16.vlgmr.msra.gmra.mxu3 %vm760_vm6, %v7037_v10 }
 0x351   : > { %v2299_v34 = vpop.permute.xlu1 %2298  ;;  %v8394_v55 = vpop.permute.xlu2 %2509 }
 0x352   : > { %v8392_v52 = vpop.f32.mrf.mxu1 }
 0x353   : > { %v2297_v24 = vpop.permute.xlu0 %2296 }
 0x354   : > { %v2301_v63 = vsel %vm1635_vm3, %v2295_v28, %v2297_v24  ;;  %v2302_v3 = vsel %vm1635_vm3, %v2297_v24, %v2299_v34  ;;  %v3105_v28 = vpack.i.b16 %v3104_v26, %v3104_v26  ;;  %v8384_v42 = vpop.f32.mrf.mxu2  ;;  %vm10467_vm3 = vcmask 269312  }
 0x355   : > { %2318 = vmatpush.bf16.msrb.mxu0 %v2301_v63  ;;  %2336 = vmatpush.bf16.msrb.mxu1 %v2302_v3  ;;  %v1483_v12 = vpop.f32.mrf.mxu0 }
 0x356   : > { %v3107_v59 = vperm.slane %v3105_v28, 3 }
 0x358   : > { %6721 = vmatmul.msk.bf16.vlgmr.msrb.gmra.mxu0 %vm760_vm6, %v7038_v37  ;;  %6723 = vmatmul.msk.bf16.vlgmr.msrb.gmra.mxu1 %vm760_vm6, %v7038_v37  ;;  %v3112_v3 = vunpack.c.l.bf16 %v3107_v59  ;;  %v3113_v37 = vunpack.c.l.bf16 %v3111_v32  ;;  %v3211_v32 = vunpack.c.h.b16 %v3208_v57 }
 0x359   : > { %v2405_v43 = vpop.permute.xlu1 %2404 }
 0x35a   : > { %v2411_v50 = vsel %vm1531_vm2, %v2405_v43, %v8362_v8  ;;  %v3009_v43 = vunpack.c.l.bf16 %v3007_v1  ;;  %v1501_v44 = vpop.f32.mrf.mxu1  ;;  %v7245_v59 = vpack.i.bf16 %v3113_v37, %v3112_v3  ;;  %v1604_v1 = vpop.f32.mrf.mxu3 }
 0x35b   : > { %v7226_v11 = vpop.permute.xlu0 %7225  ;;  %2428 = vmatpush.bf16.msrb.mxu2 %v2411_v50  ;;  %v1503_v50 = vadd.f32 %v8343_v61, %v1399_v46  ;;  %v590_v61 = vld [vmem:[%s10444_s3 + $0x8] sm:$0xff]  ;;  %s10474_s3 = smov 94  }
 0x35c   : > { %v7228_v54 = vunpack.i.h.bf16 %v7226_v11  ;;  %v7227_v58 = vunpack.i.l.bf16 %v7226_v11  ;;  %v1379_v21 = vpop.f32.mrf.mxu2  ;;  %v1504_v11 = vadd.f32 %v8345_v0, %v1400_v40 }
 0x35e   : > { %v2699_v5 = vmul.f32 %v7228_v54, %v8091_v7  ;;  %v2702_v10 = vmul.f32 %v7228_v54, %v8093_v9  ;;  %v2697_v15 = vmul.f32 %v7227_v58, %v8079_v49  ;;  %v2700_v39 = vmul.f32 %v7227_v58, %v8082_v16 }
 0x35f   : > { %v2693_v62 = vsel %vm1242_vm0, %v7227_v58, %v7228_v54  ;;  %v2290_v54 = vpack.c.b16 %v2288_v4, %v2288_v4  ;;  %v7236_v58 = vpop.permute.xlu2 %7235  ;;  %v1690_v4 = vpop.f32.mrf.mxu0  ;;  %v1614_v18 = vadd.f32 %v1604_v1, %v1504_v11  ;;  %vm10465_vm0 = vcmask 261120  }
 0x360   : > { %v2705_v34 = vpack.c.bf16 %v2702_v10, %v2699_v5  ;;  %v2703_v56 = vpack.c.bf16 %v2700_v39, %v2697_v15  ;;  %v2698_v24 = vmul.f32 %v2693_v62, %v8095_v14  ;;  %v2701_v26 = vmul.f32 %v2693_v62, %v8099_v25  ;;  %6711 = vmatmul.msk.bf16.gmra.mxu2 %vm760_vm6, %v2186_v31  ;;  %v3352_v39 = vld [vmem:[%s10341_s1] sm:$0x88] }
 0x361   : > { %v2508_v63 = vpop.permute.xlu1 %2507  ;;  %6713 = vmatmul.msk.bf16.gmra.mxu3 %vm760_vm6, %v2186_v31  ;;  %v7239_v31 = vpack.i.bf16 %v3009_v43, %v3008_v29  ;;  %v7237_v5 = vunpack.i.l.bf16 %v7236_v58  ;;  %v3212_v15 = vpack.c.b16 %v3210_v38, %v3210_v38  ;;  %v1403_v62 = vadd.f32 %v8384_v42, %v8371_v27  ;;  %v7039_v27 = vld [vmem:[%s10441_s6 + $0xc0] sm:$0xff] }
 0x362   : > { %v2514_v41 = vsel %vm1421_vm14, %v2508_v63, %v8394_v55  ;;  %2725 = vrot.lane.b32.xlu2 %v2705_v34, %s10455_s2  ;;  %2721 = vrot.lane.b32.xlu0 %v2703_v56, %s10455_s2  ;;  %v2704_v28 = vpack.c.bf16 %v2701_v26, %v2698_v24  ;;  %v1708_v34 = vpop.f32.mrf.mxu1  ;;  %v3213_v24 = vpack.c.b16 %v3211_v32, %v3211_v32  ;;  %v8459_v11 = vpop.f32.mrf.mxu3 }
 0x363   : > { %v2409_v22 = vpop.permute.xlu0 %2408  ;;  %2531 = vmatpush.bf16.msra.mxu0 %v2514_v41  ;;  %v1404_v26 = vadd.f32 %v8386_v33, %v8374_v30  ;;  %v3354_v33 = vunpack.c.l.b16 %v3352_v39  ;;  %v3355_v41 = vunpack.c.h.b16 %v3352_v39  ;;  %v1507_v43 = vadd.f32 %v8390_v20, %v1403_v62 }
 0x364   : > { %v2412_v60 = vsel %vm1531_vm2, %v8362_v8, %v2409_v22  ;;  %2723 = vrot.lane.b32.xlu1 %v2704_v28, %s10455_s2  ;;  %v1586_v45 = vpop.f32.mrf.mxu2  ;;  %v7238_v8 = vunpack.i.h.bf16 %v7236_v58  ;;  %v2911_v1 = vmul.f32 %v7237_v5, %v8079_v49 }
 0x365   : > { %2446 = vmatpush.bf16.msrb.mxu3 %v2412_v60  ;;  %v1613_v21 = vadd.f32 %v1586_v45, %v1503_v50  ;;  %v1508_v44 = vadd.f32 %v8392_v52, %v1404_v26  ;;  %v8455_v60 = vadd.f32 %v1708_v34, %v1614_v18  ;;  %v3219_v52 = vpack.i.b16 %v3213_v24, %v3213_v24 }
 0x366   : > { %v2916_v58 = vmul.f32 %v7238_v8, %v8093_v9  ;;  %v2907_v20 = vsel %vm1028_vm13, %v7237_v5, %v7238_v8  ;;  %v8469_v38 = vpack.c.b16 %v3355_v41, %v3355_v41  ;;  %vm10471_vm13 = vcmask 793600  }
 0x367   : > { %v8452_v22 = vadd.f32 %v1690_v4, %v1613_v21  ;;  %v8471_v32 = vpop.f32.mrf.mxu0  ;;  %v3221_v62 = vperm.slane %v3219_v52, 0 }
 0x368   : > { %6722 = vmatmul.msk.bf16.gmra.mxu0 %vm760_vm6, %v2290_v54  ;;  %6724 = vmatmul.msk.bf16.gmra.mxu1 %vm760_vm6, %v2290_v54  ;;  %v2913_v54 = vmul.f32 %v7238_v8, %v8091_v7  ;;  %v2914_v8 = vmul.f32 %v7237_v5, %v8082_v16  ;;  %v3400_v34 = vshrl.u32 %v8469_v38, 16 }
 0x369   : > { %v7231_v10 = vpop.permute.xlu1 %7230 }
 0x36a   : > { %v7233_v0 = vunpack.i.h.bf16 %v7231_v10  ;;  %v7232_v46 = vunpack.i.l.bf16 %v7231_v10  ;;  %7246 = vrot.lane.b32.xlu2 %v7245_v59, %s10456_s17  ;;  %7240 = vrot.lane.b32.xlu0 %v7239_v31, %s10457_s27  ;;  %v3215_v59 = vpack.i.b16 %v3212_v15, %v3212_v15  ;;  %v8467_v31 = vpack.c.b16 %v3354_v33, %v3354_v33  ;;  %v8473_v45 = vpop.f32.mrf.mxu1  ;;  %v7040_v10 = vld [vmem:[%s10441_s6 + $0xcc] sm:$0xff]  ;;  %v6727_v15 = vld [vmem:[%s10441_s6 + $0xc8] sm:$0xf]  ;;  %v1609_v26 = vpop.f32.mrf.mxu3  ;;  %s10466_s27 = smov 96  }
 0x36b   : > { %v2512_v56 = vpop.permute.xlu0 %2511  ;;  %v2917_v5 = vpack.c.bf16 %v2914_v8, %v2911_v1 }
 0x36c   : > { %v2515_v63 = vsel %vm1421_vm14, %v8394_v55, %v2512_v56  ;;  %598 = vperm.xlu1 %7244, %v590_v61   ;;  %v2809_v3 = vmul.f32 %v7233_v0, %v8091_v7  ;;  %v2812_v37 = vmul.f32 %v7233_v0, %v8093_v9  ;;  %v2807_v40 = vmul.f32 %v7232_v46, %v8079_v49  ;;  %v8457_v50 = vpop.f32.mrf.mxu2 }
 0x36d   : > { %2549 = vmatpush.bf16.msra.mxu1 %v2515_v63  ;;  %v2810_v42 = vmul.f32 %v7232_v46, %v8082_v16  ;;  %v2803_v30 = vsel %vm1138_vm15, %v7232_v46, %v7233_v0  ;;  %v2919_v61 = vpack.c.bf16 %v2916_v58, %v2913_v54  ;;  %v2912_v0 = vmul.f32 %v2907_v20, %v8095_v14  ;;  %v630_v54 = vld [vmem:[%s10460_s5 + $0x8] sm:$0xff]  ;;  %vm10472_vm15 = vmmov %vm10471_vm13 }
 0x36e   : > { %v2815_v28 = vpack.c.bf16 %v2812_v37, %v2809_v3  ;;  %v2808_v55 = vmul.f32 %v2803_v30, %v8095_v14  ;;  %v2811_v29 = vmul.f32 %v2803_v30, %v8099_v25  ;;  %v2915_v46 = vmul.f32 %v2907_v20, %v8099_v25 }
 0x36f   : > { %v2813_v12 = vpack.c.bf16 %v2810_v42, %v2807_v40  ;;  %v3217_v39 = vperm.slane %v3215_v59, 0  ;;  %v3396_v4 = vshrl.u32 %v8467_v31, 16  ;;  %v2398_v56 = vunpack.c.l.b16 %v6727_v15  ;;  %v1695_v30 = vpop.f32.mrf.mxu0 }
 0x370   : > { %v2814_v57 = vpack.c.bf16 %v2811_v29, %v2808_v55  ;;  %6732 = vmatmul.msk.bf16.vlgmr.msrb.gmra.mxu2 %vm760_vm6, %v7039_v27  ;;  %v2918_v21 = vpack.c.bf16 %v2915_v46, %v2912_v0  ;;  %v1618_v63 = vadd.f32 %v1609_v26, %v1508_v44  ;;  %v3223_v37 = vunpack.c.l.bf16 %v3221_v62 }
 0x371   : > { %6734 = vmatmul.msk.bf16.vlgmr.msrb.gmra.mxu3 %vm760_vm6, %v7039_v27  ;;  %v3222_v3 = vunpack.c.l.bf16 %v3217_v39  ;;  %v3397_v40 = vpack.i.b16 %v3396_v4, %v3396_v4  ;;  %v3401_v27 = vpack.i.b16 %v3400_v34, %v3400_v34  ;;  %v2400_v41 = vpack.c.b16 %v2398_v56, %v2398_v56 }
 0x372   : > { %2835 = vrot.lane.b32.xlu2 %v2815_v28, %s10458_s19  ;;  %2831 = vrot.lane.b32.xlu0 %v2813_v12, %s10458_s19  ;;  %v1713_v42 = vpop.f32.mrf.mxu1  ;;  %v1611_v44 = vpop.f32.mrf.mxu3 }
 0x373   : > { %v1722_v33 = vadd.f32 %v1713_v42, %v1618_v63  ;;  %v7250_v28 = vpack.i.bf16 %v3223_v37, %v3222_v3  ;;  %v3399_v55 = vperm.slane %v3397_v40, 3  ;;  %v3403_v29 = vperm.slane %v3401_v27, 3 }
 0x374   : > { %2833 = vrot.lane.b32.xlu1 %v2814_v57, %s10458_s19  ;;  %v1591_v24 = vpop.f32.mrf.mxu2  ;;  %v6738_v57 = vld [vmem:[%s10441_s6 + $0xd4] sm:$0xf]  ;;  %s10470_s19 = smov 95  }
 0x375   : > { %v1617_v18 = vadd.f32 %v1591_v24, %v1507_v43  ;;  %v629_v43 = vld [vmem:[%s10460_s5] sm:$0xff]  ;;  %v2501_v58 = vunpack.c.l.b16 %v6738_v57  ;;  %v3404_v20 = vunpack.c.l.bf16 %v3399_v55  ;;  %v3405_v59 = vunpack.c.l.bf16 %v3403_v29 }
 0x377   : > { %v1697_v1 = vpop.f32.mrf.mxu0  ;;  %v1721_v8 = vadd.f32 %v1695_v30, %v1617_v18 }
 0x378   : > { %6743 = vmatmul.msk.bf16.vlgmr.msra.gmra.mxu0 %vm760_vm6, %v7040_v10  ;;  %6745 = vmatmul.msk.bf16.vlgmr.msra.gmra.mxu1 %vm760_vm6, %v7040_v10  ;;  %v2503_v10 = vpack.c.b16 %v2501_v58, %v2501_v58 }
 0x37a   : > { %2939 = vrot.lane.b32.xlu2 %v2919_v61, %s10459_s14  ;;  %2935 = vrot.lane.b32.xlu0 %v2917_v5, %s10459_s14  ;;  %v1715_v52 = vpop.f32.mrf.mxu1  ;;  %v7255_v61 = vpack.i.bf16 %v3405_v59, %v3404_v20  ;;  %v1818_v46 = vpop.f32.mrf.mxu3 }
 0x37b   : > { %v1828_v63 = vadd.f32 %v1818_v46, %v8455_v60  ;;  %v7041_v46 = vld [vmem:[%s10441_s6 + $0xd8] sm:$0xff] }
 0x37c   : > { %2937 = vrot.lane.b32.xlu1 %v2918_v21, %s10459_s14  ;;  %v1593_v12 = vpop.f32.mrf.mxu2  ;;  %s10461_s14 = smov 34  }
 0x37f   : > { %v1904_v39 = vpop.f32.mrf.mxu0 }
 0x380   : > { %6733 = vmatmul.msk.bf16.gmra.mxu2 %vm760_vm6, %v2400_v41 }
 0x381   : > { %6735 = vmatmul.msk.bf16.gmra.mxu3 %vm760_vm6, %v2400_v41 }
 0x382   : > { %7251 = vrot.lane.b32.xlu2 %v7250_v28, %s10461_s14  ;;  %633 = vperm.xlu0 %7133, %v629_v43   ;;  %v1922_v15 = vpop.f32.mrf.mxu1  ;;  %v8510_v4 = vpop.f32.mrf.mxu3  ;;  %s7553_s14 = scalar_lea.hbm %s10353_s13, 352 }
 0x383   : > { %v1932_v40 = vadd.f32 %v1922_v15, %v1828_v63 }
 0x384   : > { %638 = vperm.xlu1 %7244, %v630_v54   ;;  %v1800_v0 = vpop.f32.mrf.mxu2 }
 0x385   : > { %v1827_v18 = vadd.f32 %v1800_v0, %v8452_v22 }
 0x387   : > { %v8514_v5 = vpop.f32.mrf.mxu0  ;;  %v1931_v30 = vadd.f32 %v1904_v39, %v1827_v18 }
 0x388   : > { %6744 = vmatmul.msk.bf16.gmra.mxu0 %vm760_vm6, %v2503_v10  ;;  %6746 = vmatmul.msk.bf16.gmra.mxu1 %vm760_vm6, %v2503_v10 }
 0x38a   : > { %7256 = vrot.lane.b32.xlu0 %v7255_v61, %s10451_s16  ;;  %v8512_v34 = vpop.f32.mrf.mxu1  ;;  %v1823_v24 = vpop.f32.mrf.mxu3 }
 0x38b   : > { %v1832_v12 = vadd.f32 %v1823_v24, %v1722_v33 }
 0x38c   : > { %v8508_v62 = vpop.f32.mrf.mxu2 }
 0x38f   : > { %v1909_v21 = vpop.f32.mrf.mxu0 }
 0x392   : > { %v1927_v26 = vpop.f32.mrf.mxu1  ;;  %v1825_v37 = vpop.f32.mrf.mxu3 }
 0x393   : > { %v1936_v54 = vadd.f32 %v1927_v26, %v1832_v12 }
 0x394   : > { %v1805_v56 = vpop.f32.mrf.mxu2 }
 0x395   : > { %v1831_v43 = vadd.f32 %v1805_v56, %v1721_v8 }
 0x397   : > { %v1911_v42 = vpop.f32.mrf.mxu0  ;;  %v1935_v58 = vadd.f32 %v1909_v21, %v1831_v43 }
 0x39a   : > { %v1929_v27 = vpop.f32.mrf.mxu1  ;;  %v2010_v28 = vpop.f32.mrf.mxu3 }
 0x39b   : > { %v2020_v26 = vadd.f32 %v2010_v28, %v1932_v40 }
 0x39c   : > { %v1807_v3 = vpop.f32.mrf.mxu2 }
 0x39d   : > { %v6749_v3 = vld [vmem:[%s10441_s6 + $0xe0] sm:$0xf] }
 0x39e   : > { %v2611_v27 = vunpack.c.l.b16 %v6749_v3 }
 0x39f   : > { %v2106_v29 = vpop.f32.mrf.mxu0 }
 0x3a0   : > { %v2613_v43 = vpack.c.b16 %v2611_v27, %v2611_v27 }
 0x3a2   : > { %v2124_v55 = vpop.f32.mrf.mxu1  ;;  %v8520_v57 = vpop.f32.mrf.mxu3 }
 0x3a3   : > { %v2622_v20 = vpop.permute.xlu2 %2621  ;;  %v2134_v63 = vadd.f32 %v2124_v55, %v2020_v26 }
 0x3a4   : > { %v1992_v41 = vpop.f32.mrf.mxu2 }
 0x3a5   : > { %v2019_v24 = vadd.f32 %v1992_v41, %v1931_v30 }
 0x3a7   : > { %v8524_v60 = vpop.f32.mrf.mxu0  ;;  %v2133_v37 = vadd.f32 %v2106_v29, %v2019_v24 }
 0x3aa   : > { %v8522_v22 = vpop.f32.mrf.mxu1  ;;  %v2015_v52 = vpop.f32.mrf.mxu3 }
 0x3ac   : > { %v8518_v44 = vpop.f32.mrf.mxu2 }
 0x3af   : > { %v2111_v0 = vpop.f32.mrf.mxu0 }
 0x3b2   : > { %v2129_v10 = vpop.f32.mrf.mxu1  ;;  %v2017_v56 = vpop.f32.mrf.mxu3 }
 0x3b4   : > { %v1997_v59 = vpop.f32.mrf.mxu2 }
 0x3b5   : > { %v2023_v12 = vadd.f32 %v1997_v59, %v1935_v58  ;;  %v3555_v58 = vld [vmem:[%s10341_s1 + $0x8] sm:$0x11] }
 0x3b6   : > { %v3558_v3 = vunpack.c.h.b16 %v3555_v58 }
 0x3b7   : > { %v2113_v18 = vpop.f32.mrf.mxu0 }
 0x3b8   : > { %v3557_v18 = vunpack.c.l.b16 %v3555_v58  ;;  %v3775_v58 = vld [vmem:[%s10341_s1 + $0x8] sm:$0x44] }
 0x3ba   : > { %v2618_v1 = vpop.permute.xlu0 %2617  ;;  %v2131_v21 = vpop.f32.mrf.mxu1 }
 0x3bb   : > { %v2620_v61 = vpop.permute.xlu1 %2619 }
 0x3bc   : > { %v2624_v8 = vsel %vm1317_vm12, %v2618_v1, %v2620_v61  ;;  %v2625_v33 = vsel %vm1317_vm12, %v2620_v61, %v2622_v20  ;;  %v2726_v15 = vpop.permute.xlu2 %2725  ;;  %v1999_v39 = vpop.f32.mrf.mxu2  ;;  %v2024_v20 = vadd.f32 %v2015_v52, %v1936_v54  ;;  %v8547_v54 = vadd.f32 %v2111_v0, %v2023_v12 }
 0x3bd   : > { %2641 = vmatpush.bf16.msra.mxu2 %v2624_v8  ;;  %2659 = vmatpush.bf16.msra.mxu3 %v2625_v33 }
 0x3be   : > { %v8540_v28 = vadd.f32 %v2129_v10, %v2024_v20 }
 0x3c0   : > { %6754 = vmatmul.msk.bf16.vlgmr.msra.gmra.mxu2 %vm760_vm6, %v7041_v46  ;;  %6756 = vmatmul.msk.bf16.vlgmr.msra.gmra.mxu3 %vm760_vm6, %v7041_v46  ;;  %v7042_v46 = vld [vmem:[%s10441_s6 + $0xe4] sm:$0xff] }
 0x3c4   : > { %v7247_v42 = vpop.permute.xlu2 %7246 }
 0x3cc   : > { %v8538_v40 = vpop.permute.xlu2 %2835 }
 0x3d0   : > { %6755 = vmatmul.msk.bf16.gmra.mxu2 %vm760_vm6, %v2613_v43  ;;  %6757 = vmatmul.msk.bf16.gmra.mxu3 %vm760_vm6, %v2613_v43 }
 0x3d3   : > { %v2216_v1 = vpop.f32.mrf.mxu2  ;;  %v2234_v30 = vpop.f32.mrf.mxu3 }
 0x3d4   : > { %v2722_v41 = vpop.permute.xlu0 %2721  ;;  %v8562_v26 = vpop.permute.xlu2 %2939  ;;  %v2243_v27 = vadd.f32 %v2216_v1, %v2133_v37  ;;  %v2244_v43 = vadd.f32 %v2234_v30, %v2134_v63  ;;  %v6760_v37 = vld [vmem:[%s10441_s6 + $0xec] sm:$0xf]  ;;  %v3559_v30 = vpack.c.b16 %v3557_v18, %v3557_v18 }
 0x3d5   : > { %v2320_v55 = vpop.f32.mrf.mxu0  ;;  %v2338_v61 = vpop.f32.mrf.mxu1 }
 0x3d6   : > { %v2724_v8 = vpop.permute.xlu1 %2723  ;;  %v8589_v18 = vadd.f32 %v2338_v61, %v2244_v43  ;;  %v3562_v43 = vpack.i.b16 %v3559_v30, %v3559_v30 }
 0x3d7   : > { %v2728_v29 = vsel %vm1207_vm10, %v2722_v41, %v2724_v8  ;;  %v2729_v33 = vsel %vm1207_vm10, %v2724_v8, %v2726_v15  ;;  %v7249_v15 = vunpack.i.h.bf16 %v7247_v42 }
 0x3d8   : > { %2745 = vmatpush.bf16.msrb.mxu0 %v2728_v29  ;;  %2763 = vmatpush.bf16.msrb.mxu1 %v2729_v33  ;;  %v7248_v29 = vunpack.i.l.bf16 %v7247_v42  ;;  %v3560_v42 = vpack.c.b16 %v3558_v3, %v3558_v3 }
 0x3da   : > { %v3125_v61 = vmul.f32 %v7248_v29, %v8079_v49 }
 0x3db   : > { %6765 = vmatmul.msk.bf16.vlgmr.msrb.gmra.mxu0 %vm760_vm6, %v7042_v46  ;;  %6767 = vmatmul.msk.bf16.vlgmr.msrb.gmra.mxu1 %vm760_vm6, %v7042_v46  ;;  %v8554_v59 = vpop.f32.mrf.mxu2  ;;  %v8556_v52 = vpop.f32.mrf.mxu3 }
 0x3dc   : > { %10462 = vst [vmem:[#allocation15_spill] sm:$0xff] %v8556_v52  ;;  %v7241_v10 = vpop.permute.xlu0 %7240 }
 0x3dd   : > { %v7243_v39 = vunpack.i.h.bf16 %v7241_v10  ;;  %v7242_v56 = vunpack.i.l.bf16 %v7241_v10  ;;  %v8558_v24 = vpop.f32.mrf.mxu0  ;;  %v8560_v0 = vpop.f32.mrf.mxu1 }
 0x3de   : > { %10463 = vst [vmem:[#allocation16_spill] sm:$0xff] %v8558_v24  ;;  %v599_v21 = vpop.permute.xlu1 %598 }
 0x3df   : > { %10464 = vst [vmem:[#allocation17_spill] sm:$0xff] %v8560_v0  ;;  %v603_v12 = vadd.f32 %v599_v21, %v7807_v47  ;;  %v604_v20 = vadd.f32 %v599_v21, %v7809_v48  ;;  %v3023_v41 = vmul.f32 %v7243_v39, %v8091_v7  ;;  %v3026_v8 = vmul.f32 %v7243_v39, %v8093_v9  ;;  %v7043_v0 = vld [vmem:[%s10441_s6 + $0xf0] sm:$0xff] }
 0x3e0   : > { %v3021_v33 = vmul.f32 %v7242_v56, %v8079_v49  ;;  %v3024_v46 = vmul.f32 %v7242_v56, %v8082_v16  ;;  %v3017_v10 = vsel %vm10465_vm0, %v7242_v56, %v7243_v39  ;;  %v2715_v56 = vunpack.c.l.b16 %v6760_v37 }
 0x3e1   : > { %607 = vst [vmem:[%s8221_s0 + $0x10] sm:$0xff] %v603_v12  ;;  %v3029_v63 = vpack.c.bf16 %v3026_v8, %v3023_v41  ;;  %v3022_v47 = vmul.f32 %v3017_v10, %v8095_v14  ;;  %v3025_v48 = vmul.f32 %v3017_v10, %v8099_v25  ;;  %v3127_v41 = vmul.f32 %v7249_v15, %v8091_v7 }
 0x3e2   : > { %608 = vst [vmem:[%s8221_s0 + $0x18] sm:$0xff] %v604_v20  ;;  %v3027_v1 = vpack.c.bf16 %v3024_v46, %v3021_v33  ;;  %v3121_v20 = vsel %vm10467_vm3, %v7248_v29, %v7249_v15  ;;  %v8587_v8 = vadd.f32 %v2320_v55, %v2243_v27  ;;  %v3130_v33 = vmul.f32 %v7249_v15, %v8093_v9 }
 0x3e3   : > { %3049 = vrot.lane.b32.xlu0 %v3029_v63, %s10466_s27  ;;  %v3028_v39 = vpack.c.bf16 %v3025_v48, %v3022_v47  ;;  %v8582_v21 = vpop.f32.mrf.mxu2  ;;  %v3359_v46 = vpack.i.b16 %v8467_v31, %v8467_v31  ;;  %v3363_v10 = vpack.i.b16 %v8469_v38, %v8469_v38  ;;  %v3777_v55 = vunpack.c.l.b16 %v3775_v58  ;;  %v7252_v38 = vpop.permute.xlu2 %7251 }
 0x3e4   : > { %3045 = vrot.lane.b32.xlu1 %v3027_v1, %s10466_s27  ;;  %v2832_v12 = vpop.permute.xlu0 %2831  ;;  %v8591_v3 = vpop.f32.mrf.mxu3  ;;  %v3566_v47 = vpack.i.b16 %v3560_v42, %v3560_v42  ;;  %v3778_v48 = vunpack.c.h.b16 %v3775_v58  ;;  %v2717_v31 = vpack.c.b16 %v2715_v56, %v2715_v56  ;;  %v3126_v24 = vmul.f32 %v3121_v20, %v8095_v14 }
 0x3e5   : > { %3047 = vrot.lane.b32.xlu2 %v3028_v39, %s10466_s27  ;;  %v8599_v37 = vpop.f32.mrf.mxu0  ;;  %v8601_v63 = vpop.f32.mrf.mxu1  ;;  %v3128_v39 = vmul.f32 %v7248_v29, %v8082_v16  ;;  %v3129_v30 = vmul.f32 %v3121_v20, %v8099_v25  ;;  %v3133_v42 = vpack.c.bf16 %v3130_v33, %v3127_v41  ;;  %v3361_v58 = vperm.slane %v3359_v46, 3 }
 0x3e6   : > { %v2834_v27 = vpop.permute.xlu1 %2833  ;;  %v8613_v52 = vpack.c.b16 %v3777_v55, %v3777_v55  ;;  %v3568_v56 = vperm.slane %v3566_v47, 0  ;;  %v7253_v29 = vunpack.i.l.bf16 %v7252_v38  ;;  %v7254_v46 = vunpack.i.h.bf16 %v7252_v38 }
 0x3e7   : > { %v2838_v1 = vsel %vm10468_vm5, %v2832_v12, %v2834_v27  ;;  %v2839_v15 = vsel %vm10469_vm11, %v2834_v27, %v8538_v40  ;;  %v3365_v12 = vperm.slane %v3363_v10, 3  ;;  %v3564_v40 = vperm.slane %v3562_v43, 0 }
 0x3e8   : > { %2855 = vmatpush.bf16.msrb.mxu2 %v2838_v1  ;;  %2873 = vmatpush.bf16.msrb.mxu3 %v2839_v15  ;;  %v8615_v27 = vpack.c.b16 %v3778_v48, %v3778_v48  ;;  %v3131_v1 = vpack.c.bf16 %v3128_v39, %v3125_v61  ;;  %v3132_v20 = vpack.c.bf16 %v3129_v30, %v3126_v24  ;;  %v3372_v10 = vunpack.c.l.bf16 %v3361_v58  ;;  %v6771_v58 = vld [vmem:[%s10441_s6 + $0xf8] sm:$0xf] }
 0x3e9   : > { %v3373_v55 = vunpack.c.l.bf16 %v3365_v12  ;;  %v3782_v61 = vpack.i.b16 %v8613_v52, %v8613_v52  ;;  %v3235_v30 = vmul.f32 %v7253_v29, %v8079_v49  ;;  %vm10473_vm0 = vcmask 277504  }
 0x3ea   : > { %v3786_v24 = vpack.i.b16 %v8615_v27, %v8615_v27  ;;  %v2248_v49 = vadd.f32 %v8591_v3, %v8540_v28  ;;  %vm10481_vm3 = vcmask 785408   ;;  %vm10483_vm11 = vcmask 777216  }
 0x3eb   : > { %6766 = vmatmul.msk.bf16.gmra.mxu0 %vm760_vm6, %v2717_v31  ;;  %6768 = vmatmul.msk.bf16.gmra.mxu1 %vm760_vm6, %v2717_v31  ;;  %v2223_v15 = vpop.f32.mrf.mxu2  ;;  %v3569_v31 = vunpack.c.l.bf16 %v3564_v40  ;;  %v7260_v12 = vpack.i.bf16 %v3373_v55, %v3372_v10  ;;  %v3231_v40 = vsel %vm10473_vm0, %v7253_v29, %v7254_v46  ;;  %vm10482_vm5 = vmmov %vm10481_vm3 }
 0x3ec   : > { %6776 = vmatmul.msk.bf16.vlgmr.msrb.gmra.mxu2 %vm760_vm6, %v7043_v0  ;;  %6778 = vmatmul.msk.bf16.vlgmr.msrb.gmra.mxu3 %vm760_vm6, %v7043_v0  ;;  %v2936_v41 = vpop.permute.xlu0 %2935  ;;  %v2241_v33 = vpop.f32.mrf.mxu3  ;;  %v3570_v0 = vunpack.c.l.bf16 %v3568_v56  ;;  %v8637_v56 = vperm.slane %v3782_v61, 2  ;;  %v2825_v15 = vunpack.c.l.b16 %v6771_v58  ;;  %v3788_v10 = vperm.slane %v3786_v24, 2 }
 0x3ed   : > { %3153 = vrot.lane.b32.xlu0 %v3133_v42, %s10470_s19  ;;  %3149 = vrot.lane.b32.xlu1 %v3131_v1, %s10470_s19  ;;  %v2327_v43 = vpop.f32.mrf.mxu0  ;;  %v2345_v47 = vpop.f32.mrf.mxu1  ;;  %v3238_v42 = vmul.f32 %v7253_v29, %v8082_v16  ;;  %v3663_v33 = vld [vmem:[%s10341_s1 + $0x8] sm:$0x22] }
 0x3ee   : > { %3151 = vrot.lane.b32.xlu2 %v3132_v20, %s10470_s19  ;;  %v2938_v48 = vpop.permute.xlu1 %2937  ;;  %v7265_v1 = vpack.i.bf16 %v3570_v0, %v3569_v31  ;;  %v3240_v20 = vmul.f32 %v7254_v46, %v8093_v9  ;;  %v3236_v43 = vmul.f32 %v3231_v40, %v8095_v14  ;;  %v3665_v61 = vunpack.c.l.b16 %v3663_v33 }
 0x3ef   : > { %v2942_v39 = vsel %vm10471_vm13, %v2936_v41, %v2938_v48  ;;  %v2943_v38 = vsel %vm10472_vm15, %v2938_v48, %v8562_v26  ;;  %v2247_v26 = vadd.f32 %v8582_v21, %v8547_v54  ;;  %v3241_v16 = vpack.c.bf16 %v3238_v42, %v3235_v30  ;;  %vm10484_vm13 = vmmov %vm10483_vm11 }
 0x3f0   : > { %2959 = vmatpush.bf16.msra.mxu0 %v2942_v39  ;;  %2977 = vmatpush.bf16.msra.mxu1 %v2943_v38  ;;  %v3237_v41 = vmul.f32 %v7254_v46, %v8091_v7  ;;  %v8653_v54 = vadd.f32 %v8601_v63, %v2248_v49  ;;  %v3666_v48 = vunpack.c.h.b16 %v3663_v33  ;;  %v2827_v39 = vpack.c.b16 %v2825_v15, %v2825_v15 }
 0x3f1   : > { %v8650_v47 = vadd.f32 %v8599_v37, %v2247_v26  ;;  %v3793_v37 = vunpack.c.l.bf16 %v8637_v56  ;;  %v3794_v38 = vunpack.c.l.bf16 %v3788_v10  ;;  %vm10487_vm15 = vcmask 769024  }
 0x3f2   : > { %v3243_v58 = vpack.c.bf16 %v3240_v20, %v3237_v41  ;;  %vm10488_vm0 = vmmov %vm10487_vm15 }
 0x3f3   : > { %v2430_v29 = vpop.f32.mrf.mxu2 }
 0x3f4   : > { %v634_v55 = vpop.permute.xlu0 %633  ;;  %v2457_v28 = vadd.f32 %v2430_v29, %v8587_v8  ;;  %v2448_v7 = vpop.f32.mrf.mxu3  ;;  %v3239_v8 = vmul.f32 %v3231_v40, %v8099_v25  ;;  %v3668_v40 = vpack.c.b16 %v3666_v48, %v3666_v48 }
 0x3f5   : > { %3259 = vrot.lane.b32.xlu0 %v3241_v16, %s10474_s3  ;;  %7261 = vrot.lane.b32.xlu1 %v7260_v12, %s10454_s4  ;;  %v641_v9 = vadd.f32 %v634_v55, %v8190_v13  ;;  %v642_v21 = vadd.f32 %v634_v55, %v8197_v23  ;;  %v2458_v3 = vadd.f32 %v2448_v7, %v8589_v18  ;;  %v2533_v14 = vpop.f32.mrf.mxu0  ;;  %v2551_v46 = vpop.f32.mrf.mxu1  ;;  %v7044_v18 = vld [vmem:[%s10441_s6 + $0xfc] sm:$0xff]  ;;  %v6782_v7 = vld [vmem:[%s10441_s6 + $0x104] sm:$0xf] }
 0x3f6   : > { %7266 = vrot.lane.b32.xlu2 %v7265_v1, %s10448_s24  ;;  %v639_v63 = vpop.permute.xlu1 %638  ;;  %v8664_v31 = vadd.f32 %v2533_v14, %v2457_v28  ;;  %v3667_v12 = vpack.c.b16 %v3665_v61, %v3665_v61 }
 0x3f7   : > { %v645_v0 = vpack.c.bf16 %v642_v21, %v641_v9  ;;  %v643_v13 = vadd.f32 %v639_v63, %v8214_v53  ;;  %v644_v23 = vadd.f32 %v639_v63, %v8219_v2  ;;  %v8671_v24 = vadd.f32 %v2551_v46, %v2458_v3 }
 0x3f8   : > { %v3242_v53 = vpack.c.bf16 %v3239_v8, %v3236_v43  ;;  %v3670_v55 = vshrl.u32 %v3667_v12, 16  ;;  %v3675_v43 = vshrl.u32 %v3668_v40, 16 }
 0x3f9   : > { %647 = vst [vmem:[#allocation3 + $0x4] sm:$0xff] %v645_v0  ;;  %v646_v30 = vpack.c.bf16 %v644_v23, %v643_v13  ;;  %v8673_v25 = vunpack.c.l.bf16 %v645_v0  ;;  %v8675_v42 = vunpack.c.h.bf16 %v645_v0  ;;  %v2929_v0 = vunpack.c.l.b16 %v6782_v7 }
 0x3fa   : > { %v3671_v13 = vpack.i.b16 %v3670_v55, %v3670_v55  ;;  %v3676_v23 = vpack.i.b16 %v3675_v43, %v3675_v43 }
 0x3fb   : > { %648 = vst [vmem:[#allocation3 + $0x14] sm:$0xff] %v646_v30  ;;  %6787 = vmatmul.msk.bf16.vlgmr.msra.gmra.mxu0 %vm760_vm6, %v7044_v18  ;;  %6789 = vmatmul.msk.bf16.vlgmr.msra.gmra.mxu1 %vm760_vm6, %v7044_v18  ;;  %v8679_v2 = vpop.f32.mrf.mxu2  ;;  %v8681_v56 = vunpack.c.l.bf16 %v646_v30  ;;  %v8684_v1 = vmul.f32 %v3793_v37, %v8673_v25  ;;  %v8686_v15 = vunpack.c.h.bf16 %v646_v30  ;;  %v8693_v16 = vmul.f32 %v3794_v38, %v8675_v42 }
 0x3fc   : > { %10475 = vst [vmem:[#allocation18_spill] sm:$0xff] %v8679_v2  ;;  %6777 = vmatmul.msk.bf16.gmra.mxu2 %vm760_vm6, %v2827_v39  ;;  %6779 = vmatmul.msk.bf16.gmra.mxu3 %vm760_vm6, %v2827_v39  ;;  %v7257_v26 = vpop.permute.xlu0 %7256  ;;  %v8690_v49 = vpop.f32.mrf.mxu3  ;;  %v3673_v46 = vperm.slane %v3671_v13, 1  ;;  %v3678_v9 = vperm.slane %v3676_v23, 1 }
 0x3fd   : > { %10476 = vst [vmem:[#allocation19_spill] sm:$0xff] %v8690_v49  ;;  %3261 = vrot.lane.b32.xlu1 %v3242_v53, %s10474_s3  ;;  %v7259_v41 = vunpack.i.h.bf16 %v7257_v26  ;;  %v7258_v20 = vunpack.i.l.bf16 %v7257_v26  ;;  %v8696_v33 = vpop.f32.mrf.mxu0  ;;  %v8698_v29 = vpop.f32.mrf.mxu1  ;;  %v8701_v10 = vmul.f32 %v3793_v37, %v8681_v56  ;;  %v8705_v28 = vmul.f32 %v3794_v38, %v8686_v15 }
 0x3fe   : > { %10477 = vst [vmem:[#allocation20_spill] sm:$0xff] %v8693_v16  ;;  %3263 = vrot.lane.b32.xlu2 %v3243_v58, %s10474_s3  ;;  %v2931_v49 = vpack.c.b16 %v2929_v0, %v2929_v0 }
 0x3ff   : > { %10478 = vst [vmem:[#allocation21_spill] sm:$0xff] %v8696_v33  ;;  %v3412_v14 = vsel %vm1421_vm14, %v7258_v20, %v7259_v41 }
 0x400   : > { %10479 = vst [vmem:[#allocation22_spill] sm:$0xff] %v8698_v29  ;;  %v3349_v21 = vld [vmem:[#allocation3 + $0x8] sm:$0xf]  ;;  %v3348_v3 = vld [vmem:[#allocation3] sm:$0xff] }
 0x401   : > { %v8715_v37 = vunpack.c.l.bf16 %v3349_v21  ;;  %v8717_v63 = vunpack.c.h.bf16 %v3348_v3  ;;  %v8719_v8 = vunpack.c.l.bf16 %v3348_v3 }
 0x402   : > { %v3351_v61 = vld [vmem:[#allocation3 + $0x18] sm:$0xf]  ;;  %v3350_v48 = vld [vmem:[#allocation3 + $0x10] sm:$0xff] }
 0x403   : > { %v8721_v18 = vunpack.c.l.bf16 %v3351_v61  ;;  %v3418_v39 = vmul.f32 %v7259_v41, %v8715_v37  ;;  %v8724_v38 = vunpack.c.h.bf16 %v3350_v48  ;;  %v3417_v30 = vmul.f32 %v3412_v14, %v8717_v63  ;;  %v2435_v58 = vpop.f32.mrf.mxu2 }
 0x404   : > { %v8727_v12 = vunpack.c.l.bf16 %v3350_v48  ;;  %v3416_v40 = vmul.f32 %v7258_v20, %v8719_v8  ;;  %v2461_v53 = vadd.f32 %v2435_v58, %v8650_v47  ;;  %v2453_v26 = vpop.f32.mrf.mxu3  ;;  %v3679_v47 = vunpack.c.l.bf16 %v3673_v46 }
 0x405   : > { %v3421_v7 = vmul.f32 %v7259_v41, %v8721_v18  ;;  %v3420_v55 = vmul.f32 %v3412_v14, %v8724_v38  ;;  %v2462_v43 = vadd.f32 %v2453_v26, %v8653_v54  ;;  %v2538_v21 = vpop.f32.mrf.mxu0  ;;  %v2556_v3 = vpop.f32.mrf.mxu1  ;;  %v3680_v54 = vunpack.c.l.bf16 %v3678_v9 }
 0x406   : > { %v3419_v61 = vmul.f32 %v7258_v20, %v8727_v12  ;;  %v2564_v33 = vadd.f32 %v2538_v21, %v2461_v53 }
 0x407   : > { %v3424_v48 = vpack.c.bf16 %v3421_v7, %v3418_v39  ;;  %v3423_v29 = vpack.c.bf16 %v3420_v55, %v3417_v30  ;;  %v2565_v2 = vadd.f32 %v2556_v3, %v2462_v43  ;;  %v7270_v23 = vpack.i.bf16 %v3680_v54, %v3679_v47  ;;  %v7045_v43 = vld [vmem:[%s10441_s6 + $0x108] sm:$0xff] }
 0x408   : > { %v3422_v16 = vpack.c.bf16 %v3419_v61, %v3416_v40 }
 0x409   : > { %3444 = vrot.lane.b32.xlu2 %v3424_v48, %s10445_s22  ;;  %3442 = vrot.lane.b32.xlu1 %v3423_v29, %s10445_s22 }
 0x40a   : > { %3440 = vrot.lane.b32.xlu0 %v3422_v16, %s10445_s22 }
 0x40b   : > { %6788 = vmatmul.msk.bf16.gmra.mxu0 %vm760_vm6, %v2931_v49  ;;  %6790 = vmatmul.msk.bf16.gmra.mxu1 %vm760_vm6, %v2931_v49  ;;  %v2437_v41 = vpop.f32.mrf.mxu2 }
 0x40c   : > { %v2455_v20 = vpop.f32.mrf.mxu3  ;;  %v6793_v41 = vld [vmem:[%s10441_s6 + $0x110] sm:$0xf] }
 0x40d   : > { %v2540_v14 = vpop.f32.mrf.mxu0  ;;  %v2558_v13 = vpop.f32.mrf.mxu1 }
 0x412   : > { %7271 = vrot.lane.b32.xlu0 %v7270_v23, %s10480_s23 }
 0x43f   : > { %v3048_v46 = vpop.permute.xlu2 %3047 }
 0x443   : > { %v2643_v0 = vpop.f32.mrf.mxu2  ;;  %v2661_v39 = vpop.f32.mrf.mxu3 }
 0x444   : > { %v2670_v30 = vadd.f32 %v2643_v0, %v8664_v31  ;;  %v2671_v29 = vadd.f32 %v2661_v39, %v8671_v24  ;;  %v7046_v0 = vld [vmem:[%s10441_s6 + $0x114] sm:$0xff]  ;;  %v3039_v39 = vunpack.c.l.b16 %v6793_v41 }
 0x44b   : > { %v8743_v16 = vpop.f32.mrf.mxu2  ;;  %v8745_v9 = vpop.f32.mrf.mxu3 }
 0x453   : > { %v2648_v58 = vpop.f32.mrf.mxu2  ;;  %v2666_v49 = vpop.f32.mrf.mxu3 }
 0x454   : > { %v2674_v40 = vadd.f32 %v2648_v58, %v2564_v33  ;;  %v2675_v53 = vadd.f32 %v2666_v49, %v2565_v2  ;;  %v3152_v33 = vpop.permute.xlu2 %3151  ;;  %v3041_v58 = vpack.c.b16 %v3039_v39, %v3039_v39 }
 0x455   : > { %v3050_v26 = vpop.permute.xlu0 %3049 }
 0x456   : > { %v3053_v7 = vsel %vm10481_vm3, %v3048_v46, %v3050_v26  ;;  %v3046_v55 = vpop.permute.xlu1 %3045  ;;  %vm10502_vm3 = vcmask 1043456  }
 0x457   : > { %v3052_v31 = vsel %vm10482_vm5, %v3046_v55, %v3048_v46  ;;  %3087 = vmatpush.bf16.msra.mxu3 %v3053_v7  ;;  %v6804_v46 = vld [vmem:[%s10441_s6 + $0x11c] sm:$0xf]  ;;  %vm10503_vm5 = vmmov %vm10502_vm3 }
 0x458   : > { %v2747_v24 = vpop.f32.mrf.mxu0  ;;  %v2765_v21 = vpop.f32.mrf.mxu1  ;;  %3069 = vmatpush.bf16.msra.mxu2 %v3052_v31 }
 0x459   : > { %v8752_v3 = vadd.f32 %v2747_v24, %v2670_v30  ;;  %v8754_v61 = vadd.f32 %v2765_v21, %v2671_v29  ;;  %v3973_v30 = vld [vmem:[%s10341_s1 + $0x10] sm:$0x11] }
 0x45a   : > { %6800 = vmatmul.msk.bf16.vlgmr.msra.gmra.mxu3 %vm760_vm6, %v7045_v43  ;;  %v3975_v26 = vunpack.c.l.b16 %v3973_v30  ;;  %v3976_v7 = vunpack.c.h.b16 %v3973_v30 }
 0x45b   : > { %6798 = vmatmul.msk.bf16.vlgmr.msra.gmra.mxu2 %vm760_vm6, %v7045_v43  ;;  %v2650_v2 = vpop.f32.mrf.mxu2  ;;  %v2668_v48 = vpop.f32.mrf.mxu3 }
 0x45c   : > { %v7267_v29 = vpop.permute.xlu2 %7266 }
 0x45d   : > { %v7269_v55 = vunpack.i.h.bf16 %v7267_v29  ;;  %v7268_v39 = vunpack.i.l.bf16 %v7267_v29 }
 0x45f   : > { %v3154_v47 = vpop.permute.xlu0 %3153  ;;  %v3150_v54 = vpop.permute.xlu1 %3149 }
 0x460   : > { %v3157_v20 = vsel %vm10483_vm11, %v3152_v33, %v3154_v47  ;;  %v3156_v14 = vsel %vm10484_vm13, %v3150_v54, %v3152_v33  ;;  %v8763_v13 = vpop.f32.mrf.mxu0  ;;  %v8765_v23 = vpop.f32.mrf.mxu1  ;;  %v3143_v33 = vunpack.c.l.b16 %v6804_v46  ;;  %v3865_v47 = vshrl.u32 %v8613_v52, 16  ;;  %vm10504_vm13 = vmmov %vm10502_vm3 }
 0x461   : > { %10485 = vst [vmem:[#allocation23_spill] sm:$0xff] %v8763_v13  ;;  %3173 = vmatpush.bf16.msrb.mxu0 %v3156_v14  ;;  %3191 = vmatpush.bf16.msrb.mxu1 %v3157_v20  ;;  %v3869_v54 = vshrl.u32 %v8615_v27, 16  ;;  %v8793_v52 = vpack.c.b16 %v3976_v7, %v3976_v7  ;;  %vm4451_vm11 = vcmask 195584  }
 0x462   : > { %10486 = vst [vmem:[#allocation24_spill] sm:$0xff] %v8765_v23 }
 0x464   : > { %6811 = vmatmul.msk.bf16.vlgmr.msrb.gmra.mxu1 %vm760_vm6, %v7046_v0  ;;  %6809 = vmatmul.msk.bf16.vlgmr.msrb.gmra.mxu0 %vm760_vm6, %v7046_v0  ;;  %v3264_v13 = vpop.permute.xlu2 %3263 }
 0x467   : > { %v7262_v49 = vpop.permute.xlu1 %7261  ;;  %v3260_v23 = vpop.permute.xlu0 %3259 }
 0x468   : > { %v7264_v43 = vunpack.i.h.bf16 %v7262_v49  ;;  %v7263_v31 = vunpack.i.l.bf16 %v7262_v49  ;;  %v2752_v24 = vpop.f32.mrf.mxu0  ;;  %v2770_v21 = vpop.f32.mrf.mxu1 }
 0x469   : > { %v8778_v2 = vadd.f32 %v2752_v24, %v2674_v40  ;;  %v8780_v48 = vadd.f32 %v2770_v21, %v2675_v53  ;;  %v8791_v53 = vpack.c.b16 %v3975_v26, %v3975_v26  ;;  %v3145_v24 = vpack.c.b16 %v3143_v33, %v3143_v33 }
 0x46a   : > { %6801 = vmatmul.msk.bf16.gmra.mxu3 %vm760_vm6, %v3041_v58  ;;  %v3386_v41 = vmul.f32 %v7264_v43, %v8715_v37  ;;  %v3389_v20 = vmul.f32 %v7264_v43, %v8721_v18  ;;  %v3384_v14 = vmul.f32 %v7263_v31, %v8719_v8  ;;  %v3387_v0 = vmul.f32 %v7263_v31, %v8727_v12 }
 0x46b   : > { %6799 = vmatmul.msk.bf16.gmra.mxu2 %vm760_vm6, %v3041_v58  ;;  %v3380_v40 = vsel %vm1317_vm12, %v7263_v31, %v7264_v43  ;;  %v3583_v21 = vmul.f32 %v7269_v55, %v8715_v37  ;;  %v3866_v58 = vpack.i.b16 %v3865_v47, %v3865_v47  ;;  %v3870_v26 = vpack.i.b16 %v3869_v54, %v3869_v54 }
 0x46c   : > { %v3392_v27 = vpack.c.bf16 %v3389_v20, %v3386_v41  ;;  %v3390_v30 = vpack.c.bf16 %v3387_v0, %v3384_v14  ;;  %v3385_v46 = vmul.f32 %v3380_v40, %v8717_v63  ;;  %v3388_v49 = vmul.f32 %v3380_v40, %v8724_v38 }
 0x46d   : > { %v3586_v31 = vmul.f32 %v7269_v55, %v8721_v18  ;;  %v3581_v41 = vmul.f32 %v7268_v39, %v8719_v8  ;;  %v3584_v20 = vmul.f32 %v7268_v39, %v8727_v12  ;;  %v3577_v33 = vsel %vm1531_vm2, %v7268_v39, %v7269_v55 }
 0x46e   : > { %3507 = vrot.lane.b32.xlu0 %v3392_v27, %s10449_s20  ;;  %3503 = vrot.lane.b32.xlu1 %v3390_v30, %s10449_s20  ;;  %v3391_v29 = vpack.c.bf16 %v3388_v49, %v3385_v46  ;;  %v3980_v47 = vpack.i.b16 %v8791_v53, %v8791_v53  ;;  %v3984_v54 = vpack.i.b16 %v8793_v52, %v8793_v52  ;;  %v3868_v55 = vperm.slane %v3866_v58, 2 }
 0x46f   : > { %v2857_v7 = vpop.f32.mrf.mxu2  ;;  %v2875_v43 = vpop.f32.mrf.mxu3  ;;  %v3872_v39 = vperm.slane %v3870_v26, 2 }
 0x470   : > { %v2884_v14 = vadd.f32 %v2857_v7, %v8752_v3  ;;  %v2885_v0 = vadd.f32 %v2875_v43, %v8754_v61  ;;  %v3262_v40 = vpop.permute.xlu1 %3261  ;;  %3505 = vrot.lane.b32.xlu2 %v3391_v29, %s10449_s20  ;;  %v2754_v27 = vpop.f32.mrf.mxu0  ;;  %v3582_v3 = vmul.f32 %v3577_v33, %v8717_v63  ;;  %v3585_v61 = vmul.f32 %v3577_v33, %v8724_v38 }
 0x471   : > { %v2772_v30 = vpop.f32.mrf.mxu1  ;;  %v3266_v46 = vsel %vm10487_vm15, %v3260_v23, %v3262_v40  ;;  %v3267_v49 = vsel %vm10488_vm0, %v3262_v40, %v3264_v13  ;;  %v3589_v29 = vpack.c.bf16 %v3586_v31, %v3583_v21  ;;  %v3587_v7 = vpack.c.bf16 %v3584_v20, %v3581_v41  ;;  %v7047_v23 = vld [vmem:[%s10441_s6 + $0x120] sm:$0xff]  ;;  %vm10505_vm15 = vmmov %vm10502_vm3 }
 0x472   : > { %3283 = vmatpush.bf16.msrb.mxu2 %v3266_v46  ;;  %3301 = vmatpush.bf16.msrb.mxu3 %v3267_v49  ;;  %v3982_v43 = vperm.slane %v3980_v47, 0  ;;  %v3986_v27 = vperm.slane %v3984_v54, 0  ;;  %v3588_v13 = vpack.c.bf16 %v3585_v61, %v3582_v3  ;;  %v3879_v33 = vunpack.c.l.bf16 %v3868_v55  ;;  %v3445_v30 = vpop.permute.xlu2 %3444  ;;  %vm10506_vm0 = vmmov %vm10502_vm3 }
 0x473   : > { %v3880_v58 = vunpack.c.l.bf16 %v3872_v39 }
 0x474   : > { %6810 = vmatmul.msk.bf16.gmra.mxu0 %vm760_vm6, %v3145_v24  ;;  %6812 = vmatmul.msk.bf16.gmra.mxu1 %vm760_vm6, %v3145_v24  ;;  %v3987_v21 = vunpack.c.l.bf16 %v3982_v43  ;;  %v3988_v31 = vunpack.c.l.bf16 %v3986_v27 }
 0x475   : > { %v7275_v54 = vpack.i.bf16 %v3880_v58, %v3879_v33  ;;  %v4081_v33 = vshrl.u32 %v8791_v53, 16  ;;  %v4085_v58 = vshrl.u32 %v8793_v52, 16 }
 0x476   : > { %3609 = vrot.lane.b32.xlu0 %v3589_v29, %s10443_s30  ;;  %3605 = vrot.lane.b32.xlu1 %v3587_v7, %s10443_s30  ;;  %v7280_v61 = vpack.i.bf16 %v3988_v31, %v3987_v21  ;;  %v4183_v29 = vld [vmem:[%s10341_s1 + $0x10] sm:$0x22] }
 0x477   : > { %v8822_v26 = vpop.f32.mrf.mxu2  ;;  %v8824_v40 = vpop.f32.mrf.mxu3  ;;  %v4186_v21 = vunpack.c.h.b16 %v4183_v29 }
 0x478   : > { %3607 = vrot.lane.b32.xlu2 %v3588_v13, %s10443_s30  ;;  %v2961_v24 = vpop.f32.mrf.mxu0 }
 0x479   : > { %v8827_v41 = vadd.f32 %v2961_v24, %v2884_v14  ;;  %v2979_v20 = vpop.f32.mrf.mxu1  ;;  %v6815_v14 = vld [vmem:[%s10441_s6 + $0x128] sm:$0xf]  ;;  %v4185_v24 = vunpack.c.l.b16 %v4183_v29 }
 0x47a   : > { %v8829_v47 = vadd.f32 %v2979_v20, %v2885_v0  ;;  %6822 = vmatmul.msk.bf16.vlgmr.msrb.gmra.mxu3 %vm760_vm6, %v7047_v23 }
 0x47b   : > { %6820 = vmatmul.msk.bf16.vlgmr.msrb.gmra.mxu2 %vm760_vm6, %v7047_v23  ;;  %v3443_v46 = vpop.permute.xlu1 %3442  ;;  %v3253_v23 = vunpack.c.l.b16 %v6815_v14 }
 0x47c   : > { %v3441_v49 = vpop.permute.xlu0 %3440  ;;  %v3447_v3 = vsel %vm760_vm6, %v3443_v46, %v3445_v30 }
 0x47d   : > { %v3446_v55 = vsel %vm760_vm6, %v3441_v49, %v3443_v46  ;;  %3481 = vmatpush.bf16.msra.mxu1 %v3447_v3  ;;  %v3255_v30 = vpack.c.b16 %v3253_v23, %v3253_v23  ;;  %v4086_v46 = vpack.i.b16 %v4085_v58, %v4085_v58  ;;  %v4188_v49 = vpack.c.b16 %v4186_v21, %v4186_v21 }
 0x47e   : > { %7276 = vrot.lane.b32.xlu1 %v7275_v54, %s10489_s28  ;;  %3463 = vmatpush.bf16.msra.mxu0 %v3446_v55 }
 0x47f   : > { %v2862_v0 = vpop.f32.mrf.mxu2  ;;  %v2880_v39 = vpop.f32.mrf.mxu3 }
 0x480   : > { %v2888_v7 = vadd.f32 %v2862_v0, %v8778_v2  ;;  %v2889_v43 = vadd.f32 %v2880_v39, %v8780_v48  ;;  %7281 = vrot.lane.b32.xlu2 %v7280_v61, %s10443_s30  ;;  %v8845_v27 = vpop.f32.mrf.mxu0  ;;  %v4082_v2 = vpack.i.b16 %v4081_v33, %v4081_v33  ;;  %v4187_v48 = vpack.c.b16 %v4185_v24, %v4185_v24 }
 0x481   : > { %v8847_v13 = vpop.f32.mrf.mxu1 }
 0x484   : > { %v7272_v31 = vpop.permute.xlu0 %7271 }
 0x485   : > { %v7274_v20 = vunpack.i.h.bf16 %v7272_v31  ;;  %v7273_v54 = vunpack.i.l.bf16 %v7272_v31 }
 0x487   : > { %v3693_v3 = vmul.f32 %v7274_v20, %v8715_v37  ;;  %v3696_v61 = vmul.f32 %v7274_v20, %v8721_v18  ;;  %v3691_v55 = vmul.f32 %v7273_v54, %v8719_v8  ;;  %v3694_v53 = vmul.f32 %v7273_v54, %v8727_v12  ;;  %v2864_v14 = vpop.f32.mrf.mxu2  ;;  %v2882_v52 = vpop.f32.mrf.mxu3 }
 0x488   : > { %v2966_v0 = vpop.f32.mrf.mxu0  ;;  %v3687_v39 = vsel %vm1849_vm8, %v7273_v54, %v7274_v20  ;;  %v4084_v8 = vperm.slane %v4082_v2, 0  ;;  %v4088_v18 = vperm.slane %v4086_v46, 0  ;;  %v4190_v12 = vpack.i.b16 %v4187_v48, %v4187_v48  ;;  %v3319_v2 = vld [vmem:[%s10347_s7 + $0x8] sm:$0xff] }
 0x489   : > { %v8856_v29 = vadd.f32 %v2966_v0, %v2888_v7  ;;  %v2984_v23 = vpop.f32.mrf.mxu1  ;;  %v3699_v33 = vpack.c.bf16 %v3696_v61, %v3693_v3  ;;  %v3697_v58 = vpack.c.bf16 %v3694_v53, %v3691_v55  ;;  %v3692_v24 = vmul.f32 %v3687_v39, %v8717_v63  ;;  %v7049_v55 = vld [vmem:[%s10348_s8 + $0xc] sm:$0xff]  ;;  %v6826_v53 = vld [vmem:[%s10348_s8 + $0x14] sm:$0xf] }
 0x48a   : > { %v8859_v21 = vadd.f32 %v2984_v23, %v2889_v43  ;;  %6823 = vmatmul.msk.bf16.gmra.mxu3 %vm760_vm6, %v3255_v30  ;;  %v3695_v37 = vmul.f32 %v3687_v39, %v8724_v38  ;;  %v4194_v7 = vpack.i.b16 %v4188_v49, %v4188_v49  ;;  %v4089_v63 = vunpack.c.l.bf16 %v4084_v8  ;;  %v3318_v38 = vld [vmem:[%s10347_s7] sm:$0xff]  ;;  %6831 = vmatmul.msk.bf16.vlgmr.msra.gmra.mxu0 %vm760_vm6, %v7049_v55 }
 0x48b   : > { %3719 = vrot.lane.b32.xlu2 %v3699_v33, %s10489_s28  ;;  %3715 = vrot.lane.b32.xlu0 %v3697_v58, %s10489_s28  ;;  %v4090_v43 = vunpack.c.l.bf16 %v4088_v18  ;;  %v4192_v20 = vperm.slane %v4190_v12, 1  ;;  %v3434_v14 = vunpack.c.l.b16 %v6826_v53  ;;  %v1402_v0 = vadd.f32 %v8360_v17, %v8354_v51 }
 0x48c   : > { %6821 = vmatmul.msk.bf16.gmra.mxu2 %vm760_vm6, %v3255_v30  ;;  %v3698_v31 = vpack.c.bf16 %v3695_v37, %v3692_v24  ;;  %v4196_v54 = vperm.slane %v4194_v7, 1  ;;  %6833 = vmatmul.msk.bf16.vlgmr.msra.gmra.mxu1 %vm760_vm6, %v7049_v55  ;;  %v1401_v39 = vadd.f32 %v8358_v19, %v8349_v6 }
 0x48d   : > { %v7285_v49 = vpack.i.bf16 %v4090_v43, %v4089_v63  ;;  %v4197_v30 = vunpack.c.l.bf16 %v4192_v20  ;;  %v3436_v52 = vpack.c.b16 %v3434_v14, %v3434_v14  ;;  %v1506_v33 = vadd.f32 %v8366_v36, %v1402_v0 }
 0x48e   : > { %3717 = vrot.lane.b32.xlu1 %v3698_v31, %s10489_s28  ;;  %v4198_v3 = vunpack.c.l.bf16 %v4196_v54  ;;  %v1505_v58 = vadd.f32 %v8364_v35, %v1401_v39  ;;  %v7050_v39 = vld [vmem:[%s10348_s8 + $0x18] sm:$0xff] }
 0x48f   : > { %v1616_v24 = vadd.f32 %v8459_v11, %v1506_v33  ;;  %v3395_v33 = vld [vmem:[%s10348_s8 + $0x8] sm:$0xf] }
 0x490   : > { %v2968_v46 = vpop.f32.mrf.mxu0  ;;  %v7291_v61 = vpack.i.bf16 %v4198_v3, %v4197_v30  ;;  %v1615_v37 = vadd.f32 %v8457_v50, %v1505_v58  ;;  %v10491_v58 = vpack.c.bf16 %v8701_v10, %v8684_v1 }
 0x491   : > { %v2986_v48 = vpop.f32.mrf.mxu1  ;;  %v1720_v18 = vadd.f32 %v8473_v45, %v1616_v24  ;;  %v7048_v46 = vld [vmem:[%s10348_s8] sm:$0xff]  ;;  %v10492_v24 = vld [vmem:[#allocation20_spill] sm:$0xff] }
 0x492   : > { %v1719_v12 = vadd.f32 %v8471_v32, %v1615_v37  ;;  %v10493_v37 = vpack.c.bf16 %v8705_v28, %v10492_v24 }
 0x493   : > { %3323 = vperm.xlu0 %7133, %v3318_v38   ;;  %3328 = vperm.xlu2 %7290, %v3319_v2   ;;  %v1830_v7 = vadd.f32 %v8510_v4, %v1720_v18  ;;  %v3864_v18 = vld [vmem:[#allocation3 + $0x1c] sm:$0xf] }
 0x494   : > { %v1829_v51 = vadd.f32 %v8508_v62, %v1719_v12  ;;  %v8970_v28 = vunpack.c.l.bf16 %v3864_v18 }
 0x495   : > { %v1934_v36 = vadd.f32 %v8512_v34, %v1830_v7  ;;  %v10494_v7 = vld [vmem:[#allocation16_spill] sm:$0xff] }
 0x496   : > { %7286 = vrot.lane.b32.xlu1 %v7285_v49, %s10445_s22  ;;  %v1933_v32 = vadd.f32 %v8514_v5, %v1829_v51 }
 0x497   : > { %v2022_v49 = vadd.f32 %v8520_v57, %v1934_v36 }
 0x498   : > { %v2021_v48 = vadd.f32 %v8518_v44, %v1933_v32 }
 0x499   : > { %v2136_v3 = vadd.f32 %v8522_v22, %v2022_v49 }
 0x49a   : > { %6832 = vmatmul.msk.bf16.gmra.mxu0 %vm760_vm6, %v3436_v52 }
 0x49b   : > { %7292 = vrot.lane.b32.xlu0 %v7291_v61, %s10449_s20  ;;  %v2135_v61 = vadd.f32 %v8524_v60, %v2021_v48  ;;  %v10496_v48 = vld [vmem:[#allocation18_spill] sm:$0xff] }
 0x49c   : > { %6834 = vmatmul.msk.bf16.gmra.mxu1 %vm760_vm6, %v3436_v52 }
 0x49d   : > { %v2245_v22 = vadd.f32 %v8554_v59, %v2135_v61  ;;  %v3497_v59 = vunpack.c.l.b16 %v3395_v33 }
 0x49f   : > { %v2349_v51 = vadd.f32 %v10494_v7, %v2245_v22  ;;  %v10499_v7 = vld [vmem:[#allocation21_spill] sm:$0xff] }
 0x4a1   : > { %v2459_v49 = vadd.f32 %v10496_v48, %v2349_v51 }
 0x4a3   : > { %v2562_v51 = vadd.f32 %v10499_v7, %v2459_v49 }
 0x4ca   : > { %v3506_v23 = vpop.permute.xlu2 %3505 }
 0x4d2   : > { %v3608_v8 = vpop.permute.xlu2 %3607 }
 0x4da   : > { %v7282_v17 = vpop.permute.xlu2 %7281 }
 0x4db   : > { %v8897_v6 = vunpack.i.h.bf16 %v7282_v17  ;;  %v7283_v19 = vunpack.i.l.bf16 %v7282_v17  ;;  %v10495_v17 = vld [vmem:[#allocation17_spill] sm:$0xff] }
 0x4dd   : > { %v3995_v35 = vsel %vm1566_vm9, %v7283_v19, %v8897_v6  ;;  %v8902_v11 = vpop.f32.mrf.mxu3  ;;  %v8905_v50 = vmul.f32 %v7283_v19, %v8673_v25  ;;  %v8911_v62 = vmul.f32 %v7283_v19, %v8681_v56 }
 0x4de   : > { %v8908_v45 = vpop.f32.mrf.mxu2  ;;  %v8914_v4 = vmul.f32 %v3995_v35, %v8675_v42  ;;  %v8917_v34 = vmul.f32 %v3995_v35, %v8686_v15 }
 0x4df   : > { %v4005_v43 = vpack.c.bf16 %v8911_v62, %v8905_v50 }
 0x4e0   : > { %v3508_v31 = vpop.permute.xlu0 %3507  ;;  %v3504_v63 = vpop.permute.xlu1 %3503  ;;  %v4006_v20 = vpack.c.bf16 %v8917_v34, %v8914_v4 }
 0x4e1   : > { %v3510_v5 = vsel %vm1352_vm4, %v3506_v23, %v3508_v31  ;;  %v3509_v54 = vsel %vm1352_vm4, %v3504_v63, %v3506_v23  ;;  %v8925_v38 = vpop.f32.mrf.mxu0  ;;  %v8927_v2 = vpop.f32.mrf.mxu1  ;;  %v10490_v23 = vld [vmem:[#allocation15_spill] sm:$0xff] }
 0x4e2   : > { %3526 = vmatpush.bf16.msra.mxu2 %v3509_v54  ;;  %3544 = vmatpush.bf16.msra.mxu3 %v3510_v5  ;;  %v2246_v60 = vadd.f32 %v10490_v23, %v2136_v3  ;;  %v10497_v3 = vld [vmem:[#allocation19_spill] sm:$0xff] }
 0x4e4   : > { %v2350_v19 = vadd.f32 %v10495_v17, %v2246_v60 }
 0x4e5   : > { %v8934_v30 = vpop.f32.mrf.mxu3  ;;  %6841 = vmatmul.msk.bf16.vlgmr.msra.gmra.mxu3 %vm760_vm6, %v7048_v46  ;;  %6839 = vmatmul.msk.bf16.vlgmr.msra.gmra.mxu2 %vm760_vm6, %v7048_v46  ;;  %v3499_v46 = vpack.c.b16 %v3497_v59, %v3497_v59 }
 0x4e6   : > { %v8940_v55 = vpop.f32.mrf.mxu2  ;;  %v2460_v61 = vadd.f32 %v10497_v3, %v2350_v19  ;;  %v4004_v19 = vmul.f32 %v8897_v6, %v8970_v28  ;;  %v3720_v3 = vpop.permute.xlu2 %3719 }
 0x4e8   : > { %v3610_v53 = vpop.permute.xlu0 %3609  ;;  %v3606_v14 = vpop.permute.xlu1 %3605 }
 0x4e9   : > { %v3612_v44 = vsel %vm1566_vm9, %v3608_v8, %v3610_v53  ;;  %v3611_v57 = vsel %vm1566_vm9, %v3606_v14, %v3608_v8  ;;  %v8944_v52 = vpop.f32.mrf.mxu0  ;;  %v8946_v0 = vpop.f32.mrf.mxu1  ;;  %v3862_v8 = vld [vmem:[#allocation3 + $0xc] sm:$0xf] }
 0x4ea   : > { %3628 = vmatpush.bf16.msrb.mxu0 %v3611_v57  ;;  %3646 = vmatpush.bf16.msrb.mxu1 %v3612_v44  ;;  %v8968_v35 = vunpack.c.l.bf16 %v3862_v8 }
 0x4ec   : > { %v4001_v17 = vmul.f32 %v8897_v6, %v8968_v35 }
 0x4ed   : > { %v3094_v12 = vpop.f32.mrf.mxu3  ;;  %6850 = vmatmul.msk.bf16.vlgmr.msrb.gmra.mxu0 %vm760_vm6, %v7050_v39  ;;  %6852 = vmatmul.msk.bf16.vlgmr.msrb.gmra.mxu1 %vm760_vm6, %v7050_v39 }
 0x4ee   : > { %3826 = vmatpush.bf16.msra.mxu0 %v10491_v58  ;;  %3844 = vmatpush.bf16.msra.mxu1 %v10493_v37  ;;  %v3076_v36 = vpop.f32.mrf.mxu2  ;;  %v3103_v1 = vadd.f32 %v3094_v12, %v8859_v21  ;;  %v10498_v37 = vld [vmem:[#allocation22_spill] sm:$0xff]  ;;  %v4007_v48 = vpack.c.bf16 %v4004_v19, %v4001_v17  ;;  %v3329_v34 = vpop.permute.xlu2 %3328 }
 0x4ef   : > { %v3102_v10 = vadd.f32 %v3076_v36, %v8856_v29  ;;  %v6845_v29 = vld [vmem:[%s10348_s8 + $0x20] sm:$0xf]  ;;  %v2563_v8 = vadd.f32 %v10498_v37, %v2460_v61  ;;  %v7052_v37 = vld [vmem:[%s10348_s8 + $0x30] sm:$0xff] }
 0x4f0   : > { %v7277_v32 = vpop.permute.xlu1 %7276  ;;  %v3599_v24 = vunpack.c.l.b16 %v6845_v29  ;;  %v3098_v29 = vadd.f32 %v8908_v45, %v8827_v41 }
 0x4f1   : > { %v7279_v31 = vunpack.i.h.bf16 %v7277_v32  ;;  %v7278_v63 = vunpack.i.l.bf16 %v7277_v32  ;;  %v3180_v5 = vpop.f32.mrf.mxu0  ;;  %v3198_v54 = vpop.f32.mrf.mxu1  ;;  %v2673_v36 = vadd.f32 %v8745_v9, %v2563_v8 }
 0x4f2   : > { %v8974_v53 = vadd.f32 %v3180_v5, %v3102_v10  ;;  %v8976_v14 = vadd.f32 %v3198_v54, %v3103_v1  ;;  %v2672_v1 = vadd.f32 %v8743_v16, %v2562_v51  ;;  %v3601_v10 = vpack.c.b16 %v3599_v24, %v3599_v24  ;;  %v10501_v54 = vld [vmem:[#allocation23_spill] sm:$0xff] }
 0x4f3   : > { %v3887_v21 = vsel %vm1884_vm7, %v7278_v63, %v7279_v31  ;;  %v3893_v44 = vmul.f32 %v7279_v31, %v8968_v35  ;;  %v3896_v57 = vmul.f32 %v7279_v31, %v8970_v28  ;;  %v3891_v39 = vmul.f32 %v7278_v63, %v8673_v25 }
 0x4f4   : > { %v3894_v22 = vmul.f32 %v7278_v63, %v8681_v56  ;;  %v3892_v23 = vmul.f32 %v3887_v21, %v8675_v42  ;;  %v3895_v60 = vmul.f32 %v3887_v21, %v8686_v15  ;;  %v10500_v63 = vld [vmem:[#allocation24_spill] sm:$0xff]  ;;  %v3099_v21 = vadd.f32 %v8902_v11, %v8829_v47 }
 0x4f5   : > { %v3096_v33 = vpop.f32.mrf.mxu3  ;;  %v3899_v58 = vpack.c.bf16 %v3896_v57, %v3893_v44  ;;  %6840 = vmatmul.msk.bf16.gmra.mxu2 %vm760_vm6, %v3499_v46  ;;  %6842 = vmatmul.msk.bf16.gmra.mxu3 %vm760_vm6, %v3499_v46  ;;  %v2777_v5 = vadd.f32 %v10500_v63, %v2673_v36  ;;  %v2776_v46 = vadd.f32 %v10501_v54, %v2672_v1 }
 0x4f6   : > { %v3078_v18 = vpop.f32.mrf.mxu2  ;;  %v3897_v12 = vpack.c.bf16 %v3894_v22, %v3891_v39  ;;  %v3898_v59 = vpack.c.bf16 %v3895_v60, %v3892_v23  ;;  %v3202_v11 = vadd.f32 %v8925_v38, %v3098_v29  ;;  %v3203_v50 = vadd.f32 %v8927_v2, %v3099_v21 }
 0x4f7   : > { %3919 = vrot.lane.b32.xlu0 %v3899_v58, %s10480_s23  ;;  %v2887_v49 = vadd.f32 %v8824_v40, %v2777_v5  ;;  %v2886_v6 = vadd.f32 %v8822_v26, %v2776_v46 }
 0x4f8   : > { %3915 = vrot.lane.b32.xlu1 %v3897_v12, %s10480_s23  ;;  %3917 = vrot.lane.b32.xlu2 %v3898_v59, %s10480_s23 }
 0x4f9   : > { %v3182_v32 = vpop.f32.mrf.mxu0  ;;  %v3200_v31 = vpop.f32.mrf.mxu1  ;;  %v2991_v16 = vadd.f32 %v8847_v13, %v2887_v49  ;;  %v2990_v40 = vadd.f32 %v8845_v27, %v2886_v6  ;;  %v7051_v13 = vld [vmem:[%s10348_s8 + $0x24] sm:$0xff] }
 0x4fb   : > { %v3101_v26 = vadd.f32 %v8934_v30, %v2991_v16  ;;  %v3100_v41 = vadd.f32 %v8940_v55, %v2990_v40  ;;  %v3320_v55 = vld [vmem:[%s10347_s7 + $0x10] sm:$0xff] }
 0x4fd   : > { %v3716_v9 = vpop.permute.xlu0 %3715  ;;  %v3303_v61 = vpop.f32.mrf.mxu3  ;;  %6851 = vmatmul.msk.bf16.gmra.mxu0 %vm760_vm6, %v3601_v10  ;;  %6853 = vmatmul.msk.bf16.gmra.mxu1 %vm760_vm6, %v3601_v10  ;;  %v3205_v45 = vadd.f32 %v8946_v0, %v3101_v26  ;;  %v4293_v26 = vld [vmem:[%s10349_s9 + $0x10] sm:$0xff] }
 0x4fe   : > { %v3285_v44 = vpop.f32.mrf.mxu2  ;;  %v3313_v4 = vadd.f32 %v3303_v61, %v3203_v50 }
 0x4ff   : > { %4027 = vrot.lane.b32.xlu0 %v4007_v48, %s10448_s24  ;;  %v3312_v62 = vadd.f32 %v3285_v44, %v3202_v11 }
 0x500   : > { %v3718_v57 = vpop.permute.xlu1 %3717  ;;  %4023 = vrot.lane.b32.xlu1 %v4005_v43, %s10448_s24  ;;  %4025 = vrot.lane.b32.xlu2 %v4006_v20, %s10448_s24  ;;  %v3204_v43 = vadd.f32 %v8944_v52, %v3100_v41  ;;  %v6856_v52 = vld [vmem:[%s10348_s8 + $0x2c] sm:$0xf] }
 0x501   : > { %v3721_v47 = vsel %vm1884_vm7, %v3716_v9, %v3718_v57  ;;  %v3722_v27 = vsel %vm1884_vm7, %v3718_v57, %v3720_v3  ;;  %v3709_v8 = vunpack.c.l.b16 %v6856_v52 }
 0x502   : > { %3738 = vmatpush.bf16.msrb.mxu2 %v3721_v47  ;;  %3756 = vmatpush.bf16.msrb.mxu3 %v3722_v27 }
 0x503   : > { %v3711_v48 = vpack.c.b16 %v3709_v8, %v3709_v8 }
 0x505   : > { %v3324_v20 = vpop.permute.xlu0 %3323  ;;  %v3305_v30 = vpop.f32.mrf.mxu3  ;;  %6861 = vmatmul.msk.bf16.vlgmr.msrb.gmra.mxu2 %vm760_vm6, %v7051_v13  ;;  %6863 = vmatmul.msk.bf16.vlgmr.msrb.gmra.mxu3 %vm760_vm6, %v7051_v13 }
 0x506   : > { %v3336_v38 = vadd.f32 %v3324_v20, %v3312_v62  ;;  %v3337_v2 = vadd.f32 %v3324_v20, %v3313_v4  ;;  %v3287_v0 = vpop.f32.mrf.mxu2  ;;  %v3315_v39 = vadd.f32 %v3305_v30, %v3205_v45 }
 0x507   : > { %v3314_v22 = vadd.f32 %v3287_v0, %v3204_v43  ;;  %v3465_v57 = vpop.f32.mrf.mxu0 }
 0x508   : > { %3342 = vst [vmem:[%s8221_s0 + $0x20] sm:$0xff] %v3336_v38  ;;  %v7287_v23 = vpop.permute.xlu1 %7286  ;;  %3333 = vperm.xlu1 %7244, %v3320_v55   ;;  %v3339_v60 = vadd.f32 %v3329_v34, %v3315_v39  ;;  %v7053_v55 = vld [vmem:[%s10348_s8 + $0x3c] sm:$0xff] }
 0x509   : > { %3343 = vst [vmem:[%s8221_s0 + $0x28] sm:$0xff] %v3337_v2  ;;  %v7289_v33 = vunpack.i.h.bf16 %v7287_v23  ;;  %v7288_v58 = vunpack.i.l.bf16 %v7287_v23  ;;  %v3338_v24 = vadd.f32 %v3329_v34, %v3314_v22  ;;  %v3483_v41 = vpop.f32.mrf.mxu1 }
 0x50a   : > { %3345 = vst [vmem:[%s8221_s0 + $0x38] sm:$0xff] %v3339_v60 }
 0x50b   : > { %v4097_v18 = vsel %vm760_vm6, %v7288_v58, %v7289_v33  ;;  %3344 = vst [vmem:[%s8221_s0 + $0x30] sm:$0xff] %v3338_v24  ;;  %v4101_v12 = vmul.f32 %v7288_v58, %v8673_v25  ;;  %v4104_v59 = vmul.f32 %v7288_v58, %v8681_v56  ;;  %v4103_v7 = vmul.f32 %v7289_v33, %v8968_v35 }
 0x50c   : > { %v4102_v51 = vmul.f32 %v4097_v18, %v8675_v42  ;;  %v4105_v17 = vmul.f32 %v4097_v18, %v8686_v15  ;;  %v4106_v19 = vmul.f32 %v7289_v33, %v8970_v28  ;;  %v7054_v18 = vld [vmem:[%s10348_s8 + $0x48] sm:$0xff] }
 0x50d   : > { %v7293_v36 = vpop.permute.xlu0 %7292  ;;  %v4107_v1 = vpack.c.bf16 %v4104_v59, %v4101_v12  ;;  %v3308_v10 = vpop.f32.mrf.mxu3  ;;  %6872 = vmatmul.msk.bf16.vlgmr.msra.gmra.mxu0 %vm760_vm6, %v7052_v37  ;;  %6874 = vmatmul.msk.bf16.vlgmr.msra.gmra.mxu1 %vm760_vm6, %v7052_v37 }
 0x50e   : > { %v7295_v32 = vunpack.i.h.bf16 %v7293_v36  ;;  %v7294_v31 = vunpack.i.l.bf16 %v7293_v36  ;;  %v4108_v63 = vpack.c.bf16 %v4105_v17, %v4102_v51  ;;  %v9058_v5 = vadd.f32 %v3308_v10, %v8976_v14 }
 0x50f   : > { %4125 = vrot.lane.b32.xlu2 %v4107_v1, %s10451_s16  ;;  %v3290_v54 = vpop.f32.mrf.mxu2  ;;  %v4109_v46 = vpack.c.bf16 %v4106_v19, %v4103_v7  ;;  %v9092_v47 = vpop.f32.mrf.mxu0  ;;  %v6878_v7 = vld [vmem:[%s10348_s8 + $0x44] sm:$0xf] }
 0x510   : > { %v4205_v49 = vsel %vm1352_vm4, %v7294_v31, %v7295_v32  ;;  %4127 = vrot.lane.b32.xlu0 %v4108_v63, %s10451_s16  ;;  %v9064_v3 = vadd.f32 %v3290_v54, %v8974_v53  ;;  %v4209_v6 = vmul.f32 %v7294_v31, %v8673_v25  ;;  %v4212_v9 = vmul.f32 %v7294_v31, %v8681_v56  ;;  %v6867_v53 = vld [vmem:[%s10348_s8 + $0x38] sm:$0xf] }
 0x511   : > { %4129 = vrot.lane.b32.xlu1 %v4109_v46, %s10451_s16  ;;  %v4210_v14 = vmul.f32 %v4205_v49, %v8675_v42  ;;  %v4213_v61 = vmul.f32 %v4205_v49, %v8686_v15  ;;  %v4211_v16 = vmul.f32 %v7295_v32, %v8968_v35  ;;  %v4214_v29 = vmul.f32 %v7295_v32, %v8970_v28  ;;  %v4291_v35 = vld [vmem:[%s10349_s9] sm:$0xff]  ;;  %v4292_v28 = vld [vmem:[%s10349_s9 + $0x8] sm:$0xff]  ;;  %v9094_v27 = vpop.f32.mrf.mxu1 }
 0x512   : > { %v4215_v21 = vpack.c.bf16 %v4212_v9, %v4209_v6  ;;  %v3810_v25 = vunpack.c.l.b16 %v6867_v53  ;;  %v3909_v17 = vunpack.c.l.b16 %v6878_v7 }
 0x513   : > { %v4216_v44 = vpack.c.bf16 %v4213_v61, %v4210_v14  ;;  %v4217_v40 = vpack.c.bf16 %v4214_v29, %v4211_v16 }
 0x514   : > { %v3812_v15 = vpack.c.b16 %v3810_v25, %v3810_v25  ;;  %v3911_v31 = vpack.c.b16 %v3909_v17, %v3909_v17 }
 0x515   : > { %6862 = vmatmul.msk.bf16.gmra.mxu2 %vm760_vm6, %v3711_v48  ;;  %6864 = vmatmul.msk.bf16.gmra.mxu3 %vm760_vm6, %v3711_v48  ;;  %v3310_v56 = vpop.f32.mrf.mxu3  ;;  %v6889_v48 = vld [vmem:[%s10348_s8 + $0x50] sm:$0xf] }
 0x516   : > { %v4017_v14 = vunpack.c.l.b16 %v6889_v48 }
 0x517   : > { %4233 = vrot.lane.b32.xlu2 %v4215_v21, %s10454_s4  ;;  %v3292_v42 = vpop.f32.mrf.mxu2  ;;  %v3470_v13 = vpop.f32.mrf.mxu0 }
 0x518   : > { %4235 = vrot.lane.b32.xlu0 %v4216_v44, %s10454_s4  ;;  %v4019_v21 = vpack.c.b16 %v4017_v14, %v4017_v14 }
 0x519   : > { %4237 = vrot.lane.b32.xlu1 %v4217_v40, %s10454_s4  ;;  %v3488_v11 = vpop.f32.mrf.mxu1 }
 0x51d   : > { %6873 = vmatmul.msk.bf16.gmra.mxu0 %vm760_vm6, %v3812_v15  ;;  %6875 = vmatmul.msk.bf16.gmra.mxu1 %vm760_vm6, %v3812_v15  ;;  %v4580_v15 = vld [vmem:[%s10341_s1 + $0x8] sm:$0x11] }
 0x51f   : > { %4296 = vperm.xlu2 %7290, %v4291_v35   ;;  %v3472_v50 = vpop.f32.mrf.mxu0 }
 0x520   : > { %4301 = vperm.xlu0 %7133, %v4292_v28  }
 0x521   : > { %4306 = vperm.xlu1 %7244, %v4293_v26   ;;  %v3490_v45 = vpop.f32.mrf.mxu1 }
 0x552   : > { %v3918_v62 = vpop.permute.xlu2 %3917 }
 0x55a   : > { %v4026_v58 = vpop.permute.xlu2 %4025 }
 0x568   : > { %v3528_v4 = vpop.f32.mrf.mxu2  ;;  %v3546_v34 = vpop.f32.mrf.mxu3 }
 0x569   : > { %v3920_v43 = vpop.permute.xlu0 %3919  ;;  %v3529_v39 = vadd.f32 %v3528_v4, %v3465_v57  ;;  %v3547_v22 = vadd.f32 %v3546_v34, %v3483_v41  ;;  %v4126_v61 = vpop.permute.xlu2 %4125  ;;  %v4582_v57 = vunpack.c.l.b16 %v4580_v15  ;;  %v4583_v41 = vunpack.c.h.b16 %v4580_v15 }
 0x56a   : > { %v3922_v20 = vsel %vm1849_vm8, %v3918_v62, %v3920_v43  ;;  %v3916_v30 = vpop.permute.xlu1 %3915  ;;  %v3630_v38 = vpop.f32.mrf.mxu0 }
 0x56b   : > { %v3921_v2 = vsel %vm1849_vm8, %v3916_v30, %v3918_v62  ;;  %3956 = vmatpush.bf16.msra.mxu3 %v3922_v20  ;;  %v3648_v0 = vpop.f32.mrf.mxu1  ;;  %v9103_v52 = vadd.f32 %v3630_v38, %v3529_v39  ;;  %v4584_v50 = vpack.c.b16 %v4582_v57, %v4582_v57  ;;  %v4585_v45 = vpack.c.b16 %v4583_v41, %v4583_v41 }
 0x56c   : > { %3938 = vmatpush.bf16.msra.mxu2 %v3921_v2  ;;  %v9105_v23 = vadd.f32 %v3648_v0, %v3547_v22 }
 0x56d   : > { %v4591_v39 = vpack.i.b16 %v4585_v45, %v4585_v45 }
 0x56e   : > { %6885 = vmatmul.msk.bf16.vlgmr.msra.gmra.mxu3 %vm760_vm6, %v7053_v55 }
 0x56f   : > { %6883 = vmatmul.msk.bf16.vlgmr.msra.gmra.mxu2 %vm760_vm6, %v7053_v55  ;;  %v4587_v55 = vpack.i.b16 %v4584_v50, %v4584_v50 }
 0x570   : > { %v9107_v60 = vpop.f32.mrf.mxu2  ;;  %v9109_v33 = vpop.f32.mrf.mxu3 }
 0x571   : > { %v4028_v24 = vpop.permute.xlu0 %4027  ;;  %v4234_v38 = vpop.permute.xlu2 %4233 }
 0x572   : > { %v4030_v37 = vsel %vm1531_vm2, %v4026_v58, %v4028_v24  ;;  %v4024_v8 = vpop.permute.xlu1 %4023  ;;  %v9115_v12 = vpop.f32.mrf.mxu0  ;;  %v7055_v24 = vld [vmem:[%s10348_s8 + $0x54] sm:$0xff] }
 0x573   : > { %v4029_v59 = vsel %vm1531_vm2, %v4024_v8, %v4026_v58  ;;  %4064 = vmatpush.bf16.msrb.mxu1 %v4030_v37  ;;  %v9121_v51 = vpop.f32.mrf.mxu1 }
 0x574   : > { %4046 = vmatpush.bf16.msrb.mxu0 %v4029_v59 }
 0x576   : > { %6896 = vmatmul.msk.bf16.vlgmr.msrb.gmra.mxu1 %vm760_vm6, %v7054_v18 }
 0x577   : > { %6894 = vmatmul.msk.bf16.vlgmr.msrb.gmra.mxu0 %vm760_vm6, %v7054_v18  ;;  %v4589_v18 = vperm.slane %v4587_v55, 0 }
 0x578   : > { %v3533_v19 = vpop.f32.mrf.mxu2  ;;  %v3551_v36 = vpop.f32.mrf.mxu3 }
 0x579   : > { %v3534_v1 = vadd.f32 %v3533_v19, %v3470_v13  ;;  %v3552_v10 = vadd.f32 %v3551_v36, %v3488_v11 }
 0x57a   : > { %v3334_v32 = vpop.permute.xlu1 %3333  ;;  %v3635_v63 = vpop.f32.mrf.mxu0 }
 0x57b   : > { %v3340_v54 = vadd.f32 %v3334_v32, %v9064_v3  ;;  %v3341_v46 = vadd.f32 %v3334_v32, %v9058_v5  ;;  %v9130_v49 = vadd.f32 %v3635_v63, %v3534_v1  ;;  %v3653_v6 = vpop.f32.mrf.mxu1  ;;  %v4327_v5 = vld [vmem:[%s10341_s1] sm:$0x88]  ;;  %v4593_v1 = vperm.slane %v4591_v39, 0 }
 0x57c   : > { %v9132_v9 = vadd.f32 %v3653_v6, %v3552_v10  ;;  %v4329_v44 = vunpack.c.l.b16 %v4327_v5  ;;  %v4330_v40 = vunpack.c.h.b16 %v4327_v5  ;;  %v7056_v5 = vld [vmem:[%s10348_s8 + $0x60] sm:$0xff] }
 0x57d   : > { %3346 = vst [vmem:[%s8221_s0 + $0x40] sm:$0xff] %v3340_v54  ;;  %v4594_v54 = vunpack.c.l.bf16 %v4589_v18 }
 0x57e   : > { %3347 = vst [vmem:[%s8221_s0 + $0x48] sm:$0xff] %v3341_v46  ;;  %6886 = vmatmul.msk.bf16.gmra.mxu3 %vm760_vm6, %v3911_v31  ;;  %v4331_v28 = vpack.c.b16 %v4329_v44, %v4329_v44  ;;  %v4332_v26 = vpack.c.b16 %v4330_v40, %v4330_v40  ;;  %v4595_v46 = vunpack.c.l.bf16 %v4593_v1 }
 0x57f   : > { %6884 = vmatmul.msk.bf16.gmra.mxu2 %vm760_vm6, %v3911_v31 }
 0x580   : > { %v3535_v3 = vpop.f32.mrf.mxu2  ;;  %v3553_v16 = vpop.f32.mrf.mxu3  ;;  %v4380_v13 = vshrl.u32 %v4331_v28, 16  ;;  %v4384_v11 = vshrl.u32 %v4332_v26, 16  ;;  %v4334_v62 = vpack.i.b16 %v4331_v28, %v4331_v28  ;;  %v4338_v4 = vpack.i.b16 %v4332_v26, %v4332_v26  ;;  %v6911_v28 = vld [vmem:[%s10348_s8 + $0x68] sm:$0xf] }
 0x581   : > { %v7306_v14 = vpack.i.bf16 %v4595_v46, %v4594_v54 }
 0x582   : > { %v4128_v29 = vpop.permute.xlu0 %4127  ;;  %v3637_v53 = vpop.f32.mrf.mxu0  ;;  %v4381_v20 = vpack.i.b16 %v4380_v13, %v4380_v13  ;;  %v4385_v30 = vpack.i.b16 %v4384_v11, %v4384_v11  ;;  %v4336_v22 = vperm.slane %v4334_v62, 3  ;;  %v4340_v7 = vperm.slane %v4338_v4, 3 }
 0x583   : > { %v4131_v25 = vsel %vm1421_vm14, %v4126_v61, %v4128_v29  ;;  %v4130_v56 = vpop.permute.xlu1 %4129  ;;  %v3655_v42 = vpop.f32.mrf.mxu1  ;;  %7307 = vrot.lane.b32.xlu1 %v7306_v14, %s10448_s24  ;;  %v4227_v13 = vunpack.c.l.b16 %v6911_v28 }
 0x584   : > { %v4132_v35 = vsel %vm1421_vm14, %v4128_v29, %v4130_v56  ;;  %4148 = vmatpush.bf16.msrb.mxu2 %v4131_v25  ;;  %v4383_v37 = vperm.slane %v4381_v20, 3  ;;  %v4387_v8 = vperm.slane %v4385_v30, 3  ;;  %v4351_v48 = vunpack.c.l.bf16 %v4340_v7 }
 0x585   : > { %4166 = vmatpush.bf16.msrb.mxu3 %v4132_v35 }
 0x586   : > { %6897 = vmatmul.msk.bf16.gmra.mxu1 %vm760_vm6, %v4019_v21  ;;  %v4388_v31 = vunpack.c.l.bf16 %v4383_v37  ;;  %v4389_v63 = vunpack.c.l.bf16 %v4387_v8 }
 0x587   : > { %6895 = vmatmul.msk.bf16.gmra.mxu0 %vm760_vm6, %v4019_v21  ;;  %v6900_v21 = vld [vmem:[%s10348_s8 + $0x5c] sm:$0xf] }
 0x588   : > { %v3740_v34 = vpop.f32.mrf.mxu2  ;;  %v3758_v43 = vpop.f32.mrf.mxu3  ;;  %v7301_v6 = vpack.i.bf16 %v4389_v63, %v4388_v31  ;;  %v4119_v44 = vunpack.c.l.b16 %v6900_v21 }
 0x589   : > { %v3767_v2 = vadd.f32 %v3740_v34, %v9103_v52  ;;  %v3768_v0 = vadd.f32 %v3758_v43, %v9105_v23  ;;  %v4350_v23 = vunpack.c.l.bf16 %v4336_v22 }
 0x58a   : > { %v4236_v58 = vpop.permute.xlu0 %4235  ;;  %v3828_v59 = vpop.f32.mrf.mxu0  ;;  %7302 = vrot.lane.b32.xlu0 %v7301_v6, %s10451_s16  ;;  %v4121_v15 = vpack.c.b16 %v4119_v44, %v4119_v44 }
 0x58b   : > { %v4239_v17 = vsel %vm1317_vm12, %v4234_v38, %v4236_v58  ;;  %v4238_v19 = vpop.permute.xlu1 %4237  ;;  %v3846_v36 = vpop.f32.mrf.mxu1  ;;  %v9154_v52 = vadd.f32 %v3828_v59, %v3767_v2  ;;  %v7296_v61 = vpack.i.bf16 %v4351_v48, %v4350_v23 }
 0x58c   : > { %v4240_v10 = vsel %vm1317_vm12, %v4236_v58, %v4238_v19  ;;  %4256 = vmatpush.bf16.msra.mxu0 %v4239_v17  ;;  %v9157_v32 = vadd.f32 %v3846_v36, %v3768_v0  ;;  %v3549_v58 = vadd.f32 %v9109_v33, %v9094_v27  ;;  %v4297_v6 = vpop.permute.xlu2 %4296 }
 0x58d   : > { %4274 = vmatpush.bf16.msra.mxu1 %v4240_v10  ;;  %7297 = vrot.lane.b32.xlu2 %v7296_v61, %s10454_s4 }
 0x58e   : > { %6907 = vmatmul.msk.bf16.vlgmr.msrb.gmra.mxu3 %vm760_vm6, %v7055_v24  ;;  %v3660_v8 = vadd.f32 %v9121_v51, %v3549_v58 }
 0x58f   : > { %6905 = vmatmul.msk.bf16.vlgmr.msrb.gmra.mxu2 %vm760_vm6, %v7055_v24  ;;  %v3531_v24 = vadd.f32 %v9107_v60, %v9092_v47 }
 0x590   : > { %v3742_v3 = vpop.f32.mrf.mxu2  ;;  %v3760_v16 = vpop.f32.mrf.mxu3 }
 0x591   : > { %v3659_v59 = vadd.f32 %v9115_v12, %v3531_v24  ;;  %v3770_v1 = vadd.f32 %v3760_v16, %v3660_v8 }
 0x592   : > { %v3830_v29 = vpop.f32.mrf.mxu0  ;;  %v4302_v44 = vpop.permute.xlu0 %4301 }
 0x593   : > { %v3848_v53 = vpop.f32.mrf.mxu1  ;;  %v3769_v23 = vadd.f32 %v3742_v3, %v3659_v59 }
 0x594   : > { %v3858_v33 = vadd.f32 %v3848_v53, %v3770_v1 }
 0x595   : > { %v3857_v60 = vadd.f32 %v3830_v29, %v3769_v23 }
 0x596   : > { %6918 = vmatmul.msk.bf16.vlgmr.msra.gmra.mxu1 %vm760_vm6, %v7056_v5 }
 0x597   : > { %6916 = vmatmul.msk.bf16.vlgmr.msra.gmra.mxu0 %vm760_vm6, %v7056_v5 }
 0x598   : > { %v3745_v40 = vpop.f32.mrf.mxu2  ;;  %v3763_v25 = vpop.f32.mrf.mxu3 }
 0x599   : > { %v3771_v56 = vadd.f32 %v3745_v40, %v9130_v49  ;;  %v3772_v42 = vadd.f32 %v3763_v25, %v9132_v9  ;;  %v4229_v49 = vpack.c.b16 %v4227_v13, %v4227_v13 }
 0x59a   : > { %v3833_v35 = vpop.f32.mrf.mxu0 }
 0x59b   : > { %v3851_v26 = vpop.f32.mrf.mxu1  ;;  %v9177_v57 = vadd.f32 %v3833_v35, %v3771_v56 }
 0x59c   : > { %v3860_v41 = vadd.f32 %v3851_v26, %v3772_v42 }
 0x59e   : > { %6908 = vmatmul.msk.bf16.gmra.mxu3 %vm760_vm6, %v4121_v15 }
 0x59f   : > { %6906 = vmatmul.msk.bf16.gmra.mxu2 %vm760_vm6, %v4121_v15 }
 0x5a0   : > { %v3747_v11 = vpop.f32.mrf.mxu2  ;;  %v3765_v50 = vpop.f32.mrf.mxu3 }
 0x5a2   : > { %v3835_v45 = vpop.f32.mrf.mxu0 }
 0x5a3   : > { %v3853_v9 = vpop.f32.mrf.mxu1 }
 0x5a6   : > { %6919 = vmatmul.msk.bf16.gmra.mxu1 %vm760_vm6, %v4229_v49 }
 0x5a7   : > { %6917 = vmatmul.msk.bf16.gmra.mxu0 %vm760_vm6, %v4229_v49 }
 0x5f1   : > { %v3958_v62 = vpop.f32.mrf.mxu3 }
 0x5f2   : > { %v3940_v4 = vpop.f32.mrf.mxu2  ;;  %v3968_v17 = vadd.f32 %v3958_v62, %v9157_v32 }
 0x5f3   : > { %v4066_v34 = vpop.f32.mrf.mxu1  ;;  %v3967_v36 = vadd.f32 %v3940_v4, %v9154_v52 }
 0x5f4   : > { %v4048_v43 = vpop.f32.mrf.mxu0  ;;  %v4076_v10 = vadd.f32 %v4066_v34, %v3968_v17 }
 0x5f5   : > { %v4075_v31 = vadd.f32 %v4048_v43, %v3967_v36  ;;  %v7298_v36 = vpop.permute.xlu2 %7297 }
 0x5f9   : > { %v3960_v20 = vpop.f32.mrf.mxu3 }
 0x5fa   : > { %v3942_v30 = vpop.f32.mrf.mxu2  ;;  %v3970_v46 = vadd.f32 %v3960_v20, %v3858_v33 }
 0x5fb   : > { %v4068_v55 = vpop.f32.mrf.mxu1  ;;  %v3969_v14 = vadd.f32 %v3942_v30, %v3857_v60  ;;  %v4307_v30 = vpop.permute.xlu1 %4306 }
 0x5fc   : > { %v4050_v38 = vpop.f32.mrf.mxu0  ;;  %v4078_v52 = vadd.f32 %v4068_v55, %v3970_v46  ;;  %v7303_v9 = vpop.permute.xlu0 %7302  ;;  %v9230_v46 = vunpack.i.h.bf16 %v7298_v36 }
 0x5fd   : > { %v4077_v16 = vadd.f32 %v4050_v38, %v3969_v14  ;;  %v7305_v55 = vunpack.i.h.bf16 %v7303_v9 }
 0x601   : > { %v3963_v2 = vpop.f32.mrf.mxu3 }
 0x602   : > { %v3945_v0 = vpop.f32.mrf.mxu2  ;;  %v3972_v56 = vadd.f32 %v3963_v2, %v3860_v41 }
 0x603   : > { %v4071_v39 = vpop.f32.mrf.mxu1  ;;  %v3971_v35 = vadd.f32 %v3945_v0, %v9177_v57  ;;  %v7304_v57 = vunpack.i.l.bf16 %v7303_v9 }
 0x604   : > { %v4053_v22 = vpop.f32.mrf.mxu0  ;;  %v4080_v11 = vadd.f32 %v4071_v39, %v3972_v56  ;;  %v7308_v56 = vpop.permute.xlu1 %7307 }
 0x605   : > { %v4079_v50 = vadd.f32 %v4053_v22, %v3971_v35  ;;  %v9208_v8 = vsel %vm1421_vm14, %v7304_v57, %v7305_v55 }
 0x609   : > { %v3965_v37 = vpop.f32.mrf.mxu3 }
 0x60a   : > { %v3947_v18 = vpop.f32.mrf.mxu2 }
 0x60b   : > { %v4073_v7 = vpop.f32.mrf.mxu1 }
 0x60c   : > { %v4055_v19 = vpop.f32.mrf.mxu0 }
 0x611   : > { %v4168_v27 = vpop.f32.mrf.mxu3 }
 0x612   : > { %v4150_v63 = vpop.f32.mrf.mxu2  ;;  %v4178_v47 = vadd.f32 %v4168_v27, %v4076_v10 }
 0x613   : > { %v4177_v54 = vadd.f32 %v4150_v63, %v4075_v31  ;;  %v4276_v51 = vpop.f32.mrf.mxu1 }
 0x614   : > { %v4258_v48 = vpop.f32.mrf.mxu0  ;;  %v4286_v12 = vadd.f32 %v4276_v51, %v4178_v47 }
 0x615   : > { %v4285_v32 = vadd.f32 %v4258_v48, %v4177_v54  ;;  %v9232_v48 = vunpack.i.l.bf16 %v7298_v36 }
 0x616   : > { %v4310_v61 = vadd.f32 %v4297_v6, %v4286_v12 }
 0x617   : > { %v4309_v5 = vadd.f32 %v4297_v6, %v4285_v32  ;;  %v9240_v32 = vsel %vm1317_vm12, %v9232_v48, %v9230_v46 }
 0x619   : > { %v9191_v3 = vpack.c.bf16 %v4310_v61, %v4309_v5  ;;  %v4170_v21 = vpop.f32.mrf.mxu3  ;;  %v4711_v61 = vld [vmem:[%s10341_s1 + $0x8] sm:$0x22] }
 0x61a   : > { %v4152_v53 = vpop.f32.mrf.mxu2  ;;  %v4180_v40 = vadd.f32 %v4170_v21, %v4078_v52 }
 0x61b   : > { %4318 = vst [vmem:[#allocation4 + $0x4] sm:$0xff] %v9191_v3  ;;  %v4179_v29 = vadd.f32 %v4152_v53, %v4077_v16  ;;  %v4278_v25 = vpop.f32.mrf.mxu1 }
 0x61c   : > { %v4260_v42 = vpop.f32.mrf.mxu0  ;;  %v4288_v15 = vadd.f32 %v4278_v25, %v4180_v40  ;;  %v4714_v25 = vunpack.c.h.b16 %v4711_v61 }
 0x61d   : > { %v4287_v28 = vadd.f32 %v4260_v42, %v4179_v29  ;;  %v4713_v29 = vunpack.c.l.b16 %v4711_v61 }
 0x61e   : > { %v4312_v26 = vadd.f32 %v4302_v44, %v4288_v15 }
 0x61f   : > { %v4311_v13 = vadd.f32 %v4302_v44, %v4287_v28 }
 0x621   : > { %v9195_v49 = vpack.c.bf16 %v4312_v26, %v4311_v13  ;;  %v4173_v45 = vpop.f32.mrf.mxu3 }
 0x622   : > { %v4155_v62 = vpop.f32.mrf.mxu2  ;;  %v4182_v4 = vadd.f32 %v4173_v45, %v4080_v11  ;;  %v9198_v2 = vld [vmem:[#allocation4 + $0x8] sm:$0xff]   ;;  %v4321_v0 = vld [vmem:[#allocation4] sm:$0xff]  ;;  %v9264_v11 = vunpack.i.l.bf16 %v7308_v56  ;;  %v4716_v45 = vpack.c.b16 %v4714_v25, %v4714_v25 }
 0x623   : > { %4319 = vst [vmem:[#allocation4 + $0x14] sm:$0xff] %v9195_v49  ;;  %v4181_v34 = vadd.f32 %v4155_v62, %v4079_v50  ;;  %v4281_v43 = vpop.f32.mrf.mxu1  ;;  %v9201_v58 = vunpack.c.l.bf16 %v9198_v2  ;;  %v9203_v24 = vunpack.c.h.bf16 %v4321_v0  ;;  %v9210_v18 = vunpack.c.l.bf16 %v4321_v0 }
 0x624   : > { %v4263_v41 = vpop.f32.mrf.mxu0  ;;  %v4290_v20 = vadd.f32 %v4281_v43, %v4182_v4  ;;  %v4715_v50 = vpack.c.b16 %v4713_v29, %v4713_v29 }
 0x625   : > { %v4289_v38 = vadd.f32 %v4263_v41, %v4181_v34  ;;  %v4402_v27 = vmul.f32 %v7305_v55, %v9201_v58  ;;  %v4401_v33 = vmul.f32 %v9208_v8, %v9203_v24  ;;  %v4400_v54 = vmul.f32 %v7304_v57, %v9210_v18 }
 0x626   : > { %v4314_v39 = vadd.f32 %v4307_v30, %v4290_v20  ;;  %v4364_v44 = vmul.f32 %v9230_v46, %v9201_v58  ;;  %v4363_v53 = vmul.f32 %v9240_v32, %v9203_v24  ;;  %v4362_v42 = vmul.f32 %v9232_v48, %v9210_v18 }
 0x627   : > { %v4313_v22 = vadd.f32 %v4307_v30, %v4289_v38  ;;  %v4606_v34 = vmul.f32 %v9264_v11, %v9210_v18  ;;  %v4718_v43 = vshrl.u32 %v4715_v50, 16  ;;  %v4723_v41 = vshrl.u32 %v4716_v45, 16 }
 0x628   : > { %v9275_v20 = vunpack.i.h.bf16 %v7308_v56  ;;  %v4847_v56 = vld [vmem:[%s10341_s1 + $0x8] sm:$0x44] }
 0x629   : > { %v9205_v37 = vpack.c.bf16 %v4314_v39, %v4313_v22  ;;  %v4175_v59 = vpop.f32.mrf.mxu3  ;;  %v4719_v22 = vpack.i.b16 %v4718_v43, %v4718_v43 }
 0x62a   : > { %v9212_v7 = vld [vmem:[#allocation4 + $0x18] sm:$0xff]   ;;  %v4323_v17 = vld [vmem:[#allocation4 + $0x10] sm:$0xff]  ;;  %v4157_v19 = vpop.f32.mrf.mxu2 }
 0x62b   : > { %4320 = vst [vmem:[#allocation4 + $0x24] sm:$0xff] %v9205_v37  ;;  %v9216_v1 = vunpack.c.l.bf16 %v9212_v7  ;;  %v9218_v23 = vunpack.c.h.bf16 %v4323_v17  ;;  %v9220_v10 = vunpack.c.l.bf16 %v4323_v17  ;;  %v4283_v31 = vpop.f32.mrf.mxu1 }
 0x62c   : > { %v4265_v63 = vpop.f32.mrf.mxu0  ;;  %v4721_v31 = vperm.slane %v4719_v22, 1 }
 0x62d   : > { %v4405_v47 = vmul.f32 %v7305_v55, %v9216_v1  ;;  %v4404_v60 = vmul.f32 %v9208_v8, %v9218_v23  ;;  %v4403_v51 = vmul.f32 %v7304_v57, %v9220_v10  ;;  %v4367_v5 = vmul.f32 %v9230_v46, %v9216_v1 }
 0x62e   : > { %v4366_v52 = vmul.f32 %v9240_v32, %v9218_v23  ;;  %v4365_v16 = vmul.f32 %v9232_v48, %v9220_v10  ;;  %v4609_v9 = vmul.f32 %v9264_v11, %v9220_v10  ;;  %v4611_v19 = vmul.f32 %v9275_v20, %v9216_v1 }
 0x62f   : > { %v4411_v12 = vpack.c.bf16 %v4405_v47, %v4402_v27  ;;  %v4410_v6 = vpack.c.bf16 %v4404_v60, %v4401_v33  ;;  %v4409_v14 = vpack.c.bf16 %v4403_v51, %v4400_v54  ;;  %v4373_v15 = vpack.c.bf16 %v4367_v5, %v4364_v44 }
 0x630   : > { %v4372_v35 = vpack.c.bf16 %v4366_v52, %v4363_v53  ;;  %v4371_v26 = vpack.c.bf16 %v4365_v16, %v4362_v42  ;;  %v4615_v30 = vpack.c.bf16 %v4609_v9, %v4606_v34  ;;  %v4608_v33 = vmul.f32 %v9275_v20, %v9201_v58 }
 0x631   : > { %4437 = vrot.lane.b32.xlu0 %v4411_v12, %s10445_s22  ;;  %4435 = vrot.lane.b32.xlu2 %v4410_v6, %s10445_s22  ;;  %v4727_v54 = vunpack.c.l.bf16 %v4721_v31  ;;  %v4849_v34 = vunpack.c.l.b16 %v4847_v56 }
 0x632   : > { %4433 = vrot.lane.b32.xlu1 %v4409_v14, %s10445_s22  ;;  %v9251_v21 = vld [vmem:[#allocation4 + $0x28] sm:$0xff]   ;;  %v4325_v40 = vld [vmem:[#allocation4 + $0x20] sm:$0xff]  ;;  %v4617_v60 = vpack.c.bf16 %v4611_v19, %v4608_v33 }
 0x633   : > { %v9260_v28 = vunpack.c.l.bf16 %v9251_v21  ;;  %v9262_v13 = vunpack.c.l.bf16 %v4325_v40  ;;  %v9277_v0 = vunpack.c.h.bf16 %v4325_v40 }
 0x635   : > { %v4408_v62 = vmul.f32 %v7305_v55, %v9260_v28  ;;  %v4406_v4 = vmul.f32 %v7304_v57, %v9262_v13  ;;  %v4724_v55 = vpack.i.b16 %v4723_v41, %v4723_v41  ;;  %v9284_v57 = vsel %vm1531_vm2, %v9264_v11, %v9275_v20 }
 0x636   : > { %v4610_v59 = vmul.f32 %v9284_v57, %v9218_v23  ;;  %v4407_v17 = vmul.f32 %v9208_v8, %v9277_v0  ;;  %v4607_v36 = vmul.f32 %v9284_v57, %v9203_v24 }
 0x637   : > { %v4414_v38 = vpack.c.bf16 %v4408_v62, %v4408_v62  ;;  %v4412_v39 = vpack.c.bf16 %v4406_v4, %v4406_v4  ;;  %v4726_v27 = vperm.slane %v4724_v55, 1 }
 0x638   : > { %v4616_v63 = vpack.c.bf16 %v4610_v59, %v4607_v36  ;;  %v4413_v47 = vpack.c.bf16 %v4407_v17, %v4407_v17  ;;  %v4368_v59 = vmul.f32 %v9232_v48, %v9262_v13  ;;  %v4612_v48 = vmul.f32 %v9264_v11, %v9262_v13  ;;  %v7058_v11 = vld [vmem:[%s10350_s10 + $0xc] sm:$0xff] }
 0x639   : > { %4518 = vrot.lane.b32.xlu0 %v4373_v15, %s10449_s20  ;;  %4516 = vrot.lane.b32.xlu2 %v4372_v35, %s10449_s20  ;;  %v4728_v8 = vunpack.c.l.bf16 %v4726_v27 }
 0x63a   : > { %4514 = vrot.lane.b32.xlu1 %v4371_v26, %s10449_s20  ;;  %v4374_v27 = vpack.c.bf16 %v4368_v59, %v4368_v59 }
 0x63b   : > { %v7311_v51 = vpack.i.bf16 %v4728_v8, %v4727_v54  ;;  %v4618_v8 = vpack.c.bf16 %v4612_v48, %v4612_v48  ;;  %v9418_v48 = vunpack.c.h.bf16 %v9195_v49 }
 0x641   : > { %4639 = vrot.lane.b32.xlu2 %v4615_v30, %s10443_s30  ;;  %4443 = vrot.lane.b32.xlu0 %v4414_v38, %s10445_s22  ;;  %v4851_v30 = vpack.c.b16 %v4849_v34, %v4849_v34 }
 0x642   : > { %4439 = vrot.lane.b32.xlu1 %v4412_v39, %s10445_s22  ;;  %v4370_v39 = vmul.f32 %v9230_v46, %v9260_v28 }
 0x643   : > { %v4951_v17 = vshrl.u32 %v4851_v30, 16 }
 0x644   : > { %v4376_v31 = vpack.c.bf16 %v4370_v39, %v4370_v39  ;;  %v9398_v39 = vunpack.c.l.bf16 %v9191_v3 }
 0x645   : > { %v4952_v33 = vpack.i.b16 %v4951_v17, %v4951_v17 }
 0x649   : > { %4641 = vrot.lane.b32.xlu0 %v4616_v63, %s10443_s30  ;;  %4441 = vrot.lane.b32.xlu2 %v4413_v47, %s10445_s22  ;;  %v4613_v47 = vmul.f32 %v9284_v57, %v9277_v0 }
 0x64a   : > { %4643 = vrot.lane.b32.xlu1 %v4617_v60, %s10443_s30  ;;  %v4954_v60 = vperm.slane %v4952_v33, 2  ;;  %v9412_v33 = vunpack.c.h.bf16 %v9212_v7 }
 0x651   : > { %7312 = vrot.lane.b32.xlu2 %v7311_v51, %s10480_s23  ;;  %v4619_v51 = vpack.c.bf16 %v4613_v47, %v4613_v47 }
 0x68b   : > { %v4436_v12 = vpop.permute.xlu2 %4435 }
 0x693   : > { %v4517_v6 = vpop.permute.xlu2 %4516 }
 0x69b   : > { %v9301_v14 = vpop.permute.xlu2 %4639 }
 0x6a3   : > { %v4438_v61 = vpop.permute.xlu0 %4437  ;;  %v4442_v5 = vpop.permute.xlu2 %4441 }
 0x6a4   : > { %v4434_v52 = vpop.permute.xlu1 %4433  ;;  %v4446_v36 = vsel %vm760_vm6, %v4436_v12, %v4438_v61 }
 0x6a5   : > { %v4445_v46 = vsel %vm760_vm6, %v4434_v52, %v4436_v12  ;;  %v4968_v12 = vunpack.c.l.bf16 %v4954_v60 }
 0x6ab   : > { %v4519_v16 = vpop.permute.xlu0 %4518  ;;  %v7313_v44 = vpop.permute.xlu2 %7312 }
 0x6ac   : > { %v4515_v53 = vpop.permute.xlu1 %4514  ;;  %v9303_v40 = vunpack.i.h.bf16 %v7313_v44  ;;  %v9305_v29 = vunpack.i.l.bf16 %v7313_v44  ;;  %v9308_v25 = vsel %vm1352_vm4, %v4517_v6, %v4519_v16 }
 0x6ad   : > { %v9314_v42 = vsel %vm1352_vm4, %v4515_v53, %v4517_v6 }
 0x6ae   : > { %v9319_v15 = vsel %vm1849_vm8, %v9305_v29, %v9303_v40  ;;  %v4741_v35 = vmul.f32 %v9303_v40, %v9201_v58  ;;  %v4744_v26 = vmul.f32 %v9303_v40, %v9216_v1  ;;  %v4739_v50 = vmul.f32 %v9305_v29, %v9210_v18 }
 0x6af   : > { %v4742_v45 = vmul.f32 %v9305_v29, %v9220_v10  ;;  %v4740_v9 = vmul.f32 %v9319_v15, %v9203_v24  ;;  %v4743_v62 = vmul.f32 %v9319_v15, %v9218_v23  ;;  %v4850_v58 = vunpack.c.h.b16 %v4847_v56 }
 0x6b0   : > { %v4750_v4 = vpack.c.bf16 %v4744_v26, %v4741_v35  ;;  %v4369_v24 = vmul.f32 %v9240_v32, %v9277_v0  ;;  %v4854_v35 = vpack.i.b16 %v4851_v30, %v4851_v30 }
 0x6b1   : > { %v4748_v43 = vpack.c.bf16 %v4742_v45, %v4739_v50  ;;  %v4749_v41 = vpack.c.bf16 %v4743_v62, %v4740_v9  ;;  %v9343_v22 = vpack.c.b16 %v4850_v58, %v4850_v58 }
 0x6b2   : > { %4776 = vrot.lane.b32.xlu2 %v4750_v4, %s10489_s28  ;;  %v4375_v19 = vpack.c.bf16 %v4369_v24, %v4369_v24  ;;  %v4856_v62 = vperm.slane %v4854_v35, 2  ;;  %v4614_v35 = vmul.f32 %v9275_v20, %v9260_v28  ;;  %v9451_v20 = vunpack.c.h.bf16 %v9205_v37 }
 0x6b3   : > { %4772 = vrot.lane.b32.xlu0 %v4748_v43, %s10489_s28  ;;  %v4444_v1 = vpop.permute.xlu0 %4443  ;;  %4774 = vrot.lane.b32.xlu1 %v4749_v41, %s10489_s28  ;;  %v4955_v32 = vshrl.u32 %v9343_v22, 16  ;;  %v9381_v41 = vunpack.c.l.bf16 %v9205_v37 }
 0x6b4   : > { %v4448_v18 = vsel %vm760_vm6, %v4442_v5, %v4444_v1  ;;  %v4440_v10 = vpop.permute.xlu1 %4439  ;;  %v4867_v58 = vunpack.c.l.bf16 %v4856_v62 }
 0x6b5   : > { %v4462_v23 = vsel %vm10502_vm3, %v4448_v18, 0  ;;  %v4447_v38 = vsel %vm760_vm6, %v4440_v10, %v4442_v5  ;;  %v4956_v63 = vpack.i.b16 %v4955_v32, %v4955_v32  ;;  %vm10507_vm3 = vmmov %vm10506_vm0 }
 0x6b6   : > { %v4459_v55 = vsel %vm10503_vm5, %v4447_v38, 0  ;;  %4488 = vmatpush.bf16.msra.mxu3 %v4462_v23  ;;  %v4873_v1 = vmul.f32 %v4867_v58, %v9381_v41  ;;  %v9392_v23 = vunpack.c.l.bf16 %v9195_v49  ;;  %vm10508_vm5 = vmmov %vm10506_vm0 }
 0x6b7   : > { %4470 = vmatpush.bf16.msra.mxu2 %v4459_v55  ;;  %v4958_v54 = vperm.slane %v4956_v63, 2  ;;  %v9415_v63 = vunpack.c.h.bf16 %v9191_v3 }
 0x6b8   : > { %v4877_v38 = vpack.c.bf16 %v4873_v1, %v4873_v1  ;;  %v4871_v55 = vmul.f32 %v4867_v58, %v9392_v23 }
 0x6b9   : > { %v4969_v6 = vunpack.c.l.bf16 %v4958_v54 }
 0x6ba   : > { %4489 = vmatpush.bf16.msra.mxu3 %v4446_v36  ;;  %4522 = vrot.lane.b32.xlu2 %v4375_v19, %s10449_s20  ;;  %v4898_v17 = vsel %vm10507_vm3, %v4877_v38, 0  ;;  %v4869_v19 = vmul.f32 %v4867_v58, %v9398_v39  ;;  %vm10511_vm3 = vmmov %vm10506_vm0 }
 0x6bb   : > { %4524 = vrot.lane.b32.xlu0 %v4376_v31, %s10449_s20  ;;  %4471 = vmatpush.bf16.msra.mxu2 %v4445_v46  ;;  %v7316_v61 = vpack.i.bf16 %v4969_v6, %v4968_v12  ;;  %v9361_v5 = vpop.permute.xlu0 %4641 }
 0x6bc   : > { %4520 = vrot.lane.b32.xlu1 %v4374_v27, %s10449_s20  ;;  %v9363_v52 = vpop.permute.xlu1 %4643  ;;  %v9409_v27 = vunpack.c.h.bf16 %v9198_v2 }
 0x6bd   : > { %6929 = vmatmul.msk.bf16.vlgmr.msra.gmra.mxu3 %vm4451_vm11, %v7058_v11 }
 0x6be   : > { %6927 = vmatmul.msk.bf16.vlgmr.msra.gmra.mxu2 %vm4451_vm11, %v7058_v11  ;;  %v9436_v11 = vunpack.c.h.bf16 %v9251_v21 }
 0x6c2   : > { %4645 = vrot.lane.b32.xlu2 %v4618_v8, %s10443_s30 }
 0x6c3   : > { %4647 = vrot.lane.b32.xlu0 %v4619_v51, %s10443_s30 }
 0x6cb   : > { %7317 = vrot.lane.b32.xlu0 %v7316_v61, %s10489_s28 }
 0x70c   : > { %v4777_v57 = vpop.permute.xlu2 %4776 }
 0x714   : > { %v4523_v26 = vpop.permute.xlu2 %4522 }
 0x71c   : > { %v4646_v18 = vpop.permute.xlu2 %4645 }
 0x725   : > { %v4773_v16 = vpop.permute.xlu0 %4772  ;;  %v4775_v44 = vpop.permute.xlu1 %4774 }
 0x726   : > { %v9371_v53 = vsel %vm1884_vm7, %v4773_v16, %v4775_v44  ;;  %v9374_v56 = vsel %vm1884_vm7, %v4775_v44, %v4777_v57 }
 0x72d   : > { %v4525_v50 = vpop.permute.xlu0 %4524 }
 0x72e   : > { %v4529_v45 = vsel %vm1352_vm4, %v4523_v26, %v4525_v50  ;;  %v4521_v9 = vpop.permute.xlu1 %4520 }
 0x72f   : > { %v4542_v4 = vsel %vm10504_vm13, %v4529_v45, 0  ;;  %v4528_v34 = vsel %vm1352_vm4, %v4521_v9, %v4523_v26  ;;  %v4620_v9 = vpack.c.bf16 %v4614_v35, %v4614_v35  ;;  %vm10509_vm13 = vmmov %vm10506_vm0 }
 0x730   : > { %v4539_v43 = vsel %vm10505_vm15, %v4528_v34, 0  ;;  %4568 = vmatpush.bf16.msrb.mxu1 %v4542_v4  ;;  %v4858_v34 = vpack.i.b16 %v9343_v22, %v9343_v22  ;;  %v4652_v22 = vsel %vm1566_vm9, %v9361_v5, %v9363_v52  ;;  %vm10510_vm15 = vmmov %vm10506_vm0 }
 0x731   : > { %4550 = vmatpush.bf16.msrb.mxu0 %v4539_v43 }
 0x732   : > { %v4860_v58 = vperm.slane %v4858_v34, 2 }
 0x734   : > { %4569 = vmatpush.bf16.msrb.mxu1 %v9308_v25  ;;  %v5085_v25 = vld [vmem:[%s10341_s1 + $0x10] sm:$0x11]  ;;  %v4868_v1 = vunpack.c.l.bf16 %v4860_v58 }
 0x735   : > { %v9385_v10 = vpop.permute.xlu0 %4647  ;;  %4551 = vmatpush.bf16.msrb.mxu0 %v9314_v42  ;;  %v4651_v42 = vsel %vm1566_vm9, %v9301_v14, %v9361_v5  ;;  %v5087_v59 = vunpack.c.l.b16 %v5085_v25  ;;  %v5088_v36 = vunpack.c.h.b16 %v5085_v25  ;;  %v4875_v14 = vpack.c.bf16 %v4871_v55, %v4869_v19 }
 0x736   : > { %v4653_v24 = vsel %vm1566_vm9, %v4646_v18, %v9385_v10  ;;  %v4874_v18 = vmul.f32 %v4868_v1, %v9451_v20  ;;  %v4872_v37 = vmul.f32 %v9418_v48, %v4868_v1 }
 0x737   : > { %v4664_v30 = vsel %vm10506_vm0, %v4653_v24, 0  ;;  %v5089_v47 = vpack.c.b16 %v5087_v59, %v5087_v59  ;;  %v5090_v51 = vpack.c.b16 %v5088_v36, %v5088_v36 }
 0x738   : > { %4675 = vmatpush.bf16.msrb.mxu2 %v4664_v30  ;;  %v4878_v55 = vpack.c.bf16 %v4874_v18, %v4874_v18 }
 0x739   : > { %v5092_v57 = vpack.i.b16 %v5089_v47, %v5089_v47  ;;  %v5096_v16 = vpack.i.b16 %v5090_v51, %v5090_v51  ;;  %v5216_v25 = vshrl.u32 %v5089_v47, 16 }
 0x73b   : > { %v5094_v26 = vperm.slane %v5092_v57, 0  ;;  %v5098_v50 = vperm.slane %v5096_v16, 0  ;;  %v5217_v59 = vpack.i.b16 %v5216_v25, %v5216_v25  ;;  %v4745_v16 = vmul.f32 %v9305_v29, %v9262_v13 }
 0x73c   : > { %4676 = vmatpush.bf16.msrb.mxu2 %v4651_v42  ;;  %v5220_v42 = vshrl.u32 %v5090_v51, 16 }
 0x73d   : > { %v7318_v32 = vpop.permute.xlu0 %7317  ;;  %v5099_v21 = vunpack.c.l.bf16 %v5094_v26  ;;  %v5100_v62 = vunpack.c.l.bf16 %v5098_v50  ;;  %v5219_v47 = vperm.slane %v5217_v59, 0  ;;  %v4751_v26 = vpack.c.bf16 %v4745_v16, %v4745_v16 }
 0x73e   : > { %v7320_v31 = vunpack.i.h.bf16 %v7318_v32  ;;  %v9406_v46 = vunpack.i.l.bf16 %v7318_v32  ;;  %v4901_v32 = vsel %vm10509_vm13, %v4878_v55, 0  ;;  %vm10513_vm13 = vmmov %vm10506_vm0 }
 0x73f   : > { %v7321_v4 = vpack.i.bf16 %v5100_v62, %v5099_v21 }
 0x740   : > { %4909 = vmatpush.bf16.msra.mxu2 %v4898_v17  ;;  %v9422_v60 = vsel %vm1884_vm7, %v9406_v46, %v7320_v31  ;;  %v4982_v54 = vmul.f32 %v7320_v31, %v9409_v27  ;;  %v4985_v2 = vmul.f32 %v7320_v31, %v9412_v33  ;;  %v4980_v7 = vmul.f32 %v9406_v46, %v9398_v39 }
 0x741   : > { %v4983_v3 = vmul.f32 %v9406_v46, %v9392_v23  ;;  %v4981_v49 = vmul.f32 %v9422_v60, %v9415_v63  ;;  %v4984_v8 = vmul.f32 %v9422_v60, %v9418_v48  ;;  %v4988_v44 = vmul.f32 %v7320_v31, %v9436_v11 }
 0x742   : > { %v4991_v12 = vpack.c.bf16 %v4985_v2, %v4982_v54  ;;  %v5221_v17 = vpack.i.b16 %v5220_v42, %v5220_v42 }
 0x743   : > { %v4989_v6 = vpack.c.bf16 %v4983_v3, %v4980_v7  ;;  %v4990_v61 = vpack.c.bf16 %v4984_v8, %v4981_v49  ;;  %v4994_v45 = vpack.c.bf16 %v4988_v44, %v4988_v44 }
 0x744   : > { %4910 = vmatpush.bf16.msra.mxu2 %v4875_v14  ;;  %5017 = vrot.lane.b32.xlu0 %v4991_v12, %s10480_s23  ;;  %v5223_v54 = vperm.slane %v5221_v17, 0 }
 0x745   : > { %5013 = vrot.lane.b32.xlu1 %v4989_v6, %s10480_s23  ;;  %5015 = vrot.lane.b32.xlu2 %v4990_v61, %s10480_s23  ;;  %v5224_v61 = vunpack.c.l.bf16 %v5219_v47 }
 0x746   : > { %v5225_v57 = vunpack.c.l.bf16 %v5223_v54 }
 0x748   : > { %v7326_v35 = vpack.i.bf16 %v5225_v57, %v5224_v61  ;;  %v6922_v61 = vld [vmem:[%s10350_s10 + $0x14] sm:$0xf] }
 0x749   : > { %v4424_v57 = vunpack.c.l.b16 %v6922_v61 }
 0x74b   : > { %v4426_v16 = vpack.c.b16 %v4424_v57, %v4424_v57 }
 0x74c   : > { %5023 = vrot.lane.b32.xlu0 %v4994_v45, %s10480_s23 }
 0x74d   : > { %4649 = vrot.lane.b32.xlu1 %v4620_v9, %s10443_s30  ;;  %v5341_v9 = vld [vmem:[%s10341_s1 + $0x10] sm:$0x22]  ;;  %6930 = vmatmul.msk.bf16.gmra.mxu3 %vm4451_vm11, %v4426_v16 }
 0x74e   : > { %v5343_v21 = vunpack.c.l.b16 %v5341_v9  ;;  %v5344_v13 = vunpack.c.h.b16 %v5341_v9  ;;  %6928 = vmatmul.msk.bf16.gmra.mxu2 %vm4451_vm11, %v4426_v16 }
 0x750   : > { %v5345_v29 = vpack.c.b16 %v5343_v21, %v5343_v21 }
 0x752   : > { %v5348_v34 = vpack.i.b16 %v5345_v29, %v5345_v29 }
 0x755   : > { %7322 = vrot.lane.b32.xlu1 %v7321_v4, %s10443_s30  ;;  %v5346_v4 = vpack.c.b16 %v5344_v13, %v5344_v13 }
 0x757   : > { %v5352_v18 = vpack.i.b16 %v5346_v4, %v5346_v4 }
 0x79f   : > { %v9488_v45 = vpop.permute.xlu2 %5015 }
 0x7b6   : > { %v9493_v58 = vpop.permute.xlu0 %5017 }
 0x7b7   : > { %v9448_v43 = vpop.permute.xlu1 %5013 }
 0x7be   : > { %v9514_v54 = vpop.permute.xlu0 %5023 }
 0x7bf   : > { %v4650_v24 = vpop.permute.xlu1 %4649 }
 0x7c0   : > { %v4654_v30 = vsel %vm1566_vm9, %v9385_v10, %v4650_v24  ;;  %v4870_v10 = vmul.f32 %v9415_v63, %v4868_v1 }
 0x7c1   : > { %v4667_v38 = vsel %vm10508_vm5, %v4654_v30, 0  ;;  %vm10512_vm5 = vmmov %vm10506_vm0 }
 0x7c2   : > { %4693 = vmatpush.bf16.msrb.mxu3 %v4667_v38  ;;  %v4876_v14 = vpack.c.bf16 %v4872_v37, %v4870_v10  ;;  %v5350_v38 = vperm.slane %v5348_v34, 1 }
 0x7c6   : > { %4694 = vmatpush.bf16.msrb.mxu3 %v4652_v22 }
 0x7c7   : > { %v7323_v19 = vpop.permute.xlu1 %7322 }
 0x7c8   : > { %v7325_v36 = vunpack.i.h.bf16 %v7323_v19  ;;  %v9463_v31 = vunpack.i.l.bf16 %v7323_v19 }
 0x7ca   : > { %4927 = vmatpush.bf16.msra.mxu3 %v4901_v32  ;;  %v9467_v5 = vsel %vm1566_vm9, %v9463_v31, %v7325_v36  ;;  %v5111_v52 = vmul.f32 %v9463_v31, %v9398_v39  ;;  %v5114_v2 = vmul.f32 %v9463_v31, %v9392_v23  ;;  %v5113_v7 = vmul.f32 %v7325_v36, %v9409_v27 }
 0x7cb   : > { %v5116_v3 = vmul.f32 %v7325_v36, %v9412_v33  ;;  %v5112_v49 = vmul.f32 %v9467_v5, %v9415_v63  ;;  %v5115_v8 = vmul.f32 %v9467_v5, %v9418_v48  ;;  %v5119_v44 = vmul.f32 %v7325_v36, %v9436_v11 }
 0x7cc   : > { %v5120_v51 = vpack.c.bf16 %v5114_v2, %v5111_v52  ;;  %v5354_v32 = vperm.slane %v5352_v18, 1  ;;  %v4746_v2 = vmul.f32 %v9319_v15, %v9277_v0 }
 0x7cd   : > { %v5122_v12 = vpack.c.bf16 %v5116_v3, %v5113_v7  ;;  %v5121_v6 = vpack.c.bf16 %v5115_v8, %v5112_v49  ;;  %v5125_v50 = vpack.c.bf16 %v5119_v44, %v5119_v44 }
 0x7ce   : > { %4928 = vmatpush.bf16.msra.mxu3 %v4876_v14  ;;  %5144 = vrot.lane.b32.xlu2 %v5120_v51, %s10448_s24  ;;  %v5355_v14 = vunpack.c.l.bf16 %v5350_v38  ;;  %v5356_v47 = vunpack.c.l.bf16 %v5354_v32  ;;  %v4752_v49 = vpack.c.bf16 %v4746_v2, %v4746_v2  ;;  %v4747_v51 = vmul.f32 %v9303_v40, %v9260_v28  ;;  %v7059_v40 = vld [vmem:[%s10350_s10 + $0x18] sm:$0xff] }
 0x7cf   : > { %5148 = vrot.lane.b32.xlu1 %v5122_v12, %s10448_s24  ;;  %5146 = vrot.lane.b32.xlu0 %v5121_v6, %s10448_s24  ;;  %v5118_v12 = vmul.f32 %v9467_v5, %v9451_v20 }
 0x7d0   : > { %v7331_v7 = vpack.i.bf16 %v5356_v47, %v5355_v14  ;;  %v4753_v15 = vpack.c.bf16 %v4747_v51, %v4747_v51  ;;  %6948 = vmatmul.msk.bf16.vlgmr.msrb.gmra.mxu3 %vm4451_vm11, %v7059_v40  ;;  %6946 = vmatmul.msk.bf16.vlgmr.msrb.gmra.mxu2 %vm4451_vm11, %v7059_v40 }
 0x7d1   : > { %v5124_v6 = vpack.c.bf16 %v5118_v12, %v5118_v12 }
 0x7d6   : > { %7327 = vrot.lane.b32.xlu2 %v7326_v35, %s10445_s22 }
 0x7d7   : > { %4778 = vrot.lane.b32.xlu0 %v4751_v26, %s10489_s28  ;;  %5154 = vrot.lane.b32.xlu1 %v5125_v50, %s10448_s24 }
 0x828   : > { %v5145_v62 = vpop.permute.xlu2 %5144 }
 0x830   : > { %v7328_v1 = vpop.permute.xlu2 %7327 }
 0x831   : > { %v7330_v24 = vunpack.i.h.bf16 %v7328_v1  ;;  %v9495_v30 = vunpack.i.l.bf16 %v7328_v1 }
 0x833   : > { %v9499_v25 = vsel %vm760_vm6, %v9495_v30, %v7330_v24  ;;  %v5238_v42 = vmul.f32 %v7330_v24, %v9409_v27  ;;  %v5241_v55 = vmul.f32 %v7330_v24, %v9412_v33  ;;  %v5236_v22 = vmul.f32 %v9495_v30, %v9398_v39 }
 0x834   : > { %v5239_v37 = vmul.f32 %v9495_v30, %v9392_v23  ;;  %v5237_v59 = vmul.f32 %v9499_v25, %v9415_v63  ;;  %v5240_v17 = vmul.f32 %v9499_v25, %v9418_v48  ;;  %v5244_v52 = vmul.f32 %v7330_v24, %v9436_v11 }
 0x835   : > { %v5247_v19 = vpack.c.bf16 %v5241_v55, %v5238_v42 }
 0x836   : > { %v5245_v10 = vpack.c.bf16 %v5239_v37, %v5236_v22  ;;  %v5246_v36 = vpack.c.bf16 %v5240_v17, %v5237_v59  ;;  %v5250_v3 = vpack.c.bf16 %v5244_v52, %v5244_v52  ;;  %v4986_v52 = vmul.f32 %v9406_v46, %v9381_v41 }
 0x837   : > { %5273 = vrot.lane.b32.xlu2 %v5247_v19, %s10451_s16  ;;  %v5117_v46 = vmul.f32 %v9463_v31, %v9381_v41 }
 0x838   : > { %5269 = vrot.lane.b32.xlu0 %v5245_v10, %s10451_s16  ;;  %5271 = vrot.lane.b32.xlu1 %v5246_v36, %s10451_s16  ;;  %v5508_v36 = vld [vmem:[%s10341_s1] sm:$0x88] }
 0x839   : > { %v5123_v16 = vpack.c.bf16 %v5117_v46, %v5117_v46 }
 0x83f   : > { %5279 = vrot.lane.b32.xlu2 %v5250_v3, %s10451_s16 }
 0x840   : > { %7332 = vrot.lane.b32.xlu0 %v7331_v7, %s10449_s20  ;;  %4780 = vrot.lane.b32.xlu1 %v4752_v49, %s10489_s28  ;;  %v4992_v49 = vpack.c.bf16 %v4986_v52, %v4986_v52 }
 0x841   : > { %v9522_v8 = vpop.permute.xlu0 %5146  ;;  %v5149_v28 = vpop.permute.xlu1 %5148 }
 0x842   : > { %v9530_v0 = vsel %vm1531_vm2, %v5145_v62, %v9522_v8  ;;  %v5157_v3 = vsel %vm1531_vm2, %v9522_v8, %v5149_v28 }
 0x847   : > { %4782 = vrot.lane.b32.xlu2 %v4753_v15, %s10489_s28 }
 0x848   : > { %5152 = vrot.lane.b32.xlu0 %v5124_v6, %s10448_s24  ;;  %v5472_v6 = vld [vmem:[%s10351_s11] sm:$0xff] }
 0x849   : > { %v4779_v44 = vpop.permute.xlu0 %4778  ;;  %v5155_v35 = vpop.permute.xlu1 %5154 }
 0x891   : > { %v5274_v5 = vpop.permute.xlu2 %5273 }
 0x899   : > { %v9544_v26 = vpop.permute.xlu2 %5279 }
 0x8a1   : > { %v4783_v13 = vpop.permute.xlu2 %4782 }
 0x8aa   : > { %v5270_v50 = vpop.permute.xlu0 %5269  ;;  %v5272_v9 = vpop.permute.xlu1 %5271 }
 0x8ab   : > { %v9547_v21 = vsel %vm1421_vm14, %v5270_v50, %v5272_v9  ;;  %v9550_v62 = vsel %vm1421_vm14, %v5272_v9, %v5274_v5  ;;  %v5473_v9 = vld [vmem:[%s10351_s11 + $0x8] sm:$0xff] }
 0x8b2   : > { %v7333_v29 = vpop.permute.xlu0 %7332  ;;  %v4781_v4 = vpop.permute.xlu1 %4780 }
 0x8b3   : > { %v7335_v34 = vunpack.i.h.bf16 %v7333_v29  ;;  %v9552_v1 = vunpack.i.l.bf16 %v7333_v29  ;;  %v4786_v18 = vsel %vm1884_vm7, %v4779_v44, %v4781_v4  ;;  %v4787_v24 = vsel %vm1884_vm7, %v4781_v4, %v4783_v13 }
 0x8b4   : > { %v4797_v38 = vsel %vm10510_vm15, %v4786_v18, 0  ;;  %v4800_v42 = vsel %vm10506_vm0, %v4787_v24, 0  ;;  %vm10514_vm15 = vmmov %vm10506_vm0 }
 0x8b5   : > { %v9560_v55 = vsel %vm1352_vm4, %v9552_v1, %v7335_v34  ;;  %4808 = vmatpush.bf16.msra.mxu0 %v4797_v38  ;;  %4826 = vmatpush.bf16.msra.mxu1 %v4800_v42  ;;  %v5369_v22 = vmul.f32 %v7335_v34, %v9409_v27  ;;  %v5372_v37 = vmul.f32 %v7335_v34, %v9412_v33  ;;  %v5511_v33 = vunpack.c.h.b16 %v5508_v36 }
 0x8b6   : > { %v5367_v59 = vmul.f32 %v9552_v1, %v9398_v39  ;;  %v5370_v17 = vmul.f32 %v9552_v1, %v9392_v23  ;;  %v5368_v32 = vmul.f32 %v9560_v55, %v9415_v63  ;;  %v5371_v19 = vmul.f32 %v9560_v55, %v9418_v48 }
 0x8b7   : > { %v5378_v10 = vpack.c.bf16 %v5372_v37, %v5369_v22  ;;  %v5510_v39 = vunpack.c.l.b16 %v5508_v36  ;;  %v5375_v48 = vmul.f32 %v7335_v34, %v9436_v11  ;;  %v7057_v34 = vld [vmem:[%s10350_s10] sm:$0xff]  ;;  %v5026_v22 = vsel %vm1849_vm8, %v9488_v45, %v9493_v58  ;;  %v5503_v36 = vld [vmem:[#allocation5 + $0x8] sm:$0xf] }
 0x8b8   : > { %v5376_v27 = vpack.c.bf16 %v5370_v17, %v5367_v59  ;;  %v5377_v14 = vpack.c.bf16 %v5371_v19, %v5368_v32  ;;  %6937 = vmatmul.msk.bf16.vlgmr.msrb.gmra.mxu1 %vm4451_vm11, %v7057_v34  ;;  %6935 = vmatmul.msk.bf16.vlgmr.msrb.gmra.mxu0 %vm4451_vm11, %v7057_v34 }
 0x8b9   : > { %5404 = vrot.lane.b32.xlu0 %v5378_v10, %s10454_s4  ;;  %4809 = vmatpush.bf16.msra.mxu0 %v9371_v53  ;;  %v4987_v53 = vmul.f32 %v9422_v60, %v9451_v20  ;;  %v5512_v2 = vpack.c.b16 %v5510_v39, %v5510_v39  ;;  %v5381_v7 = vpack.c.bf16 %v5375_v48, %v5375_v48  ;;  %v5474_v60 = vld [vmem:[%s10351_s11 + $0x10] sm:$0xff] }
 0x8ba   : > { %5400 = vrot.lane.b32.xlu1 %v5376_v27, %s10454_s4  ;;  %4827 = vmatpush.bf16.msra.mxu1 %v9374_v56  ;;  %v5153_v23 = vpop.permute.xlu0 %5152  ;;  %v5513_v56 = vpack.c.b16 %v5511_v33, %v5511_v33  ;;  %v5502_v10 = vld [vmem:[#allocation5] sm:$0xff]  ;;  %v5505_v27 = vld [vmem:[#allocation5 + $0x18] sm:$0xf] }
 0x8bb   : > { %v5159_v63 = vsel %vm1531_vm2, %v5153_v23, %v5155_v35  ;;  %5402 = vrot.lane.b32.xlu2 %v5377_v14, %s10454_s4  ;;  %v4993_v11 = vpack.c.bf16 %v4987_v53, %v4987_v53  ;;  %v5515_v51 = vpack.i.b16 %v5512_v2, %v5512_v2  ;;  %v5576_v61 = vshrl.u32 %v5512_v2, 16  ;;  %v5504_v14 = vld [vmem:[#allocation5 + $0x10] sm:$0xff] }
 0x8bc   : > { %v5172_v47 = vsel %vm10511_vm3, %v5159_v63, 0  ;;  %v5519_v12 = vpack.i.b16 %v5513_v56, %v5513_v56  ;;  %v5580_v57 = vshrl.u32 %v5513_v56, 16  ;;  %v9632_v33 = vunpack.c.l.bf16 %v5502_v10  ;;  %vm10517_vm3 = vmmov %vm10506_vm0 }
 0x8bd   : > { %5198 = vmatpush.bf16.msrb.mxu3 %v5172_v47  ;;  %v5517_v15 = vperm.slane %v5515_v51, 3  ;;  %v5577_v31 = vpack.i.b16 %v5576_v61, %v5576_v61  ;;  %v9637_v47 = vunpack.c.l.bf16 %v5505_v27  ;;  %v9639_v2 = vunpack.c.h.bf16 %v5502_v10  ;;  %v4379_v61 = vld [vmem:[%s10350_s10 + $0x8] sm:$0xf] }
 0x8be   : > { %v5521_v8 = vperm.slane %v5519_v12, 3  ;;  %v5581_v5 = vpack.i.b16 %v5580_v57, %v5580_v57  ;;  %v9641_v56 = vunpack.c.l.bf16 %v5504_v14  ;;  %v5025_v57 = vsel %vm1849_vm8, %v9448_v43, %v9488_v45 }
 0x8bf   : > { %v5531_v28 = vunpack.c.l.bf16 %v5517_v15  ;;  %v5579_v35 = vperm.slane %v5577_v31, 3 }
 0x8c0   : > { %v5532_v40 = vunpack.c.l.bf16 %v5521_v8  ;;  %v5583_v50 = vperm.slane %v5581_v5, 3  ;;  %v4505_v5 = vunpack.c.l.b16 %v4379_v61  ;;  %v7062_v61 = vld [vmem:[%s10350_s10 + $0x3c] sm:$0xff] }
 0x8c1   : > { %5199 = vmatpush.bf16.msrb.mxu3 %v5157_v3  ;;  %5410 = vrot.lane.b32.xlu0 %v5381_v7, %s10454_s4  ;;  %v5584_v13 = vunpack.c.l.bf16 %v5579_v35  ;;  %v9643_v7 = vunpack.c.h.bf16 %v5504_v14 }
 0x8c2   : > { %5019 = vrot.lane.b32.xlu1 %v4992_v49, %s10480_s23  ;;  %v7336_v44 = vpack.i.bf16 %v5532_v40, %v5531_v28  ;;  %v5585_v29 = vunpack.c.l.bf16 %v5583_v50  ;;  %v9664_v28 = vld [vmem:[%s10341_s1 + $0x8] sm:$0x22]  ;;  %v5506_v50 = vld [vmem:[#allocation5 + $0x20] sm:$0xff] }
 0x8c3   : > { %5021 = vrot.lane.b32.xlu2 %v4993_v11, %s10480_s23  ;;  %v9671_v34 = vunpack.c.l.bf16 %v5506_v50 }
 0x8c4   : > { %v7341_v4 = vpack.i.bf16 %v5585_v29, %v5584_v13 }
 0x8c9   : > { %5487 = vperm.xlu0 %7133, %v5474_v60  }
 0x8ca   : > { %5477 = vperm.xlu1 %7244, %v5472_v6   ;;  %v6941_v6 = vld [vmem:[%s10350_s10 + $0x20] sm:$0xf] }
 0x8cb   : > { %5150 = vrot.lane.b32.xlu2 %v5123_v16, %s10448_s24  ;;  %v4630_v40 = vunpack.c.l.b16 %v6941_v6  ;;  %v7063_v6 = vld [vmem:[%s10350_s10 + $0x48] sm:$0xff] }
 0x8cd   : > { %v4632_v35 = vpack.c.b16 %v4630_v40, %v4630_v40 }
 0x8cf   : > { %6949 = vmatmul.msk.bf16.gmra.mxu3 %vm4451_vm11, %v4632_v35  ;;  %6947 = vmatmul.msk.bf16.gmra.mxu2 %vm4451_vm11, %v4632_v35 }
 0x8d2   : > { %7337 = vrot.lane.b32.xlu1 %v7336_v44, %s10454_s4  ;;  %v5774_v44 = vunpack.c.l.b16 %v9664_v28 }
 0x8d3   : > { %5482 = vperm.xlu2 %7290, %v5473_v9  }
 0x8db   : > { %7342 = vrot.lane.b32.xlu2 %v7341_v4, %s10451_s16  ;;  %v4507_v4 = vpack.c.b16 %v4505_v5, %v4505_v5 }
 0x8dd   : > { %6938 = vmatmul.msk.bf16.gmra.mxu1 %vm4451_vm11, %v4507_v4  ;;  %6936 = vmatmul.msk.bf16.gmra.mxu0 %vm4451_vm11, %v4507_v4 }
 0x915   : > { %v9611_v18 = vpop.permute.xlu2 %5402 }
 0x91d   : > { %v5022_v24 = vpop.permute.xlu2 %5021 }
 0x91e   : > { %v5028_v38 = vsel %vm1849_vm8, %v5022_v24, %v9514_v54 }
 0x91f   : > { %v5041_v42 = vsel %vm10512_vm5, %v5028_v38, 0  ;;  %v5374_v38 = vmul.f32 %v9560_v55, %v9451_v20  ;;  %vm10518_vm5 = vmmov %vm10506_vm0 }
 0x920   : > { %5067 = vmatpush.bf16.msrb.mxu1 %v5041_v42  ;;  %v5243_v42 = vmul.f32 %v9499_v25, %v9451_v20 }
 0x921   : > { %v5380_v27 = vpack.c.bf16 %v5374_v38, %v5374_v38  ;;  %v4491_v38 = vpop.f32.mrf.mxu3 }
 0x924   : > { %5068 = vmatpush.bf16.msrb.mxu1 %v5026_v22  ;;  %v5776_v22 = vpack.c.b16 %v5774_v44, %v5774_v44 }
 0x925   : > { %v5151_v37 = vpop.permute.xlu2 %5150 }
 0x926   : > { %v5158_v59 = vsel %vm1531_vm2, %v5151_v37, %v5153_v23  ;;  %v5671_v23 = vld [vmem:[%s10341_s1 + $0x8] sm:$0x11]  ;;  %v5779_v14 = vshrl.u32 %v5776_v22, 16 }
 0x927   : > { %v5169_v17 = vsel %vm10513_vm13, %v5158_v59, 0  ;;  %v5673_v3 = vunpack.c.l.b16 %v5671_v23  ;;  %v5674_v12 = vunpack.c.h.b16 %v5671_v23 }
 0x928   : > { %5180 = vmatpush.bf16.msrb.mxu2 %v5169_v17  ;;  %v5242_v17 = vmul.f32 %v9495_v30, %v9381_v41  ;;  %v5373_v30 = vmul.f32 %v9552_v1, %v9381_v41  ;;  %v6963_v1 = vld [vmem:[%s10350_s10 + $0x38] sm:$0xf] }
 0x929   : > { %v5675_v16 = vpack.c.b16 %v5673_v3, %v5673_v3  ;;  %v5676_v31 = vpack.c.b16 %v5674_v12, %v5674_v12  ;;  %v7060_v3 = vld [vmem:[%s10350_s10 + $0x24] sm:$0xff]  ;;  %v6952_v12 = vld [vmem:[%s10350_s10 + $0x2c] sm:$0xf] }
 0x92a   : > { %v5248_v55 = vpack.c.bf16 %v5242_v17, %v5242_v17  ;;  %6959 = vmatmul.msk.bf16.vlgmr.msra.gmra.mxu1 %vm4451_vm11, %v7060_v3  ;;  %6957 = vmatmul.msk.bf16.vlgmr.msra.gmra.mxu0 %vm4451_vm11, %v7060_v3  ;;  %v7007_v3 = vld [vmem:[%s10350_s10 + $0x68] sm:$0xf] }
 0x92b   : > { %v5678_v43 = vpack.i.b16 %v5675_v16, %v5675_v16  ;;  %v5682_v45 = vpack.i.b16 %v5676_v31, %v5676_v31  ;;  %v6974_v31 = vld [vmem:[%s10350_s10 + $0x44] sm:$0xf]  ;;  %v5405_v44 = vpop.permute.xlu0 %5404 }
 0x92c   : > { %v5401_v32 = vpop.permute.xlu1 %5400  ;;  %5181 = vmatpush.bf16.msrb.mxu2 %v9530_v0  ;;  %v9634_v0 = vunpack.c.l.bf16 %v5503_v36  ;;  %v5507_v36 = vld [vmem:[#allocation5 + $0x28] sm:$0xf]  ;;  %v5004_v5 = vunpack.c.l.b16 %v6974_v31 }
 0x92d   : > { %v9622_v19 = vpop.permute.xlu2 %5482  ;;  %v9626_v54 = vsel %vm1317_vm12, %v5401_v32, %v9611_v18  ;;  %v5680_v32 = vperm.slane %v5678_v43, 0  ;;  %v5684_v10 = vperm.slane %v5682_v45, 0  ;;  %v9686_v23 = vunpack.c.l.bf16 %v5507_v36 }
 0x92e   : > { %v5006_v35 = vpack.c.b16 %v5004_v5, %v5004_v5  ;;  %v5775_v45 = vunpack.c.h.b16 %v9664_v28 }
 0x92f   : > { %v5685_v20 = vunpack.c.l.bf16 %v5680_v32  ;;  %v5686_v25 = vunpack.c.l.bf16 %v5684_v10 }
 0x930   : > { %v5777_v22 = vpack.c.b16 %v5775_v45, %v5775_v45 }
 0x932   : > { %v5784_v28 = vshrl.u32 %v5777_v22, 16 }
 0x934   : > { %v5020_v58 = vpop.permute.xlu1 %5019 }
 0x935   : > { %v5027_v39 = vsel %vm1849_vm8, %v5020_v58, %v5022_v24  ;;  %v7343_v63 = vpop.permute.xlu2 %7342  ;;  %v9673_v24 = vunpack.c.h.bf16 %v5506_v50  ;;  %v5249_v58 = vpack.c.bf16 %v5243_v42, %v5243_v42  ;;  %v5413_v42 = vsel %vm1317_vm12, %v9611_v18, %v5405_v44  ;;  %v4571_v22 = vpop.f32.mrf.mxu1 }
 0x936   : > { %v5038_v48 = vsel %vm10514_vm15, %v5027_v39, 0  ;;  %v7345_v52 = vunpack.i.h.bf16 %v7343_v63  ;;  %v7344_v53 = vunpack.i.l.bf16 %v7343_v63  ;;  %v5780_v63 = vpack.i.b16 %v5779_v14, %v5779_v14 }
 0x937   : > { %5049 = vmatpush.bf16.msrb.mxu0 %v5038_v48  ;;  %10515 = vst [vmem:[#allocation15_spill] sm:$0xff] %v9673_v24  ;;  %v7061_v48 = vld [vmem:[%s10350_s10 + $0x30] sm:$0xff] }
 0x938   : > { %v5598_v49 = vmul.f32 %v7345_v52, %v9634_v0  ;;  %v5601_v11 = vmul.f32 %v7345_v52, %v9637_v47  ;;  %v5592_v51 = vsel %vm1421_vm14, %v7344_v53, %v7345_v52  ;;  %v5596_v46 = vmul.f32 %v7344_v53, %v9632_v33  ;;  %6970 = vmatmul.msk.bf16.vlgmr.msra.gmra.mxu3 %vm4451_vm11, %v7061_v48 }
 0x939   : > { %v5597_v60 = vmul.f32 %v5592_v51, %v9639_v2  ;;  %v5599_v15 = vmul.f32 %v7344_v53, %v9641_v56  ;;  %v5600_v8 = vmul.f32 %v5592_v51, %v9643_v7  ;;  %v5602_v37 = vmul.f32 %v7344_v53, %v9671_v34  ;;  %6968 = vmatmul.msk.bf16.vlgmr.msra.gmra.mxu2 %vm4451_vm11, %v7061_v48 }
 0x93a   : > { %v5603_v59 = vmul.f32 %v5592_v51, %v9673_v24  ;;  %v5604_v39 = vmul.f32 %v7345_v52, %v9686_v23  ;;  %v7371_v53 = vpack.i.bf16 %v5686_v25, %v5685_v20 }
 0x93b   : > { %5050 = vmatpush.bf16.msrb.mxu0 %v5025_v57  ;;  %v7356_v9 = vpack.i.bf16 %v5601_v11, %v5600_v8  ;;  %v7351_v13 = vpack.i.bf16 %v5599_v15, %v5598_v49  ;;  %v7346_v29 = vpack.i.bf16 %v5597_v60, %v5596_v46  ;;  %v5379_v49 = vpack.c.bf16 %v5373_v30, %v5373_v30  ;;  %v6985_v57 = vld [vmem:[%s10350_s10 + $0x50] sm:$0xf]  ;;  %v4493_v30 = vpop.f32.mrf.mxu3 }
 0x93c   : > { %v5782_v11 = vperm.slane %v5780_v63, 1  ;;  %v7361_v51 = vpack.i.bf16 %v5603_v59, %v5602_v37  ;;  %v4888_v46 = vunpack.c.l.b16 %v6963_v1  ;;  %v4763_v60 = vunpack.c.l.b16 %v6952_v12  ;;  %v9753_v37 = vld [vmem:[%s10350_s10 + $0x60] sm:$0xff] }
 0x93d   : > { %7357 = vrot.lane.b32.xlu2 %v7356_v9, %s10480_s23  ;;  %7352 = vrot.lane.b32.xlu1 %v7351_v13, %s10480_s23  ;;  %v5135_v16 = vunpack.c.l.b16 %v6985_v57  ;;  %v9740_v9 = vpop.permute.xlu1 %5477  ;;  %v5411_v13 = vpop.permute.xlu0 %5410  ;;  %v5785_v63 = vpack.i.b16 %v5784_v28, %v5784_v28  ;;  %v4572_v28 = vadd.f32 %v4571_v22, %v4491_v38 }
 0x93e   : > { %7347 = vrot.lane.b32.xlu0 %v7346_v29, %s10480_s23  ;;  %v5788_v41 = vunpack.c.l.bf16 %v5782_v11  ;;  %v4890_v15 = vpack.c.b16 %v4888_v46, %v4888_v46  ;;  %v4765_v8 = vpack.c.b16 %v4763_v60, %v4763_v60 }
 0x93f   : > { %v5137_v40 = vpack.c.b16 %v5135_v16, %v5135_v16  ;;  %v5787_v57 = vperm.slane %v5785_v63, 1 }
 0x940   : > { %v7366_v52 = vpack.i.bf16 %v5788_v41, %v5604_v39  ;;  %6960 = vmatmul.msk.bf16.gmra.mxu1 %vm4451_vm11, %v4765_v8  ;;  %6958 = vmatmul.msk.bf16.gmra.mxu0 %vm4451_vm11, %v4765_v8  ;;  %v4473_v39 = vpop.f32.mrf.mxu2 }
 0x945   : > { %5408 = vrot.lane.b32.xlu2 %v5380_v27, %s10454_s4  ;;  %5277 = vrot.lane.b32.xlu1 %v5249_v58, %s10451_s16  ;;  %v9755_v59 = vpop.permute.xlu1 %7337  ;;  %v9757_v32 = vpop.permute.xlu0 %5487 }
 0x946   : > { %5275 = vrot.lane.b32.xlu0 %v5248_v55, %s10451_s16 }
 0x948   : > { %6971 = vmatmul.msk.bf16.gmra.mxu3 %vm4451_vm11, %v4890_v15  ;;  %v4475_v16 = vpop.f32.mrf.mxu2 }
 0x949   : > { %6969 = vmatmul.msk.bf16.gmra.mxu2 %vm4451_vm11, %v4890_v15  ;;  %v5391_v15 = vunpack.c.l.b16 %v7007_v3 }
 0x94b   : > { %v5393_v5 = vpack.c.b16 %v5391_v15, %v5391_v15 }
 0x94d   : > { %7372 = vrot.lane.b32.xlu2 %v7371_v53, %s10448_s24  ;;  %5406 = vrot.lane.b32.xlu1 %v5379_v49, %s10454_s4 }
 0x94e   : > { %7362 = vrot.lane.b32.xlu0 %v7361_v51, %s10480_s23 }
 0x950   : > { %6981 = vmatmul.msk.bf16.vlgmr.msrb.gmra.mxu1 %vm4451_vm11, %v7062_v61  ;;  %6979 = vmatmul.msk.bf16.vlgmr.msrb.gmra.mxu0 %vm4451_vm11, %v7062_v61 }
 0x955   : > { %7367 = vrot.lane.b32.xlu1 %v7366_v52, %s10480_s23 }
 0x958   : > { %6992 = vmatmul.msk.bf16.vlgmr.msrb.gmra.mxu3 %vm4451_vm11, %v7063_v6 }
 0x959   : > { %6990 = vmatmul.msk.bf16.vlgmr.msrb.gmra.mxu2 %vm4451_vm11, %v7063_v6 }
 0x960   : > { %6982 = vmatmul.msk.bf16.gmra.mxu1 %vm4451_vm11, %v5006_v35  ;;  %6980 = vmatmul.msk.bf16.gmra.mxu0 %vm4451_vm11, %v5006_v35  ;;  %v5789_v35 = vunpack.c.l.bf16 %v5787_v57 }
 0x968   : > { %6993 = vmatmul.msk.bf16.gmra.mxu3 %vm4451_vm11, %v5137_v40 }
 0x969   : > { %6991 = vmatmul.msk.bf16.gmra.mxu2 %vm4451_vm11, %v5137_v40  ;;  %v4496_v40 = vpop.f32.mrf.mxu3 }
 0x997   : > { %v9736_v50 = vpop.permute.xlu2 %7357 }
 0x998   : > { %v7359_v11 = vunpack.i.l.bf16 %v9736_v50 }
 0x99f   : > { %v9742_v29 = vpop.permute.xlu2 %5408 }
 0x9a0   : > { %v5415_v4 = vsel %vm1317_vm12, %v9742_v29, %v5411_v13 }
 0x9a1   : > { %v5428_v43 = vsel %vm10506_vm0, %v5415_v4, 0 }
 0x9a2   : > { %5454 = vmatpush.bf16.msra.mxu3 %v5428_v43 }
 0x9a6   : > { %5455 = vmatpush.bf16.msra.mxu3 %v5413_v42 }
 0x9a7   : > { %v7373_v17 = vpop.permute.xlu2 %7372 }
 0x9a8   : > { %v7375_v10 = vunpack.i.h.bf16 %v7373_v17  ;;  %v7374_v36 = vunpack.i.l.bf16 %v7373_v17  ;;  %v4553_v17 = vpop.f32.mrf.mxu0 }
 0x9a9   : > { %7014 = vmatmul.msk.bf16.vlgmr.msra.gmra.mxu3 %vm4451_vm11, %v9753_v37 }
 0x9aa   : > { %v5699_v18 = vmul.f32 %v7375_v10, %v9634_v0  ;;  %v5702_v27 = vmul.f32 %v7375_v10, %v9637_v47  ;;  %v5693_v58 = vsel %vm1531_vm2, %v7374_v36, %v7375_v10  ;;  %v5697_v14 = vmul.f32 %v7374_v36, %v9632_v33  ;;  %vm10516_vm2 = vmmov %vm10506_vm0 }
 0x9ab   : > { %v5698_v55 = vmul.f32 %v5693_v58, %v9639_v2  ;;  %v5700_v20 = vmul.f32 %v7374_v36, %v9641_v56  ;;  %v5701_v25 = vmul.f32 %v5693_v58, %v9643_v7  ;;  %v5703_v48 = vmul.f32 %v7374_v36, %v9671_v34 }
 0x9ac   : > { %v5704_v53 = vmul.f32 %v5693_v58, %v9673_v24  ;;  %v5705_v52 = vmul.f32 %v7375_v10, %v9686_v23  ;;  %v7064_v58 = vld [vmem:[%s10350_s10 + $0x54] sm:$0xff] }
 0x9ad   : > { %v7386_v46 = vpack.i.bf16 %v5702_v27, %v5701_v25  ;;  %v7381_v60 = vpack.i.bf16 %v5700_v20, %v5699_v18  ;;  %v7376_v6 = vpack.i.bf16 %v5698_v55, %v5697_v14  ;;  %v4554_v18 = vadd.f32 %v4553_v17, %v4473_v39  ;;  %v4498_v27 = vpop.f32.mrf.mxu3  ;;  %v4573_v20 = vpop.f32.mrf.mxu1 }
 0x9ae   : > { %v5711_v31 = vpack.c.bf16 %v5705_v52, %v5705_v52  ;;  %v7391_v36 = vpack.i.bf16 %v5704_v53, %v5703_v48  ;;  %v4574_v39 = vadd.f32 %v4573_v20, %v4493_v30 }
 0x9af   : > { %v9773_v49 = vpop.permute.xlu1 %7352  ;;  %7387 = vrot.lane.b32.xlu2 %v7386_v46, %s10446_s21  ;;  %7382 = vrot.lane.b32.xlu1 %v7381_v60, %s10446_s21 }
 0x9b0   : > { %v7355_v51 = vunpack.i.h.bf16 %v9773_v49  ;;  %v10412_v41 = vunpack.i.l.bf16 %v9773_v49  ;;  %v9778_v1 = vpop.permute.xlu0 %7347  ;;  %7377 = vrot.lane.b32.xlu0 %v7376_v6, %s10446_s21  ;;  %v5720_v42 = vunpack.c.l.bf16 %v5711_v31  ;;  %v4555_v25 = vpop.f32.mrf.mxu0 }
 0x9b1   : > { %v10411_v12 = vunpack.i.h.bf16 %v9778_v1  ;;  %v4556_v63 = vadd.f32 %v4555_v25, %v4475_v16 }
 0x9b2   : > { %v9785_v8 = vsel %vm1849_vm8, %v7355_v51, %v7359_v11 }
 0x9b3   : > { %v9792_v61 = vsel %vm1849_vm8, %v10411_v12, %v10412_v41 }
 0x9b5   : > { %v4696_v53 = vpop.f32.mrf.mxu3  ;;  %v4576_v3 = vpop.f32.mrf.mxu1 }
 0x9b6   : > { %v4577_v46 = vadd.f32 %v4576_v3, %v4496_v40 }
 0x9b7   : > { %v5278_v44 = vpop.permute.xlu1 %5277  ;;  %5794 = vrot.lane.b32.xlu2 %v5789_v35, %s10480_s23  ;;  %5746 = vrot.lane.b32.xlu1 %v5720_v42, %s10446_s21 }
 0x9b8   : > { %v5284_v13 = vsel %vm1421_vm14, %v5278_v44, %v9544_v26  ;;  %v5276_v4 = vpop.permute.xlu0 %5275  ;;  %v4478_v26 = vpop.f32.mrf.mxu2  ;;  %7392 = vrot.lane.b32.xlu0 %v7391_v36, %s10446_s21  ;;  %s6455_s21 = sshll.u32 %s8221_s0, 4  ;;  %s6456_s21 = int_to_ptr.vmem [resolvable:$true] %s6455_s21 }
 0x9b9   : > { %v5297_v43 = vsel %vm10516_vm2, %v5284_v13, 0  ;;  %v5283_v45 = vsel %vm1421_vm14, %v5276_v4, %v5278_v44  ;;  %7015 = vmatmul.msk.bf16.gmra.mxu3 %vm4451_vm11, %v5393_v5  ;;  %v4558_v51 = vpop.f32.mrf.mxu0 }
 0x9ba   : > { %v5294_v10 = vsel %vm10517_vm3, %v5283_v45, 0  ;;  %5323 = vmatpush.bf16.msra.mxu1 %v5297_v43  ;;  %v4559_v60 = vadd.f32 %v4558_v51, %v4478_v26 }
 0x9bb   : > { %5305 = vmatpush.bf16.msra.mxu0 %v5294_v10 }
 0x9bd   : > { %v4698_v30 = vpop.f32.mrf.mxu3 }
 0x9be   : > { %5324 = vmatpush.bf16.msra.mxu1 %v9550_v62  ;;  %v4706_v62 = vadd.f32 %v4696_v53, %v4572_v28  ;;  %v4708_v57 = vadd.f32 %v4698_v30, %v4574_v39  ;;  %v9844_v30 = vunpack.i.l.bf16 %v9755_v59 }
 0x9bf   : > { %5306 = vmatpush.bf16.msra.mxu0 %v9547_v21  ;;  %v5407_v14 = vpop.permute.xlu1 %5406  ;;  %v6996_v21 = vld [vmem:[%s10350_s10 + $0x5c] sm:$0xf] }
 0x9c0   : > { %v5414_v38 = vsel %vm1317_vm12, %v5407_v14, %v9742_v29  ;;  %v4480_v48 = vpop.f32.mrf.mxu2  ;;  %v5260_v29 = vunpack.c.l.b16 %v6996_v21  ;;  %v5878_v21 = vld [vmem:[%s10341_s1 + $0x8] sm:$0x44]  ;;  %10520 = vst [vmem:[#allocation16_spill] sm:$0xff] %v9844_v30 }
 0x9c1   : > { %v5425_v55 = vsel %vm10518_vm5, %v5414_v38, 0  ;;  %7003 = vmatmul.msk.bf16.vlgmr.msra.gmra.mxu1 %vm4451_vm11, %v7064_v58  ;;  %v4560_v16 = vpop.f32.mrf.mxu0 }
 0x9c2   : > { %5436 = vmatpush.bf16.msra.mxu2 %v5425_v55  ;;  %7001 = vmatmul.msk.bf16.vlgmr.msra.gmra.mxu0 %vm4451_vm11, %v7064_v58  ;;  %v5262_v6 = vpack.c.b16 %v5260_v29, %v5260_v29 }
 0x9c5   : > { %v4701_v44 = vpop.f32.mrf.mxu3 }
 0x9c6   : > { %5437 = vmatpush.bf16.msra.mxu2 %v9626_v54  ;;  %v4578_v54 = vpop.f32.mrf.mxu1 }
 0x9c8   : > { %v4678_v52 = vpop.f32.mrf.mxu2 }
 0x9c9   : > { %7012 = vmatmul.msk.bf16.vlgmr.msra.gmra.mxu2 %vm4451_vm11, %v9753_v37  ;;  %v4705_v15 = vadd.f32 %v4678_v52, %v4554_v18  ;;  %v4710_v37 = vadd.f32 %v4701_v44, %v4577_v46  ;;  %v4811_v4 = vpop.f32.mrf.mxu0  ;;  %v5880_v46 = vunpack.c.l.b16 %v5878_v21 }
 0x9cb   : > { %v4838_v43 = vadd.f32 %v4811_v4, %v4705_v15  ;;  %v5881_v15 = vunpack.c.h.b16 %v5878_v21 }
 0x9cd   : > { %v4703_v42 = vpop.f32.mrf.mxu3 }
 0x9ce   : > { %v4829_v13 = vpop.f32.mrf.mxu1 }
 0x9cf   : > { %v4839_v40 = vadd.f32 %v4829_v13, %v4706_v62 }
 0x9d0   : > { %v4680_v31 = vpop.f32.mrf.mxu2 }
 0x9d1   : > { %7004 = vmatmul.msk.bf16.gmra.mxu1 %vm4451_vm11, %v5262_v6  ;;  %v4707_v35 = vadd.f32 %v4680_v31, %v4556_v63  ;;  %v4813_v38 = vpop.f32.mrf.mxu0  ;;  %v9855_v31 = vpack.c.b16 %v5881_v15, %v5881_v15 }
 0x9d2   : > { %7002 = vmatmul.msk.bf16.gmra.mxu0 %vm4451_vm11, %v5262_v6 }
 0x9d3   : > { %v4840_v20 = vadd.f32 %v4813_v38, %v4707_v35 }
 0x9d5   : > { %v4930_v28 = vpop.f32.mrf.mxu3 }
 0x9d6   : > { %v4831_v17 = vpop.f32.mrf.mxu1  ;;  %v9825_v18 = vadd.f32 %v4930_v28, %v4839_v40  ;;  %v5889_v40 = vpack.i.b16 %v9855_v31, %v9855_v31 }
 0x9d7   : > { %v4841_v10 = vadd.f32 %v4831_v17, %v4708_v57  ;;  %v9848_v57 = vpack.c.b16 %v5880_v46, %v5880_v46 }
 0x9d8   : > { %v4683_v45 = vpop.f32.mrf.mxu2 }
 0x9d9   : > { %7013 = vmatmul.msk.bf16.gmra.mxu2 %vm4451_vm11, %v5393_v5  ;;  %v4709_v22 = vadd.f32 %v4683_v45, %v4559_v60  ;;  %v4816_v62 = vpop.f32.mrf.mxu0  ;;  %v9841_v60 = vunpack.i.h.bf16 %v9755_v59  ;;  %v5546_v59 = vmul.f32 %v9844_v30, %v9641_v56  ;;  %v5885_v4 = vpack.i.b16 %v9848_v57, %v9848_v57 }
 0x9da   : > { %v7360_v45 = vunpack.i.h.bf16 %v9736_v50 }
 0x9db   : > { %v4842_v29 = vadd.f32 %v4816_v62, %v4709_v22  ;;  %10519 = vst [vmem:[#allocation20_spill] sm:$0xff] %v9841_v60  ;;  %v9853_v54 = vsel %vm1317_vm12, %v9844_v30, %v9841_v60  ;;  %v5548_v35 = vmul.f32 %v9841_v60, %v9637_v47  ;;  %v5887_v22 = vperm.slane %v5885_v4, 2 }
 0x9dc   : > { %v5547_v13 = vmul.f32 %v9853_v54, %v9643_v7 }
 0x9dd   : > { %v4932_v27 = vpop.f32.mrf.mxu3 }
 0x9de   : > { %v9829_v14 = vadd.f32 %v4932_v27, %v4841_v10  ;;  %v4834_v5 = vpop.f32.mrf.mxu1  ;;  %v9870_v42 = vpack.c.bf16 %v5547_v13, %v5546_v59  ;;  %v5875_v10 = vld [vmem:[#allocation5 + $0x4] sm:$0xff]  ;;  %v5876_v59 = vld [vmem:[#allocation5 + $0x14] sm:$0xff] }
 0x9df   : > { %v4843_v55 = vadd.f32 %v4834_v5, %v4710_v37  ;;  %v5650_v5 = vsel %vm1849_vm8, %v7359_v11, %v7360_v45 }
 0x9e0   : > { %v4685_v36 = vpop.f32.mrf.mxu2 }
 0x9e1   : > { %v4818_v16 = vpop.f32.mrf.mxu0  ;;  %v5891_v36 = vperm.slane %v5889_v40, 2 }
 0x9e2   : > { %v5877_v16 = vld [vmem:[#allocation5 + $0x24] sm:$0xff] }
 0x9e3   : > { %v9929_v12 = vunpack.c.h.bf16 %v5877_v16 }
 0x9e5   : > { %v4935_v39 = vpop.f32.mrf.mxu3 }
 0x9e6   : > { %v9833_v48 = vadd.f32 %v4935_v39, %v4843_v55  ;;  %v4836_v53 = vpop.f32.mrf.mxu1  ;;  %v5562_v55 = vunpack.c.h.bf16 %v9870_v42  ;;  %v9888_v39 = vunpack.c.h.bf16 %v5875_v10 }
 0x9e7   : > { %v5898_v53 = vunpack.c.l.bf16 %v5887_v22 }
 0x9e8   : > { %v4912_v26 = vpop.f32.mrf.mxu2  ;;  %10522 = vst [vmem:[#allocation18_spill] sm:$0xff] %v9888_v39  ;;  %v5666_v50 = vadd.f32 %v5650_v5, %v5562_v55 }
 0x9e9   : > { %v9827_v58 = vadd.f32 %v4912_v26, %v4838_v43  ;;  %v5555_v43 = vpack.c.bf16 %v5548_v35, %v5548_v35  ;;  %v9874_v28 = vpop.f32.mrf.mxu0 }
 0x9eb   : > { %v5563_v27 = vunpack.c.l.bf16 %v5555_v43 }
 0x9ed   : > { %v4937_v51 = vpop.f32.mrf.mxu3  ;;  %v5667_v62 = vadd.f32 %v7360_v45, %v5563_v27  ;;  %v9914_v45 = vunpack.c.l.bf16 %v5877_v16  ;;  %v9920_v27 = vunpack.c.h.bf16 %v5876_v59  ;;  %v5544_v16 = vmul.f32 %v9853_v54, %v9639_v2 }
 0x9ee   : > { %v9846_v6 = vpop.f32.mrf.mxu1  ;;  %v9892_v51 = vpop.permute.xlu1 %7367 }
 0x9ef   : > { %10523 = vst [vmem:[#allocation19_spill] sm:$0xff] %v9892_v51  ;;  %v7370_v4 = vunpack.i.h.bf16 %v9892_v51  ;;  %v9932_v41 = vmul.f32 %v5898_v53, %v9914_v45  ;;  %v5960_v51 = vshrl.u32 %v9848_v57, 16 }
 0x9f0   : > { %v4914_v25 = vpop.f32.mrf.mxu2  ;;  %10526 = vst [vmem:[#allocation24_spill] sm:$0xff] %v9914_v45 }
 0x9f1   : > { %v9831_v63 = vadd.f32 %v4914_v25, %v4840_v20  ;;  %v9886_v25 = vunpack.c.l.bf16 %v5875_v10  ;;  %v9907_v13 = vpop.f32.mrf.mxu0  ;;  %v5806_v45 = vmul.f32 %v7370_v4, %v9671_v34 }
 0x9f3   : > { %10521 = vst [vmem:[#allocation17_spill] sm:$0xff] %v9886_v25 }
 0x9f5   : > { %v9859_v37 = vpop.f32.mrf.mxu3 }
 0x9f6   : > { %v9872_v17 = vpop.f32.mrf.mxu1 }
 0x9f8   : > { %v4917_v3 = vpop.f32.mrf.mxu2 }
 0x9f9   : > { %v9838_v52 = vadd.f32 %v4917_v3, %v4842_v29  ;;  %v5899_v3 = vunpack.c.l.bf16 %v5891_v36  ;;  %v9918_v36 = vunpack.c.l.bf16 %v5876_v59  ;;  %v5545_v59 = vmul.f32 %v9841_v60, %v9634_v0 }
 0x9fb   : > { %v9905_v35 = vmul.f32 %v5899_v3, %v9888_v39  ;;  %v5964_v39 = vshrl.u32 %v9855_v31, 16 }
 0x9fd   : > { %v9881_v38 = vpop.f32.mrf.mxu3 }
 0x9fe   : > { %v9912_v43 = vpop.f32.mrf.mxu1 }
 0xa00   : > { %v4919_v44 = vpop.f32.mrf.mxu2 }
 0xa01   : > { %v9902_v44 = vmul.f32 %v5898_v53, %v9886_v25  ;;  %v9939_v25 = vpop.f32.mrf.mxu0 }
 0xa05   : > { %v9916_v22 = vpop.f32.mrf.mxu3 }
 0xa06   : > { %v5077_v60 = vpop.f32.mrf.mxu1 }
 0xa08   : > { %v9876_v26 = vpop.f32.mrf.mxu2 }
 0xa09   : > { %v9884_v20 = vpop.permute.xlu2 %7387 }
 0xa0a   : > { %v7390_v21 = vunpack.i.h.bf16 %v9884_v20  ;;  %v10410_v29 = vunpack.i.l.bf16 %v9884_v20 }
 0xa0c   : > { %v5751_v11 = vsel %vm1745_vm1, %v10410_v29, %v7390_v21  ;;  %v9897_v46 = vadd.f32 %v7390_v21, %v5667_v62  ;;  %v5800_v21 = vmul.f32 %v7370_v4, %v9632_v33 }
 0xa0d   : > { %v9899_v15 = vadd.f32 %v5751_v11, %v5666_v50  ;;  %v5803_v50 = vmul.f32 %v7370_v4, %v9641_v56  ;;  %v5208_v57 = vpop.f32.mrf.mxu3 }
 0xa0e   : > { %10524 = vst [vmem:[#allocation22_spill] sm:$0xff] %v9897_v46  ;;  %v9950_v46 = vpop.permute.xlu0 %7362 }
 0xa0f   : > { %10525 = vst [vmem:[#allocation21_spill] sm:$0xff] %v9899_v15 }
 0xa10   : > { %v9910_v40 = vpop.f32.mrf.mxu2 }
 0xa11   : > { %v5795_v10 = vpop.permute.xlu2 %5794 }
 0xa12   : > { %v5796_v5 = vsel %vm1849_vm8, %v7370_v4, %v5795_v10  ;;  %v5802_v55 = vmul.f32 %v5795_v10, %v9634_v0  ;;  %v5805_v62 = vmul.f32 %v5795_v10, %v9637_v47  ;;  %v5905_v0 = vmul.f32 %v5899_v3, %v9929_v12 }
 0xa13   : > { %v5801_v11 = vmul.f32 %v5796_v5, %v9639_v2  ;;  %v5804_v29 = vmul.f32 %v5796_v5, %v9643_v7  ;;  %v5807_v47 = vmul.f32 %v5796_v5, %v9673_v24  ;;  %v5543_v7 = vmul.f32 %v9844_v30, %v9632_v33 }
 0xa14   : > { %v5808_v5 = vmul.f32 %v5795_v10, %v9686_v23  ;;  %v7401_v31 = vpack.i.bf16 %v5803_v50, %v5802_v55  ;;  %v5903_v33 = vmul.f32 %v5899_v3, %v9920_v27  ;;  %v5553_v30 = vpack.c.bf16 %v5545_v59, %v5545_v59  ;;  %v5059_v55 = vpop.f32.mrf.mxu0 }
 0xa15   : > { %v7406_v24 = vpack.i.bf16 %v5805_v62, %v5804_v29  ;;  %v7396_v15 = vpack.i.bf16 %v5801_v11, %v5800_v21  ;;  %v5961_v2 = vpack.i.b16 %v5960_v51, %v5960_v51  ;;  %v5965_v4 = vpack.i.b16 %v5964_v39, %v5964_v39 }
 0xa16   : > { %7402 = vrot.lane.b32.xlu1 %v7401_v31, %s10451_s16  ;;  %v5552_v60 = vpack.c.bf16 %v5544_v16, %v5543_v7  ;;  %v7349_v29 = vunpack.i.l.bf16 %v9778_v1  ;;  %v5814_v10 = vpack.c.bf16 %v5808_v5, %v5808_v5  ;;  %v5560_v62 = vunpack.c.l.bf16 %v5553_v30 }
 0xa17   : > { %7407 = vrot.lane.b32.xlu2 %v7406_v24, %s10451_s16  ;;  %7397 = vrot.lane.b32.xlu0 %v7396_v15, %s10451_s16  ;;  %v5963_v21 = vperm.slane %v5961_v2, 2  ;;  %v5967_v50 = vperm.slane %v5965_v4, 2  ;;  %v5561_v3 = vunpack.c.l.bf16 %v9870_v42  ;;  %v7416_v24 = vpack.i.bf16 %v9905_v35, %v9902_v44 }
 0xa18   : > { %v9941_v56 = vpop.f32.mrf.mxu2  ;;  %v5558_v11 = vunpack.c.l.bf16 %v5552_v60  ;;  %v10528_v51 = vunpack.i.l.bf16 %v9773_v49  ;;  %v5559_v59 = vunpack.c.h.bf16 %v5552_v60  ;;  %v10529_v15 = vunpack.i.h.bf16 %v9778_v1 }
 0xa19   : > { %10527 = vst [vmem:[#allocation23_spill] sm:$0xff] %v9941_v56  ;;  %v5902_v56 = vmul.f32 %v5898_v53, %v9918_v36  ;;  %v5823_v16 = vunpack.c.l.bf16 %v5814_v10  ;;  %v5665_v30 = vadd.f32 %v9785_v8, %v5561_v3  ;;  %v7411_v42 = vpack.i.bf16 %v5807_v47, %v5806_v45 }
 0xa1a   : > { %v5664_v39 = vadd.f32 %v10528_v51, %v5560_v62  ;;  %v5647_v7 = vsel %vm1849_vm8, %v7349_v29, %v10529_v15  ;;  %v5977_v49 = vunpack.c.l.bf16 %v5963_v21  ;;  %v5978_v44 = vunpack.c.l.bf16 %v5967_v50 }
 0xa1b   : > { %v5663_v1 = vadd.f32 %v9792_v61, %v5559_v59  ;;  %v5662_v35 = vadd.f32 %v5647_v7, %v5558_v11  ;;  %v10530_v60 = vunpack.i.l.bf16 %v9884_v20  ;;  %v7426_v20 = vpack.i.bf16 %v5905_v0, %v9932_v41 }
 0xa1c   : > { %v7431_v61 = vpack.i.bf16 %v5978_v44, %v5977_v49  ;;  %v5080_v11 = vadd.f32 %v9846_v6, %v9825_v18  ;;  %v5082_v59 = vadd.f32 %v9872_v17, %v9829_v14  ;;  %v5079_v0 = vadd.f32 %v9874_v28, %v9827_v58 }
 0xa1d   : > { %v5081_v58 = vadd.f32 %v9907_v13, %v9831_v63  ;;  %v5083_v63 = vadd.f32 %v9939_v25, %v9838_v52 }
 0xa1e   : > { %5849 = vrot.lane.b32.xlu1 %v5823_v16, %s10451_s16  ;;  %v5213_v15 = vadd.f32 %v9881_v38, %v5082_v59  ;;  %v5210_v18 = vadd.f32 %v9876_v26, %v5079_v0  ;;  %v6260_v0 = vld [vmem:[%s10341_s1 + $0x10] sm:$0x22] }
 0xa1f   : > { %7417 = vrot.lane.b32.xlu2 %v7416_v24, %s10454_s4  ;;  %7412 = vrot.lane.b32.xlu0 %v7411_v42, %s10451_s16  ;;  %v5211_v24 = vadd.f32 %v9859_v37, %v5080_v11  ;;  %v5084_v37 = vadd.f32 %v9912_v43, %v9833_v48  ;;  %v5212_v26 = vadd.f32 %v9910_v40, %v5081_v58 }
 0xa20   : > { %v5190_v53 = vpop.f32.mrf.mxu2  ;;  %v10531_v49 = vld [vmem:[#allocation23_spill] sm:$0xff] }
 0xa21   : > { %v7383_v57 = vpop.permute.xlu1 %7382  ;;  %v7421_v53 = vpack.i.bf16 %v5903_v33, %v5902_v56  ;;  %v5215_v38 = vadd.f32 %v9916_v22, %v5084_v37  ;;  %v5214_v40 = vadd.f32 %v10531_v49, %v5083_v63  ;;  %v6263_v37 = vunpack.c.h.b16 %v6260_v0  ;;  %v10535_v49 = vld [vmem:[#allocation18_spill] sm:$0xff] }
 0xa22   : > { %v7385_v5 = vunpack.i.h.bf16 %v7383_v57  ;;  %v7384_v31 = vunpack.i.l.bf16 %v7383_v57  ;;  %v7378_v2 = vpop.permute.xlu0 %7377 }
 0xa23   : > { %v7380_v4 = vunpack.i.h.bf16 %v7378_v2  ;;  %v7379_v55 = vunpack.i.l.bf16 %v7378_v2 }
 0xa24   : > { %v5750_v29 = vsel %vm1745_vm1, %v7385_v5, %v10530_v60  ;;  %v9973_v8 = vadd.f32 %v7384_v31, %v5664_v39 }
 0xa25   : > { %v9976_v45 = vadd.f32 %v5750_v29, %v5665_v30  ;;  %v5749_v47 = vsel %vm1745_vm1, %v7380_v4, %v7384_v31  ;;  %v5748_v10 = vsel %vm1745_vm1, %v7379_v55, %v7380_v4 }
 0xa26   : > { %v9980_v62 = vadd.f32 %v5748_v10, %v5662_v35  ;;  %v9982_v21 = vadd.f32 %v5749_v47, %v5663_v1  ;;  %7427 = vrot.lane.b32.xlu1 %v7426_v20, %s10454_s4  ;;  %v6064_v10 = vld [vmem:[%s10341_s1 + $0x10] sm:$0x11] }
 0xa27   : > { %7432 = vrot.lane.b32.xlu2 %v7431_v61, %s10489_s28  ;;  %7422 = vrot.lane.b32.xlu0 %v7421_v53, %s10454_s4  ;;  %v6066_v53 = vunpack.c.l.b16 %v6064_v10 }
 0xa29   : > { %v10037_v58 = vpop.permute.xlu1 %5746 }
 0xa2c   : > { %v5457_v50 = vpop.f32.mrf.mxu3 }
 0xa34   : > { %v5459_v3 = vpop.f32.mrf.mxu3 }
 0xa3c   : > { %v5462_v51 = vpop.f32.mrf.mxu3 }
 0xa3e   : > { %v5326_v39 = vpop.f32.mrf.mxu1 }
 0xa3f   : > { %v5336_v41 = vadd.f32 %v5326_v39, %v5211_v24  ;;  %v5308_v56 = vpop.f32.mrf.mxu0  ;;  %v10533_v24 = vld [vmem:[#allocation21_spill] sm:$0xff]  ;;  %v6067_v39 = vunpack.c.h.b16 %v6064_v10 }
 0xa40   : > { %v5335_v57 = vadd.f32 %v5308_v56, %v5210_v18  ;;  %v5959_v18 = vld [vmem:[#allocation5 + $0x2c] sm:$0xf] }
 0xa41   : > { %v5467_v33 = vadd.f32 %v5457_v50, %v5336_v41  ;;  %v6069_v41 = vpack.c.b16 %v6067_v39, %v6067_v39 }
 0xa43   : > { %v5491_v7 = vadd.f32 %v9740_v9, %v5467_v33  ;;  %v5955_v33 = vld [vmem:[#allocation5 + $0xc] sm:$0xf] }
 0xa44   : > { %v5464_v16 = vpop.f32.mrf.mxu3 }
 0xa45   : > { %5497 = vst [vmem:[%s8221_s0 + $0x58] sm:$0xff] %v5491_v7  ;;  %v6075_v7 = vpack.i.b16 %v6069_v41, %v6069_v41 }
 0xa46   : > { %v5328_v6 = vpop.f32.mrf.mxu1 }
 0xa47   : > { %v5338_v14 = vadd.f32 %v5328_v6, %v5213_v15  ;;  %v5310_v17 = vpop.f32.mrf.mxu0  ;;  %v5957_v15 = vld [vmem:[#allocation5 + $0x1c] sm:$0xf]  ;;  %v6262_v6 = vunpack.c.l.b16 %v6260_v0 }
 0xa48   : > { %v5337_v22 = vadd.f32 %v5310_v17, %v5212_v26  ;;  %v10035_v17 = vunpack.c.l.bf16 %v5957_v15  ;;  %v10041_v26 = vunpack.c.l.bf16 %v5959_v18 }
 0xa49   : > { %v5469_v28 = vadd.f32 %v5459_v3, %v5338_v14  ;;  %v10532_v3 = vld [vmem:[#allocation22_spill] sm:$0xff]  ;;  %v10033_v14 = vunpack.c.l.bf16 %v5955_v33 }
 0xa4b   : > { %v5493_v30 = vadd.f32 %v9622_v19, %v5469_v28 }
 0xa4c   : > { %v5439_v5 = vpop.f32.mrf.mxu2 }
 0xa4d   : > { %5499 = vst [vmem:[%s8221_s0 + $0x68] sm:$0xff] %v5493_v30  ;;  %v5466_v31 = vadd.f32 %v5439_v5, %v5335_v57  ;;  %v10039_v57 = vpop.permute.xlu0 %7392  ;;  %v6077_v5 = vperm.slane %v6075_v7, 0 }
 0xa4e   : > { %v5331_v2 = vpop.f32.mrf.mxu1 }
 0xa4f   : > { %v5490_v48 = vadd.f32 %v9740_v9, %v5466_v31  ;;  %v5340_v43 = vadd.f32 %v5331_v2, %v5215_v38  ;;  %v5313_v42 = vpop.f32.mrf.mxu0  ;;  %v6264_v2 = vpack.c.b16 %v6262_v6, %v6262_v6  ;;  %v6079_v7 = vunpack.c.l.bf16 %v6077_v5 }
 0xa50   : > { %v5339_v60 = vadd.f32 %v5313_v42, %v5214_v40 }
 0xa51   : > { %5496 = vst [vmem:[%s8221_s0 + $0x50] sm:$0xff] %v5490_v48  ;;  %v5471_v13 = vadd.f32 %v5462_v51, %v5340_v43  ;;  %v6265_v48 = vpack.c.b16 %v6263_v37, %v6263_v37 }
 0xa53   : > { %v5495_v4 = vadd.f32 %v9757_v32, %v5471_v13 }
 0xa54   : > { %v5441_v55 = vpop.f32.mrf.mxu2 }
 0xa55   : > { %5501 = vst [vmem:[%s8221_s0 + $0x78] sm:$0xff] %v5495_v4  ;;  %v5468_v44 = vadd.f32 %v5441_v55, %v5337_v22  ;;  %v10534_v22 = vld [vmem:[#allocation17_spill] sm:$0xff] }
 0xa56   : > { %v5333_v1 = vpop.f32.mrf.mxu1 }
 0xa57   : > { %v5492_v35 = vadd.f32 %v9622_v19, %v5468_v44  ;;  %v5315_v9 = vpop.f32.mrf.mxu0 }
 0xa58   : > { %v6169_v9 = vshrl.u32 %v6069_v41, 16 }
 0xa59   : > { %5498 = vst [vmem:[%s8221_s0 + $0x60] sm:$0xff] %v5492_v35 }
 0xa5c   : > { %v5444_v29 = vpop.f32.mrf.mxu2 }
 0xa5d   : > { %v5470_v47 = vadd.f32 %v5444_v29, %v5339_v60  ;;  %v6267_v60 = vpack.i.b16 %v6264_v2, %v6264_v2  ;;  %v6271_v29 = vpack.i.b16 %v6265_v48, %v6265_v48 }
 0xa5f   : > { %v5494_v52 = vadd.f32 %v9757_v32, %v5470_v47  ;;  %v6068_v32 = vpack.c.b16 %v6066_v53, %v6066_v53  ;;  %v10536_v47 = vld [vmem:[#allocation24_spill] sm:$0xff]  ;;  %v6269_v2 = vperm.slane %v6267_v60, 1 }
 0xa61   : > { %5500 = vst [vmem:[%s8221_s0 + $0x70] sm:$0xff] %v5494_v52  ;;  %v6071_v56 = vpack.i.b16 %v6068_v32, %v6068_v32  ;;  %v6165_v43 = vshrl.u32 %v6068_v32, 16 }
 0xa63   : > { %v6073_v16 = vperm.slane %v6071_v56, 0 }
 0xa64   : > { %v5446_v25 = vpop.f32.mrf.mxu2 }
 0xa65   : > { %v6078_v31 = vunpack.c.l.bf16 %v6073_v16 }
 0xa67   : > { %v7456_v5 = vpack.i.bf16 %v6079_v7, %v6078_v31  ;;  %v6274_v31 = vunpack.c.l.bf16 %v6269_v2  ;;  %v10537_v7 = vld [vmem:[#allocation20_spill] sm:$0xff] }
 0xa71   : > { %v7408_v61 = vpop.permute.xlu2 %7407 }
 0xa72   : > { %v7410_v50 = vunpack.i.h.bf16 %v7408_v61  ;;  %v7409_v20 = vunpack.i.l.bf16 %v7408_v61 }
 0xa74   : > { %v10022_v11 = vadd.f32 %v7410_v50, %v10532_v3  ;;  %v5854_v19 = vsel %vm1421_vm14, %v7409_v20, %v7410_v50 }
 0xa75   : > { %v10026_v51 = vadd.f32 %v5854_v19, %v10533_v24  ;;  %v6166_v19 = vpack.i.b16 %v6165_v43, %v6165_v43 }
 0xa77   : > { %v6168_v43 = vperm.slane %v6166_v19, 0 }
 0xa79   : > { %v10028_v59 = vpop.permute.xlu2 %7417 }
 0xa7a   : > { %v7420_v55 = vunpack.i.h.bf16 %v10028_v59  ;;  %v7419_v35 = vunpack.i.l.bf16 %v10028_v59 }
 0xa7c   : > { %v5933_v37 = vsel %vm1317_vm12, %v7419_v35, %v7420_v55 }
 0xa81   : > { %v7433_v28 = vpop.permute.xlu2 %7432 }
 0xa82   : > { %v7435_v38 = vunpack.i.h.bf16 %v7433_v28  ;;  %v7434_v30 = vunpack.i.l.bf16 %v7433_v28 }
 0xa84   : > { %v5991_v42 = vmul.f32 %v7435_v38, %v10033_v14  ;;  %v5994_v63 = vmul.f32 %v7435_v38, %v10035_v17  ;;  %v5985_v13 = vsel %vm1884_vm7, %v7434_v30, %v7435_v38  ;;  %v5989_v4 = vmul.f32 %v7434_v30, %v10534_v22 }
 0xa85   : > { %v5990_v40 = vmul.f32 %v5985_v13, %v10535_v49  ;;  %v5992_v44 = vmul.f32 %v7434_v30, %v9918_v36  ;;  %v5993_v1 = vmul.f32 %v5985_v13, %v9920_v27  ;;  %v5995_v52 = vmul.f32 %v7434_v30, %v10536_v47 }
 0xa86   : > { %v5996_v25 = vmul.f32 %v5985_v13, %v9929_v12  ;;  %v5997_v3 = vmul.f32 %v7435_v38, %v10041_v26  ;;  %vm10542_vm7 = vcmask 777216  }
 0xa87   : > { %v7446_v32 = vpack.i.bf16 %v5994_v63, %v5993_v1  ;;  %v7441_v56 = vpack.i.bf16 %v5992_v44, %v5991_v42  ;;  %v7436_v0 = vpack.i.bf16 %v5990_v40, %v5989_v4  ;;  %v6173_v40 = vunpack.c.l.bf16 %v6168_v43  ;;  %v10538_v43 = vld [vmem:[#allocation19_spill] sm:$0xff]  ;;  %vm10548_vm11 = vmmov %vm10542_vm7 }
 0xa88   : > { %v7403_v10 = vpop.permute.xlu1 %7402  ;;  %v6003_v28 = vpack.c.bf16 %v5997_v3, %v5997_v3  ;;  %v7451_v13 = vpack.i.bf16 %v5996_v25, %v5995_v52  ;;  %vm10549_vm13 = vmmov %vm10542_vm7 }
 0xa89   : > { %v7405_v61 = vunpack.i.h.bf16 %v7403_v10  ;;  %v7404_v50 = vunpack.i.l.bf16 %v7403_v10  ;;  %v7398_v53 = vpop.permute.xlu0 %7397  ;;  %7447 = vrot.lane.b32.xlu2 %v7446_v32, %s10455_s2  ;;  %7442 = vrot.lane.b32.xlu1 %v7441_v56, %s10455_s2  ;;  %vm10553_vm2 = vmmov %vm10542_vm7 }
 0xa8a   : > { %v7400_v24 = vunpack.i.h.bf16 %v7398_v53  ;;  %v7399_v39 = vunpack.i.l.bf16 %v7398_v53  ;;  %7437 = vrot.lane.b32.xlu0 %v7436_v0, %s10455_s2 }
 0xa8b   : > { %v5853_v59 = vsel %vm1421_vm14, %v7405_v61, %v7409_v20  ;;  %v5868_v41 = vadd.f32 %v7404_v50, %v9973_v8  ;;  %v6170_v8 = vpack.i.b16 %v6169_v9, %v6169_v9 }
 0xa8c   : > { %v5852_v33 = vsel %vm1421_vm14, %v7400_v24, %v7404_v50  ;;  %v5851_v15 = vsel %vm1421_vm14, %v7399_v39, %v7400_v24  ;;  %v10062_v16 = vadd.f32 %v5853_v59, %v9976_v45  ;;  %v6273_v45 = vperm.slane %v6271_v29, 1 }
 0xa8d   : > { %v10064_v18 = vadd.f32 %v7420_v55, %v5868_v41  ;;  %v5866_v6 = vadd.f32 %v5851_v15, %v9980_v62  ;;  %v5867_v20 = vadd.f32 %v5852_v33, %v9982_v21  ;;  %v6172_v42 = vperm.slane %v6170_v8, 0 }
 0xa8e   : > { %v6012_v21 = vunpack.c.l.bf16 %v6003_v28  ;;  %v6275_v55 = vunpack.c.l.bf16 %v6273_v45 }
 0xa8f   : > { %v10070_v38 = vadd.f32 %v7419_v35, %v5866_v6  ;;  %v10072_v30 = vadd.f32 %v5933_v37, %v5867_v20  ;;  %v6174_v44 = vunpack.c.l.bf16 %v6172_v42  ;;  %v5551_v6 = vmul.f32 %v10537_v7, %v9686_v23 }
 0xa90   : > { %v10077_v63 = vpop.permute.xlu1 %5849  ;;  %v7471_v1 = vpack.i.bf16 %v6275_v55, %v6274_v31  ;;  %v7369_v42 = vunpack.i.l.bf16 %v10538_v43 }
 0xa91   : > { %v10074_v48 = vpop.permute.xlu0 %7412  ;;  %7457 = vrot.lane.b32.xlu2 %v7456_v5, %s10443_s30  ;;  %6038 = vrot.lane.b32.xlu1 %v6012_v21, %s10455_s2  ;;  %v7466_v35 = vpack.i.bf16 %v6174_v44, %v6173_v40  ;;  %v5557_v5 = vpack.c.bf16 %v5551_v6, %v5551_v6 }
 0xa92   : > { %v7415_v62 = vunpack.i.h.bf16 %v10074_v48  ;;  %7452 = vrot.lane.b32.xlu0 %v7451_v13, %s10455_s2 }
 0xa93   : > { %v5566_v55 = vunpack.c.l.bf16 %v5557_v5 }
 0xa94   : > { %v10083_v4 = vsel %vm1421_vm14, %v7415_v62, %v10077_v63 }
 0xa98   : > { %v10103_v15 = vpop.permute.xlu1 %7427 }
 0xa99   : > { %7472 = vrot.lane.b32.xlu2 %v7471_v1, %s10449_s20  ;;  %7467 = vrot.lane.b32.xlu1 %v7466_v35, %s10445_s22  ;;  %v7423_v9 = vpop.permute.xlu0 %7422 }
 0xa9a   : > { %v7425_v60 = vunpack.i.h.bf16 %v7423_v9  ;;  %v7424_v37 = vunpack.i.l.bf16 %v7423_v9 }
 0xa9c   : > { %v5950_v10 = vadd.f32 %v7425_v60, %v10022_v11  ;;  %v5934_v2 = vsel %vm1317_vm12, %v7424_v37, %v7425_v60  ;;  %v5948_v21 = vadd.f32 %v7424_v37, %v10062_v16 }
 0xa9d   : > { %v5949_v40 = vadd.f32 %v5934_v2, %v10026_v51 }
 0xae3   : > { %v7448_v29 = vpop.permute.xlu2 %7447 }
 0xae4   : > { %v7450_v52 = vunpack.i.h.bf16 %v7448_v29  ;;  %v7449_v25 = vunpack.i.l.bf16 %v7448_v29 }
 0xae6   : > { %v6043_v61 = vsel %vm1207_vm10, %v7449_v25, %v7450_v52  ;;  %v5670_v52 = vadd.f32 %v7369_v42, %v5566_v55 }
 0xae7   : > { %v10092_v50 = vadd.f32 %v6043_v61, %v5950_v10  ;;  %v7430_v10 = vunpack.i.h.bf16 %v10103_v15 }
 0xaeb   : > { %v7458_v53 = vpop.permute.xlu2 %7457 }
 0xaec   : > { %v7460_v3 = vunpack.i.h.bf16 %v7458_v53  ;;  %v7459_v19 = vunpack.i.l.bf16 %v7458_v53 }
 0xaee   : > { %v6095_v24 = vmul.f32 %v7460_v3, %v10035_v17  ;;  %v6086_v39 = vsel %vm1566_vm9, %v7459_v19, %v7460_v3  ;;  %v6090_v32 = vmul.f32 %v7459_v19, %v10534_v22  ;;  %v6093_v59 = vmul.f32 %v7459_v19, %v9918_v36 }
 0xaef   : > { %v6091_v56 = vmul.f32 %v6086_v39, %v10535_v49  ;;  %v6094_v41 = vmul.f32 %v6086_v39, %v9920_v27  ;;  %v6096_v11 = vmul.f32 %v7459_v19, %v10536_v47  ;;  %v6097_v0 = vmul.f32 %v6086_v39, %v9929_v12 }
 0xaf0   : > { %v6092_v33 = vmul.f32 %v7460_v3, %v10033_v14  ;;  %v6098_v60 = vmul.f32 %v7460_v3, %v10041_v26  ;;  %vm10544_vm9 = vcmask 769024  }
 0xaf1   : > { %v7481_v20 = vpack.i.bf16 %v6095_v24, %v6094_v41  ;;  %v7461_v8 = vpack.i.bf16 %v6091_v56, %v6090_v32  ;;  %v7486_v28 = vpack.i.bf16 %v6097_v0, %v6096_v11  ;;  %vm10551_vm15 = vmmov %vm10544_vm9 }
 0xaf2   : > { %v7476_v9 = vpack.i.bf16 %v6093_v59, %v6092_v33  ;;  %v6104_v61 = vpack.c.bf16 %v6098_v60, %v6098_v60  ;;  %vm10552_vm0 = vmmov %vm10544_vm9 }
 0xaf3   : > { %7482 = vrot.lane.b32.xlu1 %v7481_v20, %s10466_s27  ;;  %7462 = vrot.lane.b32.xlu0 %v7461_v8, %s10466_s27  ;;  %v7473_v59 = vpop.permute.xlu2 %7472  ;;  %vm10554_vm3 = vmmov %vm10552_vm0 }
 0xaf4   : > { %7487 = vrot.lane.b32.xlu2 %v7486_v28, %s10466_s27  ;;  %v6113_v32 = vunpack.c.l.bf16 %v6104_v61  ;;  %v7475_v41 = vunpack.i.h.bf16 %v7473_v59  ;;  %v7474_v11 = vunpack.i.l.bf16 %v7473_v59  ;;  %vm10555_vm5 = vmmov %vm10552_vm0 }
 0xaf6   : > { %v6282_v37 = vsel %vm1352_vm4, %v7474_v11, %v7475_v41  ;;  %v6288_v60 = vmul.f32 %v7475_v41, %v10033_v14 }
 0xaf7   : > { %v6293_v61 = vmul.f32 %v6282_v37, %v9929_v12 }
 0xafb   : > { %v7443_v45 = vpop.permute.xlu1 %7442  ;;  %7477 = vrot.lane.b32.xlu0 %v7476_v9, %s10466_s27 }
 0xafc   : > { %v7445_v13 = vunpack.i.h.bf16 %v7443_v45  ;;  %v7444_v23 = vunpack.i.l.bf16 %v7443_v45  ;;  %v10113_v31 = vpop.permute.xlu0 %7437 }
 0xafd   : > { %v7440_v44 = vunpack.i.h.bf16 %v10113_v31 }
 0xafe   : > { %v6042_v1 = vsel %vm1207_vm10, %v7445_v13, %v7449_v25  ;;  %v10118_v35 = vadd.f32 %v7445_v13, %v5948_v21  ;;  %v5771_v25 = vadd.f32 %v10037_v58, %v5670_v52  ;;  %v6286_v13 = vmul.f32 %v7474_v11, %v10534_v22 }
 0xaff   : > { %v10121_v29 = vadd.f32 %v6042_v1, %v5949_v40  ;;  %v6041_v16 = vsel %vm1207_vm10, %v7440_v44, %v7444_v23  ;;  %v6287_v23 = vmul.f32 %v6282_v37, %v10535_v49  ;;  %v6289_v52 = vmul.f32 %v7474_v11, %v9918_v36 }
 0xb00   : > { %v10129_v51 = vadd.f32 %v6041_v16, %v10064_v18  ;;  %v5874_v3 = vadd.f32 %v10077_v63, %v5771_v25  ;;  %v6291_v16 = vmul.f32 %v7475_v41, %v10035_v17  ;;  %v6292_v25 = vmul.f32 %v7474_v11, %v10536_v47 }
 0xb02   : > { %v5953_v39 = vadd.f32 %v7430_v10, %v5874_v3 }
 0xb03   : > { %v6039_v53 = vpop.permute.xlu1 %6038  ;;  %6139 = vrot.lane.b32.xlu0 %v6113_v32, %s10466_s27  ;;  %v7526_v32 = vpack.i.bf16 %v6293_v61, %v6292_v25 }
 0xb04   : > { %v10135_v19 = vpop.permute.xlu0 %7452 }
 0xb05   : > { %v7455_v24 = vunpack.i.h.bf16 %v10135_v19 }
 0xb07   : > { %v6045_v18 = vsel %vm1207_vm10, %v7455_v24, %v6039_v53 }
 0xb08   : > { %v10144_v56 = vadd.f32 %v6045_v18, %v5953_v39  ;;  %v7511_v39 = vpack.i.bf16 %v6287_v23, %v6286_v13  ;;  %v6371_v18 = vld [vmem:[%s10352_s12 + $0x8] sm:$0xff]  ;;  %v7414_v23 = vunpack.i.l.bf16 %v10074_v48 }
 0xb0b   : > { %v7468_v63 = vpop.permute.xlu1 %7467 }
 0xb0c   : > { %v7470_v0 = vunpack.i.h.bf16 %v7468_v63  ;;  %v7469_v33 = vunpack.i.l.bf16 %v7468_v63 }
 0xb0e   : > { %v6187_v7 = vmul.f32 %v7470_v0, %v10033_v14  ;;  %v6190_v6 = vmul.f32 %v7470_v0, %v10035_v17  ;;  %v6181_v20 = vsel %vm760_vm6, %v7469_v33, %v7470_v0  ;;  %v6185_v8 = vmul.f32 %v7469_v33, %v10534_v22 }
 0xb0f   : > { %v6186_v28 = vmul.f32 %v6181_v20, %v10535_v49  ;;  %v6188_v5 = vmul.f32 %v7469_v33, %v9918_v36  ;;  %v6189_v2 = vmul.f32 %v6181_v20, %v9920_v27  ;;  %v6191_v45 = vmul.f32 %v7469_v33, %v10536_v47 }
 0xb10   : > { %v6192_v21 = vmul.f32 %v6181_v20, %v9929_v12  ;;  %v6193_v55 = vmul.f32 %v7470_v0, %v10041_v26  ;;  %v6290_v22 = vmul.f32 %v6282_v37, %v9920_v27  ;;  %v7516_v36 = vpack.i.bf16 %v6289_v52, %v6288_v60  ;;  %v6370_v27 = vld [vmem:[%s10352_s12] sm:$0xff]  ;;  %v10539_v0 = vld [vmem:[#allocation16_spill] sm:$0xff] }
 0xb11   : > { %v7496_v40 = vpack.i.bf16 %v6188_v5, %v6187_v7  ;;  %v7491_v1 = vpack.i.bf16 %v6186_v28, %v6185_v8  ;;  %v7501_v9 = vpack.i.bf16 %v6190_v6, %v6189_v2  ;;  %v6294_v17 = vmul.f32 %v7475_v41, %v10041_v26  ;;  %v6372_v26 = vld [vmem:[%s10352_s12 + $0x10] sm:$0xff]  ;;  %v10540_v7 = vld [vmem:[#allocation15_spill] sm:$0xff] }
 0xb12   : > { %v6199_v49 = vpack.c.bf16 %v6193_v55, %v6193_v55  ;;  %v7506_v3 = vpack.i.bf16 %v6192_v21, %v6191_v45  ;;  %v7521_v14 = vpack.i.bf16 %v6291_v16, %v6290_v22  ;;  %v5549_v33 = vmul.f32 %v10539_v0, %v9671_v34 }
 0xb13   : > { %7497 = vrot.lane.b32.xlu2 %v7496_v40, %s10470_s19  ;;  %7492 = vrot.lane.b32.xlu1 %v7491_v1, %s10470_s19  ;;  %v6300_v12 = vpack.c.bf16 %v6294_v17, %v6294_v17  ;;  %v5550_v6 = vmul.f32 %v9853_v54, %v10540_v7  ;;  %v7365_v37 = vunpack.i.h.bf16 %v9950_v46  ;;  %v7364_v28 = vunpack.i.l.bf16 %v9950_v46 }
 0xb14   : > { %7502 = vrot.lane.b32.xlu0 %v7501_v9, %s10470_s19  ;;  %v6208_v53 = vunpack.c.l.bf16 %v6199_v49  ;;  %v7395_v45 = vunpack.i.h.bf16 %v10039_v57  ;;  %v7394_v21 = vunpack.i.l.bf16 %v10039_v57  ;;  %v7439_v46 = vunpack.i.l.bf16 %v10113_v31 }
 0xb15   : > { %v6309_v47 = vunpack.c.l.bf16 %v6300_v12  ;;  %v5556_v5 = vpack.c.bf16 %v5550_v6, %v5549_v33  ;;  %v5651_v34 = vsel %vm1849_vm8, %v7364_v28, %v7365_v37  ;;  %v5652_v54 = vsel %vm1849_vm8, %v7365_v37, %v7369_v42 }
 0xb16   : > { %v5752_v40 = vsel %vm1745_vm1, %v7394_v21, %v7395_v45  ;;  %v5753_v60 = vsel %vm1745_vm1, %v7395_v45, %v10037_v58  ;;  %v5855_v22 = vsel %vm1421_vm14, %v7414_v23, %v7415_v62  ;;  %v7429_v49 = vunpack.i.l.bf16 %v10103_v15 }
 0xb17   : > { %v5564_v13 = vunpack.c.l.bf16 %v5556_v5  ;;  %v5565_v55 = vunpack.c.h.bf16 %v5556_v5  ;;  %v6040_v61 = vsel %vm1207_vm10, %v7439_v46, %v7440_v44  ;;  %vm10541_vm6 = vcmask 785408  }
 0xb18   : > { %v5935_v62 = vsel %vm1317_vm12, %v7429_v49, %v7430_v10  ;;  %v6056_v17 = vadd.f32 %v6040_v61, %v10072_v30  ;;  %vm10543_vm8 = vmmov %vm10541_vm6 }
 0xb19   : > { %v5668_v9 = vadd.f32 %v5651_v34, %v5564_v13  ;;  %v5669_v16 = vadd.f32 %v5652_v54, %v5565_v55  ;;  %vm10545_vm12 = vmmov %vm10541_vm6 }
 0xb1a   : > { %vm10546_vm14 = vmmov %vm10541_vm6 }
 0xb1b   : > { %6234 = vrot.lane.b32.xlu2 %v6208_v53, %s10470_s19  ;;  %7507 = vrot.lane.b32.xlu1 %v7506_v3, %s10470_s19  ;;  %v5769_v42 = vadd.f32 %v5752_v40, %v5668_v9  ;;  %v5770_v25 = vadd.f32 %v5753_v60, %v5669_v16  ;;  %vm10547_vm1 = vmmov %vm10541_vm6 }
 0xb1c   : > { %7512 = vrot.lane.b32.xlu0 %v7511_v39, %s10474_s3 }
 0xb1d   : > { %v5873_v39 = vadd.f32 %v10083_v4, %v5770_v25 }
 0xb1f   : > { %v5952_v7 = vadd.f32 %v5935_v62, %v5873_v39 }
 0xb23   : > { %7522 = vrot.lane.b32.xlu2 %v7521_v14, %s10474_s3  ;;  %7517 = vrot.lane.b32.xlu1 %v7516_v36, %s10474_s3  ;;  %v5872_v14 = vadd.f32 %v5855_v22, %v5769_v42  ;;  %v6055_v36 = vadd.f32 %v7439_v46, %v10070_v38  ;;  %v7454_v38 = vunpack.i.l.bf16 %v10135_v19 }
 0xb24   : > { %7527 = vrot.lane.b32.xlu0 %v7526_v32, %s10474_s3 }
 0xb25   : > { %v5951_v32 = vadd.f32 %v7429_v49, %v5872_v14  ;;  %v6044_v23 = vsel %vm1207_vm10, %v7454_v38, %v7455_v24  ;;  %vm10550_vm10 = vmmov %vm10542_vm7 }
 0xb2b   : > { %6375 = vperm.xlu2 %7290, %v6370_v27   ;;  %6335 = vrot.lane.b32.xlu1 %v6309_v47, %s10474_s3  ;;  %s7067_s3 = smul.u32 176, %s7714_s29  ;;  %s10559_s29 = sand.u32 1, %s7587_s26  }
 0xb2c   : > { %6380 = vperm.xlu0 %7133, %v6371_v18   ;;  %s6443_s24 = scalar_lea.sflag [#allocation7], %s10559_s29 }
 0xb2d   : > { %s6454_s17 = scalar_lea.hbm %s10353_s13, %s7067_s3 }
 0xb2e   : > { %s6457_s23 = sshll.u32 %s6454_s17, 4  ;;  %s6458_s23 = int_to_ptr.hbm [resolvable:$true] %s6457_s23 }
 0xb2f   : > { %s7547_s6 = sshra.s32 %s6458_s23, 4  ;;  %s7548_s6 = int_to_ptr.hbm [resolvable:$true] %s7547_s6 }
 0xb30   : > { %s7549_s16 = scalar_lea.hbm %s7548_s6, 176  ;;  %p7554_p0 = scmp.lt.s32.totalorder %s7548_s6, %s10353_s13 }
 0xb31   : > { %p7550_p11 = scmp.ne.s32.totalorder %s7548_s6, %s7549_s16  ;;  %p7555_p1 = scmp.lt.s32.totalorder %s7553_s14, %s7549_s16 }
 0xb33   : > { %6385 = vperm.xlu1 %7244, %v6372_v26   ;;  %p7551_p12 = pnand %p7550_p11, %p7731_p5  ;;  %p7556_p2 = por %p7555_p1, %p7554_p0 }
 0xb35   : > { %p7552_p13 = pneg %p7551_p12 }
 0xb37   : > { %p7557_p3 = pnand %p7556_p2, %p7552_p13 }
 0xb4e   : > { %v10187_v41 = vpop.permute.xlu2 %7487 }
 0xb4f   : > { %v7490_v15 = vunpack.i.h.bf16 %v10187_v41  ;;  %v7489_v26 = vunpack.i.l.bf16 %v10187_v41 }
 0xb51   : > { %v6145_v55 = vsel %vm10547_vm1, %v7489_v26, %v7490_v15 }
 0xb65   : > { %v10185_v59 = vpop.permute.xlu0 %7462  ;;  %v10197_v20 = vpop.permute.xlu1 %7482 }
 0xb66   : > { %v7465_v52 = vunpack.i.h.bf16 %v10185_v59  ;;  %v7464_v43 = vunpack.i.l.bf16 %v10185_v59  ;;  %v7485_v31 = vunpack.i.h.bf16 %v10197_v20  ;;  %v7484_v44 = vunpack.i.l.bf16 %v10197_v20 }
 0xb68   : > { %v6141_v48 = vsel %vm10541_vm6, %v7464_v43, %v7465_v52  ;;  %v6156_v12 = vadd.f32 %v7464_v43, %v6055_v36  ;;  %v6144_v6 = vsel %vm10543_vm8, %v7484_v44, %v7485_v31  ;;  %v6061_v31 = vadd.f32 %v7454_v38, %v5951_v32  ;;  %vm10556_vm6 = vmmov %vm10547_vm1 }
 0xb69   : > { %v6157_v18 = vadd.f32 %v6141_v48, %v6056_v17  ;;  %vm10558_vm8 = vmmov %vm10552_vm0 }
 0xb6d   : > { %v10189_v11 = vpop.permute.xlu0 %7477  ;;  %v10191_v63 = vpop.permute.xlu2 %7497 }
 0xb6e   : > { %v7480_v27 = vunpack.i.h.bf16 %v10189_v11  ;;  %v7479_v10 = vunpack.i.l.bf16 %v10189_v11  ;;  %v7500_v28 = vunpack.i.h.bf16 %v10191_v63  ;;  %v7499_v11 = vunpack.i.l.bf16 %v10191_v63 }
 0xb70   : > { %v6159_v5 = vadd.f32 %v7480_v27, %v10118_v35  ;;  %v6143_v34 = vsel %vm10545_vm12, %v7480_v27, %v7484_v44  ;;  %v6142_v13 = vsel %vm10546_vm14, %v7465_v52, %v7479_v10  ;;  %v6161_v35 = vadd.f32 %v6144_v6, %v10092_v50 }
 0xb71   : > { %v6158_v16 = vadd.f32 %v6142_v13, %v10129_v51  ;;  %v6160_v19 = vadd.f32 %v6143_v34, %v10121_v29  ;;  %v6062_v44 = vadd.f32 %v6044_v23, %v5952_v7  ;;  %v6162_v10 = vadd.f32 %v7489_v26, %v6061_v31 }
 0xb72   : > { %v6254_v43 = vadd.f32 %v7500_v28, %v6159_v5 }
 0xb75   : > { %v10199_v8 = vpop.permute.xlu0 %6139  ;;  %v10203_v2 = vpop.permute.xlu2 %6234 }
 0xb76   : > { %v6146_v26 = vsel %vm10556_vm6, %v7490_v15, %v10199_v8 }
 0xb7d   : > { %v10227_v3 = vpop.permute.xlu2 %7522 }
 0xb7e   : > { %v7524_v42 = vunpack.i.l.bf16 %v10227_v3 }
 0xb85   : > { %v7493_v1 = vpop.permute.xlu1 %7492  ;;  %v6376_v46 = vpop.permute.xlu2 %6375 }
 0xb86   : > { %v10216_v57 = vpop.permute.xlu0 %7502  ;;  %v7495_v58 = vunpack.i.h.bf16 %v7493_v1  ;;  %v7494_v53 = vunpack.i.l.bf16 %v7493_v1 }
 0xb87   : > { %v7504_v37 = vunpack.i.l.bf16 %v10216_v57  ;;  %v7505_v63 = vunpack.i.h.bf16 %v10216_v57 }
 0xb88   : > { %v6236_v4 = vsel %vm10542_vm7, %v7494_v53, %v7495_v58  ;;  %v6251_v59 = vadd.f32 %v7494_v53, %v6156_v12  ;;  %v6237_v1 = vsel %vm10548_vm11, %v7495_v58, %v7499_v11  ;;  %v7525_v12 = vunpack.i.h.bf16 %v10227_v3  ;;  %vm10557_vm7 = vmmov %vm10553_vm2 }
 0xb89   : > { %v6252_v20 = vadd.f32 %v6236_v4, %v6157_v18  ;;  %v6238_v9 = vsel %vm10549_vm13, %v7500_v28, %v7504_v37  ;;  %v6253_v61 = vadd.f32 %v6237_v1, %v6158_v16  ;;  %v6239_v51 = vsel %vm10550_vm10, %v7504_v37, %v7505_v63 }
 0xb8a   : > { %v6255_v58 = vadd.f32 %v6238_v9, %v6160_v19  ;;  %v6256_v27 = vadd.f32 %v6239_v51, %v6161_v35  ;;  %v6164_v11 = vadd.f32 %v6146_v26, %v10144_v56 }
 0xb8d   : > { %v10240_v47 = vpop.permute.xlu1 %7507 }
 0xb8e   : > { %v7513_v30 = vpop.permute.xlu0 %7512  ;;  %v7510_v57 = vunpack.i.h.bf16 %v10240_v47  ;;  %v7509_v53 = vunpack.i.l.bf16 %v10240_v47 }
 0xb8f   : > { %v7515_v0 = vunpack.i.h.bf16 %v7513_v30  ;;  %v7514_v33 = vunpack.i.l.bf16 %v7513_v30  ;;  %v6163_v30 = vadd.f32 %v6145_v55, %v6062_v44 }
 0xb90   : > { %v6240_v4 = vsel %vm10553_vm2, %v7509_v53, %v7510_v57  ;;  %v6257_v37 = vadd.f32 %v7509_v53, %v6162_v10 }
 0xb91   : > { %v6337_v45 = vsel %vm10544_vm9, %v7514_v33, %v7515_v0  ;;  %v6352_v21 = vadd.f32 %v7514_v33, %v6251_v59  ;;  %v6258_v28 = vadd.f32 %v6240_v4, %v6163_v30 }
 0xb92   : > { %v6353_v54 = vadd.f32 %v6337_v45, %v6252_v20  ;;  %v6340_v20 = vsel %vm10555_vm5, %v7524_v42, %v7525_v12 }
 0xb93   : > { %v6361_v40 = vmul.f32 0.11111111, %v6352_v21  ;;  %v6357_v38 = vadd.f32 %v6340_v20, %v6256_v27  ;;  %v6241_v21 = vsel %vm10557_vm7, %v7510_v57, %v10203_v2 }
 0xb94   : > { %v6362_v60 = vmul.f32 0.11111111, %v6353_v54  ;;  %v6259_v41 = vadd.f32 %v6241_v21, %v6164_v11 }
 0xb95   : > { %v6388_v24 = vadd.f32 %v6376_v46, %v6361_v40  ;;  %v7518_v52 = vpop.permute.xlu1 %7517  ;;  %v6366_v34 = vmul.f32 0.11111111, %v6357_v38 }
 0xb96   : > { %v7520_v22 = vunpack.i.h.bf16 %v7518_v52  ;;  %v7519_v50 = vunpack.i.l.bf16 %v7518_v52  ;;  %v7528_v49 = vpop.permute.xlu0 %7527  ;;  %v6389_v25 = vadd.f32 %v6376_v46, %v6362_v60 }
 0xb97   : > { %6406 = vrot.lane.b32.xlu2 %v6388_v24, %s10449_s20  ;;  %v7530_v14 = vunpack.i.h.bf16 %v7528_v49  ;;  %v7529_v62 = vunpack.i.l.bf16 %v7528_v49 }
 0xb98   : > { %v6339_v29 = vsel %vm10551_vm15, %v7520_v22, %v7524_v42  ;;  %v6338_v39 = vsel %vm10552_vm0, %v7515_v0, %v7519_v50  ;;  %6408 = vrot.lane.b32.xlu0 %v6389_v25, %s10449_s20  ;;  %v6355_v48 = vadd.f32 %v7520_v22, %v6254_v43 }
 0xb99   : > { %v6354_v36 = vadd.f32 %v6338_v39, %v6253_v61  ;;  %v6356_v17 = vadd.f32 %v6339_v29, %v6255_v58  ;;  %v6341_v0 = vsel %vm10554_vm3, %v7529_v62, %v7530_v14  ;;  %v6358_v5 = vadd.f32 %v7529_v62, %v6257_v37 }
 0xb9a   : > { %v6364_v59 = vmul.f32 0.11111111, %v6355_v48  ;;  %v6359_v45 = vadd.f32 %v6341_v0, %v6258_v28 }
 0xb9b   : > { %v6363_v47 = vmul.f32 0.11111111, %v6354_v36  ;;  %v6365_v18 = vmul.f32 0.11111111, %v6356_v17  ;;  %v6367_v13 = vmul.f32 0.11111111, %v6358_v5 }
 0xb9c   : > { %v6368_v23 = vmul.f32 0.11111111, %v6359_v45 }
 0xb9d   : > { %v6336_v33 = vpop.permute.xlu1 %6335  ;;  %v6390_v6 = vadd.f32 %v6376_v46, %v6363_v47 }
 0xb9e   : > { %v6381_v32 = vpop.permute.xlu0 %6380  ;;  %v6342_v54 = vsel %vm10558_vm8, %v7530_v14, %v6336_v33 }
 0xb9f   : > { %v6391_v7 = vadd.f32 %v6381_v32, %v6364_v59  ;;  %v6392_v3 = vadd.f32 %v6381_v32, %v6365_v18  ;;  %6410 = vrot.lane.b32.xlu1 %v6390_v6, %s10449_s20  ;;  %v6393_v55 = vadd.f32 %v6381_v32, %v6366_v34  ;;  %v6360_v40 = vadd.f32 %v6342_v54, %v6259_v41 }
 0xba1   : > { %6414 = vrot.lane.b32.xlu0 %v6392_v3, %s10449_s20  ;;  %6412 = vrot.lane.b32.xlu2 %v6391_v7, %s10449_s20  ;;  %v6369_v56 = vmul.f32 0.11111111, %v6360_v40 }
 0xba5   : > { %v6386_v8 = vpop.permute.xlu1 %6385 }
 0xba6   : > { %v6394_v15 = vadd.f32 %v6386_v8, %v6367_v13  ;;  %v6395_v35 = vadd.f32 %v6386_v8, %v6368_v23  ;;  %v6396_v2 = vadd.f32 %v6386_v8, %v6369_v56 }
 0xba7   : > { %6416 = vrot.lane.b32.xlu1 %v6393_v55, %s10449_s20 }
 0xba9   : > { %6420 = vrot.lane.b32.xlu0 %v6395_v35, %s10449_s20  ;;  %6418 = vrot.lane.b32.xlu2 %v6394_v15, %s10449_s20 }
 0xbaf   : > { %6422 = vrot.lane.b32.xlu1 %v6396_v2, %s10449_s20 }
 0xbf1   : > { %v6407_v46 = vpop.permute.xlu2 %6406 }
 0xbfb   : > { %v6413_v9 = vpop.permute.xlu2 %6412 }
 0xc03   : > { %v6419_v42 = vpop.permute.xlu2 %6418 }
 0xc0a   : > { %v6409_v1 = vpop.permute.xlu0 %6408 }
 0xc0b   : > { %v6424_v63 = vsel %vm1352_vm4, %v6407_v46, %v6409_v1 }
 0xc0c   : > { %6436 = vst [vmem:[%s8221_s0 + $0x80] sm:$0xff] %v6424_v63 }
 0xc11   : > { %v6411_v60 = vpop.permute.xlu1 %6410 }
 0xc12   : > { %v6425_v16 = vsel %vm1352_vm4, %v6409_v1, %v6411_v60 }
 0xc13   : > { %6437 = vst [vmem:[%s8221_s0 + $0x88] sm:$0xff] %v6425_v16  ;;  %v6415_v19 = vpop.permute.xlu0 %6414 }
 0xc14   : > { %v6426_v24 = vsel %vm1352_vm4, %v6413_v9, %v6415_v19 }
 0xc15   : > { %6438 = vst [vmem:[%s8221_s0 + $0x90] sm:$0xff] %v6426_v24 }
 0xc19   : > { %v6417_v52 = vpop.permute.xlu1 %6416 }
 0xc1a   : > { %v6427_v43 = vsel %vm1352_vm4, %v6415_v19, %v6417_v52 }
 0xc1b   : > { %6439 = vst [vmem:[%s8221_s0 + $0x98] sm:$0xff] %v6427_v43  ;;  %v6421_v22 = vpop.permute.xlu0 %6420 }
 0xc1c   : > { %v6428_v50 = vsel %vm1352_vm4, %v6419_v42, %v6421_v22 }
 0xc1d   : > { %6440 = vst [vmem:[%s8221_s0 + $0xa0] sm:$0xff] %v6428_v50 }
 0xc21   : > { %v6423_v49 = vpop.permute.xlu1 %6422 }
 0xc22   : > { %v6429_v25 = vsel %vm1352_vm4, %v6421_v22, %v6423_v49 }
 0xc23   : > { %6441 = vst [vmem:[%s8221_s0 + $0xa8] sm:$0xff] %v6429_v25 }
 0xc24   : > { %7560 = shalt.err (!%p7557_p3)
}
 0xc25   : > { %s7622_s0 = smov 256  }
 0xc26   : > { %7068 = dma.vmem_to_hbm [thread:$0]  (%p7731_p5), %s6456_s21, 2816, %s6458_s23, %s6443_s24, %s7622_s0, %s7622_s0, %s10445_s22  }
 0xc27 PF: > { %s10560_s27 = sld [smem:[#allocation11_spill]] }
 0xc28   : > { %s10561_s19 = sld [smem:[#allocation9_spill]] }
 0xc2d   : > { %p7074_p4 = scmp.ge.s32.totalorder %s10560_s27, 2 }
 0xc2e   : > { %s6472_s5 = sand.u32 1, %s10561_s19  }
 0xc2f   : > { %p7071_p7 = pnand %p7074_p4, %p7735_p6  ;;  %s6473_s3 = scalar_lea.sflag [#allocation7], %s6472_s5 }
 0xc31   : > { %p7072_p8 = pneg %p7071_p7 }
 0xc33   : > { %7578 = dma.done.wait (%p7072_p8), %s6473_s3, 2816  }
 0xc34   : > { %7580 = vsyncadd (%p7072_p8), %s6473_s3, 4294964480  ;;  %s10563_s28 = sld [smem:[#allocation12_spill]]  ;;  %s10566_s25 = smov %s7587_s26 }
 0xc35   : > { %s10564_s20 = sld [smem:[#allocation10_spill]] }
 0xc36   : > { %s10565_s27 = sld [smem:[#allocation13_spill]] }
 0xc3a   : > { %p23_p9 = scmp.ge.s32.totalorder %s10563_s28, 4  }
 0xc3b   : > { %s10567_s26 = smov %s10564_s20 }
 0xc3c   :  { %25 = sbr.rel (!%p23_p9) target bundleno = 10 (0xa), region = 147 }
 0xc41   :  { %6479 = vsyncpa [#allocation7], 1 }
 0xc42   :  { %6481 = vsyncpa [#allocation7 + $0x1], 1 }

</bundles_post_ra>
